<compile_context>
chip_gen: v7x
topology: tpu7x:2x2x1
jax: 0.10.0
libtpu: 0.0.40
codegen_flags: <defaults>
</compile_context>

<pallas_src>
import functools

import numpy as np
import jax
import jax.numpy as jnp
from jax import lax
from jax.experimental import pallas as pl
from jax.experimental.pallas import tpu as pltpu

K = 5  # conv kernel size used by every conv layer


# -----------------------------------------------------------------------------
# Small in-kernel helpers (pure, well-supported ops only).
# -----------------------------------------------------------------------------
def _pad_matrix(tp, t, pad):
    """(tp, t) 0/1 matrix P with P[pad+i, i] = 1: P @ x == zero-padded x."""
    r = lax.broadcasted_iota(jnp.int32, (tp, t), 0)
    c = lax.broadcasted_iota(jnp.int32, (tp, t), 1)
    return (r - pad == c).astype(jnp.float32)


def _taps(xpad, t, dil):
    """List of K shifted (t, C) views of a zero-padded (t+2*pad, C) value."""
    return [xpad[k * dil:k * dil + t, :] for k in range(K)]


# -----------------------------------------------------------------------------
# Kernel A: fused CNNextractor (both dilation branches, both layers).
# -----------------------------------------------------------------------------
def extractor_kernel(x_ref, w1_ref, b1_ref, w2_ref, b2_ref, o_ref):
    x = x_ref[0]                                   # (T, Cin) f32
    t = x.shape[0]
    f = o_ref.shape[-1]
    half = f // 2

    pm1 = _pad_matrix(t + 4, t, 2)                 # dilation 1 -> pad 2
    pm2 = _pad_matrix(t + 8, t, 4)                 # dilation 2 -> pad 4

    # layer 1: both branches in ONE im2col matmul, lane-dense 128-ch output
    xp1 = jnp.dot(pm1, x, preferred_element_type=jnp.float32)    # (t+4, Cin)
    xp2 = jnp.dot(pm2, x, preferred_element_type=jnp.float32)    # (t+8, Cin)
    im1 = jnp.concatenate(_taps(xp1, t, 1) + _taps(xp2, t, 2), axis=-1)
    h1 = jnp.maximum(
        jnp.dot(im1, w1_ref[...], preferred_element_type=jnp.float32)
        + b1_ref[...], 0.0)                                       # (t, F)

    # layer 2: branch halves, again one block-diagonal im2col matmul
    h1a = h1[:, :half]
    h1b = h1[:, half:]
    h1ap = jnp.dot(pm1, h1a, preferred_element_type=jnp.float32)  # (t+4, F/2)
    h1bp = jnp.dot(pm2, h1b, preferred_element_type=jnp.float32)  # (t+8, F/2)
    im2 = jnp.concatenate(_taps(h1ap, t, 1) + _taps(h1bp, t, 2), axis=-1)
    x2 = jnp.maximum(
        jnp.dot(im2, w2_ref[...], preferred_element_type=jnp.float32)
        + b2_ref[...], 0.0)                                       # (t, F)

    o_ref[0] = x2.astype(o_ref.dtype)


def feature_extractor(x_cl, params):
    B, T, Cin = x_cl.shape
    F = params["w1"].shape[1]
    return pl.pallas_call(
        extractor_kernel,
        out_shape=jax.ShapeDtypeStruct((B, T, F), jnp.float32),
        grid=(B,),
        in_specs=[
            pl.BlockSpec((1, T, Cin), lambda i: (i, 0, 0)),
            pl.BlockSpec(params["w1"].shape, lambda i: (0, 0)),
            pl.BlockSpec(params["b1"].shape, lambda i: (0, 0)),
            pl.BlockSpec(params["w2"].shape, lambda i: (0, 0)),
            pl.BlockSpec(params["b2"].shape, lambda i: (0, 0)),
        ],
        out_specs=pl.BlockSpec((1, T, F), lambda i: (i, 0, 0)),
        compiler_params=pltpu.CompilerParams(dimension_semantics=("parallel",)),
    )(x_cl, params["w1"], params["b1"], params["w2"], params["b2"])


# -----------------------------------------------------------------------------
# Kernel B: ContextEncoder + fc_sparse + pool + CNNrefinor + fc_dense (fused).
# -----------------------------------------------------------------------------
def head_kernel(x1_ref, x2_ref, wg_ref, bg_ref, pext_ref, fcsb_ref,
                rf1m_ref, rf1c_ref, rf1b_ref, rf2w_ref, rf2b_ref,
                wbig_ref, rmat_ref, fcdb_ref,
                sparse_ref, dense_ref, *, hidden):
    h_dim = hidden
    t = x2_ref.shape[1]
    w_out = fcdb_ref.shape[-1]

    # ---- ContextEncoder: bi-LSTM, seq_len==1, zero (h0,c0) -> one gated step
    x1 = x1_ref[0].astype(jnp.bfloat16)                           # (1, T*F)
    g = (jnp.dot(x1, wg_ref[...], preferred_element_type=jnp.float32)
         + bg_ref[...])                                           # (1, 8H)

    def lstm_dir(off):
        gi = jax.nn.sigmoid(g[:, off:off + h_dim])
        gg = jnp.tanh(g[:, off + 2 * h_dim:off + 3 * h_dim])
        go = jax.nn.sigmoid(g[:, off + 3 * h_dim:off + 4 * h_dim])
        return go * jnp.tanh(gi * gg)                             # f*c0 == 0

    h = jnp.concatenate([lstm_dir(0), lstm_dir(4 * h_dim)], axis=-1)  # (1, 2H)

    # ---- fc_sparse folded into the adaptive-avg-pool matmul (extra column)
    po = jnp.dot(h, pext_ref[...], preferred_element_type=jnp.float32)  # (1,T+1)
    sparse = jax.nn.sigmoid(po[:, t:t + 1] + fcsb_ref[...])             # (1, 1)
    pooled = po[:, :t]                                                  # (1, T)
    sparse_ref[0] = sparse.astype(sparse_ref.dtype)

    # pooled row -> zero-padded time column (T+4, 1): broadcast + diagonal
    # select + lane reduce (no transpose / relayout needed).
    tp = t + 4
    rr = lax.broadcasted_iota(jnp.int32, (tp, t), 0)
    cc = lax.broadcasted_iota(jnp.int32, (tp, t), 1)
    pcol_pad = jnp.sum(
        jnp.where(rr - 2 == cc, jnp.broadcast_to(pooled, (tp, t)), 0.0),
        axis=1, keepdims=True)                                          # (T+4,1)

    # ---- CNNrefinor layer 1: 128-ch part on MXU, 1-ch context part on VPU
    x2 = x2_ref[0]                                                      # (T, F)
    pm1 = _pad_matrix(tp, t, 2)
    x2p = jnp.dot(pm1, x2, preferred_element_type=jnp.float32)          # (T+4,F)
    im_r1 = jnp.concatenate(_taps(x2p, t, 1), axis=-1).astype(jnp.bfloat16)
    r1 = jnp.dot(im_r1, rf1m_ref[...], preferred_element_type=jnp.float32)
    wctx = rf1c_ref[...]                                                # (K, F)
    for k in range(K):
        r1 = r1 + pcol_pad[k:k + t, :] * wctx[k:k + 1, :]
    r1 = jnp.maximum(r1 + rf1b_ref[...], 0.0)                           # (T, F)

    # ---- CNNrefinor layer 2
    r1p = jnp.dot(pm1, r1, preferred_element_type=jnp.float32)          # (T+4,F)
    im_r2 = jnp.concatenate(_taps(r1p, t, 1), axis=-1).astype(jnp.bfloat16)
    r2 = jnp.maximum(
        jnp.dot(im_r2, rf2w_ref[...], preferred_element_type=jnp.float32)
        + rf2b_ref[...], 0.0)                                           # (T, 2F)

    # ---- fc_dense + sigmoid on the un-flattened (T, 2F) activation:
    # dense[j] = sum_{t,c} r2[t,c] * Wd[t*2F+c, j]; computed as
    #   z = r2 @ Wbig;  y = (z * blockdiag_mask) @ R;  dense = sum_t y
    # which avoids an in-kernel (T,2F)->(1,T*2F) relayout.
    z = jnp.dot(r2.astype(jnp.bfloat16), wbig_ref[...],
                preferred_element_type=jnp.float32)                     # (T,T*Wo)
    ri = lax.broadcasted_iota(jnp.int32, (t, t * w_out), 0)
    li = lax.broadcasted_iota(jnp.int32, (t, t * w_out), 1)
    sel = (li >= ri * w_out) & (li < (ri + 1) * w_out)
    y = jnp.dot(jnp.where(sel, z, 0.0), rmat_ref[...],
                preferred_element_type=jnp.float32)                     # (T, Wo)
    dense = jax.nn.sigmoid(jnp.sum(y, axis=0, keepdims=True) + fcdb_ref[...])
    dense_ref[0] = dense.astype(dense_ref.dtype)


def head(x2, params):
    B, T, F = x2.shape
    D = T * F
    H = params["ctx_bg"].shape[1] // 8
    Wout = params["fcd_b"].shape[1]
    x1_flat = x2.reshape(B, 1, D)          # row-major reshape: free, no copy

    def full(a):
        return pl.BlockSpec(a.shape, lambda i, _nd=a.ndim: (0,) * _nd)

    kern = functools.partial(head_kernel, hidden=H)
    sparse, dense = pl.pallas_call(
        kern,
        out_shape=(jax.ShapeDtypeStruct((B, 1, 1), jnp.float32),
                   jax.ShapeDtypeStruct((B, 1, Wout), jnp.float32)),
        grid=(B,),
        in_specs=[
            pl.BlockSpec((1, 1, D), lambda i: (i, 0, 0)),
            pl.BlockSpec((1, T, F), lambda i: (i, 0, 0)),
            full(params["ctx_wg"]), full(params["ctx_bg"]),
            full(params["p_ext"]), full(params["fcs_b"]),
            full(params["rf1_main"]), full(params["rf1_ctx"]), full(params["rf1_b"]),
            full(params["rf2_w"]), full(params["rf2_b"]),
            full(params["fcd_big"]), full(params["fcd_r"]), full(params["fcd_b"]),
        ],
        out_specs=[pl.BlockSpec((1, 1, 1), lambda i: (i, 0, 0)),
                   pl.BlockSpec((1, 1, Wout), lambda i: (i, 0, 0))],
        compiler_params=pltpu.CompilerParams(dimension_semantics=("parallel",)),
    )(x1_flat, x2, params["ctx_wg"], params["ctx_bg"], params["p_ext"],
      params["fcs_b"], params["rf1_main"], params["rf1_ctx"], params["rf1_b"],
      params["rf2_w"], params["rf2_b"], params["fcd_big"], params["fcd_r"],
      params["fcd_b"])
    return sparse.reshape(B), dense.reshape(B, Wout)


# -----------------------------------------------------------------------------
# Parameter construction (weights assembled host-side into kernel-friendly form)
# -----------------------------------------------------------------------------
def adaptive_avg_pool_matrix(in_len, out_len):
    """Exact nn.AdaptiveAvgPool1d(out_len) as an (in_len, out_len) matrix."""
    P = np.zeros((in_len, out_len), np.float32)
    for j in range(out_len):
        s = (j * in_len) // out_len
        e = -((-(j + 1) * in_len) // out_len)
        P[s:e, j] = 1.0 / (e - s)
    return P


def init_params(key, *, in_channels, base_filters, window_size, lstm_hidden):
    F = base_filters
    half = F // 2
    T = window_size
    D = T * F
    H = lstm_hidden
    G = 8 * H
    Wout = T                      # n_classes == 1
    keys = jax.random.split(key, 12)

    def w(k, shape, fan_in):
        return np.asarray(jax.random.normal(k, shape, jnp.float32)) / np.sqrt(fan_in)

    # CNNextractor: branch A (dilation 1) and branch B (dilation 2) merged into
    # block-structured im2col weights with lane-dense 128-channel outputs.
    fe1a = w(keys[0], (K, in_channels, half), K * in_channels)
    fe1b = w(keys[1], (K, in_channels, half), K * in_channels)
    fe2a = w(keys[2], (K, half, half), K * half)
    fe2b = w(keys[3], (K, half, half), K * half)
    w1 = np.zeros((2 * K * in_channels, F), np.float32)
    w1[:K * in_channels, :half] = fe1a.reshape(K * in_channels, half)
    w1[K * in_channels:, half:] = fe1b.reshape(K * in_channels, half)
    w2 = np.zeros((2 * K * half, F), np.float32)
    w2[:K * half, :half] = fe2a.reshape(K * half, half)
    w2[K * half:, half:] = fe2b.reshape(K * half, half)
    b1 = np.zeros((1, F), np.float32)
    b2 = np.zeros((1, F), np.float32)

    # ContextEncoder: bi-LSTM input weights (4 gates x 2 directions), bf16.
    ctx_wg = w(keys[4], (D, G), D)
    ctx_bg = np.zeros((1, G), np.float32)

    # AdaptiveAvgPool1d(T) over the 200-dim context, with fc_sparse folded in
    # as an extra output column.
    pool = adaptive_avg_pool_matrix(2 * H, T)
    fcs_w = w(keys[5], (2 * H, 1), 2 * H)
    p_ext = np.concatenate([pool, fcs_w], axis=1)          # (2H, T+1)
    fcs_b = np.zeros((1, 1), np.float32)

    # CNNrefinor: in (F+1) -> F -> 2F; the pooled-context channel is split out.
    rf1_main = w(keys[6], (K, F, F), K * (F + 1)).reshape(K * F, F)
    rf1_ctx = w(keys[7], (K, F), K * (F + 1))
    rf1_b = np.zeros((1, F), np.float32)
    rf2 = w(keys[8], (K, F, 2 * F), K * F).reshape(K * F, 2 * F)
    rf2_b = np.zeros((1, 2 * F), np.float32)

    # fc_dense(T*2F -> Wout), re-laid-out for the flatten-free in-kernel form.
    fcd = w(keys[9], (T * 2 * F, Wout), T * 2 * F)         # time-major flatten
    wd3 = fcd.reshape(T, 2 * F, Wout)
    fcd_big = np.transpose(wd3, (1, 0, 2)).reshape(2 * F, T * Wout)
    fcd_r = np.tile(np.eye(Wout, dtype=np.float32), (T, 1))  # (T*Wout, Wout)
    fcd_b = np.zeros((1, Wout), np.float32)

    f32 = lambda a: jnp.asarray(a, jnp.float32)
    bf16 = lambda a: jnp.asarray(a, jnp.bfloat16)
    return dict(
        w1=f32(w1), b1=f32(b1), w2=f32(w2), b2=f32(b2),
        ctx_wg=bf16(ctx_wg), ctx_bg=f32(ctx_bg),
        p_ext=f32(p_ext), fcs_b=f32(fcs_b),
        rf1_main=bf16(rf1_main), rf1_ctx=f32(rf1_ctx), rf1_b=f32(rf1_b),
        rf2_w=bf16(rf2), rf2_b=f32(rf2_b),
        fcd_big=bf16(fcd_big), fcd_r=f32(fcd_r), fcd_b=f32(fcd_b),
    )


# -----------------------------------------------------------------------------
# Full forward pass.
# -----------------------------------------------------------------------------
@jax.jit
def prectime_forward(x, params):
    """x: (B, n_channels, n_timesteps), n_timesteps == window_size."""
    x_cl = jnp.transpose(x, (0, 2, 1))              # channels-last (B, T, Cin)
    x2 = feature_extractor(x_cl, params)            # (B, T, 128)
    sparse, dense = head(x2, params)                # (B,), (B, T)
    return {"sparse_predictions": sparse, "dense_predictions": dense}


if __name__ == "__main__":
    batch = 2
    in_channels = 4
    window_size = 16           # n_timesteps == cfg.dataset.window_size
    base_filters = 128         # hard-coded in PrecTimeModel.__init__
    lstm_hidden = 100          # bi-LSTM => 200-dim context (fc_sparse in_features)

    key = jax.random.PRNGKey(0)
    k_param, k_x = jax.random.split(key)
    params = init_params(k_param, in_channels=in_channels,
                         base_filters=base_filters,
                         window_size=window_size,
                         lstm_hidden=lstm_hidden)
    x = jax.random.normal(k_x, (batch, in_channels, window_size), jnp.float32)

    out = prectime_forward(x, params)
    out = jax.block_until_ready(out)

    assert out["sparse_predictions"].shape == (batch,)
    assert out["dense_predictions"].shape == (batch, window_size)
    assert bool(jnp.all(jnp.isfinite(out["sparse_predictions"])))
    assert bool(jnp.all(jnp.isfinite(out["dense_predictions"])))
    print("KERNEL_OK")
</pallas_src>

<mosaic_0001>
module attributes {stable_mosaic.version = 11 : i64} {
  func.func @extractor_kernel(%arg0: i32, %arg1: memref<1x16x4xf32, #tpu.memory_space<vmem>>, %arg2: memref<40x128xf32, #tpu.memory_space<vmem>>, %arg3: memref<1x128xf32, #tpu.memory_space<vmem>>, %arg4: memref<640x128xf32, #tpu.memory_space<vmem>>, %arg5: memref<1x128xf32, #tpu.memory_space<vmem>>, %arg6: memref<1x16x128xf32, #tpu.memory_space<vmem>>) attributes {dimension_semantics = [#tpu.dimension_semantics<parallel>], iteration_bounds = array<i64: 2>, scalar_prefetch = 0 : i64, scratch_operands = 0 : i64, tpu.core_type = #tpu.core_type<tc>, window_params = [{transform_indices = @transform_0, window_bounds = array<i64: 1, 16, 4>}, {pipeline_mode = #tpu.pipeline_mode<synchronous>, transform_indices = @transform_1, window_bounds = array<i64: 40, 128>}, {pipeline_mode = #tpu.pipeline_mode<synchronous>, transform_indices = @transform_2, window_bounds = array<i64: 1, 128>}, {pipeline_mode = #tpu.pipeline_mode<synchronous>, transform_indices = @transform_3, window_bounds = array<i64: 640, 128>}, {pipeline_mode = #tpu.pipeline_mode<synchronous>, transform_indices = @transform_4, window_bounds = array<i64: 1, 128>}, {transform_indices = @transform_5, window_bounds = array<i64: 1, 16, 128>}]} {
    %c0 = arith.constant 0 : index
    %c0_0 = arith.constant 0 : index
    %c0_1 = arith.constant 0 : index
    %0 = vector.load %arg1[%c0, %c0_0, %c0_1] : memref<1x16x4xf32, #tpu.memory_space<vmem>>, vector<1x16x4xf32>
    %1 = vector.shape_cast %0 : vector<1x16x4xf32> to vector<16x4xf32>
    %2 = tpu.iota {dimensions = array<i32: 0>} : vector<20x16xi32>
    %3 = tpu.iota {dimensions = array<i32: 1>} : vector<20x16xi32>
    %c2_i32 = arith.constant 2 : i32
    %4 = vector.broadcast %c2_i32 : i32 to vector<20x16xi32>
    %5 = arith.subi %2, %4 : vector<20x16xi32>
    %6 = arith.cmpi eq, %5, %3 : vector<20x16xi32>
    %7 = arith.extui %6 : vector<20x16xi1> to vector<20x16xi32>
    %8 = arith.sitofp %7 : vector<20x16xi32> to vector<20x16xf32>
    %9 = tpu.iota {dimensions = array<i32: 0>} : vector<24x16xi32>
    %10 = tpu.iota {dimensions = array<i32: 1>} : vector<24x16xi32>
    %c4_i32 = arith.constant 4 : i32
    %11 = vector.broadcast %c4_i32 : i32 to vector<24x16xi32>
    %12 = arith.subi %9, %11 : vector<24x16xi32>
    %13 = arith.cmpi eq, %12, %10 : vector<24x16xi32>
    %14 = arith.extui %13 : vector<24x16xi1> to vector<24x16xi32>
    %15 = arith.sitofp %14 : vector<24x16xi32> to vector<24x16xf32>
    %cst = arith.constant dense<0.000000e+00> : vector<20x4xf32>
    %16 = tpu.matmul %8, %1, %cst {dimension_numbers = #tpu.dot_dimension_numbers<[1], [0], [0], [1], [0, 0, 1, 1], [], []>} : vector<20x16xf32>, vector<16x4xf32>, vector<20x4xf32> -> vector<20x4xf32>
    %cst_2 = arith.constant dense<0.000000e+00> : vector<24x4xf32>
    %17 = tpu.matmul %15, %1, %cst_2 {dimension_numbers = #tpu.dot_dimension_numbers<[1], [0], [0], [1], [0, 0, 1, 1], [], []>} : vector<24x16xf32>, vector<16x4xf32>, vector<24x4xf32> -> vector<24x4xf32>
    %18 = vector.extract_strided_slice %16 {offsets = [0, 0], sizes = [16, 4], strides = [1, 1]} : vector<20x4xf32> to vector<16x4xf32>
    %19 = vector.extract_strided_slice %16 {offsets = [1, 0], sizes = [16, 4], strides = [1, 1]} : vector<20x4xf32> to vector<16x4xf32>
    %20 = vector.extract_strided_slice %16 {offsets = [2, 0], sizes = [16, 4], strides = [1, 1]} : vector<20x4xf32> to vector<16x4xf32>
    %21 = vector.extract_strided_slice %16 {offsets = [3, 0], sizes = [16, 4], strides = [1, 1]} : vector<20x4xf32> to vector<16x4xf32>
    %22 = vector.extract_strided_slice %16 {offsets = [4, 0], sizes = [16, 4], strides = [1, 1]} : vector<20x4xf32> to vector<16x4xf32>
    %23 = vector.extract_strided_slice %17 {offsets = [0, 0], sizes = [16, 4], strides = [1, 1]} : vector<24x4xf32> to vector<16x4xf32>
    %24 = vector.extract_strided_slice %17 {offsets = [2, 0], sizes = [16, 4], strides = [1, 1]} : vector<24x4xf32> to vector<16x4xf32>
    %25 = vector.extract_strided_slice %17 {offsets = [4, 0], sizes = [16, 4], strides = [1, 1]} : vector<24x4xf32> to vector<16x4xf32>
    %26 = vector.extract_strided_slice %17 {offsets = [6, 0], sizes = [16, 4], strides = [1, 1]} : vector<24x4xf32> to vector<16x4xf32>
    %27 = vector.extract_strided_slice %17 {offsets = [8, 0], sizes = [16, 4], strides = [1, 1]} : vector<24x4xf32> to vector<16x4xf32>
    %28 = tpu.concatenate %18, %19, %20, %21, %22, %23, %24, %25, %26, %27 in 1 : vector<16x4xf32>, vector<16x4xf32>, vector<16x4xf32>, vector<16x4xf32>, vector<16x4xf32>, vector<16x4xf32>, vector<16x4xf32>, vector<16x4xf32>, vector<16x4xf32>, vector<16x4xf32> -> vector<16x40xf32>
    %c0_3 = arith.constant 0 : index
    %c0_4 = arith.constant 0 : index
    %29 = vector.load %arg2[%c0_3, %c0_4] : memref<40x128xf32, #tpu.memory_space<vmem>>, vector<40x128xf32>
    %cst_5 = arith.constant dense<0.000000e+00> : vector<16x128xf32>
    %30 = tpu.matmul %28, %29, %cst_5 {dimension_numbers = #tpu.dot_dimension_numbers<[1], [0], [0], [1], [0, 0, 1, 1], [], []>} : vector<16x40xf32>, vector<40x128xf32>, vector<16x128xf32> -> vector<16x128xf32>
    %c0_6 = arith.constant 0 : index
    %c0_7 = arith.constant 0 : index
    %31 = vector.load %arg3[%c0_6, %c0_7] : memref<1x128xf32, #tpu.memory_space<vmem>>, vector<1x128xf32>
    %32 = vector.broadcast %31 : vector<1x128xf32> to vector<16x128xf32>
    %33 = arith.addf %30, %32 : vector<16x128xf32>
    %cst_8 = arith.constant 0.000000e+00 : f32
    %34 = vector.broadcast %cst_8 : f32 to vector<16x128xf32>
    %35 = arith.maximumf %33, %34 : vector<16x128xf32>
    %36 = vector.extract_strided_slice %35 {offsets = [0, 0], sizes = [16, 64], strides = [1, 1]} : vector<16x128xf32> to vector<16x64xf32>
    %37 = vector.extract_strided_slice %35 {offsets = [0, 64], sizes = [16, 64], strides = [1, 1]} : vector<16x128xf32> to vector<16x64xf32>
    %cst_9 = arith.constant dense<0.000000e+00> : vector<20x64xf32>
    %38 = tpu.matmul %8, %36, %cst_9 {dimension_numbers = #tpu.dot_dimension_numbers<[1], [0], [0], [1], [0, 0, 1, 1], [], []>} : vector<20x16xf32>, vector<16x64xf32>, vector<20x64xf32> -> vector<20x64xf32>
    %cst_10 = arith.constant dense<0.000000e+00> : vector<24x64xf32>
    %39 = tpu.matmul %15, %37, %cst_10 {dimension_numbers = #tpu.dot_dimension_numbers<[1], [0], [0], [1], [0, 0, 1, 1], [], []>} : vector<24x16xf32>, vector<16x64xf32>, vector<24x64xf32> -> vector<24x64xf32>
    %40 = vector.extract_strided_slice %38 {offsets = [0, 0], sizes = [16, 64], strides = [1, 1]} : vector<20x64xf32> to vector<16x64xf32>
    %41 = vector.extract_strided_slice %38 {offsets = [1, 0], sizes = [16, 64], strides = [1, 1]} : vector<20x64xf32> to vector<16x64xf32>
    %42 = vector.extract_strided_slice %38 {offsets = [2, 0], sizes = [16, 64], strides = [1, 1]} : vector<20x64xf32> to vector<16x64xf32>
    %43 = vector.extract_strided_slice %38 {offsets = [3, 0], sizes = [16, 64], strides = [1, 1]} : vector<20x64xf32> to vector<16x64xf32>
    %44 = vector.extract_strided_slice %38 {offsets = [4, 0], sizes = [16, 64], strides = [1, 1]} : vector<20x64xf32> to vector<16x64xf32>
    %45 = vector.extract_strided_slice %39 {offsets = [0, 0], sizes = [16, 64], strides = [1, 1]} : vector<24x64xf32> to vector<16x64xf32>
    %46 = vector.extract_strided_slice %39 {offsets = [2, 0], sizes = [16, 64], strides = [1, 1]} : vector<24x64xf32> to vector<16x64xf32>
    %47 = vector.extract_strided_slice %39 {offsets = [4, 0], sizes = [16, 64], strides = [1, 1]} : vector<24x64xf32> to vector<16x64xf32>
    %48 = vector.extract_strided_slice %39 {offsets = [6, 0], sizes = [16, 64], strides = [1, 1]} : vector<24x64xf32> to vector<16x64xf32>
    %49 = vector.extract_strided_slice %39 {offsets = [8, 0], sizes = [16, 64], strides = [1, 1]} : vector<24x64xf32> to vector<16x64xf32>
    %50 = tpu.concatenate %40, %41, %42, %43, %44, %45, %46, %47, %48, %49 in 1 : vector<16x64xf32>, vector<16x64xf32>, vector<16x64xf32>, vector<16x64xf32>, vector<16x64xf32>, vector<16x64xf32>, vector<16x64xf32>, vector<16x64xf32>, vector<16x64xf32>, vector<16x64xf32> -> vector<16x640xf32>
    %c0_11 = arith.constant 0 : index
    %c0_12 = arith.constant 0 : index
    %51 = vector.load %arg4[%c0_11, %c0_12] : memref<640x128xf32, #tpu.memory_space<vmem>>, vector<640x128xf32>
    %cst_13 = arith.constant dense<0.000000e+00> : vector<16x128xf32>
    %52 = tpu.matmul %50, %51, %cst_13 {dimension_numbers = #tpu.dot_dimension_numbers<[1], [0], [0], [1], [0, 0, 1, 1], [], []>} : vector<16x640xf32>, vector<640x128xf32>, vector<16x128xf32> -> vector<16x128xf32>
    %c0_14 = arith.constant 0 : index
    %c0_15 = arith.constant 0 : index
    %53 = vector.load %arg5[%c0_14, %c0_15] : memref<1x128xf32, #tpu.memory_space<vmem>>, vector<1x128xf32>
    %54 = vector.broadcast %53 : vector<1x128xf32> to vector<16x128xf32>
    %55 = arith.addf %52, %54 : vector<16x128xf32>
    %cst_16 = arith.constant 0.000000e+00 : f32
    %56 = vector.broadcast %cst_16 : f32 to vector<16x128xf32>
    %57 = arith.maximumf %55, %56 : vector<16x128xf32>
    %c0_17 = arith.constant 0 : index
    %c0_18 = arith.constant 0 : index
    %c0_19 = arith.constant 0 : index
    %58 = vector.load %arg6[%c0_17, %c0_18, %c0_19] : memref<1x16x128xf32, #tpu.memory_space<vmem>>, vector<1x16x128xf32>
    %59 = vector.shape_cast %58 : vector<1x16x128xf32> to vector<16x128xf32>
    %60 = vector.shape_cast %57 : vector<16x128xf32> to vector<1x16x128xf32>
    tpu.vector_store %arg6[%c0_17, %c0_18, %c0_19], %60 {strides = array<i32>} : memref<1x16x128xf32, #tpu.memory_space<vmem>>, vector<1x16x128xf32>,
    return
  }
  func.func @transform_0(%arg0: i32) -> (i32, i32, i32) {
    %c0_i32 = arith.constant 0 : i32
    %c0_i32_0 = arith.constant 0 : i32
    %c0_i32_1 = arith.constant 0 : i32
    return %arg0, %c0_i32, %c0_i32_0 : i32, i32, i32
  }
  func.func @transform_1(%arg0: i32) -> (i32, i32) {
    %c0_i32 = arith.constant 0 : i32
    %c0_i32_0 = arith.constant 0 : i32
    %c0_i32_1 = arith.constant 0 : i32
    return %c0_i32, %c0_i32_0 : i32, i32
  }
  func.func @transform_2(%arg0: i32) -> (i32, i32) {
    %c0_i32 = arith.constant 0 : i32
    %c0_i32_0 = arith.constant 0 : i32
    %c0_i32_1 = arith.constant 0 : i32
    return %c0_i32, %c0_i32_0 : i32, i32
  }
  func.func @transform_3(%arg0: i32) -> (i32, i32) {
    %c0_i32 = arith.constant 0 : i32
    %c0_i32_0 = arith.constant 0 : i32
    %c0_i32_1 = arith.constant 0 : i32
    return %c0_i32, %c0_i32_0 : i32, i32
  }
  func.func @transform_4(%arg0: i32) -> (i32, i32) {
    %c0_i32 = arith.constant 0 : i32
    %c0_i32_0 = arith.constant 0 : i32
    %c0_i32_1 = arith.constant 0 : i32
    return %c0_i32, %c0_i32_0 : i32, i32
  }
  func.func @transform_5(%arg0: i32) -> (i32, i32, i32) {
    %c0_i32 = arith.constant 0 : i32
    %c0_i32_0 = arith.constant 0 : i32
    %c0_i32_1 = arith.constant 0 : i32
    return %arg0, %c0_i32, %c0_i32_0 : i32, i32, i32
  }
}

module attributes {stable_mosaic.version = 11 : i64} {
  func.func @head_kernel(%arg0: i32, %arg1: memref<1x1x2048xf32, #tpu.memory_space<vmem>>, %arg2: memref<1x16x128xf32, #tpu.memory_space<vmem>>, %arg3: memref<2048x800xbf16, #tpu.memory_space<vmem>>, %arg4: memref<1x800xf32, #tpu.memory_space<vmem>>, %arg5: memref<200x17xf32, #tpu.memory_space<vmem>>, %arg6: memref<1x1xf32, #tpu.memory_space<vmem>>, %arg7: memref<640x128xbf16, #tpu.memory_space<vmem>>, %arg8: memref<5x128xf32, #tpu.memory_space<vmem>>, %arg9: memref<1x128xf32, #tpu.memory_space<vmem>>, %arg10: memref<640x256xbf16, #tpu.memory_space<vmem>>, %arg11: memref<1x256xf32, #tpu.memory_space<vmem>>, %arg12: memref<256x256xbf16, #tpu.memory_space<vmem>>, %arg13: memref<256x16xf32, #tpu.memory_space<vmem>>, %arg14: memref<1x16xf32, #tpu.memory_space<vmem>>, %arg15: memref<1x1x1xf32, #tpu.memory_space<vmem>>, %arg16: memref<1x1x16xf32, #tpu.memory_space<vmem>>) attributes {dimension_semantics = [#tpu.dimension_semantics<parallel>], iteration_bounds = array<i64: 2>, scalar_prefetch = 0 : i64, scratch_operands = 0 : i64, tpu.core_type = #tpu.core_type<tc>, window_params = [{transform_indices = @transform_0, window_bounds = array<i64: 1, 1, 2048>}, {transform_indices = @transform_1, window_bounds = array<i64: 1, 16, 128>}, {pipeline_mode = #tpu.pipeline_mode<synchronous>, transform_indices = @transform_2, window_bounds = array<i64: 2048, 800>}, {pipeline_mode = #tpu.pipeline_mode<synchronous>, transform_indices = @transform_3, window_bounds = array<i64: 1, 800>}, {pipeline_mode = #tpu.pipeline_mode<synchronous>, transform_indices = @transform_4, window_bounds = array<i64: 200, 17>}, {pipeline_mode = #tpu.pipeline_mode<synchronous>, transform_indices = @transform_5, window_bounds = array<i64: 1, 1>}, {pipeline_mode = #tpu.pipeline_mode<synchronous>, transform_indices = @transform_6, window_bounds = array<i64: 640, 128>}, {pipeline_mode = #tpu.pipeline_mode<synchronous>, transform_indices = @transform_7, window_bounds = array<i64: 5, 128>}, {pipeline_mode = #tpu.pipeline_mode<synchronous>, transform_indices = @transform_8, window_bounds = array<i64: 1, 128>}, {pipeline_mode = #tpu.pipeline_mode<synchronous>, transform_indices = @transform_9, window_bounds = array<i64: 640, 256>}, {pipeline_mode = #tpu.pipeline_mode<synchronous>, transform_indices = @transform_10, window_bounds = array<i64: 1, 256>}, {pipeline_mode = #tpu.pipeline_mode<synchronous>, transform_indices = @transform_11, window_bounds = array<i64: 256, 256>}, {pipeline_mode = #tpu.pipeline_mode<synchronous>, transform_indices = @transform_12, window_bounds = array<i64: 256, 16>}, {pipeline_mode = #tpu.pipeline_mode<synchronous>, transform_indices = @transform_13, window_bounds = array<i64: 1, 16>}, {transform_indices = @transform_14, window_bounds = array<i64: 1, 1, 1>}, {transform_indices = @transform_15, window_bounds = array<i64: 1, 1, 16>}]} {
    %c0 = arith.constant 0 : index
    %c0_0 = arith.constant 0 : index
    %c0_1 = arith.constant 0 : index
    %0 = vector.load %arg1[%c0, %c0_0, %c0_1] : memref<1x1x2048xf32, #tpu.memory_space<vmem>>, vector<1x1x2048xf32>
    %1 = vector.shape_cast %0 : vector<1x1x2048xf32> to vector<1x2048xf32>
    %2 = arith.truncf %1 : vector<1x2048xf32> to vector<1x2048xbf16>
    %c0_2 = arith.constant 0 : index
    %c0_3 = arith.constant 0 : index
    %3 = vector.load %arg3[%c0_2, %c0_3] : memref<2048x800xbf16, #tpu.memory_space<vmem>>, vector<2048x800xbf16>
    %cst = arith.constant dense<0.000000e+00> : vector<1x800xf32>
    %4 = tpu.matmul %2, %3, %cst {dimension_numbers = #tpu.dot_dimension_numbers<[1], [0], [0], [1], [0, 0, 1, 1], [], []>} : vector<1x2048xbf16>, vector<2048x800xbf16>, vector<1x800xf32> -> vector<1x800xf32>
    %c0_4 = arith.constant 0 : index
    %c0_5 = arith.constant 0 : index
    %5 = vector.load %arg4[%c0_4, %c0_5] : memref<1x800xf32, #tpu.memory_space<vmem>>, vector<1x800xf32>
    %6 = arith.addf %4, %5 : vector<1x800xf32>
    %7 = vector.extract_strided_slice %6 {offsets = [0, 0], sizes = [1, 100], strides = [1, 1]} : vector<1x800xf32> to vector<1x100xf32>
    %8 = arith.negf %7 : vector<1x100xf32>
    %9 = math.exp %8 : vector<1x100xf32>
    %cst_6 = arith.constant 1.000000e+00 : f32
    %10 = vector.broadcast %cst_6 : f32 to vector<1x100xf32>
    %11 = arith.addf %10, %9 : vector<1x100xf32>
    %12 = arith.divf %10, %11 : vector<1x100xf32>
    %13 = vector.extract_strided_slice %6 {offsets = [0, 200], sizes = [1, 100], strides = [1, 1]} : vector<1x800xf32> to vector<1x100xf32>
    %14 = math.tanh %13 : vector<1x100xf32>
    %15 = vector.extract_strided_slice %6 {offsets = [0, 300], sizes = [1, 100], strides = [1, 1]} : vector<1x800xf32> to vector<1x100xf32>
    %16 = arith.negf %15 : vector<1x100xf32>
    %17 = math.exp %16 : vector<1x100xf32>
    %cst_7 = arith.constant 1.000000e+00 : f32
    %18 = vector.broadcast %cst_7 : f32 to vector<1x100xf32>
    %19 = arith.addf %18, %17 : vector<1x100xf32>
    %20 = arith.divf %18, %19 : vector<1x100xf32>
    %21 = arith.mulf %12, %14 : vector<1x100xf32>
    %22 = math.tanh %21 : vector<1x100xf32>
    %23 = arith.mulf %20, %22 : vector<1x100xf32>
    %24 = vector.extract_strided_slice %6 {offsets = [0, 400], sizes = [1, 100], strides = [1, 1]} : vector<1x800xf32> to vector<1x100xf32>
    %25 = arith.negf %24 : vector<1x100xf32>
    %26 = math.exp %25 : vector<1x100xf32>
    %cst_8 = arith.constant 1.000000e+00 : f32
    %27 = vector.broadcast %cst_8 : f32 to vector<1x100xf32>
    %28 = arith.addf %27, %26 : vector<1x100xf32>
    %29 = arith.divf %27, %28 : vector<1x100xf32>
    %30 = vector.extract_strided_slice %6 {offsets = [0, 600], sizes = [1, 100], strides = [1, 1]} : vector<1x800xf32> to vector<1x100xf32>
    %31 = math.tanh %30 : vector<1x100xf32>
    %32 = vector.extract_strided_slice %6 {offsets = [0, 700], sizes = [1, 100], strides = [1, 1]} : vector<1x800xf32> to vector<1x100xf32>
    %33 = arith.negf %32 : vector<1x100xf32>
    %34 = math.exp %33 : vector<1x100xf32>
    %cst_9 = arith.constant 1.000000e+00 : f32
    %35 = vector.broadcast %cst_9 : f32 to vector<1x100xf32>
    %36 = arith.addf %35, %34 : vector<1x100xf32>
    %37 = arith.divf %35, %36 : vector<1x100xf32>
    %38 = arith.mulf %29, %31 : vector<1x100xf32>
    %39 = math.tanh %38 : vector<1x100xf32>
    %40 = arith.mulf %37, %39 : vector<1x100xf32>
    %41 = tpu.concatenate %23, %40 in 1 : vector<1x100xf32>, vector<1x100xf32> -> vector<1x200xf32>
    %c0_10 = arith.constant 0 : index
    %c0_11 = arith.constant 0 : index
    %42 = vector.load %arg5[%c0_10, %c0_11] : memref<200x17xf32, #tpu.memory_space<vmem>>, vector<200x17xf32>
    %cst_12 = arith.constant dense<0.000000e+00> : vector<1x17xf32>
    %43 = tpu.matmul %41, %42, %cst_12 {dimension_numbers = #tpu.dot_dimension_numbers<[1], [0], [0], [1], [0, 0, 1, 1], [], []>} : vector<1x200xf32>, vector<200x17xf32>, vector<1x17xf32> -> vector<1x17xf32>
    %44 = vector.extract_strided_slice %43 {offsets = [0, 16], sizes = [1, 1], strides = [1, 1]} : vector<1x17xf32> to vector<1x1xf32>
    %c0_13 = arith.constant 0 : index
    %c0_14 = arith.constant 0 : index
    %45 = vector.load %arg6[%c0_13, %c0_14] : memref<1x1xf32, #tpu.memory_space<vmem>>, vector<1x1xf32>
    %46 = arith.addf %44, %45 : vector<1x1xf32>
    %47 = arith.negf %46 : vector<1x1xf32>
    %48 = math.exp %47 : vector<1x1xf32>
    %cst_15 = arith.constant 1.000000e+00 : f32
    %49 = vector.broadcast %cst_15 : f32 to vector<1x1xf32>
    %50 = arith.addf %49, %48 : vector<1x1xf32>
    %51 = arith.divf %49, %50 : vector<1x1xf32>
    %52 = vector.extract_strided_slice %43 {offsets = [0, 0], sizes = [1, 16], strides = [1, 1]} : vector<1x17xf32> to vector<1x16xf32>
    %c0_16 = arith.constant 0 : index
    %c0_17 = arith.constant 0 : index
    %c0_18 = arith.constant 0 : index
    %53 = vector.load %arg15[%c0_16, %c0_17, %c0_18] : memref<1x1x1xf32, #tpu.memory_space<vmem>>, vector<1x1x1xf32>
    %54 = vector.shape_cast %53 : vector<1x1x1xf32> to vector<1x1xf32>
    %55 = vector.shape_cast %51 : vector<1x1xf32> to vector<1x1x1xf32>
    tpu.vector_store %arg15[%c0_16, %c0_17, %c0_18], %55 {strides = array<i32>} : memref<1x1x1xf32, #tpu.memory_space<vmem>>, vector<1x1x1xf32>,
    %56 = tpu.iota {dimensions = array<i32: 0>} : vector<20x16xi32>
    %57 = tpu.iota {dimensions = array<i32: 1>} : vector<20x16xi32>
    %c2_i32 = arith.constant 2 : i32
    %58 = vector.broadcast %c2_i32 : i32 to vector<20x16xi32>
    %59 = arith.subi %56, %58 : vector<20x16xi32>
    %60 = arith.cmpi eq, %59, %57 : vector<20x16xi32>
    %61 = vector.shape_cast %52 : vector<1x16xf32> to vector<1x16xf32>
    %62 = vector.broadcast %61 : vector<1x16xf32> to vector<20x16xf32>
    %cst_19 = arith.constant 0.000000e+00 : f32
    %63 = vector.broadcast %cst_19 : f32 to vector<20x16xf32>
    %64 = arith.select %60, %62, %63 : vector<20x16xi1>, vector<20x16xf32>
    %cst_20 = arith.constant dense<0.000000e+00> : vector<20xf32>
    %65 = vector.multi_reduction <add>, %64, %cst_20 [1] : vector<20x16xf32> to vector<20xf32>
    %66 = vector.shape_cast %65 : vector<20xf32> to vector<20x1xf32>
    %c0_21 = arith.constant 0 : index
    %c0_22 = arith.constant 0 : index
    %c0_23 = arith.constant 0 : index
    %67 = vector.load %arg2[%c0_21, %c0_22, %c0_23] : memref<1x16x128xf32, #tpu.memory_space<vmem>>, vector<1x16x128xf32>
    %68 = vector.shape_cast %67 : vector<1x16x128xf32> to vector<16x128xf32>
    %69 = tpu.iota {dimensions = array<i32: 0>} : vector<20x16xi32>
    %70 = tpu.iota {dimensions = array<i32: 1>} : vector<20x16xi32>
    %c2_i32_24 = arith.constant 2 : i32
    %71 = vector.broadcast %c2_i32_24 : i32 to vector<20x16xi32>
    %72 = arith.subi %69, %71 : vector<20x16xi32>
    %73 = arith.cmpi eq, %72, %70 : vector<20x16xi32>
    %74 = arith.extui %73 : vector<20x16xi1> to vector<20x16xi32>
    %75 = arith.sitofp %74 : vector<20x16xi32> to vector<20x16xf32>
    %cst_25 = arith.constant dense<0.000000e+00> : vector<20x128xf32>
    %76 = tpu.matmul %75, %68, %cst_25 {dimension_numbers = #tpu.dot_dimension_numbers<[1], [0], [0], [1], [0, 0, 1, 1], [], []>} : vector<20x16xf32>, vector<16x128xf32>, vector<20x128xf32> -> vector<20x128xf32>
    %77 = vector.extract_strided_slice %76 {offsets = [0, 0], sizes = [16, 128], strides = [1, 1]} : vector<20x128xf32> to vector<16x128xf32>
    %78 = vector.extract_strided_slice %76 {offsets = [1, 0], sizes = [16, 128], strides = [1, 1]} : vector<20x128xf32> to vector<16x128xf32>
    %79 = vector.extract_strided_slice %76 {offsets = [2, 0], sizes = [16, 128], strides = [1, 1]} : vector<20x128xf32> to vector<16x128xf32>
    %80 = vector.extract_strided_slice %76 {offsets = [3, 0], sizes = [16, 128], strides = [1, 1]} : vector<20x128xf32> to vector<16x128xf32>
    %81 = vector.extract_strided_slice %76 {offsets = [4, 0], sizes = [16, 128], strides = [1, 1]} : vector<20x128xf32> to vector<16x128xf32>
    %82 = tpu.concatenate %77, %78, %79, %80, %81 in 1 : vector<16x128xf32>, vector<16x128xf32>, vector<16x128xf32>, vector<16x128xf32>, vector<16x128xf32> -> vector<16x640xf32>
    %83 = arith.truncf %82 : vector<16x640xf32> to vector<16x640xbf16>
    %c0_26 = arith.constant 0 : index
    %c0_27 = arith.constant 0 : index
    %84 = vector.load %arg7[%c0_26, %c0_27] : memref<640x128xbf16, #tpu.memory_space<vmem>>, vector<640x128xbf16>
    %cst_28 = arith.constant dense<0.000000e+00> : vector<16x128xf32>
    %85 = tpu.matmul %83, %84, %cst_28 {dimension_numbers = #tpu.dot_dimension_numbers<[1], [0], [0], [1], [0, 0, 1, 1], [], []>} : vector<16x640xbf16>, vector<640x128xbf16>, vector<16x128xf32> -> vector<16x128xf32>
    %c0_29 = arith.constant 0 : index
    %c0_30 = arith.constant 0 : index
    %86 = vector.load %arg8[%c0_29, %c0_30] : memref<5x128xf32, #tpu.memory_space<vmem>>, vector<5x128xf32>
    %87 = vector.extract_strided_slice %66 {offsets = [0, 0], sizes = [16, 1], strides = [1, 1]} : vector<20x1xf32> to vector<16x1xf32>
    %88 = vector.extract_strided_slice %86 {offsets = [0, 0], sizes = [1, 128], strides = [1, 1]} : vector<5x128xf32> to vector<1x128xf32>
    %89 = vector.broadcast %87 : vector<16x1xf32> to vector<16x128xf32>
    %90 = vector.broadcast %88 : vector<1x128xf32> to vector<16x128xf32>
    %91 = arith.mulf %89, %90 : vector<16x128xf32>
    %92 = arith.addf %85, %91 : vector<16x128xf32>
    %93 = vector.extract_strided_slice %66 {offsets = [1, 0], sizes = [16, 1], strides = [1, 1]} : vector<20x1xf32> to vector<16x1xf32>
    %94 = vector.extract_strided_slice %86 {offsets = [1, 0], sizes = [1, 128], strides = [1, 1]} : vector<5x128xf32> to vector<1x128xf32>
    %95 = vector.broadcast %93 : vector<16x1xf32> to vector<16x128xf32>
    %96 = vector.broadcast %94 : vector<1x128xf32> to vector<16x128xf32>
    %97 = arith.mulf %95, %96 : vector<16x128xf32>
    %98 = arith.addf %92, %97 : vector<16x128xf32>
    %99 = vector.extract_strided_slice %66 {offsets = [2, 0], sizes = [16, 1], strides = [1, 1]} : vector<20x1xf32> to vector<16x1xf32>
    %100 = vector.extract_strided_slice %86 {offsets = [2, 0], sizes = [1, 128], strides = [1, 1]} : vector<5x128xf32> to vector<1x128xf32>
    %101 = vector.broadcast %99 : vector<16x1xf32> to vector<16x128xf32>
    %102 = vector.broadcast %100 : vector<1x128xf32> to vector<16x128xf32>
    %103 = arith.mulf %101, %102 : vector<16x128xf32>
    %104 = arith.addf %98, %103 : vector<16x128xf32>
    %105 = vector.extract_strided_slice %66 {offsets = [3, 0], sizes = [16, 1], strides = [1, 1]} : vector<20x1xf32> to vector<16x1xf32>
    %106 = vector.extract_strided_slice %86 {offsets = [3, 0], sizes = [1, 128], strides = [1, 1]} : vector<5x128xf32> to vector<1x128xf32>
    %107 = vector.broadcast %105 : vector<16x1xf32> to vector<16x128xf32>
    %108 = vector.broadcast %106 : vector<1x128xf32> to vector<16x128xf32>
    %109 = arith.mulf %107, %108 : vector<16x128xf32>
    %110 = arith.addf %104, %109 : vector<16x128xf32>
    %111 = vector.extract_strided_slice %66 {offsets = [4, 0], sizes = [16, 1], strides = [1, 1]} : vector<20x1xf32> to vector<16x1xf32>
    %112 = vector.extract_strided_slice %86 {offsets = [4, 0], sizes = [1, 128], strides = [1, 1]} : vector<5x128xf32> to vector<1x128xf32>
    %113 = vector.broadcast %111 : vector<16x1xf32> to vector<16x128xf32>
    %114 = vector.broadcast %112 : vector<1x128xf32> to vector<16x128xf32>
    %115 = arith.mulf %113, %114 : vector<16x128xf32>
    %116 = arith.addf %110, %115 : vector<16x128xf32>
    %c0_31 = arith.constant 0 : index
    %c0_32 = arith.constant 0 : index
    %117 = vector.load %arg9[%c0_31, %c0_32] : memref<1x128xf32, #tpu.memory_space<vmem>>, vector<1x128xf32>
    %118 = vector.broadcast %117 : vector<1x128xf32> to vector<16x128xf32>
    %119 = arith.addf %116, %118 : vector<16x128xf32>
    %cst_33 = arith.constant 0.000000e+00 : f32
    %120 = vector.broadcast %cst_33 : f32 to vector<16x128xf32>
    %121 = arith.maximumf %119, %120 : vector<16x128xf32>
    %cst_34 = arith.constant dense<0.000000e+00> : vector<20x128xf32>
    %122 = tpu.matmul %75, %121, %cst_34 {dimension_numbers = #tpu.dot_dimension_numbers<[1], [0], [0], [1], [0, 0, 1, 1], [], []>} : vector<20x16xf32>, vector<16x128xf32>, vector<20x128xf32> -> vector<20x128xf32>
    %123 = vector.extract_strided_slice %122 {offsets = [0, 0], sizes = [16, 128], strides = [1, 1]} : vector<20x128xf32> to vector<16x128xf32>
    %124 = vector.extract_strided_slice %122 {offsets = [1, 0], sizes = [16, 128], strides = [1, 1]} : vector<20x128xf32> to vector<16x128xf32>
    %125 = vector.extract_strided_slice %122 {offsets = [2, 0], sizes = [16, 128], strides = [1, 1]} : vector<20x128xf32> to vector<16x128xf32>
    %126 = vector.extract_strided_slice %122 {offsets = [3, 0], sizes = [16, 128], strides = [1, 1]} : vector<20x128xf32> to vector<16x128xf32>
    %127 = vector.extract_strided_slice %122 {offsets = [4, 0], sizes = [16, 128], strides = [1, 1]} : vector<20x128xf32> to vector<16x128xf32>
    %128 = tpu.concatenate %123, %124, %125, %126, %127 in 1 : vector<16x128xf32>, vector<16x128xf32>, vector<16x128xf32>, vector<16x128xf32>, vector<16x128xf32> -> vector<16x640xf32>
    %129 = arith.truncf %128 : vector<16x640xf32> to vector<16x640xbf16>
    %c0_35 = arith.constant 0 : index
    %c0_36 = arith.constant 0 : index
    %130 = vector.load %arg10[%c0_35, %c0_36] : memref<640x256xbf16, #tpu.memory_space<vmem>>, vector<640x256xbf16>
    %cst_37 = arith.constant dense<0.000000e+00> : vector<16x256xf32>
    %131 = tpu.matmul %129, %130, %cst_37 {dimension_numbers = #tpu.dot_dimension_numbers<[1], [0], [0], [1], [0, 0, 1, 1], [], []>} : vector<16x640xbf16>, vector<640x256xbf16>, vector<16x256xf32> -> vector<16x256xf32>
    %c0_38 = arith.constant 0 : index
    %c0_39 = arith.constant 0 : index
    %132 = vector.load %arg11[%c0_38, %c0_39] : memref<1x256xf32, #tpu.memory_space<vmem>>, vector<1x256xf32>
    %133 = vector.broadcast %132 : vector<1x256xf32> to vector<16x256xf32>
    %134 = arith.addf %131, %133 : vector<16x256xf32>
    %cst_40 = arith.constant 0.000000e+00 : f32
    %135 = vector.broadcast %cst_40 : f32 to vector<16x256xf32>
    %136 = arith.maximumf %134, %135 : vector<16x256xf32>
    %137 = arith.truncf %136 : vector<16x256xf32> to vector<16x256xbf16>
    %c0_41 = arith.constant 0 : index
    %c0_42 = arith.constant 0 : index
    %138 = vector.load %arg12[%c0_41, %c0_42] : memref<256x256xbf16, #tpu.memory_space<vmem>>, vector<256x256xbf16>
    %cst_43 = arith.constant dense<0.000000e+00> : vector<16x256xf32>
    %139 = tpu.matmul %137, %138, %cst_43 {dimension_numbers = #tpu.dot_dimension_numbers<[1], [0], [0], [1], [0, 0, 1, 1], [], []>} : vector<16x256xbf16>, vector<256x256xbf16>, vector<16x256xf32> -> vector<16x256xf32>
    %140 = tpu.iota {dimensions = array<i32: 0>} : vector<16x256xi32>
    %141 = tpu.iota {dimensions = array<i32: 1>} : vector<16x256xi32>
    %c16_i32 = arith.constant 16 : i32
    %142 = vector.broadcast %c16_i32 : i32 to vector<16x256xi32>
    %143 = arith.muli %140, %142 : vector<16x256xi32>
    %144 = arith.cmpi sge, %141, %143 : vector<16x256xi32>
    %c1_i32 = arith.constant 1 : i32
    %145 = vector.broadcast %c1_i32 : i32 to vector<16x256xi32>
    %146 = arith.addi %140, %145 : vector<16x256xi32>
    %c16_i32_44 = arith.constant 16 : i32
    %147 = vector.broadcast %c16_i32_44 : i32 to vector<16x256xi32>
    %148 = arith.muli %146, %147 : vector<16x256xi32>
    %149 = arith.cmpi slt, %141, %148 : vector<16x256xi32>
    %150 = arith.andi %144, %149 : vector<16x256xi1>
    %cst_45 = arith.constant 0.000000e+00 : f32
    %151 = vector.broadcast %cst_45 : f32 to vector<16x256xf32>
    %152 = arith.select %150, %139, %151 : vector<16x256xi1>, vector<16x256xf32>
    %c0_46 = arith.constant 0 : index
    %c0_47 = arith.constant 0 : index
    %153 = vector.load %arg13[%c0_46, %c0_47] : memref<256x16xf32, #tpu.memory_space<vmem>>, vector<256x16xf32>
    %cst_48 = arith.constant dense<0.000000e+00> : vector<16x16xf32>
    %154 = tpu.matmul %152, %153, %cst_48 {dimension_numbers = #tpu.dot_dimension_numbers<[1], [0], [0], [1], [0, 0, 1, 1], [], []>} : vector<16x256xf32>, vector<256x16xf32>, vector<16x16xf32> -> vector<16x16xf32>
    %cst_49 = arith.constant dense<0.000000e+00> : vector<16xf32>
    %155 = vector.multi_reduction <add>, %154, %cst_49 [0] : vector<16x16xf32> to vector<16xf32>
    %156 = vector.shape_cast %155 : vector<16xf32> to vector<1x16xf32>
    %c0_50 = arith.constant 0 : index
    %c0_51 = arith.constant 0 : index
    %157 = vector.load %arg14[%c0_50, %c0_51] : memref<1x16xf32, #tpu.memory_space<vmem>>, vector<1x16xf32>
    %158 = arith.addf %156, %157 : vector<1x16xf32>
    %159 = arith.negf %158 : vector<1x16xf32>
    %160 = math.exp %159 : vector<1x16xf32>
    %cst_52 = arith.constant 1.000000e+00 : f32
    %161 = vector.broadcast %cst_52 : f32 to vector<1x16xf32>
    %162 = arith.addf %161, %160 : vector<1x16xf32>
    %163 = arith.divf %161, %162 : vector<1x16xf32>
    %c0_53 = arith.constant 0 : index
    %c0_54 = arith.constant 0 : index
    %c0_55 = arith.constant 0 : index
    %164 = vector.load %arg16[%c0_53, %c0_54, %c0_55] : memref<1x1x16xf32, #tpu.memory_space<vmem>>, vector<1x1x16xf32>
    %165 = vector.shape_cast %164 : vector<1x1x16xf32> to vector<1x16xf32>
    %166 = vector.shape_cast %163 : vector<1x16xf32> to vector<1x1x16xf32>
    tpu.vector_store %arg16[%c0_53, %c0_54, %c0_55], %166 {strides = array<i32>} : memref<1x1x16xf32, #tpu.memory_space<vmem>>, vector<1x1x16xf32>,
    return
  }
  func.func @transform_0(%arg0: i32) -> (i32, i32, i32) {
    %c0_i32 = arith.constant 0 : i32
    %c0_i32_0 = arith.constant 0 : i32
    %c0_i32_1 = arith.constant 0 : i32
    return %arg0, %c0_i32, %c0_i32_0 : i32, i32, i32
  }
  func.func @transform_1(%arg0: i32) -> (i32, i32, i32) {
    %c0_i32 = arith.constant 0 : i32
    %c0_i32_0 = arith.constant 0 : i32
    %c0_i32_1 = arith.constant 0 : i32
    return %arg0, %c0_i32, %c0_i32_0 : i32, i32, i32
  }
  func.func @transform_2(%arg0: i32) -> (i32, i32) {
    %c0_i32 = arith.constant 0 : i32
    %c0_i32_0 = arith.constant 0 : i32
    %c0_i32_1 = arith.constant 0 : i32
    return %c0_i32, %c0_i32_0 : i32, i32
  }
  func.func @transform_3(%arg0: i32) -> (i32, i32) {
    %c0_i32 = arith.constant 0 : i32
    %c0_i32_0 = arith.constant 0 : i32
    %c0_i32_1 = arith.constant 0 : i32
    return %c0_i32, %c0_i32_0 : i32, i32
  }
  func.func @transform_4(%arg0: i32) -> (i32, i32) {
    %c0_i32 = arith.constant 0 : i32
    %c0_i32_0 = arith.constant 0 : i32
    %c0_i32_1 = arith.constant 0 : i32
    return %c0_i32, %c0_i32_0 : i32, i32
  }
  func.func @transform_5(%arg0: i32) -> (i32, i32) {
    %c0_i32 = arith.constant 0 : i32
    %c0_i32_0 = arith.constant 0 : i32
    %c0_i32_1 = arith.constant 0 : i32
    return %c0_i32, %c0_i32_0 : i32, i32
  }
  func.func @transform_6(%arg0: i32) -> (i32, i32) {
    %c0_i32 = arith.constant 0 : i32
    %c0_i32_0 = arith.constant 0 : i32
    %c0_i32_1 = arith.constant 0 : i32
    return %c0_i32, %c0_i32_0 : i32, i32
  }
  func.func @transform_7(%arg0: i32) -> (i32, i32) {
    %c0_i32 = arith.constant 0 : i32
    %c0_i32_0 = arith.constant 0 : i32
    %c0_i32_1 = arith.constant 0 : i32
    return %c0_i32, %c0_i32_0 : i32, i32
  }
  func.func @transform_8(%arg0: i32) -> (i32, i32) {
    %c0_i32 = arith.constant 0 : i32
    %c0_i32_0 = arith.constant 0 : i32
    %c0_i32_1 = arith.constant 0 : i32
    return %c0_i32, %c0_i32_0 : i32, i32
  }
  func.func @transform_9(%arg0: i32) -> (i32, i32) {
    %c0_i32 = arith.constant 0 : i32
    %c0_i32_0 = arith.constant 0 : i32
    %c0_i32_1 = arith.constant 0 : i32
    return %c0_i32, %c0_i32_0 : i32, i32
  }
  func.func @transform_10(%arg0: i32) -> (i32, i32) {
    %c0_i32 = arith.constant 0 : i32
    %c0_i32_0 = arith.constant 0 : i32
    %c0_i32_1 = arith.constant 0 : i32
    return %c0_i32, %c0_i32_0 : i32, i32
  }
  func.func @transform_11(%arg0: i32) -> (i32, i32) {
    %c0_i32 = arith.constant 0 : i32
    %c0_i32_0 = arith.constant 0 : i32
    %c0_i32_1 = arith.constant 0 : i32
    return %c0_i32, %c0_i32_0 : i32, i32
  }
  func.func @transform_12(%arg0: i32) -> (i32, i32) {
    %c0_i32 = arith.constant 0 : i32
    %c0_i32_0 = arith.constant 0 : i32
    %c0_i32_1 = arith.constant 0 : i32
    return %c0_i32, %c0_i32_0 : i32, i32
  }
  func.func @transform_13(%arg0: i32) -> (i32, i32) {
    %c0_i32 = arith.constant 0 : i32
    %c0_i32_0 = arith.constant 0 : i32
    %c0_i32_1 = arith.constant 0 : i32
    return %c0_i32, %c0_i32_0 : i32, i32
  }
  func.func @transform_14(%arg0: i32) -> (i32, i32, i32) {
    %c0_i32 = arith.constant 0 : i32
    %c0_i32_0 = arith.constant 0 : i32
    %c0_i32_1 = arith.constant 0 : i32
    return %arg0, %c0_i32, %c0_i32_0 : i32, i32, i32
  }
  func.func @transform_15(%arg0: i32) -> (i32, i32, i32) {
    %c0_i32 = arith.constant 0 : i32
    %c0_i32_0 = arith.constant 0 : i32
    %c0_i32_1 = arith.constant 0 : i32
    return %arg0, %c0_i32, %c0_i32_0 : i32, i32, i32
  }
}

</mosaic_0001>

<bundles_post_ra>
// kernel: prectime_forward.2
= control target key start
LH: loop header
LB: loop body
LE: loop exit
PB: predicated region body
PF: predicated region fallthrough
CT: control target
= control target key end

     0   :  { %10 = vsyncpa [#allocation3], 0  ;;  %s2362_s0 = inlined_call_operand.vmem [shape: f32[2,16,4], index: 0, kind: input, shape index: {}]   ;;  %s2363_s1 = inlined_call_operand.hbm [shape: f32[40,128], index: 1, kind: input, shape index: {}]   ;;  %s2364_s2 = inlined_call_operand.hbm [shape: f32[1,128], index: 2, kind: input, shape index: {}]   ;;  %s2365_s3 = inlined_call_operand.hbm [shape: f32[640,128], index: 3, kind: input, shape index: {}]   ;;  %s2366_s4 = inlined_call_operand.hbm [shape: f32[1,128], index: 4, kind: input, shape index: {}]   ;;  %s2367_s5 = inlined_call_operand.vmem [shape: f32[2,16,128], index: 5, kind: output, shape index: {}]  }
   0x1   :  { %11 = vsyncpa [#allocation5], 0 }
   0x2   :  { %12 = vsyncpa [#allocation8], 0  ;;  %s2036_s18 = smov 0  }
   0x3 LB: > { %s1987_s19 = smov [#allocation4]   ;;  %s2042_s21 = sadd.s32 4294967295, %s1985_s18   ;;  %s1985_s18 = sphi %s2036_s18, %s18_s18  }
   0x4   : > { %s185_s20 = sshll.u32 %s1987_s19, 4  ;;  %p1382_p0 = scmp.ge.s32.totalorder %s1985_s18, 1  ;;  %s2047_s20 = int_to_ptr.vmem [resolvable:$true] %s185_s20 }
   0x5   : > { %p159_p1 = scmp.lt.s32.totalorder %s1985_s18, 3  ;;  %p2368_p2 = scmp.eq.s32.totalorder %s2042_s21, 0 }
   0x6   : > { %s1988_s23 = smov [#allocation2]   ;;  %s1989_s26 = smov [#allocation6]  }
   0x7   : > { %p2049_p3 = pnand %p1382_p0, %p159_p1  ;;  %s171_s24 = sshll.u32 %s1988_s23, 4  ;;  %s2055_s24 = int_to_ptr.vmem [resolvable:$true] %s171_s24 }
   0x8   : > { %s195_s27 = sshll.u32 %s1989_s26, 4  ;;  %s1990_s28 = smov [#allocation7]   ;;  %s2063_s27 = int_to_ptr.vmem [resolvable:$true] %s195_s27 }
   0x9   : > { %s2370_s22 = scalar_select %p2049_p3, 1, 0 }
   0xa   : > { %p1782_p4 = pneg %p2049_p3  ;;  %s2065_s29 = sshll.u32 %s1990_s28, 4  ;;  %s210_s29 = int_to_ptr.vmem [resolvable:$true] %s2065_s29 }
   0xb   : > { %s1855_s7 = scalar_lea.hbm %s2364_s2, 16 }
   0xc   : > { %p2059_p5 = pnand %p2368_p2, %p1782_p4  ;;  %p1856_p6 = scmp.ne.s32.totalorder %s2364_s2, %s1855_s7 }
   0xd   : > { %p1862_p10 = scmp.lt.u32.totalorder %s1855_s7, %s2364_s2 }
   0xe   : > { %p2075_p7 = pneg %p2059_p5 }
  0x10   : > { %p1858_p8 = pnand %p2075_p7, %p1856_p6 }
  0x12   : > { %p1859_p9 = pneg %p1858_p8 }
  0x14   : > { %p1864_p11 = pnand %p1862_p10, %p1859_p9 }
  0x16   : > { %1867 = shalt.err (!%p1864_p11)
}
  0x17   : > { %s1868_s13 = scalar_lea.vmem %s2047_s20, 16  ;;  %s1875_s14 = scalar_lea.vmem %s2047_s20, 32 }
  0x18   : > { %p1869_p12 = scmp.ne.s32.totalorder %s2047_s20, %s1868_s13  ;;  %p1876_p1 = scmp.lt.s32.totalorder %s2047_s20, %s2047_s20 }
  0x19   : > { %p1877_p4 = scmp.lt.s32.totalorder %s1875_s14, %s1868_s13 }
  0x1a   : > { %p1871_p13 = pnand %p1869_p12, %p2075_p7 }
  0x1b   : > { %p1878_p6 = por %p1877_p4, %p1876_p1 }
  0x1c   : > { %p1872_p0 = pneg %p1871_p13 }
  0x1e   : > { %p1879_p8 = pnand %p1878_p6, %p1872_p0 }
  0x20   : > { %1882 = shalt.err (!%p1879_p8)
}
  0x21   : > { %1788 = dma.hbm_to_vmem [thread:$0]  (!%p2059_p5), %s2364_s2, 16, %s2047_s20, [#allocation5]  }
  0x22   : > { %s1883_s23 = scalar_lea.hbm %s2363_s1, 640 }
  0x23   : > { %p1884_p9 = scmp.ne.s32.totalorder %s2363_s1, %s1883_s23  ;;  %p1890_p12 = scmp.lt.u32.totalorder %s1883_s23, %s2363_s1 }
  0x25   : > { %p1886_p10 = pnand %p1884_p9, %p2075_p7 }
  0x27   : > { %p1887_p11 = pneg %p1886_p10 }
  0x29   : > { %p1892_p13 = pnand %p1890_p12, %p1887_p11 }
  0x2b   : > { %1895 = shalt.err (!%p1892_p13)
}
  0x2c   : > { %s1896_s20 = scalar_lea.vmem %s2055_s24, 640  ;;  %p1904_p6 = scmp.lt.s32.totalorder %s2055_s24, %s2055_s24 }
  0x2d   : > { %p1897_p0 = scmp.ne.s32.totalorder %s2055_s24, %s1896_s20  ;;  %p1905_p8 = scmp.lt.s32.totalorder %s1896_s20, %s1896_s20 }
  0x2f   : > { %p1899_p1 = pnand %p1897_p0, %p2075_p7  ;;  %p1906_p9 = por %p1905_p8, %p1904_p6 }
  0x31   : > { %p1900_p4 = pneg %p1899_p1 }
  0x33   : > { %p1907_p10 = pnand %p1906_p9, %p1900_p4 }
  0x35   : > { %1910 = shalt.err (!%p1907_p10)
}
  0x36   : > { %s1991_s7 = smov 128   ;;  %s1992_s8 = smov 8  }
  0x37   : > { %1785 = dma.hbm_to_vmem [thread:$0]  (!%p2059_p5), %s2363_s1, 640, %s2055_s24, [#allocation3], %s1991_s7, %s1991_s7, %s1992_s8  }
  0x38   : > { %s1911_s14 = scalar_lea.hbm %s2365_s3, 10240 }
  0x39   : > { %p1912_p11 = scmp.ne.s32.totalorder %s2365_s3, %s1911_s14  ;;  %p1918_p0 = scmp.lt.u32.totalorder %s1911_s14, %s2365_s3 }
  0x3b   : > { %p1914_p12 = pnand %p1912_p11, %p2075_p7 }
  0x3d   : > { %p1915_p13 = pneg %p1914_p12 }
  0x3f   : > { %p1920_p1 = pnand %p1918_p0, %p1915_p13 }
  0x41   : > { %1923 = shalt.err (!%p1920_p1)
}
  0x42   : > { %s1924_s24 = scalar_lea.vmem %s2063_s27, 10240  ;;  %p1932_p9 = scmp.lt.s32.totalorder %s2063_s27, %s2063_s27 }
  0x43   : > { %p1925_p4 = scmp.ne.s32.totalorder %s2063_s27, %s1924_s24  ;;  %p1933_p10 = scmp.lt.s32.totalorder %s1924_s24, %s1924_s24 }
  0x45   : > { %p1927_p6 = pnand %p1925_p4, %p2075_p7  ;;  %p1934_p11 = por %p1933_p10, %p1932_p9 }
  0x47   : > { %p1928_p8 = pneg %p1927_p6 }
  0x49   : > { %p1935_p12 = pnand %p1934_p11, %p1928_p8 }
  0x4b   : > { %1938 = shalt.err (!%p1935_p12)
}
  0x4c   : > { %1791 = dma.hbm_to_vmem [thread:$0]  (!%p2059_p5), %s2365_s3, 10240, %s2063_s27, [#allocation5], %s1991_s7, %s1991_s7, %s1992_s8  }
  0x4d   : > { %s1939_s6 = scalar_lea.hbm %s2366_s4, 16 }
  0x4e   : > { %p1940_p13 = scmp.ne.s32.totalorder %s2366_s4, %s1939_s6  ;;  %p1946_p4 = scmp.lt.u32.totalorder %s1939_s6, %s2366_s4 }
  0x50   : > { %p1942_p0 = pnand %p1940_p13, %p2075_p7 }
  0x52   : > { %p1943_p1 = pneg %p1942_p0 }
  0x54   : > { %p1948_p6 = pnand %p1946_p4, %p1943_p1 }
  0x56   : > { %1951 = shalt.err (!%p1948_p6)
}
  0x57   : > { %s1952_s13 = scalar_lea.vmem %s210_s29, 16  ;;  %s1959_s27 = scalar_lea.vmem %s210_s29, 32 }
  0x58   : > { %p1953_p8 = scmp.ne.s32.totalorder %s210_s29, %s1952_s13  ;;  %p1960_p11 = scmp.lt.s32.totalorder %s210_s29, %s210_s29 }
  0x59   : > { %p1961_p12 = scmp.lt.s32.totalorder %s1959_s27, %s1952_s13 }
  0x5a   : > { %p1955_p9 = pnand %p1953_p8, %p2075_p7 }
  0x5b   : > { %p1962_p2 = por %p1961_p12, %p1960_p11 }
  0x5c   : > { %p1956_p10 = pneg %p1955_p9 }
  0x5e   : > { %p1963_p3 = pnand %p1962_p2, %p1956_p10 }
  0x60   : > { %1966 = shalt.err (!%p1963_p3)
}
  0x61   : > { %1794 = dma.hbm_to_vmem [thread:$0]  (!%p2059_p5), %s2366_s4, 16, %s210_s29, [#allocation8]  }
  0x62   : > { %p2373_p13 = scmp.ne.s32.totalorder %s2370_s22, 0 }
  0x63   : > { %p2374_p0 = scmp.eq.s32.totalorder (!%p2373_p13), %s2042_s21, 0 }
  0x64   : > { %230 = sbr.rel (%p2373_p13) target bundleno = 1400 (0x578), region = 40 }
  0x6b   : > { %1972 = dma.done.wait (%p2374_p0), [#allocation3], 640   ;;  %p2375_p7 = pmov %p2374_p0 }
  0x6c   : > { %p2376_p1 = pmov %p2374_p0 }
  0x6d   : > { %1974 = vsyncadd (%p2375_p7), [#allocation3], 4294966656 }
  0x6e   : > { %1976 = dma.done.wait (%p2376_p1), [#allocation5], 10256   ;;  %p2377_p2 = pmov %p2374_p0 }
  0x6f   : > { %p2378_p3 = pmov %p2374_p0 }
  0x70   : > { %1978 = vsyncadd (%p2377_p2), [#allocation5], 4294957040 }
  0x71   : > { %1980 = dma.done.wait (%p2378_p3), [#allocation8], 16   ;;  %p2379_p5 = pmov %p2374_p0 }
  0x72   : > { %p270_p4 = scmp.lt.s32.totalorder %s2042_s21, 1  ;;  %v282_v0 = vlaneseq  ;;  %v1993_v1 = vmov 0.0|0.0   ;;  %vm1994_vm0 = vmmov 0   ;;  %v1995_v2 = vmov 0.0   ;;  %s1996_s14 = smov 8   ;;  %v617_v53 = vld [vmem:[#allocation2] sm:$0xff] }
  0x73   : > { %1982 = vsyncadd (%p2379_p5), [#allocation8], 4294967280  ;;  %1650 = vmatprep.subr.bf16.mxu0 %v1993_v1  ;;  %1554 = vmatprep.mubr.msk.f32.mxu0 %vm1994_vm0, %v1995_v2  ;;  %vm312_vm2 = vcmask 130048   ;;  %vm506_vm8 = vcmask 1045504   ;;  %vm494_vm9 = vcmask 1046528   ;;  %vm518_vm10 = vcmask 1044480  }
  0x74   : > { %s2381_s21 = smov (!%p270_p4, %s2042_s21), 1  ;;  %v283_v3 = vshrl.u32 %v282_v0, 7  ;;  %1664 = vmatprep.subr.bf16.mxu1 %v1993_v1  ;;  %1593 = vmatprep.mubr.msk.f32.mxu1 %vm1994_vm0, %v1995_v2  ;;  %v287_v4 = vand.u32 127, %v282_v0  ;;  %vm530_vm11 = vcmask 1043456   ;;  %s1997_s15 = smov 4   ;;  %v618_v54 = vld [vmem:[#allocation2 + $0x8] sm:$0xff] }
  0x75   : > { %s1427_s22 = sshll.u32 %s2381_s21, 4  ;;  %s1998_s16 = smov 12   ;;  %vm573_vm12 = vcmask 1041408   ;;  %v1656_v56 = vpack.c.bf16 %v618_v54, %v617_v53  ;;  %v619_v0 = vld [vmem:[#allocation2 + $0x10] sm:$0xff]  ;;  %vm591_vm13 = vcmask 31744   ;;  %vm594_vm14 = vcmask 64512  }
  0x76   : > { %v1397_v5 = vadd.s32 4294967294, %v283_v3  ;;  %v284_v6 = vadd.s32 8, %v283_v3  ;;  %s274_s10 = scalar_lea.vmem %s2362_s0, %s1427_s22  ;;  %v285_v10 = vadd.s32 16, %v283_v3  ;;  %v1403_v15 = vadd.s32 4294967292, %v283_v3  ;;  %s1999_s17 = smov 16   ;;  %v620_v3 = vld [vmem:[#allocation2 + $0x18] sm:$0xff] }
  0x77   : > { %v280_v7 = vld [vmem:[%s274_s10] sm:$0xff]  ;;  %v281_v8 = vld [vmem:[%s274_s10 + $0x8] sm:$0xff]  ;;  %s2000_s19 = smov 20   ;;  %s2001_s24 = smov 24   ;;  %vm597_vm15 = vcmask 97280  }
  0x78   : > { %vm291_vm1 = vcmp.eq.s32.totalorder %v1397_v5, %v287_v4  ;;  %v1398_v9 = vadd.s32 4294967294, %v284_v6  ;;  %v1651_v11 = vpack.c.bf16 %v281_v8, %v280_v7  ;;  %v1399_v13 = vadd.s32 4294967294, %v285_v10  ;;  %s2002_s23 = smov 28   ;;  %s2003_s26 = smov 32  }
  0x79   : > { %v2193_v12 = vsel %vm291_vm1, 1.0, %v1995_v2  ;;  %vm303_vm5 = vcmp.eq.s32.totalorder %v1403_v15, %v287_v4  ;;  %v1404_v17 = vadd.s32 4294967292, %v284_v6  ;;  %v1405_v19 = vadd.s32 4294967292, %v285_v10  ;;  %v621_v15 = vld [vmem:[#allocation2 + $0x20] sm:$0xff]  ;;  %s2004_s28 = smov 36   ;;  %s2005_s30 = smov 64  }
  0x7a   : > { %1652 = vmatpush3.bf16.msra.mxu0 %v1651_v11  ;;  %vm292_vm3 = vcmp.eq.s32.totalorder %v1398_v9, %v287_v4  ;;  %vm293_vm4 = vcmp.eq.s32.totalorder %v1399_v13, %v287_v4  ;;  %v2215_v18 = vsel %vm303_vm5, 1.0, %v1995_v2  ;;  %v1660_v5 = vpack.c.bf16 %v620_v3, %v619_v0  ;;  %v984_v0 = vld [vmem:[#allocation6 + $0x80] sm:$0xff]  ;;  %v985_v3 = vld [vmem:[#allocation6 + $0x88] sm:$0xff]  ;;  %s279_s9 = scalar_lea.vmem %s2367_s5, %s1427_s22 }
  0x7b   : > { %1653 = vmatprep.subr.bf16.mxu0 %v1993_v1  ;;  %v2201_v14 = vsel %vm292_vm3, 1.0, %v1995_v2  ;;  %v2208_v16 = vsel %vm293_vm4, 1.0, %v1995_v2  ;;  %vm304_vm6 = vcmp.eq.s32.totalorder %v1404_v17, %v287_v4  ;;  %vm305_vm7 = vcmp.eq.s32.totalorder %v1405_v19, %v287_v4 }
  0x7c   : > { %v2222_v20 = vsel %vm304_vm6, 1.0, %v1995_v2  ;;  %v2229_v21 = vsel %vm305_vm7, 1.0, %v1995_v2  ;;  %vm602_vm1 = vcmask 162816   ;;  %vm605_vm3 = vcmask 195584  }
  0x7d   : > { %1555 = vmatmul.mubr.msk.f32.vlgmr.msra.gmra.mrb[0].mxu0 %vm312_vm2, %v2193_v12  ;;  %vm608_vm4 = vcmask 228352   ;;  %vm611_vm5 = vcmask 261120   ;;  %vm614_vm6 = vcmask 293888   ;;  %vm629_vm7 = vcmask 326656  }
  0x7e   : > { %1557 = vmatprep.mubr.msk.f32.mxu0 %vm1994_vm0, %v1995_v2  ;;  %1655 = vmatpush3.bf16.msra.mxu0 %v1651_v11 }
  0x7f   : > { %1657 = vmatprep.subr.bf16.mxu0 %v1656_v56 }
  0x81   : > { %1558 = vmatmul.mubr.msk.f32.gmra.mrb[2].mxu0 %vm312_vm2, %v2201_v14 }
  0x82   : > { %1560 = vmatprep.mubr.msk.f32.mxu0 %vm1994_vm0, %v1995_v2 }
  0x85   : > { %1561 = vmatmul.mubr.msk.f32.gmra.mrb[4].mxu0 %vm312_vm2, %v2208_v16 }
  0x86   : > { %1567 = vmatprep.mubr.msk.f32.mxu0 %vm1994_vm0, %v1995_v2 }
  0x89   : > { %1568 = vmatmul.mubr.msk.f32.vlgmr.msra.gmra.mrb[6].mxu0 %vm312_vm2, %v2215_v18 }
  0x8a   : > { %1570 = vmatprep.mubr.msk.f32.mxu0 %vm1994_vm0, %v1995_v2  ;;  %1659 = vmatpush3.bf16.msra.mxu0 %v1656_v56 }
  0x8b   : > { %1661 = vmatprep.subr.bf16.mxu0 %v1660_v5 }
  0x8d   : > { %1571 = vmatmul.mubr.msk.f32.gmra.mrb[8].mxu0 %vm312_vm2, %v2222_v20 }
  0x8e   : > { %1573 = vmatprep.mubr.msk.f32.mxu0 %vm1994_vm0, %v1995_v2  ;;  %1663 = vmatpush3.bf16.msra.mxu0 %v1660_v5  ;;  %v1670_v5 = vpack.c.bf16 %v985_v3, %v984_v0  ;;  %v1016_v0 = vld [vmem:[#allocation6 + $0x180] sm:$0xff]  ;;  %v1017_v3 = vld [vmem:[#allocation6 + $0x188] sm:$0xff] }
  0x8f   : > { %1584 = vmatprep.subr.mxu0 %v621_v15 }
  0x91   : > { %1574 = vmatmul.mubr.msk.f32.gmra.mrb[10].mxu0 %vm312_vm2, %v2229_v21 }
  0x92   : > { %1585 = vmatpush3.msra.mxu0 %v621_v15 }
  0x93   : > { %1667 = vmatprep.subr.bf16.mxu0 %v1993_v1 }
 0x150   : > { %v2233_v22 = vpop.f32.mrb[0].mxu0 }
 0x151   : > { %v1556_v23 = vpop.f32.mrb[1].mxu0  ;;  %v507_v25 = vrot.slane %v2233_v22, 2  ;;  %v495_v26 = vrot.slane %v2233_v22, 1  ;;  %v519_v27 = vrot.slane %v2233_v22, 3  ;;  %v531_v28 = vrot.slane %v2233_v22, 4 }
 0x154   : > { %v2235_v24 = vpop.f32.mrb[2].mxu0 }
 0x155   : > { %v1559_v29 = vpop.f32.mrb[3].mxu0  ;;  %v508_v30 = vrot.slane %v2235_v24, 2  ;;  %v496_v31 = vrot.slane %v2235_v24, 1  ;;  %v520_v32 = vrot.slane %v2235_v24, 3  ;;  %v532_v33 = vrot.slane %v2235_v24, 4 }
 0x157   : > { %v509_v34 = vsel %vm506_vm8, %v507_v25, %v508_v30  ;;  %v497_v35 = vsel %vm494_vm9, %v495_v26, %v496_v31  ;;  %v521_v36 = vsel %vm518_vm10, %v519_v27, %v520_v32  ;;  %v533_v37 = vsel %vm530_vm11, %v531_v28, %v532_v33 }
 0x158   : > { %512 = vrot.lane.b32.xlu1 %v509_v34, %s1996_s14  ;;  %500 = vrot.lane.b32.xlu0 %v497_v35, %s1997_s15  ;;  %v398_v38 = vpop.f32.mrb[4].mxu0 }
 0x159   : > { %v498_v39 = vrot.slane %v398_v38, 1  ;;  %v510_v40 = vrot.slane %v398_v38, 2  ;;  %v522_v41 = vrot.slane %v398_v38, 3  ;;  %v534_v42 = vrot.slane %v398_v38, 4  ;;  %v1562_v43 = vpop.f32.mrb[5].mxu0 }
 0x15b   : > { %v511_v44 = vsel %vm506_vm8, %v508_v30, %v510_v40  ;;  %v523_v45 = vsel %vm518_vm10, %v520_v32, %v522_v41  ;;  %v535_v46 = vsel %vm530_vm11, %v532_v33, %v534_v42  ;;  %v499_v47 = vsel %vm494_vm9, %v496_v31, %v498_v39 }
 0x15c   : > { %524 = vrot.lane.b32.xlu0 %v521_v36, %s1998_s16  ;;  %514 = vrot.lane.b32.xlu1 %v511_v44, %s1996_s14  ;;  %v477_v48 = vpop.f32.mrb[6].mxu0 }
 0x15d   : > { %v1569_v49 = vpop.f32.mrb[7].mxu0  ;;  %v551_v50 = vrot.slane %v477_v48, 2  ;;  %v562_v51 = vrot.slane %v477_v48, 4  ;;  %v574_v52 = vrot.slane %v477_v48, 6 }
 0x160   : > { %536 = vrot.lane.b32.xlu0 %v533_v37, %s1999_s17  ;;  %526 = vrot.lane.b32.xlu1 %v523_v45, %s1998_s16  ;;  %v482_v55 = vpop.f32.mrb[8].mxu0 }
 0x161   : > { %v1572_v57 = vpop.f32.mrb[9].mxu0  ;;  %v552_v58 = vrot.slane %v482_v55, 2  ;;  %v563_v59 = vrot.slane %v482_v55, 4  ;;  %v575_v60 = vrot.slane %v482_v55, 6 }
 0x163   : > { %v553_v61 = vsel %vm506_vm8, %v551_v50, %v552_v58  ;;  %v564_v62 = vsel %vm530_vm11, %v562_v51, %v563_v59  ;;  %v576_v63 = vsel %vm573_vm12, %v574_v52, %v575_v60 }
 0x164   : > { %538 = vrot.lane.b32.xlu1 %v535_v46, %s1999_s17  ;;  %502 = vrot.lane.b32.xlu0 %v499_v47, %s1997_s15  ;;  %v487_v4 = vpop.f32.mrb[10].mxu0 }
 0x165   : > { %v554_v6 = vrot.slane %v487_v4, 2  ;;  %v565_v7 = vrot.slane %v487_v4, 4  ;;  %v577_v8 = vrot.slane %v487_v4, 6  ;;  %v1575_v9 = vpop.f32.mrb[11].mxu0 }
 0x167   : > { %v555_v10 = vsel %vm506_vm8, %v552_v58, %v554_v6  ;;  %v566_v11 = vsel %vm530_vm11, %v563_v59, %v565_v7  ;;  %v578_v13 = vsel %vm573_vm12, %v575_v60, %v577_v8  ;;  %v969_v6 = vld [vmem:[#allocation6 + $0x8] sm:$0xff]  ;;  %v986_v7 = vld [vmem:[#allocation6 + $0x90] sm:$0xff]  ;;  %v987_v8 = vld [vmem:[#allocation6 + $0x98] sm:$0xff] }
 0x168   : > { %544 = vrot.lane.b32.xlu0 %v477_v48, %s2000_s19  ;;  %546 = vrot.lane.b32.xlu1 %v482_v55, %s2000_s19  ;;  %v1674_v9 = vpack.c.bf16 %v987_v8, %v986_v7 }
 0x16c   : > { %556 = vrot.lane.b32.xlu0 %v553_v61, %s2001_s24  ;;  %558 = vrot.lane.b32.xlu1 %v555_v10, %s2001_s24  ;;  %v970_v10 = vld [vmem:[#allocation6 + $0x10] sm:$0xff] }
 0x170   : > { %567 = vrot.lane.b32.xlu0 %v564_v62, %s2002_s23  ;;  %569 = vrot.lane.b32.xlu1 %v566_v11, %s2002_s23  ;;  %v971_v11 = vld [vmem:[#allocation6 + $0x18] sm:$0xff] }
 0x171   : > { %v1676_v15 = vpack.c.bf16 %v971_v11, %v970_v10  ;;  %v1019_v10 = vld [vmem:[#allocation6 + $0x198] sm:$0xff]  ;;  %v1032_v11 = vld [vmem:[#allocation6 + $0x200] sm:$0xff] }
 0x174   : > { %579 = vrot.lane.b32.xlu0 %v576_v63, %s2003_s26  ;;  %581 = vrot.lane.b32.xlu1 %v578_v13, %s2003_s26  ;;  %v988_v13 = vld [vmem:[#allocation6 + $0xa0] sm:$0xff] }
 0x178   : > { %585 = vrot.lane.b32.xlu0 %v482_v55, %s2004_s28  ;;  %587 = vrot.lane.b32.xlu1 %v487_v4, %s2004_s28  ;;  %v1415_v55 = vld [vmem:[#allocation4] ss:$0 sm:$0xff]  ;;  %v968_v4 = vld [vmem:[#allocation6] sm:$0xff] }
 0x1ca   : > { %v513_v17 = vpop.permute.xlu1 %512  ;;  %v501_v19 = vpop.permute.xlu0 %500 }
 0x1cb   : > { %v592_v35 = vsel %vm591_vm13, %v2233_v22, %v501_v19  ;;  %v972_v19 = vld [vmem:[#allocation6 + $0x20] sm:$0xff] }
 0x1cc   : > { %v595_v39 = vsel %vm594_vm14, %v592_v35, %v513_v17 }
 0x1ce   : > { %v525_v23 = vpop.permute.xlu0 %524  ;;  %v515_v25 = vpop.permute.xlu1 %514 }
 0x1cf   : > { %v598_v41 = vsel %vm597_vm15, %v595_v39, %v525_v23  ;;  %v990_v23 = vld [vmem:[#allocation6 + $0xb0] sm:$0xff] }
 0x1d2   : > { %v537_v26 = vpop.permute.xlu0 %536  ;;  %v527_v27 = vpop.permute.xlu1 %526 }
 0x1d3   : > { %v600_v42 = vsel %vm312_vm2, %v598_v41, %v537_v26 }
 0x1d6   : > { %v539_v28 = vpop.permute.xlu1 %538  ;;  %v503_v29 = vpop.permute.xlu0 %502 }
 0x1d7   : > { %v593_v31 = vsel %vm591_vm13, %v2235_v24, %v503_v29  ;;  %v975_v29 = vld [vmem:[#allocation6 + $0x38] sm:$0xff] }
 0x1d8   : > { %v596_v32 = vsel %vm594_vm14, %v593_v31, %v515_v25  ;;  %v991_v25 = vld [vmem:[#allocation6 + $0xb8] sm:$0xff] }
 0x1d9   : > { %v599_v36 = vsel %vm597_vm15, %v596_v32, %v527_v27  ;;  %v1682_v27 = vpack.c.bf16 %v991_v25, %v990_v23  ;;  %v1003_v23 = vld [vmem:[#allocation6 + $0x118] sm:$0xff] }
 0x1da   : > { %v545_v30 = vpop.permute.xlu0 %544  ;;  %v547_v1 = vpop.permute.xlu1 %546  ;;  %v601_v40 = vsel %vm312_vm2, %v599_v36, %v539_v28  ;;  %v974_v28 = vld [vmem:[#allocation6 + $0x30] sm:$0xff] }
 0x1db   : > { %v603_v44 = vsel %vm602_vm1, %v600_v42, %v545_v30  ;;  %v604_v45 = vsel %vm602_vm1, %v601_v40, %v547_v1  ;;  %v992_v30 = vld [vmem:[#allocation6 + $0xc0] sm:$0xff]  ;;  %v993_v1 = vld [vmem:[#allocation6 + $0xc8] sm:$0xff]  ;;  %v1684_v31 = vpack.c.bf16 %v975_v29, %v974_v28  ;;  %v994_v36 = vld [vmem:[#allocation6 + $0xd0] sm:$0xff] }
 0x1dc   : > { %v1686_v32 = vpack.c.bf16 %v993_v1, %v992_v30  ;;  %v1020_v1 = vld [vmem:[#allocation6 + $0x1a0] sm:$0xff] }
 0x1de   : > { %v557_v33 = vpop.permute.xlu0 %556  ;;  %v559_v34 = vpop.permute.xlu1 %558 }
 0x1df   : > { %v606_v46 = vsel %vm605_vm3, %v603_v44, %v557_v33  ;;  %v607_v47 = vsel %vm605_vm3, %v604_v45, %v559_v34  ;;  %v976_v33 = vld [vmem:[#allocation6 + $0x40] sm:$0xff]  ;;  %v977_v34 = vld [vmem:[#allocation6 + $0x48] sm:$0xff] }
 0x1e0   : > { %v1688_v40 = vpack.c.bf16 %v977_v34, %v976_v33  ;;  %v996_v45 = vld [vmem:[#allocation6 + $0xe0] sm:$0xff]  ;;  %v1021_v33 = vld [vmem:[#allocation6 + $0x1a8] sm:$0xff] }
 0x1e2   : > { %v568_v37 = vpop.permute.xlu0 %567  ;;  %v570_v38 = vpop.permute.xlu1 %569 }
 0x1e3   : > { %v609_v22 = vsel %vm608_vm4, %v606_v46, %v568_v37  ;;  %v610_v48 = vsel %vm608_vm4, %v607_v47, %v570_v38  ;;  %v995_v37 = vld [vmem:[#allocation6 + $0xd8] sm:$0xff]  ;;  %v997_v46 = vld [vmem:[#allocation6 + $0xe8] sm:$0xff] }
 0x1e4   : > { %v1690_v42 = vpack.c.bf16 %v995_v37, %v994_v36  ;;  %v1694_v47 = vpack.c.bf16 %v997_v46, %v996_v45  ;;  %v1710_v37 = vpack.c.bf16 %v1021_v33, %v1020_v1  ;;  %v1006_v45 = vld [vmem:[#allocation6 + $0x130] sm:$0xff]  ;;  %v1007_v46 = vld [vmem:[#allocation6 + $0x138] sm:$0xff] }
 0x1e6   : > { %v580_v24 = vpop.permute.xlu0 %579  ;;  %v582_v43 = vpop.permute.xlu1 %581 }
 0x1e7   : > { %v612_v49 = vsel %vm611_vm5, %v609_v22, %v580_v24  ;;  %v613_v50 = vsel %vm611_vm5, %v610_v48, %v582_v43  ;;  %v978_v24 = vld [vmem:[#allocation6 + $0x50] sm:$0xff]  ;;  %v979_v43 = vld [vmem:[#allocation6 + $0x58] sm:$0xff]  ;;  %v980_v22 = vld [vmem:[#allocation6 + $0x60] sm:$0xff] }
 0x1e8   : > { %v1692_v44 = vpack.c.bf16 %v979_v43, %v978_v24  ;;  %v981_v48 = vld [vmem:[#allocation6 + $0x68] sm:$0xff] }
 0x1ea   : > { %v586_v51 = vpop.permute.xlu0 %585  ;;  %v588_v52 = vpop.permute.xlu1 %587 }
 0x1eb   : > { %v615_v53 = vsel %vm614_vm6, %v612_v49, %v586_v51  ;;  %v616_v54 = vsel %vm614_vm6, %v613_v50, %v588_v52  ;;  %v1696_v49 = vpack.c.bf16 %v981_v48, %v980_v22  ;;  %v999_v50 = vld [vmem:[#allocation6 + $0xf8] sm:$0xff]  ;;  %v982_v52 = vld [vmem:[#allocation6 + $0x70] sm:$0xff]  ;;  %v1025_v22 = vld [vmem:[#allocation6 + $0x1c8] sm:$0xff]  ;;  %v1716_v48 = vpack.c.bf16 %v1007_v46, %v1006_v45 }
 0x1ec   : > { %1586 = vmatprep.mubr.msk.f32.mxu0 %vm629_vm7, %v615_v53  ;;  %v983_v53 = vld [vmem:[#allocation6 + $0x78] sm:$0xff] }
 0x1ed   : > { %1587 = vmatmul.mubr.msk.f32.vlgmr.msra.gmra.mrb[12].mxu0 %vm629_vm7, %v616_v54 }
 0x1ee   : > { %1606 = vmatprep.mubr.msk.f32.mxu0 %vm1994_vm0, %v1995_v2 }
 0x2c0   : > { %v1588_v56 = vpop.f32.mrb[12].mxu0 }
 0x2c1   : > { %v708_v57 = vadd.f32 %v1588_v56, %v1415_v55  ;;  %v702_v58 = vpop.f32.mrb[13].mxu0 }
 0x2c2   : > { %v703_v59 = vadd.f32 %v1415_v55, %v702_v58 }
 0x2c3   : > { %v712_v60 = vmax.f32 %v708_v57, 0.0 }
 0x2c4   : > { %v711_v61 = vmax.f32 %v703_v59, 0.0 }
 0x2c6   : > { %v1830_v62 = vpack.i.bf16 %v712_v60, %v711_v61  ;;  %v1665_v63 = vpack.c.bf16 %v712_v60, %v711_v61 }
 0x2c8   : > { %1831 = vrot.lane.b32.xlu0 %v1830_v62, %s2005_s30  ;;  %1666 = vmatpush3.bf16.msra.mxu1 %v1665_v63 }
 0x2c9   : > { %1671 = vmatprep.subr.bf16.mxu1 %v1670_v5  ;;  %v1001_v5 = vld [vmem:[#allocation6 + $0x108] sm:$0xff] }
 0x2cb   : > { %1594 = vmatmul.mubr.msk.f32.vlgmr.msra.gmra.mrb[0].mxu1 %vm312_vm2, %v2193_v12  ;;  %v1672_v12 = vpack.c.bf16 %v969_v6, %v968_v4  ;;  %v1000_v4 = vld [vmem:[#allocation6 + $0x100] sm:$0xff] }
 0x2cc   : > { %1596 = vmatprep.mubr.msk.f32.mxu1 %vm1994_vm0, %v1995_v2 }
 0x2cd   : > { %1673 = vmatpush3.bf16.msra.mxu1 %v1672_v12  ;;  %v1702_v12 = vpack.c.bf16 %v1017_v3, %v1016_v0  ;;  %v1031_v0 = vld [vmem:[#allocation6 + $0x1f8] sm:$0xff] }
 0x2ce   : > { %1675 = vmatprep.subr.bf16.mxu1 %v1674_v9  ;;  %v1018_v9 = vld [vmem:[#allocation6 + $0x190] sm:$0xff] }
 0x2cf   : > { %1597 = vmatmul.mubr.msk.f32.gmra.mrb[2].mxu1 %vm312_vm2, %v2201_v14  ;;  %v989_v14 = vld [vmem:[#allocation6 + $0xa8] sm:$0xff] }
 0x2d0   : > { %1599 = vmatprep.mubr.msk.f32.mxu1 %vm1994_vm0, %v1995_v2  ;;  %v1678_v17 = vpack.c.bf16 %v989_v14, %v988_v13 }
 0x2d1   : > { %1677 = vmatpush3.bf16.msra.mxu1 %v1676_v15  ;;  %v1704_v15 = vpack.c.bf16 %v1001_v5, %v1000_v4  ;;  %v1014_v4 = vld [vmem:[#allocation6 + $0x170] sm:$0xff]  ;;  %v1015_v5 = vld [vmem:[#allocation6 + $0x178] sm:$0xff] }
 0x2d2   : > { %1679 = vmatprep.subr.bf16.mxu1 %v1678_v17  ;;  %v1706_v17 = vpack.c.bf16 %v1019_v10, %v1018_v9 }
 0x2d3   : > { %1600 = vmatmul.mubr.msk.f32.gmra.mrb[4].mxu1 %vm312_vm2, %v2208_v16  ;;  %v973_v16 = vld [vmem:[#allocation6 + $0x28] sm:$0xff] }
 0x2d4   : > { %v1680_v26 = vpack.c.bf16 %v973_v16, %v972_v19  ;;  %v1033_v19 = vld [vmem:[#allocation6 + $0x208] sm:$0xff]  ;;  %v1002_v16 = vld [vmem:[#allocation6 + $0x110] sm:$0xff] }
 0x2d6   : > { %1681 = vmatpush3.bf16.msra.mxu1 %v1680_v26 }
 0x2d7   : > { %1683 = vmatprep.subr.bf16.mxu1 %v1682_v27 }
 0x2da   : > { %1685 = vmatpush3.bf16.msra.mxu1 %v1684_v31  ;;  %v2310_v31 = vpack.c.bf16 %v1033_v19, %v1032_v11 }
 0x2db   : > { %1687 = vmatprep.subr.bf16.mxu1 %v1686_v32  ;;  %v1708_v32 = vpack.c.bf16 %v1003_v23, %v1002_v16 }
 0x2de   : > { %1689 = vmatpush3.bf16.msra.mxu1 %v1688_v40 }
 0x2df   : > { %1691 = vmatprep.subr.bf16.mxu1 %v1690_v42  ;;  %v1023_v42 = vld [vmem:[#allocation6 + $0x1b8] sm:$0xff] }
 0x2e2   : > { %1693 = vmatpush3.bf16.msra.mxu1 %v1692_v44 }
 0x2e3   : > { %1695 = vmatprep.subr.bf16.mxu1 %v1694_v47  ;;  %v1024_v47 = vld [vmem:[#allocation6 + $0x1c0] sm:$0xff] }
 0x2e6   : > { %1697 = vmatpush3.bf16.msra.mxu1 %v1696_v49  ;;  %v1718_v49 = vpack.c.bf16 %v1025_v22, %v1024_v47 }
 0x33a   : > { %v1832_v35 = vpop.permute.xlu0 %1831 }
 0x33b   : > { %v1834_v38 = vunpack.i.h.bf16 %v1832_v35  ;;  %v1833_v39 = vunpack.i.l.bf16 %v1832_v35 }
 0x33d   : > { %v1668_v41 = vpack.c.bf16 %v1834_v38, %v1833_v39  ;;  %v1004_v38 = vld [vmem:[#allocation6 + $0x120] sm:$0xff]  ;;  %v1005_v39 = vld [vmem:[#allocation6 + $0x128] sm:$0xff] }
 0x33e   : > { %v1712_v43 = vpack.c.bf16 %v1005_v39, %v1004_v38 }
 0x33f   : > { %1669 = vmatpush3.bf16.msra.mxu0 %v1668_v41  ;;  %v1022_v41 = vld [vmem:[#allocation6 + $0x1b0] sm:$0xff] }
 0x340   : > { %1703 = vmatprep.subr.bf16.mxu0 %v1702_v12  ;;  %v1714_v44 = vpack.c.bf16 %v1023_v42, %v1022_v41 }
 0x342   : > { %1607 = vmatmul.mubr.msk.f32.vlgmr.msra.gmra.mrb[14].mxu0 %vm312_vm2, %v2215_v18  ;;  %v998_v18 = vld [vmem:[#allocation6 + $0xf0] sm:$0xff] }
 0x343   : > { %1609 = vmatprep.mubr.msk.f32.mxu0 %vm1994_vm0, %v1995_v2  ;;  %v1698_v51 = vpack.c.bf16 %v999_v50, %v998_v18  ;;  %1705 = vmatpush3.bf16.msra.mxu0 %v1704_v15  ;;  %v1008_v18 = vld [vmem:[#allocation6 + $0x140] sm:$0xff]  ;;  %v1009_v50 = vld [vmem:[#allocation6 + $0x148] sm:$0xff] }
 0x344   : > { %1707 = vmatprep.subr.bf16.mxu0 %v1706_v17 }
 0x345   : > { %1699 = vmatprep.subr.bf16.mxu1 %v1698_v51  ;;  %v1026_v51 = vld [vmem:[#allocation6 + $0x1d0] sm:$0xff] }
 0x346   : > { %1610 = vmatmul.mubr.msk.f32.gmra.mrb[16].mxu0 %vm312_vm2, %v2222_v20  ;;  %v1700_v20 = vpack.c.bf16 %v983_v53, %v982_v52  ;;  %v1027_v52 = vld [vmem:[#allocation6 + $0x1d8] sm:$0xff]  ;;  %v1720_v53 = vpack.c.bf16 %v1009_v50, %v1008_v18  ;;  %v1038_v50 = vld [vmem:[#allocation6 + $0x230] sm:$0xff] }
 0x347   : > { %1612 = vmatprep.mubr.msk.f32.mxu0 %vm1994_vm0, %v1995_v2  ;;  %1709 = vmatpush3.bf16.msra.mxu0 %v1708_v32  ;;  %vm957_vm0 = vcmask 523264  }
 0x348   : > { %1701 = vmatpush3.bf16.msra.mxu1 %v1700_v20  ;;  %1711 = vmatprep.subr.bf16.mxu0 %v1710_v37  ;;  %v1722_v20 = vpack.c.bf16 %v1027_v52, %v1026_v51  ;;  %v1039_v51 = vld [vmem:[#allocation6 + $0x238] sm:$0xff]  ;;  %v1040_v52 = vld [vmem:[#allocation6 + $0x240] sm:$0xff] }
 0x349   : > { %1735 = vmatprep.subr.bf16.mxu1 %v2310_v31 }
 0x34a   : > { %1613 = vmatmul.mubr.msk.f32.gmra.mrb[18].mxu0 %vm312_vm2, %v2229_v21 }
 0x34b   : > { %1713 = vmatpush3.bf16.msra.mxu0 %v1712_v43  ;;  %v1036_v43 = vld [vmem:[#allocation6 + $0x220] sm:$0xff] }
 0x34c   : > { %1715 = vmatprep.subr.bf16.mxu0 %v1714_v44  ;;  %v1037_v44 = vld [vmem:[#allocation6 + $0x228] sm:$0xff] }
 0x34d   : > { %v1742_v18 = vpack.c.bf16 %v1037_v44, %v1036_v43 }
 0x34f   : > { %1717 = vmatpush3.bf16.msra.mxu0 %v1716_v48 }
 0x350   : > { %1719 = vmatprep.subr.bf16.mxu0 %v1718_v49 }
 0x353   : > { %1721 = vmatpush3.bf16.msra.mxu0 %v1720_v53  ;;  %v1041_v53 = vld [vmem:[#allocation6 + $0x248] sm:$0xff] }
 0x354   : > { %1723 = vmatprep.subr.bf16.mxu0 %v1722_v20  ;;  %v1042_v20 = vld [vmem:[#allocation6 + $0x250] sm:$0xff] }
 0x39e   : > { %v2289_v2 = vpop.f32.mrb[0].mxu1 }
 0x39f   : > { %v1595_v54 = vpop.f32.mrb[1].mxu1  ;;  %v884_v21 = vrot.slane %v2289_v2, 1  ;;  %v902_v55 = vrot.slane %v2289_v2, 3  ;;  %v895_v56 = vrot.slane %v2289_v2, 2  ;;  %v913_v57 = vrot.slane %v2289_v2, 4 }
 0x3a0   : > { %v1010_v54 = vld [vmem:[#allocation6 + $0x150] sm:$0xff] }
 0x3a2   : > { %v2295_v58 = vpop.f32.mrb[2].mxu1 }
 0x3a3   : > { %v885_v59 = vrot.slane %v2295_v58, 1  ;;  %v903_v60 = vrot.slane %v2295_v58, 3  ;;  %v914_v61 = vrot.slane %v2295_v58, 4  ;;  %v1598_v62 = vpop.f32.mrb[3].mxu1  ;;  %v896_v63 = vrot.slane %v2295_v58, 2 }
 0x3a5   : > { %v886_v6 = vsel %vm494_vm9, %v884_v21, %v885_v59  ;;  %v904_v7 = vsel %vm518_vm10, %v902_v55, %v903_v60  ;;  %v2304_v8 = vsel %vm506_vm8, %v895_v56, %v896_v63  ;;  %v2307_v25 = vsel %vm530_vm11, %v913_v57, %v914_v61  ;;  %v1011_v21 = vld [vmem:[#allocation6 + $0x158] sm:$0xff]  ;;  %v1028_v55 = vld [vmem:[#allocation6 + $0x1e0] sm:$0xff]  ;;  %v1029_v56 = vld [vmem:[#allocation6 + $0x1e8] sm:$0xff] }
 0x3a6   : > { %v789_v13 = vpop.f32.mrb[4].mxu1  ;;  %v1835_v14 = vpack.i.bf16 %v886_v6, %v904_v7  ;;  %v1724_v57 = vpack.c.bf16 %v1011_v21, %v1010_v54  ;;  %v1732_v6 = vpack.c.bf16 %v1015_v5, %v1014_v4  ;;  %v1043_v54 = vld [vmem:[#allocation6 + $0x258] sm:$0xff]  ;;  %v1044_v21 = vld [vmem:[#allocation6 + $0x260] sm:$0xff] }
 0x3a7   : > { %v887_v26 = vrot.slane %v789_v13, 1  ;;  %v898_v27 = vrot.slane %v789_v13, 2  ;;  %v905_v28 = vrot.slane %v789_v13, 3  ;;  %v916_v29 = vrot.slane %v789_v13, 4  ;;  %v1601_v30 = vpop.f32.mrb[5].mxu1  ;;  %v1034_v13 = vld [vmem:[#allocation6 + $0x210] sm:$0xff] }
 0x3a8   : > { %1836 = vrot.lane.b32.xlu1 %v1835_v14, %s2005_s30  ;;  %1725 = vmatpush3.bf16.msra.mxu0 %v1724_v57  ;;  %v1046_v57 = vld [vmem:[#allocation6 + $0x270] sm:$0xff] }
 0x3a9   : > { %v888_v34 = vsel %vm494_vm9, %v885_v59, %v887_v26  ;;  %v906_v35 = vsel %vm518_vm10, %v903_v60, %v905_v28  ;;  %v2315_v36 = vsel %vm506_vm8, %v896_v63, %v898_v27  ;;  %v2319_v24 = vsel %vm530_vm11, %v914_v61, %v916_v29  ;;  %v1012_v60 = vld [vmem:[#allocation6 + $0x160] sm:$0xff]  ;;  %v1013_v61 = vld [vmem:[#allocation6 + $0x168] sm:$0xff]  ;;  %v1030_v63 = vld [vmem:[#allocation6 + $0x1f0] sm:$0xff] }
 0x3aa   : > { %v1840_v40 = vpack.i.bf16 %v888_v34, %v906_v35  ;;  %v1726_v59 = vpack.c.bf16 %v1029_v56, %v1028_v55  ;;  %v1728_v62 = vpack.c.bf16 %v1013_v61, %v1012_v60  ;;  %v1730_v3 = vpack.c.bf16 %v1031_v0, %v1030_v63  ;;  %v1035_v26 = vld [vmem:[#allocation6 + $0x218] sm:$0xff]  ;;  %v1045_v55 = vld [vmem:[#allocation6 + $0x268] sm:$0xff] }
 0x3ab   : > { %v1738_v37 = vpack.c.bf16 %v1035_v26, %v1034_v13  ;;  %v1758_v56 = vpack.c.bf16 %v1045_v55, %v1044_v21 }
 0x3ac   : > { %1841 = vrot.lane.b32.xlu1 %v1840_v40, %s2005_s30  ;;  %1727 = vmatprep.subr.bf16.mxu0 %v1726_v59  ;;  %v1047_v59 = vld [vmem:[#allocation6 + $0x278] sm:$0xff] }
 0x3ad   : > { %1729 = vmatpush3.bf16.msra.mxu0 %v1728_v62  ;;  %v1762_v60 = vpack.c.bf16 %v1047_v59, %v1046_v57 }
 0x3ae   : > { %1731 = vmatprep.subr.bf16.mxu0 %v1730_v3 }
 0x3b1   : > { %1733 = vmatpush3.bf16.msra.mxu0 %v1732_v6 }
 0x415   : > { %v867_v7 = vpop.f32.mrb[14].mxu0 }
 0x416   : > { %v1608_v12 = vpop.f32.mrb[15].mxu0  ;;  %v929_v9 = vrot.slane %v867_v7, 2  ;;  %v936_v10 = vrot.slane %v867_v7, 4  ;;  %v947_v14 = vrot.slane %v867_v7, 6 }
 0x419   : > { %v872_v11 = vpop.f32.mrb[16].mxu0 }
 0x41a   : > { %v930_v15 = vrot.slane %v872_v11, 2  ;;  %v937_v17 = vrot.slane %v872_v11, 4  ;;  %v948_v19 = vrot.slane %v872_v11, 6  ;;  %v1611_v16 = vpop.f32.mrb[17].mxu0  ;;  %v1837_v23 = vpop.permute.xlu1 %1836 }
 0x41b   : > { %v1839_v27 = vunpack.i.h.bf16 %v1837_v23  ;;  %v1838_v28 = vunpack.i.l.bf16 %v1837_v23  ;;  %v1424_v16 = vld [vmem:[#allocation7] ss:$0 sm:$0xff] }
 0x41c   : > { %v938_v29 = vsel %vm530_vm11, %v936_v10, %v937_v17  ;;  %v2324_v30 = vsel %vm506_vm8, %v929_v9, %v930_v15  ;;  %v2327_v1 = vsel %vm573_vm12, %v947_v14, %v948_v19 }
 0x41d   : > { %v877_v32 = vpop.f32.mrb[18].mxu0  ;;  %v960_v33 = vsel %vm957_vm0, %v2304_v8, %v1838_v28  ;;  %v1845_v34 = vpack.i.bf16 %v867_v7, %v938_v29  ;;  %v958_v35 = vsel %vm957_vm0, %v2289_v2, %v1839_v27 }
 0x41e   : > { %v932_v38 = vrot.slane %v877_v32, 2  ;;  %v939_v39 = vrot.slane %v877_v32, 4  ;;  %v950_v40 = vrot.slane %v877_v32, 6  ;;  %v1614_v41 = vpop.f32.mrb[19].mxu0  ;;  %1119 = vmatprep.mubr.f32.mxu1 %v960_v33  ;;  %954 = vrot.lane.b32.xlu1 %v877_v32, %s2005_s30  ;;  %v1842_v42 = vpop.permute.xlu1 %1841 }
 0x41f   : > { %v1844_v45 = vunpack.i.h.bf16 %v1842_v42  ;;  %v1843_v46 = vunpack.i.l.bf16 %v1842_v42  ;;  %1846 = vrot.lane.b32.xlu0 %v1845_v34, %s2005_s30  ;;  %1120 = vmatmul.mubr.f32.vlgmr.msra.gmra.mrb[6].mxu1 %v958_v35 }
 0x420   : > { %v940_v8 = vsel %vm530_vm11, %v937_v17, %v939_v39  ;;  %1737 = vmatpush3.bf16.msra.mxu1 %v2310_v31  ;;  %v951_v2 = vsel %vm573_vm12, %v948_v19, %v950_v40  ;;  %v933_v47 = vsel %vm506_vm8, %v930_v15, %v932_v38  ;;  %v1746_v31 = vpack.c.bf16 %v1039_v51, %v1038_v50 }
 0x421   : > { %v961_v22 = vsel %vm957_vm0, %v2315_v36, %v1843_v46  ;;  %v1850_v48 = vpack.i.bf16 %v872_v11, %v940_v8  ;;  %v959_v49 = vsel %vm957_vm0, %v2295_v58, %v1844_v45  ;;  %1739 = vmatprep.subr.bf16.mxu1 %v1738_v37  ;;  %v1750_v36 = vpack.c.bf16 %v1041_v53, %v1040_v52 }
 0x422   : > { %1124 = vmatprep.mubr.f32.mxu1 %v961_v22  ;;  %v1754_v58 = vpack.c.bf16 %v1043_v54, %v1042_v20 }
 0x423   : > { %1851 = vrot.lane.b32.xlu0 %v1850_v48, %s2005_s30  ;;  %1125 = vmatmul.mubr.f32.gmra.mrb[8].mxu1 %v959_v49 }
 0x424   : > { %1741 = vmatpush3.bf16.msra.mxu1 %v1738_v37 }
 0x425   : > { %1743 = vmatprep.subr.bf16.mxu1 %v1742_v18 }
 0x428   : > { %1745 = vmatpush3.bf16.msra.mxu1 %v1742_v18 }
 0x429   : > { %1747 = vmatprep.subr.bf16.mxu1 %v1746_v31 }
 0x42c   : > { %1749 = vmatpush3.bf16.msra.mxu1 %v1746_v31 }
 0x42d   : > { %1751 = vmatprep.subr.bf16.mxu1 %v1750_v36 }
 0x430   : > { %1753 = vmatpush3.bf16.msra.mxu1 %v1750_v36 }
 0x431   : > { %1755 = vmatprep.subr.bf16.mxu1 %v1754_v58 }
 0x434   : > { %1757 = vmatpush3.bf16.msra.mxu1 %v1754_v58 }
 0x435   : > { %1759 = vmatprep.subr.bf16.mxu1 %v1758_v56 }
 0x438   : > { %1761 = vmatpush3.bf16.msra.mxu1 %v1758_v56 }
 0x439   : > { %1763 = vmatprep.subr.bf16.mxu1 %v1762_v60 }
 0x43c   : > { %1765 = vmatpush3.bf16.msra.mxu1 %v1762_v60 }
 0x490   : > { %v955_v5 = vpop.permute.xlu1 %954 }
 0x491   : > { %v1847_v61 = vpop.permute.xlu0 %1846  ;;  %v967_v11 = vsel %vm957_vm0, %v951_v2, %v955_v5 }
 0x492   : > { %v1849_v62 = vunpack.i.h.bf16 %v1847_v61  ;;  %v1848_v63 = vunpack.i.l.bf16 %v1847_v61 }
 0x494   : > { %v964_v0 = vsel %vm957_vm0, %v2324_v30, %v1848_v63  ;;  %v962_v3 = vsel %vm957_vm0, %v2307_v25, %v1849_v62 }
 0x495   : > { %1194 = vmatprep.mubr.f32.mxu0 %v964_v0  ;;  %v1852_v4 = vpop.permute.xlu0 %1851 }
 0x496   : > { %v1854_v6 = vunpack.i.h.bf16 %v1852_v4  ;;  %v1853_v7 = vunpack.i.l.bf16 %v1852_v4  ;;  %1195 = vmatmul.mubr.f32.vlgmr.msra.gmra.mrb[20].mxu0 %v962_v3 }
 0x498   : > { %v965_v12 = vsel %vm957_vm0, %v933_v47, %v1853_v7  ;;  %v966_v9 = vsel %vm957_vm0, %v2327_v1, %v1854_v6  ;;  %v963_v10 = vsel %vm957_vm0, %v2319_v24, %v1854_v6 }
 0x499   : > { %1199 = vmatprep.mubr.f32.mxu0 %v965_v12  ;;  %1647 = vmatprep.mubr.f32.mxu1 %v966_v9 }
 0x49a   : > { %1200 = vmatmul.mubr.f32.gmra.mrb[22].mxu0 %v963_v10  ;;  %1648 = vmatmul.mubr.f32.vlgmr.msra.gmra.mrb[10].mxu1 %v967_v11 }
 0x4f2   : > { %v1488_v25 = vpop.f32.mrb[6].mxu1 }
 0x4f3   : > { %v1489_v13 = vpop.f32.mrb[7].mxu1 }
 0x4f4   : > { %v1490_v14 = vadd.f32 %v1489_v13, %v1488_v25 }
 0x4f6   : > { %v1491_v15 = vpop.f32.mrb[8].mxu1  ;;  %v1122_v27 = vadd.f32 %v1490_v14, %v1424_v16 }
 0x4f7   : > { %v1492_v17 = vpop.f32.mrb[9].mxu1 }
 0x4f8   : > { %v1493_v19 = vadd.f32 %v1492_v17, %v1491_v15 }
 0x4fa   : > { %v1127_v33 = vadd.f32 %v1493_v19, %v1424_v16 }
 0x569   : > { %v1526_v23 = vpop.f32.mrb[20].mxu0 }
 0x56a   : > { %v1527_v26 = vpop.f32.mrb[21].mxu0 }
 0x56b   : > { %v1528_v28 = vadd.f32 %v1527_v26, %v1526_v23 }
 0x56d   : > { %v1529_v29 = vpop.f32.mrb[22].mxu0  ;;  %v1649_v24 = vpop.f32.mrb[10].mxu1  ;;  %v1197_v30 = vadd.f32 %v1528_v28, %v1122_v27 }
 0x56e   : > { %v1530_v1 = vpop.f32.mrb[23].mxu0  ;;  %v1271_v32 = vpop.f32.mrb[11].mxu1 }
 0x56f   : > { %v1531_v34 = vadd.f32 %v1530_v1, %v1529_v29  ;;  %v1272_v35 = vadd.f32 %v1271_v32, %v1197_v30 }
 0x571   : > { %v1202_v37 = vadd.f32 %v1531_v34, %v1127_v33  ;;  %v1280_v38 = vmax.f32 %v1272_v35, 0.0 }
 0x573   : > { %v1277_v39 = vadd.f32 %v1649_v24, %v1202_v37  ;;  %1282 = vst [vmem:[%s279_s9] sm:$0xff] %v1280_v38 }
 0x575   : > { %v1281_v40 = vmax.f32 %v1277_v39, 0.0 }
 0x577   : > { %1283 = vst [vmem:[%s279_s9 + $0x8] sm:$0xff] %v1281_v40 }
 0x578 PF: > { %s18_s18 = sadd.s32 1, %s1985_s18  }
 0x579   : > { %p15_p6 = scmp.ge.s32.totalorder %s18_s18, 4  }
 0x57b   :  { %17 = sbr.rel (!%p15_p6) target bundleno = 3 (0x3), region = 87 }
 0x582   :  { %1305 = vsyncpa [#allocation3], 1 }
 0x583   :  { %1307 = vsyncpa [#allocation3 + $0x1], 1 }
 0x584   :  { %1308 = vsyncpa [#allocation5], 1 }
 0x585   :  { %1309 = vsyncpa [#allocation8], 1 }

// kernel: prectime_forward.3
= control target key start
LH: loop header
LB: loop body
LE: loop exit
PB: predicated region body
PF: predicated region fallthrough
CT: control target
= control target key end

     0   :  { %s16933_s0 = inlined_call_operand.vmem [shape: f32[2,1,2048], index: 0, kind: input, shape index: {}, may-alias: {0,1}]   ;;  %s16934_s1 = inlined_call_operand.vmem [shape: f32[2,16,128], index: 1, kind: input, shape index: {}, may-alias: {0,1}]   ;;  %s16935_s2 = inlined_call_operand.vmem [shape: bf16[2048,800], index: 2, kind: input, shape index: {}]   ;;  %s16936_s3 = inlined_call_operand.vmem [shape: f32[1,800], index: 3, kind: input, shape index: {}]   ;;  %s16937_s4 = inlined_call_operand.vmem [shape: f32[200,17], index: 4, kind: input, shape index: {}]   ;;  %s16938_s5 = inlined_call_operand.<no memory space> [shape: f32[1,1], index: 5, kind: input, shape index: {}]   ;;  %s16939_s6 = inlined_call_operand.vmem [shape: bf16[640,128], index: 6, kind: input, shape index: {}]   ;;  %s16940_s7 = inlined_call_operand.vmem [shape: f32[5,128], index: 7, kind: input, shape index: {}]   ;;  %s16941_s8 = inlined_call_operand.vmem [shape: f32[1,128], index: 8, kind: input, shape index: {}]   ;;  %s16942_s9 = inlined_call_operand.vmem [shape: bf16[640,256], index: 9, kind: input, shape index: {}]   ;;  %s16943_s10 = inlined_call_operand.vmem [shape: f32[1,256], index: 10, kind: input, shape index: {}]   ;;  %s16944_s11 = inlined_call_operand.vmem [shape: bf16[256,256], index: 11, kind: input, shape index: {}]   ;;  %s16945_s12 = inlined_call_operand.vmem [shape: f32[256,16], index: 12, kind: input, shape index: {}]   ;;  %s16946_s13 = inlined_call_operand.vmem [shape: f32[1,16], index: 13, kind: input, shape index: {}]   ;;  %s16947_s14 = inlined_call_operand.vmem [shape: f32[2,1,1], index: 14, kind: output, shape index: {0}]   ;;  %s16948_s15 = inlined_call_operand.hbm [shape: f32[2,1,16], index: 15, kind: output, shape index: {1}]  }
   0x1   :  { %16955 = sst [smem:[#allocation10_spill]] %s16933_s0  ;;  %v21_v0 = vstv %s16938_s5 }
   0x2   :  { %22 = vst [vmem:[#allocation2] sm:$0x1] %v21_v0 }
   0x3   :  { %23 = vsyncpa [#allocation4], 0 }
   0x4   :  { %25 = vsyncpa [#allocation4 + $0x1], 0  ;;  %s13065_s20 = smov 0   ;;  %s13067_s21 = smov 0  }
   0x5   :  { %s13069_s22 = smov 0   ;;  %s13071_s23 = smov 0  }
   0x6 LB: > { %16956 = sst [smem:[#allocation6_spill]] %s12965_s22  ;;  %s13086_s5 = sadd.s32 4294967295, %s12969_s23   ;;  %s12969_s23 = sphi %s13071_s23, %s16966_s23   ;;  %s12965_s22 = sphi %s13069_s22, %s16968_s22   ;;  %s12961_s21 = sphi %s13067_s21, %s16970_s21   ;;  %s12957_s20 = sphi %s13065_s20, %s16969_s20  }
   0x7   : > { %s9737_s24 = sadd.s32 4294967294, %s12969_s23   ;;  %s13090_s25 = sadd.s32 1, %s12969_s23  }
   0x8   : > { %16957 = sst [smem:[#allocation7_spill]] %s13090_s25  ;;  %s368_s26 = sadd.s32 1, %s12965_s22 }
   0x9   : > { %s365_s27 = ssub.s32 %s12969_s23, %s13090_s25  ;;  %p378_p0 = scmp.ne.s32.totalorder %s12965_s22, %s12961_s21 }
   0xa   : > { %p366_p1 = scmp.eq.s32.totalorder %s365_s27, 0  ;;  %p379_p2 = scmp.eq.s32.totalorder %s13086_s5, 1 }
   0xb   : > { %p384_p3 = scmp.ne.s32.totalorder %s12961_s21, %s12957_s20  ;;  %p385_p4 = scmp.eq.s32.totalorder %s9737_s24, 1 }
   0xc   : > { %s13101_s28 = scalar_select %p366_p1, %s12965_s22, %s368_s26  }
   0xd   : > { %p13103_p5 = por %p379_p2, %p378_p0  ;;  %p13107_p6 = por %p385_p4, %p384_p3 }
   0xe   : > { %16958 = sst [smem:[#allocation8_spill]] %s13101_s28  ;;  %p9740_p7 = scmp.ge.s32.totalorder %s12969_s23, 1 }
   0xf   : > { %s16960_s30 = scalar_select %p13107_p6, 1, 0 }
  0x10   : > { %p454_p8 = scmp.lt.s32.totalorder %s12969_s23, 3 }
  0x11   : > { %16961 = sst [smem:[#allocation9_spill]] %s16960_s30 }
  0x12   : > { %p455_p9 = pnand %p9740_p7, %p454_p8 }
  0x13   : > { %v11375_v1 = vld [vmem:[%s16935_s2 + $0x4] ss:$28 sps:$4 sm:$0xff] (!%p455_p9)   ;;  %v11378_v3 = vld [vmem:[%s16935_s2 + $0x3c] ss:$28 sps:$4 sm:$0xff] (!%p455_p9)   ;;  %v11381_v5 = vld [vmem:[%s16935_s2 + $0xc] ss:$28 sps:$4 sm:$0xff] (!%p455_p9)   ;;  %v525_v34 = vlaneseq (!%p455_p9) }
  0x14   : > { %458 = sbr.rel (%p455_p9) target bundleno = 3054 (0xbee), region = 76  ;;  %v11377_v2 = vld [vmem:[%s16935_s2] ss:$28 sps:$4 sm:$0xff] (!%p455_p9)   ;;  %6290 = vmatprep.subr.bf16.mxu0 (!%p455_p9), %v11375_v1  ;;  %v11380_v4 = vld [vmem:[%s16935_s2 + $0x38] ss:$28 sps:$4 sm:$0xff] (!%p455_p9)   ;;  %6618 = vmatprep.subr.bf16.mxu1 (!%p455_p9), %v11381_v5  ;;  %p508_p10 = scmp.lt.s32.totalorder (!%p455_p9), %s13086_s5, 1 }
  0x15   : > { %6291 = vmatpush1.bf16.msra.mxu0 (!%p455_p9), %v11377_v2  ;;  %v11383_v6 = vld [vmem:[%s16935_s2 + $0x8] ss:$28 sps:$4 sm:$0xff] (!%p455_p9)   ;;  %v11384_v7 = vld [vmem:[%s16935_s2 + $0x74] ss:$28 sps:$4 sm:$0xff] (!%p455_p9)   ;;  %v11389_v9 = vld [vmem:[%s16935_s2 + $0x40] ss:$28 sps:$4 sm:$0xff] (!%p455_p9)  }
  0x16   : > { %6292 = vmatprep.subr.bf16.mxu0 (!%p455_p9), %v11378_v3  ;;  %6619 = vmatpush1.bf16.msra.mxu1 (!%p455_p9), %v11383_v6  ;;  %v11387_v8 = vld [vmem:[%s16935_s2 + $0x44] ss:$28 sps:$4 sm:$0xff] (!%p455_p9)   ;;  %v11386_v10 = vld [vmem:[%s16935_s2 + $0x70] ss:$28 sps:$4 sm:$0xff] (!%p455_p9)   ;;  %v11393_v12 = vld [vmem:[%s16935_s2 + $0x7c] ss:$28 sps:$4 sm:$0xff] (!%p455_p9)  }
  0x17   : > { %v11390_v11 = vld [vmem:[%s16935_s2 + $0xac] ss:$28 sps:$4 sm:$0xff] (!%p455_p9)   ;;  %6620 = vmatprep.subr.bf16.mxu1 (!%p455_p9), %v11387_v8  ;;  %v11395_v13 = vld [vmem:[%s16935_s2 + $0x78] ss:$28 sps:$4 sm:$0xff] (!%p455_p9)   ;;  %v11396_v16 = vld [vmem:[%s16935_s2 + $0xe4] ss:$28 sps:$4 sm:$0xff] (!%p455_p9)  }
  0x18   : > { %v11392_v14 = vld [vmem:[%s16935_s2 + $0xa8] ss:$28 sps:$4 sm:$0xff] (!%p455_p9)   ;;  %v11399_v15 = vld [vmem:[%s16935_s2 + $0xb4] ss:$28 sps:$4 sm:$0xff] (!%p455_p9)   ;;  %v11398_v18 = vld [vmem:[%s16935_s2 + $0xe0] ss:$28 sps:$4 sm:$0xff] (!%p455_p9)  }
  0x19   : > { %6293 = vmatpush1.bf16.msra.mxu0 (!%p455_p9), %v11380_v4  ;;  %v11401_v17 = vld [vmem:[%s16935_s2 + $0xb0] ss:$28 sps:$4 sm:$0xff] (!%p455_p9)   ;;  %v11402_v20 = vld [vmem:[%s16935_s2 + $0x11c] ss:$28 sps:$4 sm:$0xff] (!%p455_p9)   ;;  %v11407_v21 = vld [vmem:[%s16935_s2 + $0xe8] ss:$28 sps:$4 sm:$0xff] (!%p455_p9)  }
  0x1a   : > { %6294 = vmatprep.subr.bf16.mxu0 (!%p455_p9), %v11384_v7  ;;  %6621 = vmatpush1.bf16.msra.mxu1 (!%p455_p9), %v11389_v9  ;;  %v11405_v19 = vld [vmem:[%s16935_s2 + $0xec] ss:$28 sps:$4 sm:$0xff] (!%p455_p9)   ;;  %v11404_v22 = vld [vmem:[%s16935_s2 + $0x118] ss:$28 sps:$4 sm:$0xff] (!%p455_p9)   ;;  %v11411_v23 = vld [vmem:[%s16935_s2 + $0x124] ss:$28 sps:$4 sm:$0xff] (!%p455_p9)  }
  0x1b   : > { %6622 = vmatprep.subr.bf16.mxu1 %v11393_v12  ;;  %v11408_v24 = vld [vmem:[%s16935_s2 + $0x154] ss:$28 sps:$4 sm:$0xff]   ;;  %v11413_v25 = vld [vmem:[%s16935_s2 + $0x120] ss:$28 sps:$4 sm:$0xff]   ;;  %v11414_v28 = vld [vmem:[%s16935_s2 + $0x18c] ss:$28 sps:$4 sm:$0xff]  }
  0x1c   : > { %v11410_v26 = vld [vmem:[%s16935_s2 + $0x150] ss:$28 sps:$4 sm:$0xff]   ;;  %v11417_v27 = vld [vmem:[%s16935_s2 + $0x15c] ss:$28 sps:$4 sm:$0xff]   ;;  %v11416_v30 = vld [vmem:[%s16935_s2 + $0x188] ss:$28 sps:$4 sm:$0xff]  }
  0x1d   : > { %6295 = vmatpush1.bf16.msra.mxu0 %v11386_v10  ;;  %v11419_v29 = vld [vmem:[%s16935_s2 + $0x158] ss:$28 sps:$4 sm:$0xff]   ;;  %v11420_v32 = vld [vmem:[%s16935_s2 + $0x1c4] ss:$28 sps:$4 sm:$0xff]   ;;  %v11425_v33 = vld [vmem:[%s16935_s2 + $0x190] ss:$28 sps:$4 sm:$0xff]  }
  0x1e   : > { %6296 = vmatprep.subr.bf16.mxu0 %v11390_v11  ;;  %6623 = vmatpush1.bf16.msra.mxu1 %v11395_v13  ;;  %v11423_v31 = vld [vmem:[%s16935_s2 + $0x194] ss:$28 sps:$4 sm:$0xff]   ;;  %v11422_v35 = vld [vmem:[%s16935_s2 + $0x1c0] ss:$28 sps:$4 sm:$0xff]   ;;  %v11429_v36 = vld [vmem:[%s16935_s2 + $0x1cc] ss:$28 sps:$4 sm:$0xff]  }
  0x1f   : > { %6624 = vmatprep.subr.bf16.mxu1 %v11399_v15  ;;  %s13220_s16 = scalar_select %p508_p10, %s13086_s5, 1  ;;  %v11426_v37 = vld [vmem:[%s16935_s2 + $0x1fc] ss:$28 sps:$4 sm:$0xff]   ;;  %v11431_v38 = vld [vmem:[%s16935_s2 + $0x1c8] ss:$28 sps:$4 sm:$0xff]   ;;  %v13229_v39 = vshrl.u32 %v525_v34, 7 }
  0x20   : > { %v11428_v40 = vld [vmem:[%s16935_s2 + $0x1f8] ss:$28 sps:$4 sm:$0xff]   ;;  %v11435_v41 = vld [vmem:[%s16935_s2 + $0x204] ss:$28 sps:$4 sm:$0xff]   ;;  %s16962_s0 = sld [smem:[#allocation10_spill]]  ;;  %s12971_s27 = smov 56  }
  0x21   : > { %6297 = vmatpush1.bf16.msra.mxu0 %v11392_v14  ;;  %s16953_s25 = sshll.u32 %s13220_s16, 4  ;;  %v11432_v42 = vld [vmem:[%s16935_s2 + $0x234] ss:$28 sps:$4 sm:$0xff]   ;;  %v11437_v43 = vld [vmem:[%s16935_s2 + $0x200] ss:$28 sps:$4 sm:$0xff]   ;;  %v13252_v44 = vsub.s32 1, %v13229_v39 }
  0x22   : > { %6298 = vmatprep.subr.bf16.mxu0 %v11396_v16  ;;  %6625 = vmatpush1.bf16.msra.mxu1 %v11401_v17  ;;  %v11434_v45 = vld [vmem:[%s16935_s2 + $0x230] ss:$28 sps:$4 sm:$0xff]   ;;  %v11441_v46 = vld [vmem:[%s16935_s2 + $0x23c] ss:$28 sps:$4 sm:$0xff]   ;;  %v11440_v49 = vld [vmem:[%s16935_s2 + $0x268] ss:$28 sps:$4 sm:$0xff]  }
  0x23   : > { %6626 = vmatprep.subr.bf16.mxu1 %v11405_v19  ;;  %v11438_v47 = vld [vmem:[%s16935_s2 + $0x26c] ss:$28 sps:$4 sm:$0xff]   ;;  %v11443_v50 = vld [vmem:[%s16935_s2 + $0x238] ss:$28 sps:$4 sm:$0xff]   ;;  %v11444_v53 = vld [vmem:[%s16935_s2 + $0x2a4] ss:$28 sps:$4 sm:$0xff]  }
  0x24   : > { %v11447_v52 = vld [vmem:[%s16935_s2 + $0x274] ss:$28 sps:$4 sm:$0xff]   ;;  %v11446_v55 = vld [vmem:[%s16935_s2 + $0x2a0] ss:$28 sps:$4 sm:$0xff]   ;;  %v11453_v57 = vld [vmem:[%s16935_s2 + $0x2ac] ss:$28 sps:$4 sm:$0xff]  }
  0x25   : > { %6299 = vmatpush1.bf16.msra.mxu0 %v11398_v18  ;;  %v11449_v56 = vld [vmem:[%s16935_s2 + $0x270] ss:$28 sps:$4 sm:$0xff]   ;;  %v11450_v58 = vld [vmem:[%s16935_s2 + $0x2dc] ss:$28 sps:$4 sm:$0xff]   ;;  %v11455_v60 = vld [vmem:[%s16935_s2 + $0x2a8] ss:$28 sps:$4 sm:$0xff]  }
  0x26   : > { %6300 = vmatprep.subr.bf16.mxu0 %v11402_v20  ;;  %6627 = vmatpush1.bf16.msra.mxu1 %v11407_v21  ;;  %s13249_s28 = scalar_lea.vmem %s16962_s0, %s16953_s25  ;;  %v11452_v59 = vld [vmem:[%s16935_s2 + $0x2d8] ss:$28 sps:$4 sm:$0xff]   ;;  %v11459_v61 = vld [vmem:[%s16935_s2 + $0x2e4] ss:$28 sps:$4 sm:$0xff]   ;;  %v11458_v63 = vld [vmem:[%s16935_s2 + $0x310] ss:$28 sps:$4 sm:$0xff]  }
  0x27   : > { %6628 = vmatprep.subr.bf16.mxu1 %v11411_v23  ;;  %v13264_v48 = vld [vmem:[%s13249_s28] sm:$0xff]  ;;  %v11456_v62 = vld [vmem:[%s16935_s2 + $0x314] ss:$28 sps:$4 sm:$0xff]   ;;  %v13315_v1 = vsub.s32 0, %v13229_v39  ;;  %v11465_v2 = vld [vmem:[%s16935_s2 + $0x31c] ss:$28 sps:$4 sm:$0xff]  }
  0x28   : > { %v532_v51 = vrot.slane %v13264_v48, %v13252_v44  ;;  %v11461_v0 = vld [vmem:[%s16935_s2 + $0x2e0] ss:$28 sps:$4 sm:$0xff]   ;;  %v11462_v3 = vld [vmem:[%s16935_s2 + $0x34c] ss:$28 sps:$4 sm:$0xff]   ;;  %v13324_v4 = vsub.s32 3, %v13229_v39  ;;  %vm7620_vm0 = vcmask 457728  }
  0x29   : > { %6301 = vmatpush1.bf16.msra.mxu0 %v11404_v22  ;;  %v11464_v5 = vld [vmem:[%s16935_s2 + $0x348] ss:$28 sps:$4 sm:$0xff]   ;;  %v11467_v6 = vld [vmem:[%s16935_s2 + $0x318] ss:$28 sps:$4 sm:$0xff]   ;;  %v528_v7 = vrot.slane %v13264_v48, %v13315_v1  ;;  %v11468_v11 = vld [vmem:[%s16935_s2 + $0x380] ss:$28 sps:$4 sm:$0xff]  }
  0x2a   : > { %6302 = vmatprep.subr.bf16.mxu0 %v11408_v24  ;;  %6629 = vmatpush1.bf16.msra.mxu1 %v11413_v25  ;;  %v13280_v54 = vpack.c.bf16 %v532_v51, %v532_v51  ;;  %v11471_v8 = vld [vmem:[%s16935_s2 + $0x354] ss:$28 sps:$4 sm:$0xff]   ;;  %v11470_v9 = vld [vmem:[%s16935_s2 + $0x384] ss:$28 sps:$4 sm:$0xff]   ;;  %v540_v10 = vrot.slane %v13264_v48, %v13324_v4  ;;  %v11479_v14 = vld [vmem:[%s16935_s2 + $0x38c] ss:$28 sps:$4 sm:$0xff]  }
  0x2b   : > { %6630 = vmatprep.subr.bf16.mxu1 %v11417_v27  ;;  %v13345_v12 = vpack.c.bf16 %v528_v7, %v528_v7  ;;  %v11473_v13 = vld [vmem:[%s16935_s2 + $0x350] ss:$28 sps:$4 sm:$0xff]   ;;  %v11476_v15 = vld [vmem:[%s16935_s2 + $0x3bc] ss:$28 sps:$4 sm:$0xff]   ;;  %v11477_v18 = vld [vmem:[%s16935_s2 + $0x388] ss:$28 sps:$4 sm:$0xff]  }
  0x2c   : > { %6322 = vmatprep.mubr.bf16.mxu0 %v13280_v54  ;;  %6650 = vmatprep.mubr.bf16.mxu1 %v13280_v54  ;;  %v13356_v16 = vpack.c.bf16 %v540_v10, %v540_v10  ;;  %v11474_v17 = vld [vmem:[%s16935_s2 + $0x3b8] ss:$28 sps:$4 sm:$0xff]   ;;  %v11485_v19 = vld [vmem:[%s16935_s2 + $0x3c4] ss:$28 sps:$4 sm:$0xff]   ;;  %v11480_v21 = vld [vmem:[%s16935_s2 + $0x3f0] ss:$28 sps:$4 sm:$0xff]  }
  0x2d   : > { %6303 = vmatpush1.bf16.msra.mxu0 %v11410_v26  ;;  %v11482_v20 = vld [vmem:[%s16935_s2 + $0x3f4] ss:$28 sps:$4 sm:$0xff]   ;;  %v11483_v22 = vld [vmem:[%s16935_s2 + $0x3c0] ss:$28 sps:$4 sm:$0xff]   ;;  %v11488_v24 = vld [vmem:[%s16935_s2 + $0x42c] ss:$28 sps:$4 sm:$0xff]  }
  0x2e   : > { %6304 = vmatprep.subr.bf16.mxu0 %v11414_v28  ;;  %6631 = vmatpush1.bf16.msra.mxu1 %v11419_v29  ;;  %v11491_v23 = vld [vmem:[%s16935_s2 + $0x3fc] ss:$28 sps:$4 sm:$0xff]   ;;  %v11486_v25 = vld [vmem:[%s16935_s2 + $0x428] ss:$28 sps:$4 sm:$0xff]   ;;  %v11497_v27 = vld [vmem:[%s16935_s2 + $0x434] ss:$28 sps:$4 sm:$0xff]  }
  0x2f   : > { %6632 = vmatprep.subr.bf16.mxu1 %v11423_v31  ;;  %v11489_v26 = vld [vmem:[%s16935_s2 + $0x3f8] ss:$28 sps:$4 sm:$0xff]   ;;  %v11494_v28 = vld [vmem:[%s16935_s2 + $0x464] ss:$28 sps:$4 sm:$0xff]   ;;  %v11503_v31 = vld [vmem:[%s16935_s2 + $0x46c] ss:$28 sps:$4 sm:$0xff]  }
  0x30   : > { %v11492_v29 = vld [vmem:[%s16935_s2 + $0x460] ss:$28 sps:$4 sm:$0xff]   ;;  %v11527_v51 = vld [vmem:[%s16935_s2 + $0x54c] ss:$28 sps:$4 sm:$0xff]   ;;  %s16954_s30 = smov 44   ;;  %s12973_s22 = smov 84  }
  0x31   : > { %6305 = vmatpush1.bf16.msra.mxu0 %v11416_v30  ;;  %v11495_v30 = vld [vmem:[%s16935_s2 + $0x430] ss:$28 sps:$4 sm:$0xff]   ;;  %v11548_v7 = vld [vmem:[%s16935_s2 + $0x65c] ss:$28 sps:$4 sm:$0xff]   ;;  %v11557_v10 = vld [vmem:[%s16935_s2 + $0x664] ss:$28 sps:$4 sm:$0xff]  }
  0x32   : > { %6306 = vmatprep.subr.bf16.mxu0 %v11420_v32  ;;  %6633 = vmatpush1.bf16.msra.mxu1 %v11425_v33  ;;  %v11500_v32 = vld [vmem:[%s16935_s2 + $0x49c] ss:$28 sps:$4 sm:$0xff]   ;;  %s16963_s0 = sshll.u32 %s13220_s16, 4  ;;  %vm12975_vm1 = vmmov 0   ;;  %vm7820_vm3 = vcmask 130048   ;;  %s16964_s25 = smov 44  }
  0x33   : > { %6634 = vmatprep.subr.bf16.mxu1 %v11429_v36  ;;  %v11498_v33 = vld [vmem:[%s16935_s2 + $0x498] ss:$28 sps:$4 sm:$0xff]   ;;  %v11509_v36 = vld [vmem:[%s16935_s2 + $0x4a4] ss:$28 sps:$4 sm:$0xff]   ;;  %s516_s18 = scalar_lea.vmem %s16934_s1, %s16963_s0  ;;  %s12977_s17 = smov 40   ;;  %vm7931_vm6 = vcmask 1046528  }
  0x34   : > { %vm7947_vm7 = vcmask 1044480   ;;  %vm7939_vm8 = vcmask 1045504   ;;  %vm7955_vm9 = vcmask 1043456   ;;  %vm7667_vm10 = vcmask 687104   ;;  %s12979_s19 = smov 112   ;;  %s506_s0 = sand.u32 1, %s12961_s21  }
  0x35   : > { %6307 = vmatpush1.bf16.msra.mxu0 %v11422_v35  ;;  %v11501_v35 = vld [vmem:[%s16935_s2 + $0x468] ss:$28 sps:$4 sm:$0xff]   ;;  %vm7679_vm11 = vcmask 818176   ;;  %vm7676_vm12 = vcmask 326656   ;;  %vm7706_vm13 = vcmask 588800   ;;  %vm7827_vm14 = vcmask 125952  }
  0x36   : > { %6308 = vmatprep.subr.bf16.mxu0 %v11426_v37  ;;  %6635 = vmatpush1.bf16.msra.mxu1 %v11431_v38  ;;  %v11506_v37 = vld [vmem:[%s16935_s2 + $0x4d4] ss:$28 sps:$4 sm:$0xff]   ;;  %vm7799_vm15 = vcmask 0  }
  0x37   : > { %6636 = vmatprep.subr.bf16.mxu1 %v11435_v41  ;;  %v11504_v38 = vld [vmem:[%s16935_s2 + $0x4d0] ss:$28 sps:$4 sm:$0xff]   ;;  %v11515_v41 = vld [vmem:[%s16935_s2 + $0x4dc] ss:$28 sps:$4 sm:$0xff]  }
  0x39   : > { %6309 = vmatpush1.bf16.msra.mxu0 %v11428_v40  ;;  %v11507_v40 = vld [vmem:[%s16935_s2 + $0x4a0] ss:$28 sps:$4 sm:$0xff]  }
  0x3a   : > { %6310 = vmatprep.subr.bf16.mxu0 %v11432_v42  ;;  %6637 = vmatpush1.bf16.msra.mxu1 %v11437_v43  ;;  %v11512_v42 = vld [vmem:[%s16935_s2 + $0x50c] ss:$28 sps:$4 sm:$0xff]  }
  0x3b   : > { %6638 = vmatprep.subr.bf16.mxu1 %v11441_v46  ;;  %v11510_v43 = vld [vmem:[%s16935_s2 + $0x508] ss:$28 sps:$4 sm:$0xff]   ;;  %v11521_v46 = vld [vmem:[%s16935_s2 + $0x514] ss:$28 sps:$4 sm:$0xff]  }
  0x3d   : > { %6311 = vmatpush1.bf16.msra.mxu0 %v11434_v45  ;;  %v11513_v45 = vld [vmem:[%s16935_s2 + $0x4d8] ss:$28 sps:$4 sm:$0xff]  }
  0x3e   : > { %6312 = vmatprep.subr.bf16.mxu0 %v11438_v47  ;;  %6639 = vmatpush1.bf16.msra.mxu1 %v11443_v50  ;;  %v11518_v47 = vld [vmem:[%s16935_s2 + $0x544] ss:$28 sps:$4 sm:$0xff]   ;;  %v11519_v50 = vld [vmem:[%s16935_s2 + $0x510] ss:$28 sps:$4 sm:$0xff]  }
  0x3f   : > { %6640 = vmatprep.subr.bf16.mxu1 %v11447_v52  ;;  %v11524_v52 = vld [vmem:[%s16935_s2 + $0x57c] ss:$28 sps:$4 sm:$0xff]  }
  0x41   : > { %6313 = vmatpush1.bf16.msra.mxu0 %v11440_v49  ;;  %v11516_v49 = vld [vmem:[%s16935_s2 + $0x540] ss:$28 sps:$4 sm:$0xff]  }
  0x42   : > { %6314 = vmatprep.subr.bf16.mxu0 %v11444_v53  ;;  %6641 = vmatpush1.bf16.msra.mxu1 %v11449_v56  ;;  %v11522_v53 = vld [vmem:[%s16935_s2 + $0x578] ss:$28 sps:$4 sm:$0xff]   ;;  %v11533_v56 = vld [vmem:[%s16935_s2 + $0x584] ss:$28 sps:$4 sm:$0xff]  }
  0x43   : > { %6642 = vmatprep.subr.bf16.mxu1 %v11453_v57  ;;  %v11530_v57 = vld [vmem:[%s16935_s2 + $0x5b4] ss:$28 sps:$4 sm:$0xff]  }
  0x45   : > { %6315 = vmatpush1.bf16.msra.mxu0 %v11446_v55  ;;  %v11525_v55 = vld [vmem:[%s16935_s2 + $0x548] ss:$28 sps:$4 sm:$0xff]  }
  0x46   : > { %6316 = vmatprep.subr.bf16.mxu0 %v11450_v58  ;;  %6643 = vmatpush1.bf16.msra.mxu1 %v11455_v60  ;;  %v11528_v58 = vld [vmem:[%s16935_s2 + $0x5b0] ss:$28 sps:$4 sm:$0xff]   ;;  %v11539_v60 = vld [vmem:[%s16935_s2 + $0x5bc] ss:$28 sps:$4 sm:$0xff]  }
  0x47   : > { %6644 = vmatprep.subr.bf16.mxu1 %v11459_v61  ;;  %v11536_v61 = vld [vmem:[%s16935_s2 + $0x5ec] ss:$28 sps:$4 sm:$0xff]  }
  0x49   : > { %6317 = vmatpush1.bf16.msra.mxu0 %v11452_v59  ;;  %v11531_v59 = vld [vmem:[%s16935_s2 + $0x580] ss:$28 sps:$4 sm:$0xff]  }
  0x4a   : > { %6318 = vmatprep.subr.bf16.mxu0 %v11456_v62  ;;  %6645 = vmatpush1.bf16.msra.mxu1 %v11461_v0  ;;  %v11534_v62 = vld [vmem:[%s16935_s2 + $0x5e8] ss:$28 sps:$4 sm:$0xff]   ;;  %v11545_v0 = vld [vmem:[%s16935_s2 + $0x5f4] ss:$28 sps:$4 sm:$0xff]  }
  0x4b   : > { %6646 = vmatprep.subr.bf16.mxu1 %v11465_v2  ;;  %v11542_v2 = vld [vmem:[%s16935_s2 + $0x624] ss:$28 sps:$4 sm:$0xff]  }
  0x4d   : > { %6319 = vmatpush1.bf16.msra.mxu0 %v11458_v63  ;;  %v11537_v63 = vld [vmem:[%s16935_s2 + $0x5b8] ss:$28 sps:$4 sm:$0xff]  }
  0x4e   : > { %6320 = vmatprep.subr.bf16.mxu0 %v11462_v3  ;;  %6647 = vmatpush1.bf16.msra.mxu1 %v11467_v6  ;;  %v11540_v3 = vld [vmem:[%s16935_s2 + $0x620] ss:$28 sps:$4 sm:$0xff]   ;;  %v11551_v6 = vld [vmem:[%s16935_s2 + $0x62c] ss:$28 sps:$4 sm:$0xff]  }
  0x4f   : > { %6648 = vmatprep.subr.bf16.mxu1 %v11471_v8  ;;  %v11546_v8 = vld [vmem:[%s16935_s2 + $0x658] ss:$28 sps:$4 sm:$0xff]  }
  0x51   : > { %6321 = vmatpush1.bf16.msra.mxu0 %v11464_v5  ;;  %v11543_v5 = vld [vmem:[%s16935_s2 + $0x5f0] ss:$28 sps:$4 sm:$0xff]  }
  0x52   : > { %6331 = vmatprep.subr.bf16.mxu0 %v11470_v9  ;;  %6649 = vmatpush1.bf16.msra.mxu1 %v11473_v13  ;;  %v11549_v9 = vld [vmem:[%s16935_s2 + $0x628] ss:$28 sps:$4 sm:$0xff]   ;;  %v11552_v13 = vld [vmem:[%s16935_s2 + $0x690] ss:$28 sps:$4 sm:$0xff]  }
  0x53   : > { %6659 = vmatprep.subr.bf16.mxu1 %v11479_v14  ;;  %v11555_v14 = vld [vmem:[%s16935_s2 + $0x660] ss:$28 sps:$4 sm:$0xff]  }
  0x54   : > { %6323 = vmatmul.mubr.bf16.vlgmr.msra.gmra.mrb[0].mxu0 %v13345_v12 }
  0x55   : > { %6332 = vmatpush1.bf16.msra.mxu0 %v11468_v11  ;;  %6363 = vmatprep.mubr.bf16.mxu0 %v13356_v16  ;;  %v11554_v11 = vld [vmem:[%s16935_s2 + $0x694] ss:$28 sps:$4 sm:$0xff]  }
  0x56   : > { %6333 = vmatprep.subr.bf16.mxu0 %v11476_v15  ;;  %6651 = vmatmul.mubr.bf16.vlgmr.msra.gmra.mrb[0].mxu1 %v13345_v12  ;;  %v13525_v15 = vsub.s32 2, %v13229_v39 }
  0x57   : > { %6660 = vmatpush1.bf16.msra.mxu1 %v11477_v18  ;;  %6691 = vmatprep.mubr.bf16.mxu1 %v13356_v16  ;;  %v11560_v18 = vld [vmem:[%s16935_s2 + $0x6cc] ss:$28 sps:$4 sm:$0xff]  }
  0x58   : > { %6661 = vmatprep.subr.bf16.mxu1 %v11485_v19  ;;  %v13534_v19 = vsub.s32 5, %v13229_v39 }
  0x59   : > { %6334 = vmatpush1.bf16.msra.mxu0 %v11474_v17  ;;  %v11563_v17 = vld [vmem:[%s16935_s2 + $0x69c] ss:$28 sps:$4 sm:$0xff]  }
  0x5a   : > { %6335 = vmatprep.subr.bf16.mxu0 %v11482_v20  ;;  %v11558_v20 = vld [vmem:[%s16935_s2 + $0x6c8] ss:$28 sps:$4 sm:$0xff]  }
  0x5b   : > { %6662 = vmatpush1.bf16.msra.mxu1 %v11483_v22  ;;  %v536_v22 = vrot.slane %v13264_v48, %v13525_v15 }
  0x5c   : > { %6663 = vmatprep.subr.bf16.mxu1 %v11491_v23  ;;  %v11569_v23 = vld [vmem:[%s16935_s2 + $0x6d4] ss:$28 sps:$4 sm:$0xff]  }
  0x5d   : > { %6336 = vmatpush1.bf16.msra.mxu0 %v11480_v21  ;;  %v11561_v21 = vld [vmem:[%s16935_s2 + $0x698] ss:$28 sps:$4 sm:$0xff]  }
  0x5e   : > { %6337 = vmatprep.subr.bf16.mxu0 %v11488_v24  ;;  %v11566_v24 = vld [vmem:[%s16935_s2 + $0x704] ss:$28 sps:$4 sm:$0xff]  }
  0x5f   : > { %6664 = vmatpush1.bf16.msra.mxu1 %v11489_v26  ;;  %v11564_v26 = vld [vmem:[%s16935_s2 + $0x700] ss:$28 sps:$4 sm:$0xff]  }
  0x60   : > { %6665 = vmatprep.subr.bf16.mxu1 %v11497_v27  ;;  %v13555_v27 = vpack.c.bf16 %v536_v22, %v536_v22  ;;  %v11636_v22 = vld [vmem:[%s16935_s2 + $0x9a0] ss:$28 sps:$4 sm:$0xff]  }
  0x61   : > { %6338 = vmatpush1.bf16.msra.mxu0 %v11486_v25  ;;  %v548_v25 = vrot.slane %v13264_v48, %v13534_v19  ;;  %v11572_v48 = vld [vmem:[%s16935_s2 + $0x73c] ss:$28 sps:$4 sm:$0xff]  }
  0x62   : > { %6339 = vmatprep.subr.bf16.mxu0 %v11494_v28  ;;  %v11567_v28 = vld [vmem:[%s16935_s2 + $0x6d0] ss:$28 sps:$4 sm:$0xff]  }
  0x63   : > { %6666 = vmatpush1.bf16.msra.mxu1 %v11495_v30  ;;  %v13566_v30 = vpack.c.bf16 %v548_v25, %v548_v25  ;;  %v11644_v25 = vld [vmem:[%s16935_s2 + $0x9dc] ss:$28 sps:$4 sm:$0xff]  }
  0x64   : > { %6667 = vmatprep.subr.bf16.mxu1 %v11503_v31  ;;  %v11570_v31 = vld [vmem:[%s16935_s2 + $0x738] ss:$28 sps:$4 sm:$0xff]  }
  0x65   : > { %6340 = vmatpush1.bf16.msra.mxu0 %v11492_v29  ;;  %v11575_v29 = vld [vmem:[%s16935_s2 + $0x70c] ss:$28 sps:$4 sm:$0xff]  }
  0x66   : > { %6341 = vmatprep.subr.bf16.mxu0 %v11500_v32  ;;  %v11573_v32 = vld [vmem:[%s16935_s2 + $0x708] ss:$28 sps:$4 sm:$0xff]  }
  0x67   : > { %6668 = vmatpush1.bf16.msra.mxu1 %v11501_v35  ;;  %v11578_v35 = vld [vmem:[%s16935_s2 + $0x774] ss:$28 sps:$4 sm:$0xff]  }
  0x68   : > { %6669 = vmatprep.subr.bf16.mxu1 %v11509_v36  ;;  %v11576_v36 = vld [vmem:[%s16935_s2 + $0x770] ss:$28 sps:$4 sm:$0xff]  }
  0x69   : > { %6342 = vmatpush1.bf16.msra.mxu0 %v11498_v33  ;;  %v11581_v33 = vld [vmem:[%s16935_s2 + $0x744] ss:$28 sps:$4 sm:$0xff]  }
  0x6a   : > { %6343 = vmatprep.subr.bf16.mxu0 %v11506_v37  ;;  %v11579_v37 = vld [vmem:[%s16935_s2 + $0x740] ss:$28 sps:$4 sm:$0xff]  }
  0x6b   : > { %6670 = vmatpush1.bf16.msra.mxu1 %v11507_v40  ;;  %v11584_v40 = vld [vmem:[%s16935_s2 + $0x7ac] ss:$28 sps:$4 sm:$0xff]  }
  0x6c   : > { %6671 = vmatprep.subr.bf16.mxu1 %v11515_v41  ;;  %v11582_v41 = vld [vmem:[%s16935_s2 + $0x7a8] ss:$28 sps:$4 sm:$0xff]  }
  0x6d   : > { %6344 = vmatpush1.bf16.msra.mxu0 %v11504_v38  ;;  %v11587_v38 = vld [vmem:[%s16935_s2 + $0x77c] ss:$28 sps:$4 sm:$0xff]  }
  0x6e   : > { %6345 = vmatprep.subr.bf16.mxu0 %v11512_v42  ;;  %v11585_v42 = vld [vmem:[%s16935_s2 + $0x778] ss:$28 sps:$4 sm:$0xff]  }
  0x6f   : > { %6672 = vmatpush1.bf16.msra.mxu1 %v11513_v45  ;;  %v11590_v45 = vld [vmem:[%s16935_s2 + $0x7e4] ss:$28 sps:$4 sm:$0xff]  }
  0x70   : > { %6673 = vmatprep.subr.bf16.mxu1 %v11521_v46  ;;  %v11588_v46 = vld [vmem:[%s16935_s2 + $0x7e0] ss:$28 sps:$4 sm:$0xff]  }
  0x71   : > { %6346 = vmatpush1.bf16.msra.mxu0 %v11510_v43  ;;  %v11593_v43 = vld [vmem:[%s16935_s2 + $0x7b4] ss:$28 sps:$4 sm:$0xff]  }
  0x72   : > { %6347 = vmatprep.subr.bf16.mxu0 %v11518_v47  ;;  %v11591_v47 = vld [vmem:[%s16935_s2 + $0x7b0] ss:$28 sps:$4 sm:$0xff]  }
  0x73   : > { %6674 = vmatpush1.bf16.msra.mxu1 %v11519_v50  ;;  %v11596_v50 = vld [vmem:[%s16935_s2 + $0x81c] ss:$28 sps:$4 sm:$0xff]  }
  0x74   : > { %6675 = vmatprep.subr.bf16.mxu1 %v11527_v51  ;;  %v11594_v51 = vld [vmem:[%s16935_s2 + $0x818] ss:$28 sps:$4 sm:$0xff]  }
  0x75   : > { %6348 = vmatpush1.bf16.msra.mxu0 %v11516_v49  ;;  %v11599_v49 = vld [vmem:[%s16935_s2 + $0x7ec] ss:$28 sps:$4 sm:$0xff]  }
  0x76   : > { %6349 = vmatprep.subr.bf16.mxu0 %v11524_v52  ;;  %v11597_v52 = vld [vmem:[%s16935_s2 + $0x7e8] ss:$28 sps:$4 sm:$0xff]  }
  0x77   : > { %6676 = vmatpush1.bf16.msra.mxu1 %v11525_v55  ;;  %v11602_v55 = vld [vmem:[%s16935_s2 + $0x854] ss:$28 sps:$4 sm:$0xff]  }
  0x78   : > { %6677 = vmatprep.subr.bf16.mxu1 %v11533_v56  ;;  %v11600_v56 = vld [vmem:[%s16935_s2 + $0x850] ss:$28 sps:$4 sm:$0xff]  }
  0x79   : > { %6350 = vmatpush1.bf16.msra.mxu0 %v11522_v53  ;;  %v11605_v53 = vld [vmem:[%s16935_s2 + $0x824] ss:$28 sps:$4 sm:$0xff]  }
  0x7a   : > { %6351 = vmatprep.subr.bf16.mxu0 %v11530_v57  ;;  %v11603_v57 = vld [vmem:[%s16935_s2 + $0x820] ss:$28 sps:$4 sm:$0xff]  }
  0x7b   : > { %6678 = vmatpush1.bf16.msra.mxu1 %v11531_v59  ;;  %v11608_v59 = vld [vmem:[%s16935_s2 + $0x88c] ss:$28 sps:$4 sm:$0xff]  }
  0x7c   : > { %6679 = vmatprep.subr.bf16.mxu1 %v11539_v60  ;;  %v11606_v60 = vld [vmem:[%s16935_s2 + $0x888] ss:$28 sps:$4 sm:$0xff]  }
  0x7d   : > { %6352 = vmatpush1.bf16.msra.mxu0 %v11528_v58  ;;  %v11611_v58 = vld [vmem:[%s16935_s2 + $0x85c] ss:$28 sps:$4 sm:$0xff]  }
  0x7e   : > { %6353 = vmatprep.subr.bf16.mxu0 %v11536_v61  ;;  %v11609_v61 = vld [vmem:[%s16935_s2 + $0x858] ss:$28 sps:$4 sm:$0xff]  }
  0x7f   : > { %6680 = vmatpush1.bf16.msra.mxu1 %v11537_v63  ;;  %v11614_v63 = vld [vmem:[%s16935_s2 + $0x8c4] ss:$28 sps:$4 sm:$0xff]  }
  0x80   : > { %6681 = vmatprep.subr.bf16.mxu1 %v11545_v0  ;;  %v11612_v0 = vld [vmem:[%s16935_s2 + $0x8c0] ss:$28 sps:$4 sm:$0xff]  }
  0x81   : > { %6354 = vmatpush1.bf16.msra.mxu0 %v11534_v62  ;;  %v11617_v62 = vld [vmem:[%s16935_s2 + $0x894] ss:$28 sps:$4 sm:$0xff]  }
  0x82   : > { %6355 = vmatprep.subr.bf16.mxu0 %v11542_v2  ;;  %v11615_v2 = vld [vmem:[%s16935_s2 + $0x890] ss:$28 sps:$4 sm:$0xff]  }
  0x83   : > { %6682 = vmatpush1.bf16.msra.mxu1 %v11543_v5  ;;  %v11620_v5 = vld [vmem:[%s16935_s2 + $0x8fc] ss:$28 sps:$4 sm:$0xff]  }
  0x84   : > { %6683 = vmatprep.subr.bf16.mxu1 %v11551_v6  ;;  %v11618_v6 = vld [vmem:[%s16935_s2 + $0x8f8] ss:$28 sps:$4 sm:$0xff]  }
  0x85   : > { %6356 = vmatpush1.bf16.msra.mxu0 %v11540_v3  ;;  %v11623_v3 = vld [vmem:[%s16935_s2 + $0x8cc] ss:$28 sps:$4 sm:$0xff]  }
  0x86   : > { %6357 = vmatprep.subr.bf16.mxu0 %v11548_v7  ;;  %v11621_v7 = vld [vmem:[%s16935_s2 + $0x8c8] ss:$28 sps:$4 sm:$0xff]  }
  0x87   : > { %6684 = vmatpush1.bf16.msra.mxu1 %v11549_v9  ;;  %v11626_v9 = vld [vmem:[%s16935_s2 + $0x934] ss:$28 sps:$4 sm:$0xff]  }
  0x88   : > { %6685 = vmatprep.subr.bf16.mxu1 %v11557_v10  ;;  %v11624_v10 = vld [vmem:[%s16935_s2 + $0x930] ss:$28 sps:$4 sm:$0xff]  }
  0x89   : > { %6358 = vmatpush1.bf16.msra.mxu0 %v11546_v8  ;;  %v11629_v8 = vld [vmem:[%s16935_s2 + $0x904] ss:$28 sps:$4 sm:$0xff]  }
  0x8a   : > { %6359 = vmatprep.subr.bf16.mxu0 %v11554_v11  ;;  %v11627_v11 = vld [vmem:[%s16935_s2 + $0x900] ss:$28 sps:$4 sm:$0xff]  }
  0x8b   : > { %6686 = vmatpush1.bf16.msra.mxu1 %v11555_v14  ;;  %v11632_v14 = vld [vmem:[%s16935_s2 + $0x96c] ss:$28 sps:$4 sm:$0xff]  }
  0x8c   : > { %6687 = vmatprep.subr.bf16.mxu1 %v11563_v17  ;;  %v11630_v17 = vld [vmem:[%s16935_s2 + $0x968] ss:$28 sps:$4 sm:$0xff]  }
  0x8d   : > { %6360 = vmatpush1.bf16.msra.mxu0 %v11552_v13  ;;  %v11635_v13 = vld [vmem:[%s16935_s2 + $0x93c] ss:$28 sps:$4 sm:$0xff]  }
  0x8e   : > { %6361 = vmatprep.subr.bf16.mxu0 %v11560_v18  ;;  %v11633_v18 = vld [vmem:[%s16935_s2 + $0x938] ss:$28 sps:$4 sm:$0xff]  }
  0x8f   : > { %6688 = vmatpush1.bf16.msra.mxu1 %v11561_v21  ;;  %v11638_v21 = vld [vmem:[%s16935_s2 + $0x9a4] ss:$28 sps:$4 sm:$0xff]  }
  0x90   : > { %6689 = vmatprep.subr.bf16.mxu1 %v11569_v23  ;;  %v11639_v23 = vld [vmem:[%s16935_s2 + $0x970] ss:$28 sps:$4 sm:$0xff]  }
  0x91   : > { %6362 = vmatpush1.bf16.msra.mxu0 %v11558_v20  ;;  %v11641_v20 = vld [vmem:[%s16935_s2 + $0x974] ss:$28 sps:$4 sm:$0xff]  }
  0x92   : > { %6372 = vmatprep.subr.bf16.mxu0 %v11566_v24  ;;  %v11647_v24 = vld [vmem:[%s16935_s2 + $0x9ac] ss:$28 sps:$4 sm:$0xff]  }
  0x93   : > { %6690 = vmatpush1.bf16.msra.mxu1 %v11567_v28  ;;  %v11645_v28 = vld [vmem:[%s16935_s2 + $0x9a8] ss:$28 sps:$4 sm:$0xff]  }
  0x94   : > { %6364 = vmatmul.mubr.bf16.vlgmr.msra.gmra.mrb[0].mxu0 %v13555_v27  ;;  %6700 = vmatprep.subr.bf16.mxu1 %v11575_v29  ;;  %v11653_v29 = vld [vmem:[%s16935_s2 + $0x9e4] ss:$28 sps:$4 sm:$0xff]  }
  0x95   : > { %6373 = vmatpush1.bf16.msra.mxu0 %v11564_v26  ;;  %6404 = vmatprep.mubr.bf16.mxu0 %v13566_v30  ;;  %v11642_v26 = vld [vmem:[%s16935_s2 + $0x9d8] ss:$28 sps:$4 sm:$0xff]  }
  0x96   : > { %6374 = vmatprep.subr.bf16.mxu0 %v11572_v48  ;;  %6692 = vmatmul.mubr.bf16.vlgmr.msra.gmra.mrb[0].mxu1 %v13555_v27  ;;  %v11650_v48 = vld [vmem:[%s16935_s2 + $0xa14] ss:$28 sps:$4 sm:$0xff]  }
  0x97   : > { %6701 = vmatpush1.bf16.msra.mxu1 %v11573_v32  ;;  %6732 = vmatprep.mubr.bf16.mxu1 %v13566_v30  ;;  %v11651_v32 = vld [vmem:[%s16935_s2 + $0x9e0] ss:$28 sps:$4 sm:$0xff]  }
  0x98   : > { %6702 = vmatprep.subr.bf16.mxu1 %v11581_v33  ;;  %v13735_v33 = vsub.s32 4, %v13229_v39 }
  0x99   : > { %6375 = vmatpush1.bf16.msra.mxu0 %v11570_v31  ;;  %v11648_v31 = vld [vmem:[%s16935_s2 + $0xa10] ss:$28 sps:$4 sm:$0xff]  }
  0x9a   : > { %6376 = vmatprep.subr.bf16.mxu0 %v11578_v35  ;;  %v11659_v35 = vld [vmem:[%s16935_s2 + $0xa1c] ss:$28 sps:$4 sm:$0xff]  }
  0x9b   : > { %6703 = vmatpush1.bf16.msra.mxu1 %v11579_v37  ;;  %v555_v37 = vsub.s32 7, %v13229_v39 }
  0x9c   : > { %6704 = vmatprep.subr.bf16.mxu1 %v11587_v38  ;;  %v11654_v38 = vld [vmem:[%s16935_s2 + $0xa48] ss:$28 sps:$4 sm:$0xff]  }
  0x9d   : > { %6377 = vmatpush1.bf16.msra.mxu0 %v11576_v36  ;;  %v11656_v36 = vld [vmem:[%s16935_s2 + $0xa4c] ss:$28 sps:$4 sm:$0xff]  }
  0x9e   : > { %6378 = vmatprep.subr.bf16.mxu0 %v11584_v40  ;;  %v11657_v40 = vld [vmem:[%s16935_s2 + $0xa18] ss:$28 sps:$4 sm:$0xff]  }
  0x9f   : > { %6705 = vmatpush1.bf16.msra.mxu1 %v11585_v42 }
  0xa0   : > { %6706 = vmatprep.subr.bf16.mxu1 %v11593_v43  ;;  %v11665_v43 = vld [vmem:[%s16935_s2 + $0xa54] ss:$28 sps:$4 sm:$0xff]  }
  0xa1   : > { %6379 = vmatpush1.bf16.msra.mxu0 %v11582_v41  ;;  %v13751_v41 = vld [vmem:[%s13249_s28] sm:$0xff] }
  0xa2   : > { %6380 = vmatprep.subr.bf16.mxu0 %v11590_v45  ;;  %v544_v42 = vrot.slane %v13751_v41, %v13735_v33  ;;  %v11662_v45 = vld [vmem:[%s16935_s2 + $0xa84] ss:$28 sps:$4 sm:$0xff]  }
  0xa3   : > { %6707 = vmatpush1.bf16.msra.mxu1 %v11591_v47  ;;  %v11660_v47 = vld [vmem:[%s16935_s2 + $0xa80] ss:$28 sps:$4 sm:$0xff]  }
  0xa4   : > { %6708 = vmatprep.subr.bf16.mxu1 %v11599_v49  ;;  %v13767_v49 = vpack.c.bf16 %v544_v42, %v544_v42  ;;  %v11728_v42 = vld [vmem:[%s16935_s2 + $0xcec] ss:$28 sps:$4 sm:$0xff]  }
  0xa5   : > { %6381 = vmatpush1.bf16.msra.mxu0 %v11588_v46  ;;  %v556_v46 = vrot.slane %v13751_v41, %v555_v37 }
  0xa6   : > { %6382 = vmatprep.subr.bf16.mxu0 %v11596_v50  ;;  %v11663_v50 = vld [vmem:[%s16935_s2 + $0xa50] ss:$28 sps:$4 sm:$0xff]  }
  0xa7   : > { %6709 = vmatpush1.bf16.msra.mxu1 %v11597_v52  ;;  %v11668_v52 = vld [vmem:[%s16935_s2 + $0xabc] ss:$28 sps:$4 sm:$0xff]  }
  0xa8   : > { %6710 = vmatprep.subr.bf16.mxu1 %v11605_v53  ;;  %v13778_v53 = vpack.c.bf16 %v556_v46, %v556_v46  ;;  %v11737_v46 = vld [vmem:[%s16935_s2 + $0xcf4] ss:$28 sps:$4 sm:$0xff]  }
  0xa9   : > { %6383 = vmatpush1.bf16.msra.mxu0 %v11594_v51  ;;  %v11671_v51 = vld [vmem:[%s16935_s2 + $0xa8c] ss:$28 sps:$4 sm:$0xff]  }
  0xaa   : > { %6384 = vmatprep.subr.bf16.mxu0 %v11602_v55  ;;  %v11666_v55 = vld [vmem:[%s16935_s2 + $0xab8] ss:$28 sps:$4 sm:$0xff]  }
  0xab   : > { %6711 = vmatpush1.bf16.msra.mxu1 %v11603_v57  ;;  %v11677_v57 = vld [vmem:[%s16935_s2 + $0xac4] ss:$28 sps:$4 sm:$0xff]  }
  0xac   : > { %6712 = vmatprep.subr.bf16.mxu1 %v11611_v58  ;;  %v11674_v58 = vld [vmem:[%s16935_s2 + $0xaf4] ss:$28 sps:$4 sm:$0xff]  }
  0xad   : > { %6385 = vmatpush1.bf16.msra.mxu0 %v11600_v56  ;;  %v11669_v56 = vld [vmem:[%s16935_s2 + $0xa88] ss:$28 sps:$4 sm:$0xff]  }
  0xae   : > { %6386 = vmatprep.subr.bf16.mxu0 %v11608_v59  ;;  %v11672_v59 = vld [vmem:[%s16935_s2 + $0xaf0] ss:$28 sps:$4 sm:$0xff]  }
  0xaf   : > { %6713 = vmatpush1.bf16.msra.mxu1 %v11609_v61  ;;  %v11683_v61 = vld [vmem:[%s16935_s2 + $0xafc] ss:$28 sps:$4 sm:$0xff]  }
  0xb0   : > { %6714 = vmatprep.subr.bf16.mxu1 %v11617_v62  ;;  %v11680_v62 = vld [vmem:[%s16935_s2 + $0xb2c] ss:$28 sps:$4 sm:$0xff]  }
  0xb1   : > { %6387 = vmatpush1.bf16.msra.mxu0 %v11606_v60  ;;  %v11675_v60 = vld [vmem:[%s16935_s2 + $0xac0] ss:$28 sps:$4 sm:$0xff]  }
  0xb2   : > { %6388 = vmatprep.subr.bf16.mxu0 %v11614_v63  ;;  %v11678_v63 = vld [vmem:[%s16935_s2 + $0xb28] ss:$28 sps:$4 sm:$0xff]  }
  0xb3   : > { %6715 = vmatpush1.bf16.msra.mxu1 %v11615_v2  ;;  %v11689_v2 = vld [vmem:[%s16935_s2 + $0xb34] ss:$28 sps:$4 sm:$0xff]  }
  0xb4   : > { %6716 = vmatprep.subr.bf16.mxu1 %v11623_v3  ;;  %v11686_v3 = vld [vmem:[%s16935_s2 + $0xb64] ss:$28 sps:$4 sm:$0xff]  }
  0xb5   : > { %6389 = vmatpush1.bf16.msra.mxu0 %v11612_v0  ;;  %v11681_v0 = vld [vmem:[%s16935_s2 + $0xaf8] ss:$28 sps:$4 sm:$0xff]  }
  0xb6   : > { %6390 = vmatprep.subr.bf16.mxu0 %v11620_v5  ;;  %v11684_v5 = vld [vmem:[%s16935_s2 + $0xb60] ss:$28 sps:$4 sm:$0xff]  }
  0xb7   : > { %6717 = vmatpush1.bf16.msra.mxu1 %v11621_v7  ;;  %v11695_v7 = vld [vmem:[%s16935_s2 + $0xb6c] ss:$28 sps:$4 sm:$0xff]  }
  0xb8   : > { %6718 = vmatprep.subr.bf16.mxu1 %v11629_v8  ;;  %v11692_v8 = vld [vmem:[%s16935_s2 + $0xb9c] ss:$28 sps:$4 sm:$0xff]  }
  0xb9   : > { %6391 = vmatpush1.bf16.msra.mxu0 %v11618_v6  ;;  %v11687_v6 = vld [vmem:[%s16935_s2 + $0xb30] ss:$28 sps:$4 sm:$0xff]  }
  0xba   : > { %6392 = vmatprep.subr.bf16.mxu0 %v11626_v9  ;;  %v11690_v9 = vld [vmem:[%s16935_s2 + $0xb98] ss:$28 sps:$4 sm:$0xff]  }
  0xbb   : > { %6719 = vmatpush1.bf16.msra.mxu1 %v11627_v11  ;;  %v11701_v11 = vld [vmem:[%s16935_s2 + $0xba4] ss:$28 sps:$4 sm:$0xff]  }
  0xbc   : > { %6720 = vmatprep.subr.bf16.mxu1 %v11635_v13  ;;  %v11698_v13 = vld [vmem:[%s16935_s2 + $0xbd4] ss:$28 sps:$4 sm:$0xff]  }
  0xbd   : > { %6393 = vmatpush1.bf16.msra.mxu0 %v11624_v10  ;;  %v11693_v10 = vld [vmem:[%s16935_s2 + $0xb68] ss:$28 sps:$4 sm:$0xff]  }
  0xbe   : > { %6394 = vmatprep.subr.bf16.mxu0 %v11632_v14  ;;  %v11696_v14 = vld [vmem:[%s16935_s2 + $0xbd0] ss:$28 sps:$4 sm:$0xff]  }
  0xbf   : > { %6721 = vmatpush1.bf16.msra.mxu1 %v11633_v18  ;;  %v11707_v18 = vld [vmem:[%s16935_s2 + $0xbdc] ss:$28 sps:$4 sm:$0xff]  }
  0xc0   : > { %6722 = vmatprep.subr.bf16.mxu1 %v11641_v20  ;;  %v11704_v20 = vld [vmem:[%s16935_s2 + $0xc0c] ss:$28 sps:$4 sm:$0xff]  }
  0xc1   : > { %6395 = vmatpush1.bf16.msra.mxu0 %v11630_v17  ;;  %v11699_v17 = vld [vmem:[%s16935_s2 + $0xba0] ss:$28 sps:$4 sm:$0xff]  }
  0xc2   : > { %6396 = vmatprep.subr.bf16.mxu0 %v11638_v21  ;;  %v11702_v21 = vld [vmem:[%s16935_s2 + $0xc08] ss:$28 sps:$4 sm:$0xff]  }
  0xc3   : > { %6723 = vmatpush1.bf16.msra.mxu1 %v11639_v23  ;;  %v11713_v23 = vld [vmem:[%s16935_s2 + $0xc14] ss:$28 sps:$4 sm:$0xff]  }
  0xc4   : > { %6724 = vmatprep.subr.bf16.mxu1 %v11647_v24  ;;  %v11710_v24 = vld [vmem:[%s16935_s2 + $0xc44] ss:$28 sps:$4 sm:$0xff]  }
  0xc5   : > { %6397 = vmatpush1.bf16.msra.mxu0 %v11636_v22  ;;  %v11705_v22 = vld [vmem:[%s16935_s2 + $0xbd8] ss:$28 sps:$4 sm:$0xff]  }
  0xc6   : > { %6398 = vmatprep.subr.bf16.mxu0 %v11644_v25  ;;  %v11708_v25 = vld [vmem:[%s16935_s2 + $0xc40] ss:$28 sps:$4 sm:$0xff]  }
  0xc7   : > { %6725 = vmatpush1.bf16.msra.mxu1 %v11645_v28  ;;  %v11719_v28 = vld [vmem:[%s16935_s2 + $0xc4c] ss:$28 sps:$4 sm:$0xff]  }
  0xc8   : > { %6726 = vmatprep.subr.bf16.mxu1 %v11653_v29  ;;  %v11716_v29 = vld [vmem:[%s16935_s2 + $0xc7c] ss:$28 sps:$4 sm:$0xff]  }
  0xc9   : > { %6399 = vmatpush1.bf16.msra.mxu0 %v11642_v26  ;;  %v11711_v26 = vld [vmem:[%s16935_s2 + $0xc10] ss:$28 sps:$4 sm:$0xff]  }
  0xca   : > { %6400 = vmatprep.subr.bf16.mxu0 %v11650_v48  ;;  %v11714_v48 = vld [vmem:[%s16935_s2 + $0xc78] ss:$28 sps:$4 sm:$0xff]  }
  0xcb   : > { %6727 = vmatpush1.bf16.msra.mxu1 %v11651_v32  ;;  %v11725_v32 = vld [vmem:[%s16935_s2 + $0xc84] ss:$28 sps:$4 sm:$0xff]  }
  0xcc   : > { %6728 = vmatprep.subr.bf16.mxu1 %v11659_v35  ;;  %v11722_v35 = vld [vmem:[%s16935_s2 + $0xcb4] ss:$28 sps:$4 sm:$0xff]  }
  0xcd   : > { %6401 = vmatpush1.bf16.msra.mxu0 %v11648_v31  ;;  %v11717_v31 = vld [vmem:[%s16935_s2 + $0xc48] ss:$28 sps:$4 sm:$0xff]  }
  0xce   : > { %6402 = vmatprep.subr.bf16.mxu0 %v11656_v36  ;;  %v11720_v36 = vld [vmem:[%s16935_s2 + $0xcb0] ss:$28 sps:$4 sm:$0xff]  }
  0xcf   : > { %6729 = vmatpush1.bf16.msra.mxu1 %v11657_v40  ;;  %v11731_v40 = vld [vmem:[%s16935_s2 + $0xcbc] ss:$28 sps:$4 sm:$0xff]  }
  0xd0   : > { %6730 = vmatprep.subr.bf16.mxu1 %v11665_v43  ;;  %v11726_v43 = vld [vmem:[%s16935_s2 + $0xce8] ss:$28 sps:$4 sm:$0xff]  }
  0xd1   : > { %6403 = vmatpush1.bf16.msra.mxu0 %v11654_v38  ;;  %v11723_v38 = vld [vmem:[%s16935_s2 + $0xc80] ss:$28 sps:$4 sm:$0xff]  }
  0xd2   : > { %6413 = vmatprep.subr.bf16.mxu0 %v11662_v45  ;;  %v11729_v45 = vld [vmem:[%s16935_s2 + $0xcb8] ss:$28 sps:$4 sm:$0xff]  }
  0xd3   : > { %6731 = vmatpush1.bf16.msra.mxu1 %v11663_v50  ;;  %v11732_v50 = vld [vmem:[%s16935_s2 + $0xd20] ss:$28 sps:$4 sm:$0xff]  }
  0xd4   : > { %6405 = vmatmul.mubr.bf16.vlgmr.msra.gmra.mrb[0].mxu0 %v13767_v49  ;;  %6741 = vmatprep.subr.bf16.mxu1 %v11671_v51  ;;  %v11735_v51 = vld [vmem:[%s16935_s2 + $0xcf0] ss:$28 sps:$4 sm:$0xff]  }
  0xd5   : > { %6414 = vmatpush1.bf16.msra.mxu0 %v11660_v47  ;;  %6445 = vmatprep.mubr.bf16.mxu0 %v13778_v53  ;;  %v11734_v47 = vld [vmem:[%s16935_s2 + $0xd24] ss:$28 sps:$4 sm:$0xff]  }
  0xd6   : > { %6415 = vmatprep.subr.bf16.mxu0 %v11668_v52  ;;  %6733 = vmatmul.mubr.bf16.vlgmr.msra.gmra.mrb[0].mxu1 %v13767_v49  ;;  %v11743_v52 = vld [vmem:[%s16935_s2 + $0xd2c] ss:$28 sps:$4 sm:$0xff]  }
  0xd7   : > { %6742 = vmatpush1.bf16.msra.mxu1 %v11669_v56  ;;  %6773 = vmatprep.mubr.bf16.mxu1 %v13778_v53  ;;  %v11738_v56 = vld [vmem:[%s16935_s2 + $0xd58] ss:$28 sps:$4 sm:$0xff]  }
  0xd8   : > { %6743 = vmatprep.subr.bf16.mxu1 %v11677_v57  ;;  %v11741_v57 = vld [vmem:[%s16935_s2 + $0xd28] ss:$28 sps:$4 sm:$0xff]  }
  0xd9   : > { %6416 = vmatpush1.bf16.msra.mxu0 %v11666_v55  ;;  %v11740_v55 = vld [vmem:[%s16935_s2 + $0xd5c] ss:$28 sps:$4 sm:$0xff]  }
  0xda   : > { %6417 = vmatprep.subr.bf16.mxu0 %v11674_v58  ;;  %v11749_v58 = vld [vmem:[%s16935_s2 + $0xd64] ss:$28 sps:$4 sm:$0xff]  }
  0xdb   : > { %6744 = vmatpush1.bf16.msra.mxu1 %v11675_v60  ;;  %v11744_v60 = vld [vmem:[%s16935_s2 + $0xd90] ss:$28 sps:$4 sm:$0xff]  }
  0xdc   : > { %6745 = vmatprep.subr.bf16.mxu1 %v11683_v61  ;;  %v11747_v61 = vld [vmem:[%s16935_s2 + $0xd60] ss:$28 sps:$4 sm:$0xff]  }
  0xdd   : > { %6418 = vmatpush1.bf16.msra.mxu0 %v11672_v59  ;;  %v11746_v59 = vld [vmem:[%s16935_s2 + $0xd94] ss:$28 sps:$4 sm:$0xff]  }
  0xde   : > { %6419 = vmatprep.subr.bf16.mxu0 %v11680_v62  ;;  %v13947_v62 = vsub.s32 6, %v13229_v39 }
  0xdf   : > { %6746 = vmatpush1.bf16.msra.mxu1 %v11681_v0  ;;  %v11752_v0 = vld [vmem:[%s16935_s2 + $0xdcc] ss:$28 sps:$4 sm:$0xff]  }
  0xe0   : > { %6747 = vmatprep.subr.bf16.mxu1 %v11689_v2  ;;  %v11750_v2 = vld [vmem:[%s16935_s2 + $0xdc8] ss:$28 sps:$4 sm:$0xff]  }
  0xe1   : > { %6420 = vmatpush1.bf16.msra.mxu0 %v11678_v63  ;;  %v11755_v63 = vld [vmem:[%s16935_s2 + $0xd9c] ss:$28 sps:$4 sm:$0xff]  }
  0xe2   : > { %6421 = vmatprep.subr.bf16.mxu0 %v11686_v3  ;;  %v13959_v3 = vld [vmem:[%s13249_s28 + $0x8] sm:$0xff] }
  0xe3   : > { %6748 = vmatpush1.bf16.msra.mxu1 %v11687_v6  ;;  %v552_v6 = vrot.slane %v13751_v41, %v13947_v62 }
  0xe4   : > { %6749 = vmatprep.subr.bf16.mxu1 %v11695_v7  ;;  %v11761_v7 = vld [vmem:[%s16935_s2 + $0xdd4] ss:$28 sps:$4 sm:$0xff]  }
  0xe5   : > { %6422 = vmatpush1.bf16.msra.mxu0 %v11684_v5  ;;  %v11753_v5 = vld [vmem:[%s16935_s2 + $0xd98] ss:$28 sps:$4 sm:$0xff]   ;;  %v13977_v41 = vpack.c.bf16 %v552_v6, %v552_v6  ;;  %v11816_v6 = vld [vmem:[%s16935_s2 + $0x1030] ss:$28 sps:$4 sm:$0xff]  }
  0xe6   : > { %6423 = vmatprep.subr.bf16.mxu0 %v11692_v8  ;;  %v11758_v8 = vld [vmem:[%s16935_s2 + $0xe04] ss:$28 sps:$4 sm:$0xff]  }
  0xe7   : > { %6750 = vmatpush1.bf16.msra.mxu1 %v11693_v10  ;;  %v11756_v10 = vld [vmem:[%s16935_s2 + $0xe00] ss:$28 sps:$4 sm:$0xff]  }
  0xe8   : > { %6751 = vmatprep.subr.bf16.mxu1 %v11701_v11  ;;  %v11759_v11 = vld [vmem:[%s16935_s2 + $0xdd0] ss:$28 sps:$4 sm:$0xff]  }
  0xe9   : > { %6424 = vmatpush1.bf16.msra.mxu0 %v11690_v9  ;;  %v564_v9 = vrot.slane %v13959_v3, %v13252_v44 }
  0xea   : > { %6425 = vmatprep.subr.bf16.mxu0 %v11698_v13  ;;  %v11767_v13 = vld [vmem:[%s16935_s2 + $0xe0c] ss:$28 sps:$4 sm:$0xff]  }
  0xeb   : > { %6752 = vmatpush1.bf16.msra.mxu1 %v11699_v17  ;;  %v13988_v17 = vpack.c.bf16 %v564_v9, %v564_v9  ;;  %v11827_v9 = vld [vmem:[%s16935_s2 + $0x103c] ss:$28 sps:$4 sm:$0xff]  }
  0xec   : > { %6753 = vmatprep.subr.bf16.mxu1 %v11707_v18  ;;  %v11762_v18 = vld [vmem:[%s16935_s2 + $0xe38] ss:$28 sps:$4 sm:$0xff]  }
  0xed   : > { %6426 = vmatpush1.bf16.msra.mxu0 %v11696_v14  ;;  %v11764_v14 = vld [vmem:[%s16935_s2 + $0xe3c] ss:$28 sps:$4 sm:$0xff]  }
  0xee   : > { %6427 = vmatprep.subr.bf16.mxu0 %v11704_v20  ;;  %v11765_v20 = vld [vmem:[%s16935_s2 + $0xe08] ss:$28 sps:$4 sm:$0xff]  }
  0xef   : > { %6754 = vmatpush1.bf16.msra.mxu1 %v11705_v22  ;;  %v11773_v22 = vld [vmem:[%s16935_s2 + $0xe44] ss:$28 sps:$4 sm:$0xff]  }
  0xf0   : > { %6755 = vmatprep.subr.bf16.mxu1 %v11713_v23  ;;  %v11768_v23 = vld [vmem:[%s16935_s2 + $0xe70] ss:$28 sps:$4 sm:$0xff]  }
  0xf1   : > { %6428 = vmatpush1.bf16.msra.mxu0 %v11702_v21  ;;  %v11770_v21 = vld [vmem:[%s16935_s2 + $0xe74] ss:$28 sps:$4 sm:$0xff]  }
  0xf2   : > { %6429 = vmatprep.subr.bf16.mxu0 %v11710_v24  ;;  %v11771_v24 = vld [vmem:[%s16935_s2 + $0xe40] ss:$28 sps:$4 sm:$0xff]  }
  0xf3   : > { %6756 = vmatpush1.bf16.msra.mxu1 %v11711_v26  ;;  %v11779_v26 = vld [vmem:[%s16935_s2 + $0xe7c] ss:$28 sps:$4 sm:$0xff]  }
  0xf4   : > { %6757 = vmatprep.subr.bf16.mxu1 %v11719_v28  ;;  %v11774_v28 = vld [vmem:[%s16935_s2 + $0xea8] ss:$28 sps:$4 sm:$0xff]  }
  0xf5   : > { %6430 = vmatpush1.bf16.msra.mxu0 %v11708_v25  ;;  %v11776_v25 = vld [vmem:[%s16935_s2 + $0xeac] ss:$28 sps:$4 sm:$0xff]  }
  0xf6   : > { %6431 = vmatprep.subr.bf16.mxu0 %v11716_v29  ;;  %v11777_v29 = vld [vmem:[%s16935_s2 + $0xe78] ss:$28 sps:$4 sm:$0xff]  }
  0xf7   : > { %6758 = vmatpush1.bf16.msra.mxu1 %v11717_v31  ;;  %v11785_v31 = vld [vmem:[%s16935_s2 + $0xeb4] ss:$28 sps:$4 sm:$0xff]  }
  0xf8   : > { %6759 = vmatprep.subr.bf16.mxu1 %v11725_v32  ;;  %v11780_v32 = vld [vmem:[%s16935_s2 + $0xee0] ss:$28 sps:$4 sm:$0xff]  }
  0xf9   : > { %6432 = vmatpush1.bf16.msra.mxu0 %v11714_v48  ;;  %v11782_v48 = vld [vmem:[%s16935_s2 + $0xee4] ss:$28 sps:$4 sm:$0xff]  }
  0xfa   : > { %6433 = vmatprep.subr.bf16.mxu0 %v11722_v35  ;;  %v11783_v35 = vld [vmem:[%s16935_s2 + $0xeb0] ss:$28 sps:$4 sm:$0xff]  }
  0xfb   : > { %6760 = vmatpush1.bf16.msra.mxu1 %v11723_v38  ;;  %v11791_v38 = vld [vmem:[%s16935_s2 + $0xeec] ss:$28 sps:$4 sm:$0xff]  }
  0xfc   : > { %6761 = vmatprep.subr.bf16.mxu1 %v11731_v40  ;;  %v11786_v40 = vld [vmem:[%s16935_s2 + $0xf18] ss:$28 sps:$4 sm:$0xff]  }
  0xfd   : > { %6434 = vmatpush1.bf16.msra.mxu0 %v11720_v36  ;;  %v11788_v36 = vld [vmem:[%s16935_s2 + $0xf1c] ss:$28 sps:$4 sm:$0xff]  }
  0xfe   : > { %6435 = vmatprep.subr.bf16.mxu0 %v11728_v42  ;;  %v11789_v42 = vld [vmem:[%s16935_s2 + $0xee8] ss:$28 sps:$4 sm:$0xff]  }
  0xff   : > { %6762 = vmatpush1.bf16.msra.mxu1 %v11729_v45  ;;  %v11797_v45 = vld [vmem:[%s16935_s2 + $0xf24] ss:$28 sps:$4 sm:$0xff]  }
 0x100   : > { %6763 = vmatprep.subr.bf16.mxu1 %v11737_v46  ;;  %v11792_v46 = vld [vmem:[%s16935_s2 + $0xf50] ss:$28 sps:$4 sm:$0xff]  }
 0x101   : > { %6436 = vmatpush1.bf16.msra.mxu0 %v11726_v43  ;;  %v11794_v43 = vld [vmem:[%s16935_s2 + $0xf54] ss:$28 sps:$4 sm:$0xff]  }
 0x102   : > { %6437 = vmatprep.subr.bf16.mxu0 %v11734_v47  ;;  %v11795_v47 = vld [vmem:[%s16935_s2 + $0xf20] ss:$28 sps:$4 sm:$0xff]  }
 0x103   : > { %6764 = vmatpush1.bf16.msra.mxu1 %v11735_v51  ;;  %v11803_v51 = vld [vmem:[%s16935_s2 + $0xf5c] ss:$28 sps:$4 sm:$0xff]  }
 0x104   : > { %6765 = vmatprep.subr.bf16.mxu1 %v11743_v52  ;;  %v11798_v52 = vld [vmem:[%s16935_s2 + $0xf88] ss:$28 sps:$4 sm:$0xff]  }
 0x105   : > { %6438 = vmatpush1.bf16.msra.mxu0 %v11732_v50  ;;  %v11800_v50 = vld [vmem:[%s16935_s2 + $0xf8c] ss:$28 sps:$4 sm:$0xff]  }
 0x106   : > { %6439 = vmatprep.subr.bf16.mxu0 %v11740_v55  ;;  %v11801_v55 = vld [vmem:[%s16935_s2 + $0xf58] ss:$28 sps:$4 sm:$0xff]  }
 0x107   : > { %6766 = vmatpush1.bf16.msra.mxu1 %v11741_v57  ;;  %v11809_v57 = vld [vmem:[%s16935_s2 + $0xf94] ss:$28 sps:$4 sm:$0xff]  }
 0x108   : > { %6767 = vmatprep.subr.bf16.mxu1 %v11749_v58  ;;  %v11804_v58 = vld [vmem:[%s16935_s2 + $0xfc0] ss:$28 sps:$4 sm:$0xff]  }
 0x109   : > { %6440 = vmatpush1.bf16.msra.mxu0 %v11738_v56  ;;  %v11806_v56 = vld [vmem:[%s16935_s2 + $0xfc4] ss:$28 sps:$4 sm:$0xff]  }
 0x10a   : > { %6441 = vmatprep.subr.bf16.mxu0 %v11746_v59  ;;  %v11807_v59 = vld [vmem:[%s16935_s2 + $0xf90] ss:$28 sps:$4 sm:$0xff]  }
 0x10b   : > { %6768 = vmatpush1.bf16.msra.mxu1 %v11747_v61  ;;  %v11815_v61 = vld [vmem:[%s16935_s2 + $0xfcc] ss:$28 sps:$4 sm:$0xff]  }
 0x10c   : > { %6769 = vmatprep.subr.bf16.mxu1 %v11755_v63  ;;  %v11810_v63 = vld [vmem:[%s16935_s2 + $0xff8] ss:$28 sps:$4 sm:$0xff]  }
 0x10d   : > { %6442 = vmatpush1.bf16.msra.mxu0 %v11744_v60  ;;  %v11812_v60 = vld [vmem:[%s16935_s2 + $0xffc] ss:$28 sps:$4 sm:$0xff]  }
 0x10e   : > { %6443 = vmatprep.subr.bf16.mxu0 %v11752_v0  ;;  %v11813_v0 = vld [vmem:[%s16935_s2 + $0xfc8] ss:$28 sps:$4 sm:$0xff]  }
 0x10f   : > { %6770 = vmatpush1.bf16.msra.mxu1 %v11753_v5  ;;  %v11821_v5 = vld [vmem:[%s16935_s2 + $0x1004] ss:$28 sps:$4 sm:$0xff]  }
 0x110   : > { %6771 = vmatprep.subr.bf16.mxu1 %v11761_v7  ;;  %v11819_v7 = vld [vmem:[%s16935_s2 + $0x1000] ss:$28 sps:$4 sm:$0xff]  }
 0x111   : > { %6444 = vmatpush1.bf16.msra.mxu0 %v11750_v2  ;;  %v11818_v2 = vld [vmem:[%s16935_s2 + $0x1034] ss:$28 sps:$4 sm:$0xff]  }
 0x112   : > { %6454 = vmatprep.subr.bf16.mxu0 %v11758_v8  ;;  %v11824_v8 = vld [vmem:[%s16935_s2 + $0x106c] ss:$28 sps:$4 sm:$0xff]  }
 0x113   : > { %6772 = vmatpush1.bf16.msra.mxu1 %v11759_v11  ;;  %v11825_v11 = vld [vmem:[%s16935_s2 + $0x1038] ss:$28 sps:$4 sm:$0xff]  }
 0x114   : > { %6446 = vmatmul.mubr.bf16.vlgmr.msra.gmra.mrb[0].mxu0 %v13977_v41  ;;  %6782 = vmatprep.subr.bf16.mxu1 %v11767_v13  ;;  %v11830_v13 = vld [vmem:[%s16935_s2 + $0x10a4] ss:$28 sps:$4 sm:$0xff]  }
 0x115   : > { %6455 = vmatpush1.bf16.msra.mxu0 %v11756_v10  ;;  %6486 = vmatprep.mubr.bf16.mxu0 %v13988_v17  ;;  %v11822_v10 = vld [vmem:[%s16935_s2 + $0x1068] ss:$28 sps:$4 sm:$0xff]  }
 0x116   : > { %6456 = vmatprep.subr.bf16.mxu0 %v11764_v14  ;;  %6774 = vmatmul.mubr.bf16.vlgmr.msra.gmra.mrb[0].mxu1 %v13977_v41  ;;  %v11833_v14 = vld [vmem:[%s16935_s2 + $0x1074] ss:$28 sps:$4 sm:$0xff]  }
 0x117   : > { %6783 = vmatpush1.bf16.msra.mxu1 %v11765_v20  ;;  %6814 = vmatprep.mubr.bf16.mxu1 %v13988_v17  ;;  %v11831_v20 = vld [vmem:[%s16935_s2 + $0x1070] ss:$28 sps:$4 sm:$0xff]  }
 0x118   : > { %6784 = vmatprep.subr.bf16.mxu1 %v11773_v22  ;;  %v11839_v22 = vld [vmem:[%s16935_s2 + $0x10ac] ss:$28 sps:$4 sm:$0xff]  }
 0x119   : > { %6457 = vmatpush1.bf16.msra.mxu0 %v11762_v18  ;;  %v11828_v18 = vld [vmem:[%s16935_s2 + $0x10a0] ss:$28 sps:$4 sm:$0xff]  }
 0x11a   : > { %6458 = vmatprep.subr.bf16.mxu0 %v11770_v21  ;;  %v11836_v21 = vld [vmem:[%s16935_s2 + $0x10dc] ss:$28 sps:$4 sm:$0xff]  }
 0x11b   : > { %6785 = vmatpush1.bf16.msra.mxu1 %v11771_v24  ;;  %v11837_v24 = vld [vmem:[%s16935_s2 + $0x10a8] ss:$28 sps:$4 sm:$0xff]  }
 0x11c   : > { %6786 = vmatprep.subr.bf16.mxu1 %v11779_v26  ;;  %v11845_v26 = vld [vmem:[%s16935_s2 + $0x10e4] ss:$28 sps:$4 sm:$0xff]  }
 0x11d   : > { %6459 = vmatpush1.bf16.msra.mxu0 %v11768_v23  ;;  %v11834_v23 = vld [vmem:[%s16935_s2 + $0x10d8] ss:$28 sps:$4 sm:$0xff]  }
 0x11e   : > { %6460 = vmatprep.subr.bf16.mxu0 %v11776_v25  ;;  %v11842_v25 = vld [vmem:[%s16935_s2 + $0x1114] ss:$28 sps:$4 sm:$0xff]  }
 0x11f   : > { %6787 = vmatpush1.bf16.msra.mxu1 %v11777_v29  ;;  %v11843_v29 = vld [vmem:[%s16935_s2 + $0x10e0] ss:$28 sps:$4 sm:$0xff]  }
 0x120   : > { %6788 = vmatprep.subr.bf16.mxu1 %v11785_v31  ;;  %v11851_v31 = vld [vmem:[%s16935_s2 + $0x111c] ss:$28 sps:$4 sm:$0xff]  }
 0x121   : > { %6461 = vmatpush1.bf16.msra.mxu0 %v11774_v28  ;;  %v11840_v28 = vld [vmem:[%s16935_s2 + $0x1110] ss:$28 sps:$4 sm:$0xff]  }
 0x122   : > { %6462 = vmatprep.subr.bf16.mxu0 %v11782_v48  ;;  %v11848_v48 = vld [vmem:[%s16935_s2 + $0x114c] ss:$28 sps:$4 sm:$0xff]  }
 0x123   : > { %6789 = vmatpush1.bf16.msra.mxu1 %v11783_v35  ;;  %v11849_v35 = vld [vmem:[%s16935_s2 + $0x1118] ss:$28 sps:$4 sm:$0xff]  }
 0x124   : > { %6790 = vmatprep.subr.bf16.mxu1 %v11791_v38  ;;  %v11854_v38 = vld [vmem:[%s16935_s2 + $0x1184] ss:$28 sps:$4 sm:$0xff]  }
 0x125   : > { %6463 = vmatpush1.bf16.msra.mxu0 %v11780_v32  ;;  %v11846_v32 = vld [vmem:[%s16935_s2 + $0x1148] ss:$28 sps:$4 sm:$0xff]  }
 0x126   : > { %6464 = vmatprep.subr.bf16.mxu0 %v11788_v36  ;;  %v560_v36 = vrot.slane %v13959_v3, %v13315_v1 }
 0x127   : > { %6791 = vmatpush1.bf16.msra.mxu1 %v11789_v42  ;;  %v572_v42 = vrot.slane %v13959_v3, %v13324_v4  ;;  %v11863_v3 = vld [vmem:[%s16935_s2 + $0x118c] ss:$28 sps:$4 sm:$0xff]  }
 0x128   : > { %6792 = vmatprep.subr.bf16.mxu1 %v11797_v45  ;;  %v14181_v45 = vpack.c.bf16 %v560_v36, %v560_v36  ;;  %v11917_v36 = vld [vmem:[%s16935_s2 + $0x1384] ss:$28 sps:$4 sm:$0xff]  }
 0x129   : > { %6465 = vmatpush1.bf16.msra.mxu0 %v11786_v40  ;;  %v11857_v40 = vld [vmem:[%s16935_s2 + $0x1154] ss:$28 sps:$4 sm:$0xff]  }
 0x12a   : > { %6466 = vmatprep.subr.bf16.mxu0 %v11794_v43  ;;  %v11852_v43 = vld [vmem:[%s16935_s2 + $0x1180] ss:$28 sps:$4 sm:$0xff]  }
 0x12b   : > { %6793 = vmatpush1.bf16.msra.mxu1 %v11795_v47  ;;  %v11860_v47 = vld [vmem:[%s16935_s2 + $0x11bc] ss:$28 sps:$4 sm:$0xff]  }
 0x12c   : > { %6794 = vmatprep.subr.bf16.mxu1 %v11803_v51  ;;  %v11858_v51 = vld [vmem:[%s16935_s2 + $0x11b8] ss:$28 sps:$4 sm:$0xff]  }
 0x12d   : > { %6467 = vmatpush1.bf16.msra.mxu0 %v11792_v46  ;;  %v11855_v46 = vld [vmem:[%s16935_s2 + $0x1150] ss:$28 sps:$4 sm:$0xff]  }
 0x12e   : > { %6468 = vmatprep.subr.bf16.mxu0 %v11800_v50  ;;  %v14192_v50 = vpack.c.bf16 %v572_v42, %v572_v42  ;;  %v11920_v42 = vld [vmem:[%s16935_s2 + $0x13ec] ss:$28 sps:$4 sm:$0xff]  }
 0x12f   : > { %6795 = vmatpush1.bf16.msra.mxu1 %v11801_v55  ;;  %v11866_v55 = vld [vmem:[%s16935_s2 + $0x11f4] ss:$28 sps:$4 sm:$0xff]  }
 0x130   : > { %6796 = vmatprep.subr.bf16.mxu1 %v11809_v57  ;;  %v11864_v57 = vld [vmem:[%s16935_s2 + $0x11f0] ss:$28 sps:$4 sm:$0xff]  }
 0x131   : > { %6469 = vmatpush1.bf16.msra.mxu0 %v11798_v52  ;;  %v11861_v52 = vld [vmem:[%s16935_s2 + $0x1188] ss:$28 sps:$4 sm:$0xff]  }
 0x132   : > { %6470 = vmatprep.subr.bf16.mxu0 %v11806_v56  ;;  %v11869_v56 = vld [vmem:[%s16935_s2 + $0x11c4] ss:$28 sps:$4 sm:$0xff]  }
 0x133   : > { %6797 = vmatpush1.bf16.msra.mxu1 %v11807_v59  ;;  %v11872_v59 = vld [vmem:[%s16935_s2 + $0x122c] ss:$28 sps:$4 sm:$0xff]  }
 0x134   : > { %6798 = vmatprep.subr.bf16.mxu1 %v11815_v61  ;;  %v11870_v61 = vld [vmem:[%s16935_s2 + $0x1228] ss:$28 sps:$4 sm:$0xff]  }
 0x135   : > { %6471 = vmatpush1.bf16.msra.mxu0 %v11804_v58  ;;  %v11867_v58 = vld [vmem:[%s16935_s2 + $0x11c0] ss:$28 sps:$4 sm:$0xff]  }
 0x136   : > { %6472 = vmatprep.subr.bf16.mxu0 %v11812_v60  ;;  %v11875_v60 = vld [vmem:[%s16935_s2 + $0x11fc] ss:$28 sps:$4 sm:$0xff]  }
 0x137   : > { %6799 = vmatpush1.bf16.msra.mxu1 %v11813_v0  ;;  %v11878_v0 = vld [vmem:[%s16935_s2 + $0x1264] ss:$28 sps:$4 sm:$0xff]  }
 0x138   : > { %6800 = vmatprep.subr.bf16.mxu1 %v11821_v5  ;;  %v11876_v5 = vld [vmem:[%s16935_s2 + $0x1260] ss:$28 sps:$4 sm:$0xff]  }
 0x139   : > { %6473 = vmatpush1.bf16.msra.mxu0 %v11810_v63  ;;  %v11873_v63 = vld [vmem:[%s16935_s2 + $0x11f8] ss:$28 sps:$4 sm:$0xff]  }
 0x13a   : > { %6474 = vmatprep.subr.bf16.mxu0 %v11818_v2  ;;  %v11881_v2 = vld [vmem:[%s16935_s2 + $0x1234] ss:$28 sps:$4 sm:$0xff]  }
 0x13b   : > { %6801 = vmatpush1.bf16.msra.mxu1 %v11819_v7  ;;  %v11884_v7 = vld [vmem:[%s16935_s2 + $0x129c] ss:$28 sps:$4 sm:$0xff]  }
 0x13c   : > { %6802 = vmatprep.subr.bf16.mxu1 %v11827_v9  ;;  %v11882_v9 = vld [vmem:[%s16935_s2 + $0x1298] ss:$28 sps:$4 sm:$0xff]  }
 0x13d   : > { %6475 = vmatpush1.bf16.msra.mxu0 %v11816_v6  ;;  %v11879_v6 = vld [vmem:[%s16935_s2 + $0x1230] ss:$28 sps:$4 sm:$0xff]  }
 0x13e   : > { %6476 = vmatprep.subr.bf16.mxu0 %v11824_v8  ;;  %v11887_v8 = vld [vmem:[%s16935_s2 + $0x126c] ss:$28 sps:$4 sm:$0xff]  }
 0x13f   : > { %6803 = vmatpush1.bf16.msra.mxu1 %v11825_v11  ;;  %v11890_v11 = vld [vmem:[%s16935_s2 + $0x12d4] ss:$28 sps:$4 sm:$0xff]  }
 0x140   : > { %6804 = vmatprep.subr.bf16.mxu1 %v11833_v14  ;;  %v11888_v14 = vld [vmem:[%s16935_s2 + $0x12d0] ss:$28 sps:$4 sm:$0xff]  }
 0x141   : > { %6477 = vmatpush1.bf16.msra.mxu0 %v11822_v10  ;;  %v11885_v10 = vld [vmem:[%s16935_s2 + $0x1268] ss:$28 sps:$4 sm:$0xff]  }
 0x142   : > { %6478 = vmatprep.subr.bf16.mxu0 %v11830_v13  ;;  %v11893_v13 = vld [vmem:[%s16935_s2 + $0x12a4] ss:$28 sps:$4 sm:$0xff]  }
 0x143   : > { %6805 = vmatpush1.bf16.msra.mxu1 %v11831_v20  ;;  %v11896_v20 = vld [vmem:[%s16935_s2 + $0x130c] ss:$28 sps:$4 sm:$0xff]  }
 0x144   : > { %6806 = vmatprep.subr.bf16.mxu1 %v11839_v22  ;;  %v11894_v22 = vld [vmem:[%s16935_s2 + $0x1308] ss:$28 sps:$4 sm:$0xff]  }
 0x145   : > { %6479 = vmatpush1.bf16.msra.mxu0 %v11828_v18  ;;  %v11891_v18 = vld [vmem:[%s16935_s2 + $0x12a0] ss:$28 sps:$4 sm:$0xff]  }
 0x146   : > { %6480 = vmatprep.subr.bf16.mxu0 %v11836_v21  ;;  %v11899_v21 = vld [vmem:[%s16935_s2 + $0x12dc] ss:$28 sps:$4 sm:$0xff]  }
 0x147   : > { %6807 = vmatpush1.bf16.msra.mxu1 %v11837_v24  ;;  %v11902_v24 = vld [vmem:[%s16935_s2 + $0x1344] ss:$28 sps:$4 sm:$0xff]  }
 0x148   : > { %6808 = vmatprep.subr.bf16.mxu1 %v11845_v26  ;;  %v11900_v26 = vld [vmem:[%s16935_s2 + $0x1340] ss:$28 sps:$4 sm:$0xff]  }
 0x149   : > { %6481 = vmatpush1.bf16.msra.mxu0 %v11834_v23  ;;  %v11897_v23 = vld [vmem:[%s16935_s2 + $0x12d8] ss:$28 sps:$4 sm:$0xff]  }
 0x14a   : > { %6482 = vmatprep.subr.bf16.mxu0 %v11842_v25  ;;  %v11905_v25 = vld [vmem:[%s16935_s2 + $0x1314] ss:$28 sps:$4 sm:$0xff]  }
 0x14b   : > { %6809 = vmatpush1.bf16.msra.mxu1 %v11843_v29  ;;  %v11908_v29 = vld [vmem:[%s16935_s2 + $0x137c] ss:$28 sps:$4 sm:$0xff]  }
 0x14c   : > { %6810 = vmatprep.subr.bf16.mxu1 %v11851_v31  ;;  %v11906_v31 = vld [vmem:[%s16935_s2 + $0x1378] ss:$28 sps:$4 sm:$0xff]  }
 0x14d   : > { %6483 = vmatpush1.bf16.msra.mxu0 %v11840_v28  ;;  %v11903_v28 = vld [vmem:[%s16935_s2 + $0x1310] ss:$28 sps:$4 sm:$0xff]  }
 0x14e   : > { %6484 = vmatprep.subr.bf16.mxu0 %v11848_v48  ;;  %v11911_v48 = vld [vmem:[%s16935_s2 + $0x134c] ss:$28 sps:$4 sm:$0xff]  }
 0x14f   : > { %6811 = vmatpush1.bf16.msra.mxu1 %v11849_v35  ;;  %v11914_v35 = vld [vmem:[%s16935_s2 + $0x13b4] ss:$28 sps:$4 sm:$0xff]  }
 0x150   : > { %6812 = vmatprep.subr.bf16.mxu1 %v11857_v40  ;;  %v11915_v40 = vld [vmem:[%s16935_s2 + $0x1380] ss:$28 sps:$4 sm:$0xff]  }
 0x151   : > { %6485 = vmatpush1.bf16.msra.mxu0 %v11846_v32  ;;  %v11909_v32 = vld [vmem:[%s16935_s2 + $0x1348] ss:$28 sps:$4 sm:$0xff]  }
 0x152   : > { %6495 = vmatprep.subr.bf16.mxu0 %v11854_v38  ;;  %v11912_v38 = vld [vmem:[%s16935_s2 + $0x13b0] ss:$28 sps:$4 sm:$0xff]  }
 0x153   : > { %6813 = vmatpush1.bf16.msra.mxu1 %v11855_v46  ;;  %v11918_v46 = vld [vmem:[%s16935_s2 + $0x13e8] ss:$28 sps:$4 sm:$0xff]  }
 0x154   : > { %6487 = vmatmul.mubr.bf16.vlgmr.msra.gmra.mrb[0].mxu0 %v14181_v45  ;;  %6823 = vmatprep.subr.bf16.mxu1 %v11863_v3  ;;  %v11926_v3 = vld [vmem:[%s16935_s2 + $0x1424] ss:$28 sps:$4 sm:$0xff]  }
 0x155   : > { %6496 = vmatpush1.bf16.msra.mxu0 %v11852_v43  ;;  %6527 = vmatprep.mubr.bf16.mxu0 %v14192_v50  ;;  %v11923_v43 = vld [vmem:[%s16935_s2 + $0x13bc] ss:$28 sps:$4 sm:$0xff]  }
 0x156   : > { %6497 = vmatprep.subr.bf16.mxu0 %v11860_v47  ;;  %6815 = vmatmul.mubr.bf16.vlgmr.msra.gmra.mrb[0].mxu1 %v14181_v45  ;;  %v11921_v47 = vld [vmem:[%s16935_s2 + $0x13b8] ss:$28 sps:$4 sm:$0xff]  }
 0x157   : > { %6824 = vmatpush1.bf16.msra.mxu1 %v11861_v52  ;;  %6855 = vmatprep.mubr.bf16.mxu1 %v14192_v50  ;;  %v11924_v52 = vld [vmem:[%s16935_s2 + $0x1420] ss:$28 sps:$4 sm:$0xff]  }
 0x158   : > { %6825 = vmatprep.subr.bf16.mxu1 %v11869_v56  ;;  %v11932_v56 = vld [vmem:[%s16935_s2 + $0x145c] ss:$28 sps:$4 sm:$0xff]  }
 0x159   : > { %6498 = vmatpush1.bf16.msra.mxu0 %v11858_v51  ;;  %v11929_v51 = vld [vmem:[%s16935_s2 + $0x13f4] ss:$28 sps:$4 sm:$0xff]  }
 0x15a   : > { %6499 = vmatprep.subr.bf16.mxu0 %v11866_v55  ;;  %v11927_v55 = vld [vmem:[%s16935_s2 + $0x13f0] ss:$28 sps:$4 sm:$0xff]  }
 0x15b   : > { %6826 = vmatpush1.bf16.msra.mxu1 %v11867_v58  ;;  %v11930_v58 = vld [vmem:[%s16935_s2 + $0x1458] ss:$28 sps:$4 sm:$0xff]  }
 0x15c   : > { %6827 = vmatprep.subr.bf16.mxu1 %v11875_v60  ;;  %v11938_v60 = vld [vmem:[%s16935_s2 + $0x1494] ss:$28 sps:$4 sm:$0xff]  }
 0x15d   : > { %6500 = vmatpush1.bf16.msra.mxu0 %v11864_v57  ;;  %v11935_v57 = vld [vmem:[%s16935_s2 + $0x142c] ss:$28 sps:$4 sm:$0xff]  }
 0x15e   : > { %6501 = vmatprep.subr.bf16.mxu0 %v11872_v59  ;;  %v11933_v59 = vld [vmem:[%s16935_s2 + $0x1428] ss:$28 sps:$4 sm:$0xff]  }
 0x15f   : > { %6828 = vmatpush1.bf16.msra.mxu1 %v11873_v63  ;;  %v11936_v63 = vld [vmem:[%s16935_s2 + $0x1490] ss:$28 sps:$4 sm:$0xff]  }
 0x160   : > { %6829 = vmatprep.subr.bf16.mxu1 %v11881_v2  ;;  %v11944_v2 = vld [vmem:[%s16935_s2 + $0x14cc] ss:$28 sps:$4 sm:$0xff]  }
 0x161   : > { %6502 = vmatpush1.bf16.msra.mxu0 %v11870_v61  ;;  %v11941_v61 = vld [vmem:[%s16935_s2 + $0x1464] ss:$28 sps:$4 sm:$0xff]  }
 0x162   : > { %6503 = vmatprep.subr.bf16.mxu0 %v11878_v0  ;;  %v11939_v0 = vld [vmem:[%s16935_s2 + $0x1460] ss:$28 sps:$4 sm:$0xff]  }
 0x163   : > { %6830 = vmatpush1.bf16.msra.mxu1 %v11879_v6  ;;  %v11942_v6 = vld [vmem:[%s16935_s2 + $0x14c8] ss:$28 sps:$4 sm:$0xff]  }
 0x164   : > { %6831 = vmatprep.subr.bf16.mxu1 %v11887_v8  ;;  %v14373_v8 = vld [vmem:[%s13249_s28 + $0x8] sm:$0xff] }
 0x165   : > { %6504 = vmatpush1.bf16.msra.mxu0 %v11876_v5  ;;  %v11947_v5 = vld [vmem:[%s16935_s2 + $0x149c] ss:$28 sps:$4 sm:$0xff]  }
 0x166   : > { %6505 = vmatprep.subr.bf16.mxu0 %v11884_v7  ;;  %v11945_v7 = vld [vmem:[%s16935_s2 + $0x1498] ss:$28 sps:$4 sm:$0xff]  }
 0x167   : > { %6832 = vmatpush1.bf16.msra.mxu1 %v11885_v10  ;;  %v11950_v10 = vld [vmem:[%s16935_s2 + $0x1504] ss:$28 sps:$4 sm:$0xff]  }
 0x168   : > { %6833 = vmatprep.subr.bf16.mxu1 %v11893_v13  ;;  %v580_v13 = vrot.slane %v14373_v8, %v13534_v19 }
 0x169   : > { %6506 = vmatpush1.bf16.msra.mxu0 %v11882_v9  ;;  %v568_v9 = vrot.slane %v14373_v8, %v13525_v15 }
 0x16a   : > { %6507 = vmatprep.subr.bf16.mxu0 %v11890_v11  ;;  %v11953_v11 = vld [vmem:[%s16935_s2 + $0x14d4] ss:$28 sps:$4 sm:$0xff]  }
 0x16b   : > { %6834 = vmatpush1.bf16.msra.mxu1 %v11891_v18  ;;  %v11951_v18 = vld [vmem:[%s16935_s2 + $0x14d0] ss:$28 sps:$4 sm:$0xff]  }
 0x16c   : > { %6835 = vmatprep.subr.bf16.mxu1 %v11899_v21  ;;  %v11959_v21 = vld [vmem:[%s16935_s2 + $0x150c] ss:$28 sps:$4 sm:$0xff]  }
 0x16d   : > { %6508 = vmatpush1.bf16.msra.mxu0 %v11888_v14  ;;  %v11948_v14 = vld [vmem:[%s16935_s2 + $0x1500] ss:$28 sps:$4 sm:$0xff]  }
 0x16e   : > { %6509 = vmatprep.subr.bf16.mxu0 %v11896_v20  ;;  %v14391_v20 = vpack.c.bf16 %v568_v9, %v568_v9  ;;  %v12005_v9 = vld [vmem:[%s16935_s2 + $0x16c8] ss:$28 sps:$4 sm:$0xff]  }
 0x16f   : > { %6836 = vmatpush1.bf16.msra.mxu1 %v11897_v23  ;;  %v14399_v23 = vpack.c.bf16 %v580_v13, %v580_v13  ;;  %v12013_v13 = vld [vmem:[%s16935_s2 + $0x1704] ss:$28 sps:$4 sm:$0xff]  }
 0x170   : > { %6837 = vmatprep.subr.bf16.mxu1 %v11905_v25  ;;  %v11957_v25 = vld [vmem:[%s16935_s2 + $0x1508] ss:$28 sps:$4 sm:$0xff]  }
 0x171   : > { %6510 = vmatpush1.bf16.msra.mxu0 %v11894_v22  ;;  %v11956_v22 = vld [vmem:[%s16935_s2 + $0x153c] ss:$28 sps:$4 sm:$0xff]  }
 0x172   : > { %6511 = vmatprep.subr.bf16.mxu0 %v11902_v24  ;;  %v11954_v24 = vld [vmem:[%s16935_s2 + $0x1538] ss:$28 sps:$4 sm:$0xff]  }
 0x173   : > { %6838 = vmatpush1.bf16.msra.mxu1 %v11903_v28  ;;  %v11965_v28 = vld [vmem:[%s16935_s2 + $0x1544] ss:$28 sps:$4 sm:$0xff]  }
 0x174   : > { %6839 = vmatprep.subr.bf16.mxu1 %v11911_v48  ;;  %v11960_v48 = vld [vmem:[%s16935_s2 + $0x1570] ss:$28 sps:$4 sm:$0xff]  }
 0x175   : > { %6512 = vmatpush1.bf16.msra.mxu0 %v11900_v26  ;;  %v11962_v26 = vld [vmem:[%s16935_s2 + $0x1574] ss:$28 sps:$4 sm:$0xff]  }
 0x176   : > { %6513 = vmatprep.subr.bf16.mxu0 %v11908_v29  ;;  %v11963_v29 = vld [vmem:[%s16935_s2 + $0x1540] ss:$28 sps:$4 sm:$0xff]  }
 0x177   : > { %6840 = vmatpush1.bf16.msra.mxu1 %v11909_v32  ;;  %v11971_v32 = vld [vmem:[%s16935_s2 + $0x157c] ss:$28 sps:$4 sm:$0xff]  }
 0x178   : > { %6841 = vmatprep.subr.bf16.mxu1 %v11917_v36  ;;  %v11966_v36 = vld [vmem:[%s16935_s2 + $0x15a8] ss:$28 sps:$4 sm:$0xff]  }
 0x179   : > { %6514 = vmatpush1.bf16.msra.mxu0 %v11906_v31  ;;  %v11968_v31 = vld [vmem:[%s16935_s2 + $0x15ac] ss:$28 sps:$4 sm:$0xff]  }
 0x17a   : > { %6515 = vmatprep.subr.bf16.mxu0 %v11914_v35  ;;  %v11969_v35 = vld [vmem:[%s16935_s2 + $0x1578] ss:$28 sps:$4 sm:$0xff]  }
 0x17b   : > { %6842 = vmatpush1.bf16.msra.mxu1 %v11915_v40  ;;  %v11977_v40 = vld [vmem:[%s16935_s2 + $0x15b4] ss:$28 sps:$4 sm:$0xff]  }
 0x17c   : > { %6843 = vmatprep.subr.bf16.mxu1 %v11923_v43  ;;  %v11972_v43 = vld [vmem:[%s16935_s2 + $0x15e0] ss:$28 sps:$4 sm:$0xff]  }
 0x17d   : > { %6516 = vmatpush1.bf16.msra.mxu0 %v11912_v38  ;;  %v11974_v38 = vld [vmem:[%s16935_s2 + $0x15e4] ss:$28 sps:$4 sm:$0xff]  }
 0x17e   : > { %6517 = vmatprep.subr.bf16.mxu0 %v11920_v42  ;;  %v11975_v42 = vld [vmem:[%s16935_s2 + $0x15b0] ss:$28 sps:$4 sm:$0xff]  }
 0x17f   : > { %6844 = vmatpush1.bf16.msra.mxu1 %v11921_v47  ;;  %v11983_v47 = vld [vmem:[%s16935_s2 + $0x15ec] ss:$28 sps:$4 sm:$0xff]  }
 0x180   : > { %6845 = vmatprep.subr.bf16.mxu1 %v11929_v51  ;;  %v11978_v51 = vld [vmem:[%s16935_s2 + $0x1618] ss:$28 sps:$4 sm:$0xff]  }
 0x181   : > { %6518 = vmatpush1.bf16.msra.mxu0 %v11918_v46  ;;  %v11980_v46 = vld [vmem:[%s16935_s2 + $0x161c] ss:$28 sps:$4 sm:$0xff]  }
 0x182   : > { %6519 = vmatprep.subr.bf16.mxu0 %v11926_v3  ;;  %v11981_v3 = vld [vmem:[%s16935_s2 + $0x15e8] ss:$28 sps:$4 sm:$0xff]  }
 0x183   : > { %6846 = vmatpush1.bf16.msra.mxu1 %v11927_v55  ;;  %v11989_v55 = vld [vmem:[%s16935_s2 + $0x1624] ss:$28 sps:$4 sm:$0xff]  }
 0x184   : > { %6847 = vmatprep.subr.bf16.mxu1 %v11935_v57  ;;  %v11984_v57 = vld [vmem:[%s16935_s2 + $0x1650] ss:$28 sps:$4 sm:$0xff]  }
 0x185   : > { %6520 = vmatpush1.bf16.msra.mxu0 %v11924_v52  ;;  %v11986_v52 = vld [vmem:[%s16935_s2 + $0x1654] ss:$28 sps:$4 sm:$0xff]  }
 0x186   : > { %6521 = vmatprep.subr.bf16.mxu0 %v11932_v56  ;;  %v11987_v56 = vld [vmem:[%s16935_s2 + $0x1620] ss:$28 sps:$4 sm:$0xff]  }
 0x187   : > { %6848 = vmatpush1.bf16.msra.mxu1 %v11933_v59  ;;  %v11995_v59 = vld [vmem:[%s16935_s2 + $0x165c] ss:$28 sps:$4 sm:$0xff]  }
 0x188   : > { %6849 = vmatprep.subr.bf16.mxu1 %v11941_v61  ;;  %v11990_v61 = vld [vmem:[%s16935_s2 + $0x1688] ss:$28 sps:$4 sm:$0xff]  }
 0x189   : > { %6522 = vmatpush1.bf16.msra.mxu0 %v11930_v58  ;;  %v11992_v58 = vld [vmem:[%s16935_s2 + $0x168c] ss:$28 sps:$4 sm:$0xff]  }
 0x18a   : > { %6523 = vmatprep.subr.bf16.mxu0 %v11938_v60  ;;  %v11993_v60 = vld [vmem:[%s16935_s2 + $0x1658] ss:$28 sps:$4 sm:$0xff]  }
 0x18b   : > { %6850 = vmatpush1.bf16.msra.mxu1 %v11939_v0  ;;  %v12001_v0 = vld [vmem:[%s16935_s2 + $0x1694] ss:$28 sps:$4 sm:$0xff]  }
 0x18c   : > { %6851 = vmatprep.subr.bf16.mxu1 %v11947_v5  ;;  %v11996_v5 = vld [vmem:[%s16935_s2 + $0x16c0] ss:$28 sps:$4 sm:$0xff]  }
 0x18d   : > { %6524 = vmatpush1.bf16.msra.mxu0 %v11936_v63  ;;  %v11998_v63 = vld [vmem:[%s16935_s2 + $0x16c4] ss:$28 sps:$4 sm:$0xff]  }
 0x18e   : > { %6525 = vmatprep.subr.bf16.mxu0 %v11944_v2  ;;  %v11999_v2 = vld [vmem:[%s16935_s2 + $0x1690] ss:$28 sps:$4 sm:$0xff]  }
 0x18f   : > { %6852 = vmatpush1.bf16.msra.mxu1 %v11945_v7  ;;  %v12007_v7 = vld [vmem:[%s16935_s2 + $0x16cc] ss:$28 sps:$4 sm:$0xff]  }
 0x190   : > { %6853 = vmatprep.subr.bf16.mxu1 %v11953_v11  ;;  %v12010_v11 = vld [vmem:[%s16935_s2 + $0x1734] ss:$28 sps:$4 sm:$0xff]  }
 0x191   : > { %6526 = vmatpush1.bf16.msra.mxu0 %v11942_v6  ;;  %v12004_v6 = vld [vmem:[%s16935_s2 + $0x16fc] ss:$28 sps:$4 sm:$0xff]  }
 0x192   : > { %6536 = vmatprep.subr.bf16.mxu0 %v11950_v10  ;;  %v12002_v10 = vld [vmem:[%s16935_s2 + $0x16f8] ss:$28 sps:$4 sm:$0xff]  }
 0x193   : > { %6854 = vmatpush1.bf16.msra.mxu1 %v11951_v18  ;;  %v12008_v18 = vld [vmem:[%s16935_s2 + $0x1730] ss:$28 sps:$4 sm:$0xff]  }
 0x194   : > { %6528 = vmatmul.mubr.bf16.vlgmr.msra.gmra.mrb[0].mxu0 %v14391_v20  ;;  %6864 = vmatprep.subr.bf16.mxu1 %v11959_v21  ;;  %v12016_v21 = vld [vmem:[%s16935_s2 + $0x176c] ss:$28 sps:$4 sm:$0xff]  }
 0x195   : > { %6537 = vmatpush1.bf16.msra.mxu0 %v11948_v14  ;;  %6568 = vmatprep.mubr.bf16.mxu0 %v14399_v23  ;;  %v12011_v14 = vld [vmem:[%s16935_s2 + $0x1700] ss:$28 sps:$4 sm:$0xff]  }
 0x196   : > { %6538 = vmatprep.subr.bf16.mxu0 %v11956_v22  ;;  %6856 = vmatmul.mubr.bf16.vlgmr.msra.gmra.mrb[0].mxu1 %v14391_v20  ;;  %v12019_v22 = vld [vmem:[%s16935_s2 + $0x173c] ss:$28 sps:$4 sm:$0xff]  }
 0x197   : > { %6865 = vmatpush1.bf16.msra.mxu1 %v11957_v25  ;;  %6896 = vmatprep.mubr.bf16.mxu1 %v14399_v23  ;;  %v12014_v25 = vld [vmem:[%s16935_s2 + $0x1768] ss:$28 sps:$4 sm:$0xff]  }
 0x198   : > { %6866 = vmatprep.subr.bf16.mxu1 %v11965_v28  ;;  %v12025_v28 = vld [vmem:[%s16935_s2 + $0x1774] ss:$28 sps:$4 sm:$0xff]  }
 0x199   : > { %6539 = vmatpush1.bf16.msra.mxu0 %v11954_v24  ;;  %v12017_v24 = vld [vmem:[%s16935_s2 + $0x1738] ss:$28 sps:$4 sm:$0xff]  }
 0x19a   : > { %6540 = vmatprep.subr.bf16.mxu0 %v11962_v26  ;;  %v12022_v26 = vld [vmem:[%s16935_s2 + $0x17a4] ss:$28 sps:$4 sm:$0xff]  }
 0x19b   : > { %6867 = vmatpush1.bf16.msra.mxu1 %v11963_v29  ;;  %v12023_v29 = vld [vmem:[%s16935_s2 + $0x1770] ss:$28 sps:$4 sm:$0xff]  }
 0x19c   : > { %6868 = vmatprep.subr.bf16.mxu1 %v11971_v32  ;;  %v12031_v32 = vld [vmem:[%s16935_s2 + $0x17ac] ss:$28 sps:$4 sm:$0xff]  }
 0x19d   : > { %6541 = vmatpush1.bf16.msra.mxu0 %v11960_v48  ;;  %v12020_v48 = vld [vmem:[%s16935_s2 + $0x17a0] ss:$28 sps:$4 sm:$0xff]  }
 0x19e   : > { %6542 = vmatprep.subr.bf16.mxu0 %v11968_v31  ;;  %v12028_v31 = vld [vmem:[%s16935_s2 + $0x17dc] ss:$28 sps:$4 sm:$0xff]  }
 0x19f   : > { %6869 = vmatpush1.bf16.msra.mxu1 %v11969_v35  ;;  %v12029_v35 = vld [vmem:[%s16935_s2 + $0x17a8] ss:$28 sps:$4 sm:$0xff]  }
 0x1a0   : > { %6870 = vmatprep.subr.bf16.mxu1 %v11977_v40  ;;  %v12037_v40 = vld [vmem:[%s16935_s2 + $0x17e4] ss:$28 sps:$4 sm:$0xff]  }
 0x1a1   : > { %6543 = vmatpush1.bf16.msra.mxu0 %v11966_v36  ;;  %v12026_v36 = vld [vmem:[%s16935_s2 + $0x17d8] ss:$28 sps:$4 sm:$0xff]  }
 0x1a2   : > { %6544 = vmatprep.subr.bf16.mxu0 %v11974_v38  ;;  %v12034_v38 = vld [vmem:[%s16935_s2 + $0x1814] ss:$28 sps:$4 sm:$0xff]  }
 0x1a3   : > { %6871 = vmatpush1.bf16.msra.mxu1 %v11975_v42  ;;  %v12035_v42 = vld [vmem:[%s16935_s2 + $0x17e0] ss:$28 sps:$4 sm:$0xff]  }
 0x1a4   : > { %6872 = vmatprep.subr.bf16.mxu1 %v11983_v47  ;;  %v12043_v47 = vld [vmem:[%s16935_s2 + $0x181c] ss:$28 sps:$4 sm:$0xff]  }
 0x1a5   : > { %6545 = vmatpush1.bf16.msra.mxu0 %v11972_v43  ;;  %v12032_v43 = vld [vmem:[%s16935_s2 + $0x1810] ss:$28 sps:$4 sm:$0xff]  }
 0x1a6   : > { %6546 = vmatprep.subr.bf16.mxu0 %v11980_v46  ;;  %v12040_v46 = vld [vmem:[%s16935_s2 + $0x184c] ss:$28 sps:$4 sm:$0xff]  }
 0x1a7   : > { %6873 = vmatpush1.bf16.msra.mxu1 %v11981_v3  ;;  %v12041_v3 = vld [vmem:[%s16935_s2 + $0x1818] ss:$28 sps:$4 sm:$0xff]  }
 0x1a8   : > { %6874 = vmatprep.subr.bf16.mxu1 %v11989_v55  ;;  %v12046_v55 = vld [vmem:[%s16935_s2 + $0x1884] ss:$28 sps:$4 sm:$0xff]  }
 0x1a9   : > { %6547 = vmatpush1.bf16.msra.mxu0 %v11978_v51  ;;  %v12038_v51 = vld [vmem:[%s16935_s2 + $0x1848] ss:$28 sps:$4 sm:$0xff]  }
 0x1aa   : > { %6548 = vmatprep.subr.bf16.mxu0 %v11986_v52  ;;  %v576_v52 = vrot.slane %v14373_v8, %v13735_v33 }
 0x1ab   : > { %6875 = vmatpush1.bf16.msra.mxu1 %v11987_v56  ;;  %v12049_v56 = vld [vmem:[%s16935_s2 + $0x1854] ss:$28 sps:$4 sm:$0xff]  }
 0x1ac   : > { %6876 = vmatprep.subr.bf16.mxu1 %v11995_v59  ;;  %v12044_v59 = vld [vmem:[%s16935_s2 + $0x1880] ss:$28 sps:$4 sm:$0xff]  }
 0x1ad   : > { %6549 = vmatpush1.bf16.msra.mxu0 %v11984_v57  ;;  %v12047_v57 = vld [vmem:[%s16935_s2 + $0x1850] ss:$28 sps:$4 sm:$0xff]  }
 0x1ae   : > { %6550 = vmatprep.subr.bf16.mxu0 %v11992_v58  ;;  %v588_v58 = vrot.slane %v14373_v8, %v555_v37  ;;  %v12053_v37 = vld [vmem:[%s16935_s2 + $0x1888] ss:$28 sps:$4 sm:$0xff]  }
 0x1af   : > { %6877 = vmatpush1.bf16.msra.mxu1 %v11993_v60  ;;  %v14596_v60 = vpack.c.bf16 %v576_v52, %v576_v52  ;;  %v12101_v52 = vld [vmem:[%s16935_s2 + $0x1a48] ss:$28 sps:$4 sm:$0xff]  }
 0x1b0   : > { %6878 = vmatprep.subr.bf16.mxu1 %v12001_v0  ;;  %v14607_v8 = vpack.c.bf16 %v588_v58, %v588_v58  ;;  %v12050_v0 = vld [vmem:[%s16935_s2 + $0x18b8] ss:$28 sps:$4 sm:$0xff]   ;;  %v12107_v58 = vld [vmem:[%s16935_s2 + $0x1a80] ss:$28 sps:$4 sm:$0xff]  }
 0x1b1   : > { %6551 = vmatpush1.bf16.msra.mxu0 %v11990_v61  ;;  %v12052_v61 = vld [vmem:[%s16935_s2 + $0x18bc] ss:$28 sps:$4 sm:$0xff]  }
 0x1b2   : > { %6552 = vmatprep.subr.bf16.mxu0 %v11998_v63  ;;  %v12055_v63 = vld [vmem:[%s16935_s2 + $0x188c] ss:$28 sps:$4 sm:$0xff]  }
 0x1b3   : > { %6879 = vmatpush1.bf16.msra.mxu1 %v11999_v2  ;;  %v12058_v2 = vld [vmem:[%s16935_s2 + $0x18f4] ss:$28 sps:$4 sm:$0xff]  }
 0x1b4   : > { %6880 = vmatprep.subr.bf16.mxu1 %v12007_v7  ;;  %v12056_v7 = vld [vmem:[%s16935_s2 + $0x18f0] ss:$28 sps:$4 sm:$0xff]  }
 0x1b5   : > { %6553 = vmatpush1.bf16.msra.mxu0 %v11996_v5  ;;  %v12061_v5 = vld [vmem:[%s16935_s2 + $0x18c4] ss:$28 sps:$4 sm:$0xff]  }
 0x1b6   : > { %6554 = vmatprep.subr.bf16.mxu0 %v12004_v6  ;;  %v12059_v6 = vld [vmem:[%s16935_s2 + $0x18c0] ss:$28 sps:$4 sm:$0xff]  }
 0x1b7   : > { %6881 = vmatpush1.bf16.msra.mxu1 %v12005_v9  ;;  %v12064_v9 = vld [vmem:[%s16935_s2 + $0x192c] ss:$28 sps:$4 sm:$0xff]  }
 0x1b8   : > { %6882 = vmatprep.subr.bf16.mxu1 %v12013_v13  ;;  %v12062_v13 = vld [vmem:[%s16935_s2 + $0x1928] ss:$28 sps:$4 sm:$0xff]  }
 0x1b9   : > { %6555 = vmatpush1.bf16.msra.mxu0 %v12002_v10  ;;  %v12067_v10 = vld [vmem:[%s16935_s2 + $0x18fc] ss:$28 sps:$4 sm:$0xff]  }
 0x1ba   : > { %6556 = vmatprep.subr.bf16.mxu0 %v12010_v11  ;;  %v12065_v11 = vld [vmem:[%s16935_s2 + $0x18f8] ss:$28 sps:$4 sm:$0xff]  }
 0x1bb   : > { %6883 = vmatpush1.bf16.msra.mxu1 %v12011_v14  ;;  %v12070_v14 = vld [vmem:[%s16935_s2 + $0x1964] ss:$28 sps:$4 sm:$0xff]  }
 0x1bc   : > { %6884 = vmatprep.subr.bf16.mxu1 %v12019_v22  ;;  %v12068_v22 = vld [vmem:[%s16935_s2 + $0x1960] ss:$28 sps:$4 sm:$0xff]  }
 0x1bd   : > { %6557 = vmatpush1.bf16.msra.mxu0 %v12008_v18  ;;  %v12073_v18 = vld [vmem:[%s16935_s2 + $0x1934] ss:$28 sps:$4 sm:$0xff]  }
 0x1be   : > { %6558 = vmatprep.subr.bf16.mxu0 %v12016_v21  ;;  %v12071_v21 = vld [vmem:[%s16935_s2 + $0x1930] ss:$28 sps:$4 sm:$0xff]  }
 0x1bf   : > { %6885 = vmatpush1.bf16.msra.mxu1 %v12017_v24  ;;  %v12076_v24 = vld [vmem:[%s16935_s2 + $0x199c] ss:$28 sps:$4 sm:$0xff]  }
 0x1c0   : > { %6886 = vmatprep.subr.bf16.mxu1 %v12025_v28  ;;  %v12074_v28 = vld [vmem:[%s16935_s2 + $0x1998] ss:$28 sps:$4 sm:$0xff]  }
 0x1c1   : > { %6559 = vmatpush1.bf16.msra.mxu0 %v12014_v25  ;;  %v12079_v25 = vld [vmem:[%s16935_s2 + $0x196c] ss:$28 sps:$4 sm:$0xff]  }
 0x1c2   : > { %6560 = vmatprep.subr.bf16.mxu0 %v12022_v26  ;;  %v12077_v26 = vld [vmem:[%s16935_s2 + $0x1968] ss:$28 sps:$4 sm:$0xff]  }
 0x1c3   : > { %6887 = vmatpush1.bf16.msra.mxu1 %v12023_v29  ;;  %v12082_v29 = vld [vmem:[%s16935_s2 + $0x19d4] ss:$28 sps:$4 sm:$0xff]  }
 0x1c4   : > { %6888 = vmatprep.subr.bf16.mxu1 %v12031_v32  ;;  %v12080_v32 = vld [vmem:[%s16935_s2 + $0x19d0] ss:$28 sps:$4 sm:$0xff]  }
 0x1c5   : > { %6561 = vmatpush1.bf16.msra.mxu0 %v12020_v48  ;;  %v12085_v48 = vld [vmem:[%s16935_s2 + $0x19a4] ss:$28 sps:$4 sm:$0xff]  }
 0x1c6   : > { %6562 = vmatprep.subr.bf16.mxu0 %v12028_v31  ;;  %v12083_v31 = vld [vmem:[%s16935_s2 + $0x19a0] ss:$28 sps:$4 sm:$0xff]  }
 0x1c7   : > { %6889 = vmatpush1.bf16.msra.mxu1 %v12029_v35  ;;  %v12088_v35 = vld [vmem:[%s16935_s2 + $0x1a0c] ss:$28 sps:$4 sm:$0xff]  }
 0x1c8   : > { %6890 = vmatprep.subr.bf16.mxu1 %v12037_v40  ;;  %v12086_v40 = vld [vmem:[%s16935_s2 + $0x1a08] ss:$28 sps:$4 sm:$0xff]  }
 0x1c9   : > { %6563 = vmatpush1.bf16.msra.mxu0 %v12026_v36  ;;  %v12091_v36 = vld [vmem:[%s16935_s2 + $0x19dc] ss:$28 sps:$4 sm:$0xff]  }
 0x1ca   : > { %6564 = vmatprep.subr.bf16.mxu0 %v12034_v38  ;;  %v12089_v38 = vld [vmem:[%s16935_s2 + $0x19d8] ss:$28 sps:$4 sm:$0xff]  }
 0x1cb   : > { %6891 = vmatpush1.bf16.msra.mxu1 %v12035_v42  ;;  %v12094_v42 = vld [vmem:[%s16935_s2 + $0x1a44] ss:$28 sps:$4 sm:$0xff]  }
 0x1cc   : > { %6892 = vmatprep.subr.bf16.mxu1 %v12043_v47  ;;  %v12092_v47 = vld [vmem:[%s16935_s2 + $0x1a40] ss:$28 sps:$4 sm:$0xff]  }
 0x1cd   : > { %6565 = vmatpush1.bf16.msra.mxu0 %v12032_v43  ;;  %v12097_v43 = vld [vmem:[%s16935_s2 + $0x1a14] ss:$28 sps:$4 sm:$0xff]  }
 0x1ce   : > { %6566 = vmatprep.subr.bf16.mxu0 %v12040_v46  ;;  %v12095_v46 = vld [vmem:[%s16935_s2 + $0x1a10] ss:$28 sps:$4 sm:$0xff]  }
 0x1cf   : > { %6893 = vmatpush1.bf16.msra.mxu1 %v12041_v3  ;;  %v12100_v3 = vld [vmem:[%s16935_s2 + $0x1a7c] ss:$28 sps:$4 sm:$0xff]  }
 0x1d0   : > { %6894 = vmatprep.subr.bf16.mxu1 %v12049_v56  ;;  %v12106_v56 = vld [vmem:[%s16935_s2 + $0x1ab4] ss:$28 sps:$4 sm:$0xff]  }
 0x1d1   : > { %6567 = vmatpush1.bf16.msra.mxu0 %v12038_v51  ;;  %v12103_v51 = vld [vmem:[%s16935_s2 + $0x1a4c] ss:$28 sps:$4 sm:$0xff]  }
 0x1d2   : > { %6577 = vmatprep.subr.bf16.mxu0 %v12046_v55  ;;  %v12098_v55 = vld [vmem:[%s16935_s2 + $0x1a78] ss:$28 sps:$4 sm:$0xff]  }
 0x1d3   : > { %6895 = vmatpush1.bf16.msra.mxu1 %v12047_v57  ;;  %v12109_v57 = vld [vmem:[%s16935_s2 + $0x1a84] ss:$28 sps:$4 sm:$0xff]  }
 0x1d4   : > { %6569 = vmatmul.mubr.bf16.vlgmr.msra.gmra.mrb[0].mxu0 %v14596_v60  ;;  %6905 = vmatprep.subr.bf16.mxu1 %v12055_v63  ;;  %v12115_v63 = vld [vmem:[%s16935_s2 + $0x1abc] ss:$28 sps:$4 sm:$0xff]  }
 0x1d5   : > { %6578 = vmatpush1.bf16.msra.mxu0 %v12044_v59  ;;  %6609 = vmatprep.mubr.bf16.mxu0 %v14607_v8  ;;  %v12104_v59 = vld [vmem:[%s16935_s2 + $0x1ab0] ss:$28 sps:$4 sm:$0xff]  }
 0x1d6   : > { %6579 = vmatprep.subr.bf16.mxu0 %v12052_v61  ;;  %6897 = vmatmul.mubr.bf16.vlgmr.msra.gmra.mrb[0].mxu1 %v14596_v60  ;;  %v12112_v61 = vld [vmem:[%s16935_s2 + $0x1aec] ss:$28 sps:$4 sm:$0xff]  }
 0x1d7   : > { %6906 = vmatpush1.bf16.msra.mxu1 %v12053_v37  ;;  %6937 = vmatprep.mubr.bf16.mxu1 %v14607_v8  ;;  %v12113_v37 = vld [vmem:[%s16935_s2 + $0x1ab8] ss:$28 sps:$4 sm:$0xff]  }
 0x1d8   : > { %6907 = vmatprep.subr.bf16.mxu1 %v12061_v5  ;;  %v12121_v5 = vld [vmem:[%s16935_s2 + $0x1af4] ss:$28 sps:$4 sm:$0xff]  }
 0x1d9   : > { %6580 = vmatpush1.bf16.msra.mxu0 %v12050_v0  ;;  %v12110_v0 = vld [vmem:[%s16935_s2 + $0x1ae8] ss:$28 sps:$4 sm:$0xff]  }
 0x1da   : > { %6581 = vmatprep.subr.bf16.mxu0 %v12058_v2  ;;  %v12118_v2 = vld [vmem:[%s16935_s2 + $0x1b24] ss:$28 sps:$4 sm:$0xff]  }
 0x1db   : > { %6908 = vmatpush1.bf16.msra.mxu1 %v12059_v6  ;;  %v12119_v6 = vld [vmem:[%s16935_s2 + $0x1af0] ss:$28 sps:$4 sm:$0xff]  }
 0x1dc   : > { %6909 = vmatprep.subr.bf16.mxu1 %v12067_v10  ;;  %v12127_v10 = vld [vmem:[%s16935_s2 + $0x1b2c] ss:$28 sps:$4 sm:$0xff]  }
 0x1dd   : > { %6582 = vmatpush1.bf16.msra.mxu0 %v12056_v7  ;;  %v12116_v7 = vld [vmem:[%s16935_s2 + $0x1b20] ss:$28 sps:$4 sm:$0xff]  }
 0x1de   : > { %6583 = vmatprep.subr.bf16.mxu0 %v12064_v9  ;;  %v12124_v9 = vld [vmem:[%s16935_s2 + $0x1b5c] ss:$28 sps:$4 sm:$0xff]  }
 0x1df   : > { %6910 = vmatpush1.bf16.msra.mxu1 %v12065_v11  ;;  %v12125_v11 = vld [vmem:[%s16935_s2 + $0x1b28] ss:$28 sps:$4 sm:$0xff]  }
 0x1e0   : > { %6911 = vmatprep.subr.bf16.mxu1 %v12073_v18  ;;  %v12133_v18 = vld [vmem:[%s16935_s2 + $0x1b64] ss:$28 sps:$4 sm:$0xff]  }
 0x1e1   : > { %6584 = vmatpush1.bf16.msra.mxu0 %v12062_v13  ;;  %v12122_v13 = vld [vmem:[%s16935_s2 + $0x1b58] ss:$28 sps:$4 sm:$0xff]  }
 0x1e2   : > { %6585 = vmatprep.subr.bf16.mxu0 %v12070_v14  ;;  %v12130_v14 = vld [vmem:[%s16935_s2 + $0x1b94] ss:$28 sps:$4 sm:$0xff]  }
 0x1e3   : > { %6912 = vmatpush1.bf16.msra.mxu1 %v12071_v21  ;;  %v12131_v21 = vld [vmem:[%s16935_s2 + $0x1b60] ss:$28 sps:$4 sm:$0xff]  }
 0x1e4   : > { %6913 = vmatprep.subr.bf16.mxu1 %v12079_v25  ;;  %v12139_v25 = vld [vmem:[%s16935_s2 + $0x1b9c] ss:$28 sps:$4 sm:$0xff]  }
 0x1e5   : > { %6586 = vmatpush1.bf16.msra.mxu0 %v12068_v22  ;;  %v12128_v22 = vld [vmem:[%s16935_s2 + $0x1b90] ss:$28 sps:$4 sm:$0xff]  }
 0x1e6   : > { %6587 = vmatprep.subr.bf16.mxu0 %v12076_v24  ;;  %v12136_v24 = vld [vmem:[%s16935_s2 + $0x1bcc] ss:$28 sps:$4 sm:$0xff]  }
 0x1e7   : > { %6914 = vmatpush1.bf16.msra.mxu1 %v12077_v26  ;;  %v12137_v26 = vld [vmem:[%s16935_s2 + $0x1b98] ss:$28 sps:$4 sm:$0xff]  }
 0x1e8   : > { %6915 = vmatprep.subr.bf16.mxu1 %v12085_v48 }
 0x1e9   : > { %6588 = vmatpush1.bf16.msra.mxu0 %v12074_v28  ;;  %v12134_v28 = vld [vmem:[%s16935_s2 + $0x1bc8] ss:$28 sps:$4 sm:$0xff]  }
 0x1ea   : > { %6589 = vmatprep.subr.bf16.mxu0 %v12082_v29  ;;  %v12905_v29 = vld [vmem:[%s13249_s28 + $0x8] sm:$0xff]  ;;  %s9636_s28 = scalar_lea.sflag [#allocation4], %s506_s0 }
 0x1eb   : > { %6916 = vmatpush1.bf16.msra.mxu1 %v12083_v31  ;;  %v584_v48 = vrot.slane %v12905_v29, %v13947_v62  ;;  %v12142_v31 = vld [vmem:[%s16935_s2 + $0x14] ss:$28 sps:$4 sm:$0xff]   ;;  %v12199_v29 = vld [vmem:[%s16935_s2 + $0x404] ss:$28 sps:$4 sm:$0xff]  }
 0x1ec   : > { %6917 = vmatprep.subr.bf16.mxu1 %v12091_v36 }
 0x1ed   : > { %6590 = vmatpush1.bf16.msra.mxu0 %v12080_v32  ;;  %v12145_v32 = vld [vmem:[%s16935_s2 + $0x1bd4] ss:$28 sps:$4 sm:$0xff]   ;;  %v14795_v36 = vpack.c.bf16 %v584_v48, %v584_v48  ;;  %v12197_v48 = vld [vmem:[%s16935_s2 + $0x400] ss:$28 sps:$4 sm:$0xff]  }
 0x1ee   : > { %6591 = vmatprep.subr.bf16.mxu0 %v12088_v35  ;;  %v12143_v35 = vld [vmem:[%s16935_s2 + $0x1bd0] ss:$28 sps:$4 sm:$0xff]  }
 0x1ef   : > { %6918 = vmatpush1.bf16.msra.mxu1 %v12089_v38  ;;  %v12140_v38 = vld [vmem:[%s16935_s2 + $0x10] ss:$28 sps:$4 sm:$0xff]  }
 0x1f0   : > { %6919 = vmatprep.subr.bf16.mxu1 %v12097_v43  ;;  %v12151_v43 = vld [vmem:[%s16935_s2 + $0x84] ss:$28 sps:$4 sm:$0xff]  }
 0x1f1   : > { %6592 = vmatpush1.bf16.msra.mxu0 %v12086_v40  ;;  %v12148_v40 = vld [vmem:[%s16935_s2 + $0x4c] ss:$28 sps:$4 sm:$0xff]  }
 0x1f2   : > { %6593 = vmatprep.subr.bf16.mxu0 %v12094_v42  ;;  %v12146_v42 = vld [vmem:[%s16935_s2 + $0x48] ss:$28 sps:$4 sm:$0xff]  }
 0x1f3   : > { %6920 = vmatpush1.bf16.msra.mxu1 %v12095_v46  ;;  %v12149_v46 = vld [vmem:[%s16935_s2 + $0x80] ss:$28 sps:$4 sm:$0xff]  }
 0x1f4   : > { %6921 = vmatprep.subr.bf16.mxu1 %v12103_v51  ;;  %v12157_v51 = vld [vmem:[%s16935_s2 + $0xf4] ss:$28 sps:$4 sm:$0xff]  }
 0x1f5   : > { %6594 = vmatpush1.bf16.msra.mxu0 %v12092_v47  ;;  %v12154_v47 = vld [vmem:[%s16935_s2 + $0xbc] ss:$28 sps:$4 sm:$0xff]  }
 0x1f6   : > { %6595 = vmatprep.subr.bf16.mxu0 %v12100_v3  ;;  %v12152_v3 = vld [vmem:[%s16935_s2 + $0xb8] ss:$28 sps:$4 sm:$0xff]  }
 0x1f7   : > { %6922 = vmatpush1.bf16.msra.mxu1 %v12101_v52  ;;  %v12160_v52 = vld [vmem:[%s16935_s2 + $0x12c] ss:$28 sps:$4 sm:$0xff]  }
 0x1f8   : > { %6923 = vmatprep.subr.bf16.mxu1 %v12109_v57  ;;  %v12161_v57 = vld [vmem:[%s16935_s2 + $0x160] ss:$28 sps:$4 sm:$0xff]  }
 0x1f9   : > { %6596 = vmatpush1.bf16.msra.mxu0 %v12098_v55  ;;  %v12158_v55 = vld [vmem:[%s16935_s2 + $0x128] ss:$28 sps:$4 sm:$0xff]  }
 0x1fa   : > { %6597 = vmatprep.subr.bf16.mxu0 %v12106_v56  ;;  %v12163_v56 = vld [vmem:[%s16935_s2 + $0x164] ss:$28 sps:$4 sm:$0xff]  }
 0x1fb   : > { %6924 = vmatpush1.bf16.msra.mxu1 %v12107_v58  ;;  %v12166_v58 = vld [vmem:[%s16935_s2 + $0x19c] ss:$28 sps:$4 sm:$0xff]  }
 0x1fc   : > { %6925 = vmatprep.subr.bf16.mxu1 %v12115_v63  ;;  %v12167_v63 = vld [vmem:[%s16935_s2 + $0x1d0] ss:$28 sps:$4 sm:$0xff]  }
 0x1fd   : > { %6598 = vmatpush1.bf16.msra.mxu0 %v12104_v59  ;;  %v12164_v59 = vld [vmem:[%s16935_s2 + $0x198] ss:$28 sps:$4 sm:$0xff]  }
 0x1fe   : > { %6599 = vmatprep.subr.bf16.mxu0 %v12112_v61  ;;  %v12169_v61 = vld [vmem:[%s16935_s2 + $0x1d4] ss:$28 sps:$4 sm:$0xff]  }
 0x1ff   : > { %6926 = vmatpush1.bf16.msra.mxu1 %v12113_v37  ;;  %v12172_v37 = vld [vmem:[%s16935_s2 + $0x20c] ss:$28 sps:$4 sm:$0xff]  }
 0x200   : > { %6927 = vmatprep.subr.bf16.mxu1 %v12121_v5  ;;  %v12173_v5 = vld [vmem:[%s16935_s2 + $0x240] ss:$28 sps:$4 sm:$0xff]  }
 0x201   : > { %6600 = vmatpush1.bf16.msra.mxu0 %v12110_v0  ;;  %v12170_v0 = vld [vmem:[%s16935_s2 + $0x208] ss:$28 sps:$4 sm:$0xff]  }
 0x202   : > { %6601 = vmatprep.subr.bf16.mxu0 %v12118_v2  ;;  %v12175_v2 = vld [vmem:[%s16935_s2 + $0x244] ss:$28 sps:$4 sm:$0xff]  }
 0x203   : > { %6928 = vmatpush1.bf16.msra.mxu1 %v12119_v6  ;;  %v12178_v6 = vld [vmem:[%s16935_s2 + $0x27c] ss:$28 sps:$4 sm:$0xff]  }
 0x204   : > { %6929 = vmatprep.subr.bf16.mxu1 %v12127_v10  ;;  %v12179_v10 = vld [vmem:[%s16935_s2 + $0x2b0] ss:$28 sps:$4 sm:$0xff]  }
 0x205   : > { %6602 = vmatpush1.bf16.msra.mxu0 %v12116_v7  ;;  %v12176_v7 = vld [vmem:[%s16935_s2 + $0x278] ss:$28 sps:$4 sm:$0xff]  }
 0x206   : > { %6603 = vmatprep.subr.bf16.mxu0 %v12124_v9  ;;  %v12181_v9 = vld [vmem:[%s16935_s2 + $0x2b4] ss:$28 sps:$4 sm:$0xff]  }
 0x207   : > { %6930 = vmatpush1.bf16.msra.mxu1 %v12125_v11  ;;  %v12184_v11 = vld [vmem:[%s16935_s2 + $0x2ec] ss:$28 sps:$4 sm:$0xff]  }
 0x208   : > { %6931 = vmatprep.subr.bf16.mxu1 %v12133_v18  ;;  %v12185_v18 = vld [vmem:[%s16935_s2 + $0x320] ss:$28 sps:$4 sm:$0xff]  }
 0x209   : > { %6604 = vmatpush1.bf16.msra.mxu0 %v12122_v13  ;;  %v12182_v13 = vld [vmem:[%s16935_s2 + $0x2e8] ss:$28 sps:$4 sm:$0xff]  }
 0x20a   : > { %6605 = vmatprep.subr.bf16.mxu0 %v12130_v14  ;;  %v12187_v14 = vld [vmem:[%s16935_s2 + $0x324] ss:$28 sps:$4 sm:$0xff]  }
 0x20b   : > { %6932 = vmatpush1.bf16.msra.mxu1 %v12131_v21  ;;  %v12190_v21 = vld [vmem:[%s16935_s2 + $0x35c] ss:$28 sps:$4 sm:$0xff]  }
 0x20c   : > { %6933 = vmatprep.subr.bf16.mxu1 %v12139_v25  ;;  %v12191_v25 = vld [vmem:[%s16935_s2 + $0x390] ss:$28 sps:$4 sm:$0xff]  }
 0x20d   : > { %6606 = vmatpush1.bf16.msra.mxu0 %v12128_v22  ;;  %v12188_v22 = vld [vmem:[%s16935_s2 + $0x358] ss:$28 sps:$4 sm:$0xff]  }
 0x20e   : > { %6607 = vmatprep.subr.bf16.mxu0 %v12136_v24  ;;  %v12193_v24 = vld [vmem:[%s16935_s2 + $0x394] ss:$28 sps:$4 sm:$0xff]  }
 0x20f   : > { %6934 = vmatpush1.bf16.msra.mxu1 %v12137_v26  ;;  %v12196_v26 = vld [vmem:[%s16935_s2 + $0x3cc] ss:$28 sps:$4 sm:$0xff]  }
 0x210   : > { %6935 = vmatprep.subr.bf16.mxu1 %v12145_v32  ;;  %v12200_v32 = vld [vmem:[%s16935_s2 + $0x438] ss:$28 sps:$4 sm:$0xff]  }
 0x211   : > { %6608 = vmatpush1.bf16.msra.mxu0 %v12134_v28  ;;  %v12194_v28 = vld [vmem:[%s16935_s2 + $0x3c8] ss:$28 sps:$4 sm:$0xff]  }
 0x212   : > { %6946 = vmatprep.subr.bf16.mxu0 %v12142_v31  ;;  %v12202_v31 = vld [vmem:[%s16935_s2 + $0x43c] ss:$28 sps:$4 sm:$0xff]  }
 0x213   : > { %6936 = vmatpush1.bf16.msra.mxu1 %v12143_v35  ;;  %v12205_v35 = vld [vmem:[%s16935_s2 + $0x474] ss:$28 sps:$4 sm:$0xff]  }
 0x214   : > { %6610 = vmatmul.mubr.bf16.vlgmr.msra.gmra.mrb[0].mxu0 %v14795_v36 }
 0x215   : > { %6947 = vmatpush1.bf16.msra.mxu0 %v12140_v38  ;;  %6978 = vmatprep.mubr.bf16.mxu0 %v13280_v54  ;;  %v12203_v38 = vld [vmem:[%s16935_s2 + $0x470] ss:$28 sps:$4 sm:$0xff]  }
 0x216   : > { %6948 = vmatprep.subr.bf16.mxu0 %v12148_v40  ;;  %6938 = vmatmul.mubr.bf16.vlgmr.msra.gmra.mrb[0].mxu1 %v14795_v36  ;;  %v12208_v40 = vld [vmem:[%s16935_s2 + $0x4ac] ss:$28 sps:$4 sm:$0xff]  }
 0x217   : > { %7306 = vmatprep.mubr.bf16.mxu1 %v13280_v54  ;;  %v12155_v54 = vld [vmem:[%s16935_s2 + $0xf0] ss:$28 sps:$4 sm:$0xff]  }
 0x219   : > { %6949 = vmatpush1.bf16.msra.mxu0 %v12146_v42  ;;  %v12206_v42 = vld [vmem:[%s16935_s2 + $0x4a8] ss:$28 sps:$4 sm:$0xff]  }
 0x21a   : > { %6950 = vmatprep.subr.bf16.mxu0 %v12151_v43  ;;  %v12211_v43 = vld [vmem:[%s16935_s2 + $0x4e4] ss:$28 sps:$4 sm:$0xff]  }
 0x21d   : > { %6951 = vmatpush1.bf16.msra.mxu0 %v12149_v46  ;;  %v12209_v46 = vld [vmem:[%s16935_s2 + $0x4e0] ss:$28 sps:$4 sm:$0xff]  }
 0x21e   : > { %6952 = vmatprep.subr.bf16.mxu0 %v12154_v47  ;;  %v12214_v47 = vld [vmem:[%s16935_s2 + $0x51c] ss:$28 sps:$4 sm:$0xff]  }
 0x221   : > { %6953 = vmatpush1.bf16.msra.mxu0 %v12152_v3  ;;  %v12212_v3 = vld [vmem:[%s16935_s2 + $0x518] ss:$28 sps:$4 sm:$0xff]  }
 0x222   : > { %6954 = vmatprep.subr.bf16.mxu0 %v12157_v51  ;;  %v12217_v51 = vld [vmem:[%s16935_s2 + $0x554] ss:$28 sps:$4 sm:$0xff]  }
 0x225   : > { %6955 = vmatpush1.bf16.msra.mxu0 %v12155_v54  ;;  %v12215_v54 = vld [vmem:[%s16935_s2 + $0x550] ss:$28 sps:$4 sm:$0xff]  }
 0x226   : > { %6956 = vmatprep.subr.bf16.mxu0 %v12160_v52  ;;  %v12220_v52 = vld [vmem:[%s16935_s2 + $0x58c] ss:$28 sps:$4 sm:$0xff]  }
 0x229   : > { %6957 = vmatpush1.bf16.msra.mxu0 %v12158_v55  ;;  %v12218_v55 = vld [vmem:[%s16935_s2 + $0x588] ss:$28 sps:$4 sm:$0xff]  }
 0x22a   : > { %6958 = vmatprep.subr.bf16.mxu0 %v12163_v56  ;;  %v12223_v56 = vld [vmem:[%s16935_s2 + $0x5c4] ss:$28 sps:$4 sm:$0xff]  }
 0x22d   : > { %6959 = vmatpush1.bf16.msra.mxu0 %v12161_v57  ;;  %v12221_v57 = vld [vmem:[%s16935_s2 + $0x5c0] ss:$28 sps:$4 sm:$0xff]  }
 0x22e   : > { %6960 = vmatprep.subr.bf16.mxu0 %v12166_v58  ;;  %v12226_v58 = vld [vmem:[%s16935_s2 + $0x5fc] ss:$28 sps:$4 sm:$0xff]  }
 0x231   : > { %6961 = vmatpush1.bf16.msra.mxu0 %v12164_v59  ;;  %v12224_v59 = vld [vmem:[%s16935_s2 + $0x5f8] ss:$28 sps:$4 sm:$0xff]  }
 0x232   : > { %6962 = vmatprep.subr.bf16.mxu0 %v12169_v61  ;;  %v12229_v61 = vld [vmem:[%s16935_s2 + $0x634] ss:$28 sps:$4 sm:$0xff]  }
 0x235   : > { %6963 = vmatpush1.bf16.msra.mxu0 %v12167_v63  ;;  %v12227_v63 = vld [vmem:[%s16935_s2 + $0x630] ss:$28 sps:$4 sm:$0xff]  }
 0x236   : > { %6964 = vmatprep.subr.bf16.mxu0 %v12172_v37  ;;  %v12232_v37 = vld [vmem:[%s16935_s2 + $0x66c] ss:$28 sps:$4 sm:$0xff]  }
 0x239   : > { %6965 = vmatpush1.bf16.msra.mxu0 %v12170_v0  ;;  %v12230_v0 = vld [vmem:[%s16935_s2 + $0x668] ss:$28 sps:$4 sm:$0xff]  }
 0x23a   : > { %6966 = vmatprep.subr.bf16.mxu0 %v12175_v2  ;;  %v12235_v2 = vld [vmem:[%s16935_s2 + $0x6a4] ss:$28 sps:$4 sm:$0xff]  }
 0x23d   : > { %6967 = vmatpush1.bf16.msra.mxu0 %v12173_v5  ;;  %v12233_v5 = vld [vmem:[%s16935_s2 + $0x6a0] ss:$28 sps:$4 sm:$0xff]  }
 0x23e   : > { %6968 = vmatprep.subr.bf16.mxu0 %v12178_v6  ;;  %v12238_v6 = vld [vmem:[%s16935_s2 + $0x6dc] ss:$28 sps:$4 sm:$0xff]  }
 0x241   : > { %6969 = vmatpush1.bf16.msra.mxu0 %v12176_v7  ;;  %v12236_v7 = vld [vmem:[%s16935_s2 + $0x6d8] ss:$28 sps:$4 sm:$0xff]  }
 0x242   : > { %6970 = vmatprep.subr.bf16.mxu0 %v12181_v9  ;;  %v12241_v9 = vld [vmem:[%s16935_s2 + $0x714] ss:$28 sps:$4 sm:$0xff]  }
 0x245   : > { %6971 = vmatpush1.bf16.msra.mxu0 %v12179_v10  ;;  %v12239_v10 = vld [vmem:[%s16935_s2 + $0x710] ss:$28 sps:$4 sm:$0xff]  }
 0x246   : > { %6972 = vmatprep.subr.bf16.mxu0 %v12184_v11  ;;  %v12244_v11 = vld [vmem:[%s16935_s2 + $0x74c] ss:$28 sps:$4 sm:$0xff]  }
 0x249   : > { %6973 = vmatpush1.bf16.msra.mxu0 %v12182_v13  ;;  %v12242_v13 = vld [vmem:[%s16935_s2 + $0x748] ss:$28 sps:$4 sm:$0xff]  }
 0x24a   : > { %6974 = vmatprep.subr.bf16.mxu0 %v12187_v14  ;;  %v12247_v14 = vld [vmem:[%s16935_s2 + $0x784] ss:$28 sps:$4 sm:$0xff]  }
 0x24d   : > { %6975 = vmatpush1.bf16.msra.mxu0 %v12185_v18  ;;  %v12245_v18 = vld [vmem:[%s16935_s2 + $0x780] ss:$28 sps:$4 sm:$0xff]  }
 0x24e   : > { %6976 = vmatprep.subr.bf16.mxu0 %v12190_v21  ;;  %v12250_v21 = vld [vmem:[%s16935_s2 + $0x7bc] ss:$28 sps:$4 sm:$0xff]  }
 0x251   : > { %6977 = vmatpush1.bf16.msra.mxu0 %v12188_v22  ;;  %v12248_v22 = vld [vmem:[%s16935_s2 + $0x7b8] ss:$28 sps:$4 sm:$0xff]  }
 0x252   : > { %6987 = vmatprep.subr.bf16.mxu0 %v12193_v24  ;;  %v12253_v24 = vld [vmem:[%s16935_s2 + $0x7f4] ss:$28 sps:$4 sm:$0xff]  }
 0x254   : > { %6979 = vmatmul.mubr.bf16.vlgmr.msra.gmra.mrb[4].mxu0 %v13345_v12 }
 0x255   : > { %6988 = vmatpush1.bf16.msra.mxu0 %v12191_v25  ;;  %7019 = vmatprep.mubr.bf16.mxu0 %v13356_v16  ;;  %v12251_v25 = vld [vmem:[%s16935_s2 + $0x7f0] ss:$28 sps:$4 sm:$0xff]  }
 0x256   : > { %6989 = vmatprep.subr.bf16.mxu0 %v12196_v26  ;;  %v12256_v26 = vld [vmem:[%s16935_s2 + $0x82c] ss:$28 sps:$4 sm:$0xff]  }
 0x259   : > { %6990 = vmatpush1.bf16.msra.mxu0 %v12194_v28  ;;  %v12254_v28 = vld [vmem:[%s16935_s2 + $0x828] ss:$28 sps:$4 sm:$0xff]  }
 0x25a   : > { %6991 = vmatprep.subr.bf16.mxu0 %v12199_v29  ;;  %v12259_v29 = vld [vmem:[%s16935_s2 + $0x864] ss:$28 sps:$4 sm:$0xff]  }
 0x25d   : > { %6992 = vmatpush1.bf16.msra.mxu0 %v12197_v48  ;;  %v12353_v48 = vld [vmem:[%s16935_s2 + $0x1d8] ss:$28 sps:$4 sm:$0xff]  }
 0x25e   : > { %6993 = vmatprep.subr.bf16.mxu0 %v12202_v31  ;;  %v12354_v31 = vld [vmem:[%s16935_s2 + $0x18] ss:$28 sps:$4 sm:$0xff]   ;;  %10822 = vmatprep.subr.bf16.mxu1 %v12353_v48  ;;  %v12287_v48 = vld [vmem:[%s16935_s2 + $0xa90] ss:$28 sps:$4 sm:$0xff]  }
 0x25f   : > { %10823 = vmatpush3.bf16.msra.mxu1 %v12354_v31  ;;  %v12292_v31 = vld [vmem:[%s16935_s2 + $0xacc] ss:$28 sps:$4 sm:$0xff]  }
 0x261   : > { %6994 = vmatpush1.bf16.msra.mxu0 %v12200_v32  ;;  %v12257_v32 = vld [vmem:[%s16935_s2 + $0x860] ss:$28 sps:$4 sm:$0xff]  }
 0x262   : > { %6995 = vmatprep.subr.bf16.mxu0 %v12205_v35  ;;  %v12262_v35 = vld [vmem:[%s16935_s2 + $0x89c] ss:$28 sps:$4 sm:$0xff]  }
 0x265   : > { %6996 = vmatpush1.bf16.msra.mxu0 %v12203_v38  ;;  %v12358_v38 = vld [vmem:[%s16935_s2 + $0x210] ss:$28 sps:$4 sm:$0xff]  }
 0x266   : > { %6997 = vmatprep.subr.bf16.mxu0 %v12208_v40  ;;  %v12359_v40 = vld [vmem:[%s16935_s2 + $0x50] ss:$28 sps:$4 sm:$0xff]   ;;  %10824 = vmatprep.subr.bf16.mxu1 %v12358_v38  ;;  %v12290_v38 = vld [vmem:[%s16935_s2 + $0xac8] ss:$28 sps:$4 sm:$0xff]  }
 0x267   : > { %10825 = vmatpush3.bf16.msra.mxu1 %v12359_v40  ;;  %v12295_v40 = vld [vmem:[%s16935_s2 + $0xb04] ss:$28 sps:$4 sm:$0xff]  }
 0x269   : > { %6998 = vmatpush1.bf16.msra.mxu0 %v12206_v42  ;;  %v12260_v42 = vld [vmem:[%s16935_s2 + $0x898] ss:$28 sps:$4 sm:$0xff]  }
 0x26a   : > { %6999 = vmatprep.subr.bf16.mxu0 %v12211_v43  ;;  %v12265_v43 = vld [vmem:[%s16935_s2 + $0x8d4] ss:$28 sps:$4 sm:$0xff]  }
 0x26d   : > { %7000 = vmatpush1.bf16.msra.mxu0 %v12209_v46  ;;  %v12363_v46 = vld [vmem:[%s16935_s2 + $0x248] ss:$28 sps:$4 sm:$0xff]  }
 0x26e   : > { %7001 = vmatprep.subr.bf16.mxu0 %v12214_v47  ;;  %v12364_v47 = vld [vmem:[%s16935_s2 + $0x88] ss:$28 sps:$4 sm:$0xff]   ;;  %10826 = vmatprep.subr.bf16.mxu1 %v12363_v46  ;;  %v12293_v46 = vld [vmem:[%s16935_s2 + $0xb00] ss:$28 sps:$4 sm:$0xff]  }
 0x26f   : > { %10827 = vmatpush3.bf16.msra.mxu1 %v12364_v47  ;;  %v12298_v47 = vld [vmem:[%s16935_s2 + $0xb3c] ss:$28 sps:$4 sm:$0xff]  }
 0x271   : > { %7002 = vmatpush1.bf16.msra.mxu0 %v12212_v3  ;;  %v12263_v3 = vld [vmem:[%s16935_s2 + $0x8d0] ss:$28 sps:$4 sm:$0xff]  }
 0x272   : > { %7003 = vmatprep.subr.bf16.mxu0 %v12217_v51  ;;  %v12268_v51 = vld [vmem:[%s16935_s2 + $0x90c] ss:$28 sps:$4 sm:$0xff]  }
 0x275   : > { %7004 = vmatpush1.bf16.msra.mxu0 %v12215_v54  ;;  %v12368_v54 = vld [vmem:[%s16935_s2 + $0x280] ss:$28 sps:$4 sm:$0xff]  }
 0x276   : > { %7005 = vmatprep.subr.bf16.mxu0 %v12220_v52  ;;  %v12369_v52 = vld [vmem:[%s16935_s2 + $0xc0] ss:$28 sps:$4 sm:$0xff]   ;;  %10828 = vmatprep.subr.bf16.mxu1 %v12368_v54  ;;  %v12296_v54 = vld [vmem:[%s16935_s2 + $0xb38] ss:$28 sps:$4 sm:$0xff]  }
 0x277   : > { %10829 = vmatpush3.bf16.msra.mxu1 %v12369_v52  ;;  %v12301_v52 = vld [vmem:[%s16935_s2 + $0xb74] ss:$28 sps:$4 sm:$0xff]  }
 0x279   : > { %7006 = vmatpush1.bf16.msra.mxu0 %v12218_v55  ;;  %v12266_v55 = vld [vmem:[%s16935_s2 + $0x908] ss:$28 sps:$4 sm:$0xff]  }
 0x27a   : > { %7007 = vmatprep.subr.bf16.mxu0 %v12223_v56  ;;  %v12271_v56 = vld [vmem:[%s16935_s2 + $0x944] ss:$28 sps:$4 sm:$0xff]  }
 0x27d   : > { %7008 = vmatpush1.bf16.msra.mxu0 %v12221_v57  ;;  %v12373_v57 = vld [vmem:[%s16935_s2 + $0x2b8] ss:$28 sps:$4 sm:$0xff]  }
 0x27e   : > { %7009 = vmatprep.subr.bf16.mxu0 %v12226_v58  ;;  %v12374_v58 = vld [vmem:[%s16935_s2 + $0xf8] ss:$28 sps:$4 sm:$0xff]   ;;  %10830 = vmatprep.subr.bf16.mxu1 %v12373_v57  ;;  %v12299_v57 = vld [vmem:[%s16935_s2 + $0xb70] ss:$28 sps:$4 sm:$0xff]  }
 0x27f   : > { %10831 = vmatpush3.bf16.msra.mxu1 %v12374_v58  ;;  %v15217_v58 = vld [vmem:[%s16936_s3] sm:$0x7f] }
 0x281   : > { %7010 = vmatpush1.bf16.msra.mxu0 %v12224_v59  ;;  %v12269_v59 = vld [vmem:[%s16935_s2 + $0x940] ss:$28 sps:$4 sm:$0xff]  }
 0x282   : > { %7011 = vmatprep.subr.bf16.mxu0 %v12229_v61  ;;  %v12274_v61 = vld [vmem:[%s16935_s2 + $0x97c] ss:$28 sps:$4 sm:$0xff]  }
 0x285   : > { %7012 = vmatpush1.bf16.msra.mxu0 %v12227_v63  ;;  %v12378_v63 = vld [vmem:[%s16935_s2 + $0x2f0] ss:$28 sps:$4 sm:$0xff]  }
 0x286   : > { %7013 = vmatprep.subr.bf16.mxu0 %v12232_v37  ;;  %v12379_v37 = vld [vmem:[%s16935_s2 + $0x130] ss:$28 sps:$4 sm:$0xff]   ;;  %10832 = vmatprep.subr.bf16.mxu1 %v12378_v63  ;;  %v12429_v63 = vld [vmem:[%s16935_s2 + $0x520] ss:$28 sps:$4 sm:$0xff]  }
 0x287   : > { %10833 = vmatpush3.bf16.msra.mxu1 %v12379_v37  ;;  %v6262_v37 = vrot.slane %v15217_v58, %v13252_v44 }
 0x289   : > { %7014 = vmatpush1.bf16.msra.mxu0 %v12230_v0  ;;  %v12272_v0 = vld [vmem:[%s16935_s2 + $0x978] ss:$28 sps:$4 sm:$0xff]  }
 0x28a   : > { %7015 = vmatprep.subr.bf16.mxu0 %v12235_v2  ;;  %v12277_v2 = vld [vmem:[%s16935_s2 + $0x9b4] ss:$28 sps:$4 sm:$0xff]  }
 0x28d   : > { %7016 = vmatpush1.bf16.msra.mxu0 %v12233_v5  ;;  %v12383_v5 = vld [vmem:[%s16935_s2 + $0x328] ss:$28 sps:$4 sm:$0xff]  }
 0x28e   : > { %7017 = vmatprep.subr.bf16.mxu0 %v12238_v6  ;;  %v12384_v6 = vld [vmem:[%s16935_s2 + $0x168] ss:$28 sps:$4 sm:$0xff]   ;;  %10834 = vmatprep.subr.bf16.mxu1 %v12383_v5  ;;  %v12433_v5 = vld [vmem:[%s16935_s2 + $0x8d8] ss:$28 sps:$4 sm:$0xff]  }
 0x28f   : > { %10835 = vmatpush3.bf16.msra.mxu1 %v12384_v6 }
 0x291   : > { %7018 = vmatpush1.bf16.msra.mxu0 %v12236_v7  ;;  %v12275_v7 = vld [vmem:[%s16935_s2 + $0x9b0] ss:$28 sps:$4 sm:$0xff]  }
 0x292   : > { %7028 = vmatprep.subr.bf16.mxu0 %v12241_v9  ;;  %v12280_v9 = vld [vmem:[%s16935_s2 + $0x9ec] ss:$28 sps:$4 sm:$0xff]  }
 0x294   : > { %7020 = vmatmul.mubr.bf16.vlgmr.msra.gmra.mrb[4].mxu0 %v13555_v27 }
 0x295   : > { %7029 = vmatpush1.bf16.msra.mxu0 %v12239_v10  ;;  %7060 = vmatprep.mubr.bf16.mxu0 %v13566_v30  ;;  %v12388_v10 = vld [vmem:[%s16935_s2 + $0x360] ss:$28 sps:$4 sm:$0xff]  }
 0x296   : > { %7030 = vmatprep.subr.bf16.mxu0 %v12244_v11  ;;  %v12389_v11 = vld [vmem:[%s16935_s2 + $0x1a0] ss:$28 sps:$4 sm:$0xff]   ;;  %10836 = vmatprep.subr.bf16.mxu1 %v12388_v10 }
 0x297   : > { %10837 = vmatpush3.bf16.msra.mxu1 %v12389_v11 }
 0x299   : > { %7031 = vmatpush1.bf16.msra.mxu0 %v12242_v13  ;;  %v12278_v13 = vld [vmem:[%s16935_s2 + $0x9e8] ss:$28 sps:$4 sm:$0xff]  }
 0x29a   : > { %7032 = vmatprep.subr.bf16.mxu0 %v12247_v14  ;;  %v12283_v14 = vld [vmem:[%s16935_s2 + $0xa24] ss:$28 sps:$4 sm:$0xff]   ;;  %7307 = vmatmul.mubr.bf16.vlgmr.msra.gmra.mrb[4].mxu1 %v13345_v12  ;;  %v12399_v12 = vld [vmem:[%s16935_s2 + $0x3d0] ss:$28 sps:$4 sm:$0xff]  }
 0x29b   : > { %7346 = vmatprep.mubr.bf16.mxu1 %v13356_v16  ;;  %v12403_v16 = vld [vmem:[%s16935_s2 + $0x5c8] ss:$28 sps:$4 sm:$0xff]  }
 0x29d   : > { %7033 = vmatpush1.bf16.msra.mxu0 %v12245_v18  ;;  %v12393_v18 = vld [vmem:[%s16935_s2 + $0x558] ss:$28 sps:$4 sm:$0xff]  }
 0x29e   : > { %7034 = vmatprep.subr.bf16.mxu0 %v12250_v21  ;;  %v12394_v21 = vld [vmem:[%s16935_s2 + $0x398] ss:$28 sps:$4 sm:$0xff]   ;;  %10844 = vmatprep.subr.bf16.mxu1 %v12393_v18 }
 0x29f   : > { %10845 = vmatpush3.bf16.msra.mxu1 %v12394_v21 }
 0x2a1   : > { %7035 = vmatpush1.bf16.msra.mxu0 %v12248_v22  ;;  %v12281_v22 = vld [vmem:[%s16935_s2 + $0xa20] ss:$28 sps:$4 sm:$0xff]  }
 0x2a2   : > { %7036 = vmatprep.subr.bf16.mxu0 %v12253_v24  ;;  %v12286_v24 = vld [vmem:[%s16935_s2 + $0xa5c] ss:$28 sps:$4 sm:$0xff]  }
 0x2a5   : > { %7037 = vmatpush1.bf16.msra.mxu0 %v12251_v25  ;;  %v12398_v25 = vld [vmem:[%s16935_s2 + $0x590] ss:$28 sps:$4 sm:$0xff]  }
 0x2a6   : > { %7038 = vmatprep.subr.bf16.mxu0 %v12256_v26  ;;  %10846 = vmatprep.subr.bf16.mxu1 %v12398_v25  ;;  %v12284_v26 = vld [vmem:[%s16935_s2 + $0xa58] ss:$28 sps:$4 sm:$0xff]  }
 0x2a7   : > { %10847 = vmatpush3.bf16.msra.mxu1 %v12399_v12 }
 0x2a8   : > { %10848 = vmatprep.subr.bf16.mxu1 %v12403_v16 }
 0x2a9   : > { %7039 = vmatpush1.bf16.msra.mxu0 %v12254_v28  ;;  %v12289_v28 = vld [vmem:[%s16935_s2 + $0xa94] ss:$28 sps:$4 sm:$0xff]  }
 0x2aa   : > { %7040 = vmatprep.subr.bf16.mxu0 %v12259_v29  ;;  %v12404_v29 = vld [vmem:[%s16935_s2 + $0x408] ss:$28 sps:$4 sm:$0xff]  }
 0x2ab   : > { %10849 = vmatpush3.bf16.msra.mxu1 %v12404_v29  ;;  %v12313_v29 = vld [vmem:[%s16935_s2 + $0xc54] ss:$28 sps:$4 sm:$0xff]  }
 0x2ad   : > { %7041 = vmatpush1.bf16.msra.mxu0 %v12257_v32  ;;  %v12408_v32 = vld [vmem:[%s16935_s2 + $0x600] ss:$28 sps:$4 sm:$0xff]  }
 0x2ae   : > { %7042 = vmatprep.subr.bf16.mxu0 %v12262_v35  ;;  %v12409_v35 = vld [vmem:[%s16935_s2 + $0x440] ss:$28 sps:$4 sm:$0xff]   ;;  %10850 = vmatprep.subr.bf16.mxu1 %v12408_v32  ;;  %v12316_v32 = vld [vmem:[%s16935_s2 + $0xc8c] ss:$28 sps:$4 sm:$0xff]  }
 0x2af   : > { %10851 = vmatpush3.bf16.msra.mxu1 %v12409_v35  ;;  %v12448_v35 = vld [vmem:[%s16935_s2 + $0x980] ss:$28 sps:$4 sm:$0xff]  }
 0x2b1   : > { %7043 = vmatpush1.bf16.msra.mxu0 %v12260_v42  ;;  %v12413_v42 = vld [vmem:[%s16935_s2 + $0x638] ss:$28 sps:$4 sm:$0xff]  }
 0x2b2   : > { %7044 = vmatprep.subr.bf16.mxu0 %v12265_v43  ;;  %v12414_v43 = vld [vmem:[%s16935_s2 + $0x478] ss:$28 sps:$4 sm:$0xff]   ;;  %10852 = vmatprep.subr.bf16.mxu1 %v12413_v42  ;;  %v12314_v42 = vld [vmem:[%s16935_s2 + $0xc88] ss:$28 sps:$4 sm:$0xff]  }
 0x2b3   : > { %10853 = vmatpush3.bf16.msra.mxu1 %v12414_v43  ;;  %v12319_v43 = vld [vmem:[%s16935_s2 + $0xcc4] ss:$28 sps:$4 sm:$0xff]  }
 0x2b5   : > { %7045 = vmatpush1.bf16.msra.mxu0 %v12263_v3  ;;  %v12418_v3 = vld [vmem:[%s16935_s2 + $0x670] ss:$28 sps:$4 sm:$0xff]  }
 0x2b6   : > { %7046 = vmatprep.subr.bf16.mxu0 %v12268_v51  ;;  %v12419_v51 = vld [vmem:[%s16935_s2 + $0x4b0] ss:$28 sps:$4 sm:$0xff]   ;;  %10854 = vmatprep.subr.bf16.mxu1 %v12418_v3  ;;  %v12454_v3 = vld [vmem:[%s16935_s2 + $0x7f8] ss:$28 sps:$4 sm:$0xff]  }
 0x2b7   : > { %10855 = vmatpush3.bf16.msra.mxu1 %v12419_v51  ;;  %v12317_v51 = vld [vmem:[%s16935_s2 + $0xcc0] ss:$28 sps:$4 sm:$0xff]  }
 0x2b9   : > { %7047 = vmatpush1.bf16.msra.mxu0 %v12266_v55  ;;  %v12423_v55 = vld [vmem:[%s16935_s2 + $0x6a8] ss:$28 sps:$4 sm:$0xff]  }
 0x2ba   : > { %7048 = vmatprep.subr.bf16.mxu0 %v12271_v56  ;;  %v12424_v56 = vld [vmem:[%s16935_s2 + $0x4e8] ss:$28 sps:$4 sm:$0xff]   ;;  %10856 = vmatprep.subr.bf16.mxu1 %v12423_v55  ;;  %v12459_v55 = vld [vmem:[%s16935_s2 + $0x830] ss:$28 sps:$4 sm:$0xff]  }
 0x2bb   : > { %10857 = vmatpush3.bf16.msra.mxu1 %v12424_v56  ;;  %v12320_v56 = vld [vmem:[%s16935_s2 + $0xcf8] ss:$28 sps:$4 sm:$0xff]  }
 0x2bd   : > { %7049 = vmatpush1.bf16.msra.mxu0 %v12269_v59  ;;  %v12304_v59 = vld [vmem:[%s16935_s2 + $0xbac] ss:$28 sps:$4 sm:$0xff]  }
 0x2be   : > { %7050 = vmatprep.subr.bf16.mxu0 %v12274_v61  ;;  %v12428_v61 = vld [vmem:[%s16935_s2 + $0x6e0] ss:$28 sps:$4 sm:$0xff]  }
 0x2bf   : > { %10858 = vmatprep.subr.bf16.mxu1 %v12428_v61  ;;  %v12464_v61 = vld [vmem:[%s16935_s2 + $0x868] ss:$28 sps:$4 sm:$0xff]  }
 0x2c0   : > { %10859 = vmatpush3.bf16.msra.mxu1 %v12429_v63  ;;  %v12323_v63 = vld [vmem:[%s16935_s2 + $0xd30] ss:$28 sps:$4 sm:$0xff]  }
 0x2c1   : > { %7051 = vmatpush1.bf16.msra.mxu0 %v12272_v0  ;;  %v12302_v0 = vld [vmem:[%s16935_s2 + $0xba8] ss:$28 sps:$4 sm:$0xff]   ;;  %10866 = vmatprep.subr.bf16.mxu1 %v12433_v5 }
 0x2c2   : > { %7052 = vmatprep.subr.bf16.mxu0 %v12277_v2  ;;  %v12307_v2 = vld [vmem:[%s16935_s2 + $0xbe4] ss:$28 sps:$4 sm:$0xff]  }
 0x2c3   : > { %7347 = vmatmul.mubr.bf16.vlgmr.msra.gmra.mrb[8].mxu1 %v13555_v27  ;;  %v12439_v27 = vld [vmem:[%s16935_s2 + $0x750] ss:$28 sps:$4 sm:$0xff]   ;;  %v12326_v5 = vld [vmem:[%s16935_s2 + $0xd68] ss:$28 sps:$4 sm:$0xff]  }
 0x2c4   : > { %7386 = vmatprep.mubr.bf16.mxu1 %v13566_v30  ;;  %v12443_v30 = vld [vmem:[%s16935_s2 + $0x948] ss:$28 sps:$4 sm:$0xff]  }
 0x2c5   : > { %7053 = vmatpush1.bf16.msra.mxu0 %v12275_v7  ;;  %v6266_v7 = vrot.slane %v15217_v58, %v13525_v15 }
 0x2c6   : > { %7054 = vmatprep.subr.bf16.mxu0 %v12280_v9  ;;  %v12434_v9 = vld [vmem:[%s16935_s2 + $0x718] ss:$28 sps:$4 sm:$0xff]  }
 0x2c7   : > { %10867 = vmatpush3.bf16.msra.mxu1 %v12434_v9  ;;  %v12473_v9 = vld [vmem:[%s16935_s2 + $0xc58] ss:$28 sps:$4 sm:$0xff]  }
 0x2c9   : > { %7055 = vmatpush1.bf16.msra.mxu0 %v12278_v13 }
 0x2ca   : > { %7056 = vmatprep.subr.bf16.mxu0 %v12283_v14  ;;  %v12305_v14 = vld [vmem:[%s16935_s2 + $0xbe0] ss:$28 sps:$4 sm:$0xff]  }
 0x2cd   : > { %7057 = vmatpush1.bf16.msra.mxu0 %v12281_v22  ;;  %v12310_v22 = vld [vmem:[%s16935_s2 + $0xc1c] ss:$28 sps:$4 sm:$0xff]  }
 0x2ce   : > { %7058 = vmatprep.subr.bf16.mxu0 %v12286_v24  ;;  %v12438_v24 = vld [vmem:[%s16935_s2 + $0x910] ss:$28 sps:$4 sm:$0xff]  }
 0x2cf   : > { %10868 = vmatprep.subr.bf16.mxu1 %v12438_v24  ;;  %v12335_v24 = vld [vmem:[%s16935_s2 + $0xe10] ss:$28 sps:$4 sm:$0xff]  }
 0x2d0   : > { %10869 = vmatpush3.bf16.msra.mxu1 %v12439_v27  ;;  %v12340_v27 = vld [vmem:[%s16935_s2 + $0xe4c] ss:$28 sps:$4 sm:$0xff]  }
 0x2d1   : > { %7059 = vmatpush1.bf16.msra.mxu0 %v12284_v26  ;;  %10870 = vmatprep.subr.bf16.mxu1 %v12443_v30  ;;  %v12493_v30 = vld [vmem:[%s16935_s2 + $0xd38] ss:$28 sps:$4 sm:$0xff]  }
 0x2d2   : > { %7069 = vmatprep.subr.bf16.mxu0 %v12289_v28  ;;  %v12308_v28 = vld [vmem:[%s16935_s2 + $0xc18] ss:$28 sps:$4 sm:$0xff]  }
 0x2d4   : > { %7061 = vmatmul.mubr.bf16.vlgmr.msra.gmra.mrb[4].mxu0 %v13767_v49 }
 0x2d5   : > { %7070 = vmatpush1.bf16.msra.mxu0 %v12287_v48  ;;  %7101 = vmatprep.mubr.bf16.mxu0 %v13778_v53  ;;  %v12444_v48 = vld [vmem:[%s16935_s2 + $0x788] ss:$28 sps:$4 sm:$0xff]  }
 0x2d6   : > { %7071 = vmatprep.subr.bf16.mxu0 %v12292_v31  ;;  %v12311_v31 = vld [vmem:[%s16935_s2 + $0xc50] ss:$28 sps:$4 sm:$0xff]   ;;  %10871 = vmatpush3.bf16.msra.mxu1 %v12444_v48  ;;  %v12494_v48 = vld [vmem:[%s16935_s2 + $0xb78] ss:$28 sps:$4 sm:$0xff]  }
 0x2d7   : > { %10872 = vmatprep.subr.bf16.mxu1 %v12448_v35  ;;  %v12498_v35 = vld [vmem:[%s16935_s2 + $0xd70] ss:$28 sps:$4 sm:$0xff]  }
 0x2d9   : > { %7072 = vmatpush1.bf16.msra.mxu0 %v12290_v38  ;;  %v12449_v38 = vld [vmem:[%s16935_s2 + $0x7c0] ss:$28 sps:$4 sm:$0xff]  }
 0x2da   : > { %7073 = vmatprep.subr.bf16.mxu0 %v12295_v40  ;;  %10873 = vmatpush3.bf16.msra.mxu1 %v12449_v38  ;;  %v12499_v38 = vld [vmem:[%s16935_s2 + $0xbb0] ss:$28 sps:$4 sm:$0xff]  }
 0x2dd   : > { %7074 = vmatpush1.bf16.msra.mxu0 %v12293_v46  ;;  %v12453_v46 = vld [vmem:[%s16935_s2 + $0x9b8] ss:$28 sps:$4 sm:$0xff]  }
 0x2de   : > { %7075 = vmatprep.subr.bf16.mxu0 %v12298_v47  ;;  %10874 = vmatprep.subr.bf16.mxu1 %v12453_v46  ;;  %v12504_v46 = vld [vmem:[%s16935_s2 + $0xbe8] ss:$28 sps:$4 sm:$0xff]  }
 0x2df   : > { %10875 = vmatpush3.bf16.msra.mxu1 %v12454_v3  ;;  %v12352_v3 = vld [vmem:[%s16935_s2 + $0xf2c] ss:$28 sps:$4 sm:$0xff]  }
 0x2e1   : > { %7076 = vmatpush1.bf16.msra.mxu0 %v12296_v54  ;;  %v12322_v54 = vld [vmem:[%s16935_s2 + $0xcfc] ss:$28 sps:$4 sm:$0xff]  }
 0x2e2   : > { %7077 = vmatprep.subr.bf16.mxu0 %v12301_v52  ;;  %v12458_v52 = vld [vmem:[%s16935_s2 + $0x9f0] ss:$28 sps:$4 sm:$0xff]  }
 0x2e3   : > { %10876 = vmatprep.subr.bf16.mxu1 %v12458_v52  ;;  %v12350_v52 = vld [vmem:[%s16935_s2 + $0xf28] ss:$28 sps:$4 sm:$0xff]  }
 0x2e4   : > { %10877 = vmatpush3.bf16.msra.mxu1 %v12459_v55  ;;  %v12357_v55 = vld [vmem:[%s16935_s2 + $0xf64] ss:$28 sps:$4 sm:$0xff]  }
 0x2e5   : > { %7078 = vmatpush1.bf16.msra.mxu0 %v12299_v57  ;;  %v12325_v57 = vld [vmem:[%s16935_s2 + $0xd34] ss:$28 sps:$4 sm:$0xff]  }
 0x2e6   : > { %7079 = vmatprep.subr.bf16.mxu0 %v12304_v59  ;;  %v12463_v59 = vld [vmem:[%s16935_s2 + $0xa28] ss:$28 sps:$4 sm:$0xff]  }
 0x2e7   : > { %v15239_v6 = vpop.f32.mrb[0].mxu0  ;;  %10878 = vmatprep.subr.bf16.mxu1 %v12463_v59  ;;  %v12355_v59 = vld [vmem:[%s16935_s2 + $0xf60] ss:$28 sps:$4 sm:$0xff]  }
 0x2e8   : > { %v6613_v10 = vpop.f32.mrb[1].mxu0  ;;  %10879 = vmatpush3.bf16.msra.mxu1 %v12464_v61  ;;  %v12362_v61 = vld [vmem:[%s16935_s2 + $0xf9c] ss:$28 sps:$4 sm:$0xff]  }
 0x2e9   : > { %v11220_v11 = vadd.f32 %v6613_v10, %v6262_v37  ;;  %v6615_v13 = vpop.f32.mrb[2].mxu0  ;;  %7080 = vmatpush1.bf16.msra.mxu0 %v12302_v0  ;;  %v6939_v21 = vpop.f32.mrb[0].mxu1  ;;  %v12328_v37 = vld [vmem:[%s16935_s2 + $0xd6c] ss:$28 sps:$4 sm:$0xff]   ;;  %v12468_v0 = vld [vmem:[%s16935_s2 + $0xa60] ss:$28 sps:$4 sm:$0xff]  }
 0x2ea   : > { %v6616_v18 = vpop.f32.mrb[3].mxu0  ;;  %7081 = vmatprep.subr.bf16.mxu0 %v12307_v2  ;;  %v15256_v25 = vadd.f32 %v6939_v21, %v6266_v7  ;;  %v15258_v12 = vpop.f32.mrb[1].mxu1  ;;  %v12469_v2 = vld [vmem:[%s16935_s2 + $0x8a0] ss:$28 sps:$4 sm:$0xff]   ;;  %10880 = vmatprep.subr.bf16.mxu1 %v12468_v0  ;;  %v12474_v10 = vld [vmem:[%s16935_s2 + $0xa98] ss:$28 sps:$4 sm:$0xff]  }
 0x2eb   : > { %12863 = vtanh.f32 %v11220_v11  ;;  %v6943_v26 = vpop.f32.mrb[2].mxu1  ;;  %v12331_v7 = vld [vmem:[%s16935_s2 + $0xda4] ss:$28 sps:$4 sm:$0xff]   ;;  %v12334_v13 = vld [vmem:[%s16935_s2 + $0xddc] ss:$28 sps:$4 sm:$0xff]  }
 0x2ec   : > { %12865 = vtanh.f32 %v15256_v25  ;;  %v6944_v16 = vpop.f32.mrb[3].mxu1  ;;  %10881 = vmatpush3.bf16.msra.mxu1 %v12469_v2  ;;  %v12329_v11 = vld [vmem:[%s16935_s2 + $0xda0] ss:$28 sps:$4 sm:$0xff]   ;;  %v12479_v18 = vld [vmem:[%s16935_s2 + $0xad0] ss:$28 sps:$4 sm:$0xff]  }
 0x2ed   : > { %7082 = vmatpush1.bf16.msra.mxu0 %v12305_v14  ;;  %10888 = vmatprep.subr.bf16.mxu1 %v12473_v9  ;;  %v12478_v14 = vld [vmem:[%s16935_s2 + $0xc90] ss:$28 sps:$4 sm:$0xff]   ;;  %v12332_v21 = vld [vmem:[%s16935_s2 + $0xdd8] ss:$28 sps:$4 sm:$0xff]   ;;  %v12488_v26 = vld [vmem:[%s16935_s2 + $0xd00] ss:$28 sps:$4 sm:$0xff]  }
 0x2ee   : > { %7083 = vmatprep.subr.bf16.mxu0 %v12310_v22  ;;  %v12483_v22 = vld [vmem:[%s16935_s2 + $0xcc8] ss:$28 sps:$4 sm:$0xff]   ;;  %v12360_v0 = vld [vmem:[%s16935_s2 + $0xf98] ss:$28 sps:$4 sm:$0xff]   ;;  %v12528_v9 = vld [vmem:[%s16935_s2 + $0x1080] ss:$28 sps:$4 sm:$0xff]  }
 0x2ef   : > { %7387 = vmatmul.mubr.bf16.vlgmr.msra.gmra.mrb[12].mxu1 %v13767_v49  ;;  %v12337_v49 = vld [vmem:[%s16935_s2 + $0xe14] ss:$28 sps:$4 sm:$0xff]   ;;  %v12338_v16 = vld [vmem:[%s16935_s2 + $0xe48] ss:$28 sps:$4 sm:$0xff]  }
 0x2f0   : > { %10889 = vmatpush3.bf16.msra.mxu1 %v12474_v10  ;;  %7426 = vmatprep.mubr.bf16.mxu1 %v13778_v53  ;;  %v12484_v53 = vld [vmem:[%s16935_s2 + $0xb08] ss:$28 sps:$4 sm:$0xff]   ;;  %v12529_v10 = vld [vmem:[%s16935_s2 + $0xec0] ss:$28 sps:$4 sm:$0xff]  }
 0x2f1   : > { %7084 = vmatpush1.bf16.msra.mxu0 %v12308_v28  ;;  %10890 = vmatprep.subr.bf16.mxu1 %v12478_v14  ;;  %v12489_v28 = vld [vmem:[%s16935_s2 + $0xb40] ss:$28 sps:$4 sm:$0xff]   ;;  %v12523_v2 = vld [vmem:[%s16935_s2 + $0x1048] ss:$28 sps:$4 sm:$0xff]   ;;  %v12533_v14 = vld [vmem:[%s16935_s2 + $0x10b8] ss:$28 sps:$4 sm:$0xff]  }
 0x2f2   : > { %7085 = vmatprep.subr.bf16.mxu0 %v12313_v29  ;;  %v12343_v29 = vld [vmem:[%s16935_s2 + $0xe84] ss:$28 sps:$4 sm:$0xff]  }
 0x2f4   : > { %10891 = vmatpush3.bf16.msra.mxu1 %v12479_v18  ;;  %v12534_v18 = vld [vmem:[%s16935_s2 + $0xef8] ss:$28 sps:$4 sm:$0xff]  }
 0x2f5   : > { %v12864_v40 = vpop.eup %12863  ;;  %7086 = vmatpush1.bf16.msra.mxu0 %v12311_v31  ;;  %10892 = vmatprep.subr.bf16.mxu1 %v12483_v22  ;;  %v12341_v31 = vld [vmem:[%s16935_s2 + $0xe80] ss:$28 sps:$4 sm:$0xff]   ;;  %v12538_v22 = vld [vmem:[%s16935_s2 + $0x10f0] ss:$28 sps:$4 sm:$0xff]  }
 0x2f6   : > { %7616 = vrot.lane.b32.xlu0 %v12864_v40, %s12971_s27  ;;  %7087 = vmatprep.subr.bf16.mxu0 %v12316_v32  ;;  %v12866_v47 = vpop.eup %12865  ;;  %v12346_v32 = vld [vmem:[%s16935_s2 + $0xebc] ss:$28 sps:$4 sm:$0xff]  }
 0x2f7   : > { %v12344_v40 = vld [vmem:[%s16935_s2 + $0xeb8] ss:$28 sps:$4 sm:$0xff]  }
 0x2f8   : > { %10893 = vmatpush3.bf16.msra.mxu1 %v12484_v53  ;;  %v12539_v53 = vld [vmem:[%s16935_s2 + $0xf30] ss:$28 sps:$4 sm:$0xff]  }
 0x2f9   : > { %7088 = vmatpush1.bf16.msra.mxu0 %v12314_v42  ;;  %10894 = vmatprep.subr.bf16.mxu1 %v12488_v26  ;;  %v12349_v42 = vld [vmem:[%s16935_s2 + $0xef4] ss:$28 sps:$4 sm:$0xff]   ;;  %v12543_v26 = vld [vmem:[%s16935_s2 + $0x1128] ss:$28 sps:$4 sm:$0xff]  }
 0x2fa   : > { %7618 = vrot.lane.b32.xlu0 %v12866_v47, %s12971_s27  ;;  %7089 = vmatprep.subr.bf16.mxu0 %v12319_v43  ;;  %v12503_v43 = vld [vmem:[%s16935_s2 + $0xda8] ss:$28 sps:$4 sm:$0xff]   ;;  %v12347_v47 = vld [vmem:[%s16935_s2 + $0xef0] ss:$28 sps:$4 sm:$0xff]  }
 0x2fc   : > { %10895 = vmatpush3.bf16.msra.mxu1 %v12489_v28  ;;  %v12544_v28 = vld [vmem:[%s16935_s2 + $0xf68] ss:$28 sps:$4 sm:$0xff]  }
 0x2fd   : > { %7090 = vmatpush1.bf16.msra.mxu0 %v12317_v51  ;;  %10896 = vmatprep.subr.bf16.mxu1 %v12493_v30  ;;  %v12508_v51 = vld [vmem:[%s16935_s2 + $0xde0] ss:$28 sps:$4 sm:$0xff]  }
 0x2fe   : > { %7091 = vmatprep.subr.bf16.mxu0 %v12322_v54  ;;  %v12509_v54 = vld [vmem:[%s16935_s2 + $0xc20] ss:$28 sps:$4 sm:$0xff]  }
 0x2ff   : > { %v12548_v30 = vld [vmem:[%s16935_s2 + $0x1160] ss:$28 sps:$4 sm:$0xff]  }
 0x300   : > { %10897 = vmatpush3.bf16.msra.mxu1 %v12494_v48  ;;  %v12549_v48 = vld [vmem:[%s16935_s2 + $0xfa0] ss:$28 sps:$4 sm:$0xff]  }
 0x301   : > { %7092 = vmatpush1.bf16.msra.mxu0 %v12320_v56  ;;  %10898 = vmatprep.subr.bf16.mxu1 %v12498_v35  ;;  %v12513_v56 = vld [vmem:[%s16935_s2 + $0xfd8] ss:$28 sps:$4 sm:$0xff]   ;;  %v12397_v35 = vld [vmem:[%s16935_s2 + $0x1124] ss:$28 sps:$4 sm:$0xff]  }
 0x302   : > { %7093 = vmatprep.subr.bf16.mxu0 %v12325_v57  ;;  %v12514_v57 = vld [vmem:[%s16935_s2 + $0xe18] ss:$28 sps:$4 sm:$0xff]  }
 0x304   : > { %10899 = vmatpush3.bf16.msra.mxu1 %v12499_v38  ;;  %v12553_v38 = vld [vmem:[%s16935_s2 + $0x1358] ss:$28 sps:$4 sm:$0xff]  }
 0x305   : > { %7094 = vmatpush1.bf16.msra.mxu0 %v12323_v63  ;;  %10900 = vmatprep.subr.bf16.mxu1 %v12503_v43  ;;  %v12518_v63 = vld [vmem:[%s16935_s2 + $0x1010] ss:$28 sps:$4 sm:$0xff]  }
 0x306   : > { %7095 = vmatprep.subr.bf16.mxu0 %v12328_v37  ;;  %v12519_v37 = vld [vmem:[%s16935_s2 + $0xe50] ss:$28 sps:$4 sm:$0xff]  }
 0x308   : > { %10901 = vmatpush3.bf16.msra.mxu1 %v12504_v46  ;;  %v12402_v46 = vld [vmem:[%s16935_s2 + $0x115c] ss:$28 sps:$4 sm:$0xff]  }
 0x309   : > { %7096 = vmatpush1.bf16.msra.mxu0 %v12326_v5  ;;  %10902 = vmatprep.subr.bf16.mxu1 %v12508_v51  ;;  %v12365_v5 = vld [vmem:[%s16935_s2 + $0xfd0] ss:$28 sps:$4 sm:$0xff]  }
 0x30a   : > { %7097 = vmatprep.subr.bf16.mxu0 %v12331_v7  ;;  %v12372_v7 = vld [vmem:[%s16935_s2 + $0x100c] ss:$28 sps:$4 sm:$0xff]  }
 0x30c   : > { %10903 = vmatpush3.bf16.msra.mxu1 %v12509_v54  ;;  %v12407_v54 = vld [vmem:[%s16935_s2 + $0x1194] ss:$28 sps:$4 sm:$0xff]  }
 0x30d   : > { %7098 = vmatpush1.bf16.msra.mxu0 %v12329_v11  ;;  %10910 = vmatprep.subr.bf16.mxu1 %v12513_v56  ;;  %v12370_v11 = vld [vmem:[%s16935_s2 + $0x1008] ss:$28 sps:$4 sm:$0xff]   ;;  %v12405_v56 = vld [vmem:[%s16935_s2 + $0x1190] ss:$28 sps:$4 sm:$0xff]  }
 0x30e   : > { %7099 = vmatprep.subr.bf16.mxu0 %v12334_v13  ;;  %v12377_v13 = vld [vmem:[%s16935_s2 + $0x1044] ss:$28 sps:$4 sm:$0xff]  }
 0x30f   : > { %7427 = vmatmul.mubr.bf16.vlgmr.msra.gmra.mrb[16].mxu1 %v13977_v41 }
 0x310   : > { %10911 = vmatpush3.bf16.msra.mxu1 %v12514_v57  ;;  %7466 = vmatprep.mubr.bf16.mxu1 %v13988_v17  ;;  %v12412_v57 = vld [vmem:[%s16935_s2 + $0x11cc] ss:$28 sps:$4 sm:$0xff]  }
 0x311   : > { %7100 = vmatpush1.bf16.msra.mxu0 %v12332_v21  ;;  %10912 = vmatprep.subr.bf16.mxu1 %v12518_v63  ;;  %v12375_v21 = vld [vmem:[%s16935_s2 + $0x1040] ss:$28 sps:$4 sm:$0xff]   ;;  %v12410_v63 = vld [vmem:[%s16935_s2 + $0x11c8] ss:$28 sps:$4 sm:$0xff]  }
 0x312   : > { %7110 = vmatprep.subr.bf16.mxu0 %v12337_v49  ;;  %v12382_v49 = vld [vmem:[%s16935_s2 + $0x107c] ss:$28 sps:$4 sm:$0xff]  }
 0x314   : > { %7102 = vmatmul.mubr.bf16.vlgmr.msra.gmra.mrb[4].mxu0 %v13977_v41  ;;  %v12367_v41 = vld [vmem:[%s16935_s2 + $0xfd4] ss:$28 sps:$4 sm:$0xff]   ;;  %10913 = vmatpush3.bf16.msra.mxu1 %v12519_v37  ;;  %v12417_v37 = vld [vmem:[%s16935_s2 + $0x1204] ss:$28 sps:$4 sm:$0xff]  }
 0x315   : > { %7111 = vmatpush1.bf16.msra.mxu0 %v12335_v24  ;;  %7142 = vmatprep.mubr.bf16.mxu0 %v13988_v17  ;;  %v12524_v17 = vld [vmem:[%s16935_s2 + $0xe88] ss:$28 sps:$4 sm:$0xff]   ;;  %v12380_v24 = vld [vmem:[%s16935_s2 + $0x1078] ss:$28 sps:$4 sm:$0xff]  }
 0x316   : > { %7112 = vmatprep.subr.bf16.mxu0 %v12340_v27  ;;  %10914 = vmatprep.subr.bf16.mxu1 %v12523_v2  ;;  %v12387_v27 = vld [vmem:[%s16935_s2 + $0x10b4] ss:$28 sps:$4 sm:$0xff]  }
 0x317   : > { %v12578_v2 = vld [vmem:[%s16935_s2 + $0x1470] ss:$28 sps:$4 sm:$0xff]  }
 0x318   : > { %10915 = vmatpush3.bf16.msra.mxu1 %v12524_v17  ;;  %v12579_v17 = vld [vmem:[%s16935_s2 + $0x12b0] ss:$28 sps:$4 sm:$0xff]  }
 0x319   : > { %7113 = vmatpush1.bf16.msra.mxu0 %v12338_v16  ;;  %10916 = vmatprep.subr.bf16.mxu1 %v12528_v9  ;;  %v12385_v16 = vld [vmem:[%s16935_s2 + $0x10b0] ss:$28 sps:$4 sm:$0xff]  }
 0x31a   : > { %7114 = vmatprep.subr.bf16.mxu0 %v12343_v29  ;;  %v12392_v29 = vld [vmem:[%s16935_s2 + $0x10ec] ss:$28 sps:$4 sm:$0xff]   ;;  %v12427_v9 = vld [vmem:[%s16935_s2 + $0x1274] ss:$28 sps:$4 sm:$0xff]  }
 0x31c   : > { %10917 = vmatpush3.bf16.msra.mxu1 %v12529_v10  ;;  %v12583_v10 = vld [vmem:[%s16935_s2 + $0x14a8] ss:$28 sps:$4 sm:$0xff]  }
 0x31d   : > { %7115 = vmatpush1.bf16.msra.mxu0 %v12341_v31  ;;  %10918 = vmatprep.subr.bf16.mxu1 %v12533_v14  ;;  %v12390_v31 = vld [vmem:[%s16935_s2 + $0x10e8] ss:$28 sps:$4 sm:$0xff]   ;;  %v12425_v14 = vld [vmem:[%s16935_s2 + $0x1270] ss:$28 sps:$4 sm:$0xff]  }
 0x31e   : > { %7116 = vmatprep.subr.bf16.mxu0 %v12346_v32  ;;  %v6258_v32 = vrot.slane %v15217_v58, %v13315_v1 }
 0x320   : > { %10919 = vmatpush3.bf16.msra.mxu1 %v12534_v18  ;;  %v11219_v43 = vadd.f32 %v15239_v6, %v6258_v32  ;;  %v12400_v6 = vld [vmem:[%s16935_s2 + $0x1158] ss:$28 sps:$4 sm:$0xff]   ;;  %v12432_v18 = vld [vmem:[%s16935_s2 + $0x12ac] ss:$28 sps:$4 sm:$0xff]  }
 0x321   : > { %7117 = vmatpush1.bf16.msra.mxu0 %v12344_v40  ;;  %10920 = vmatprep.subr.bf16.mxu1 %v12538_v22  ;;  %v12554_v40 = vld [vmem:[%s16935_s2 + $0x1198] ss:$28 sps:$4 sm:$0xff]   ;;  %v12430_v22 = vld [vmem:[%s16935_s2 + $0x12a8] ss:$28 sps:$4 sm:$0xff]  }
 0x322   : > { %7118 = vmatprep.subr.bf16.mxu0 %v12349_v42  ;;  %v12395_v42 = vld [vmem:[%s16935_s2 + $0x1120] ss:$28 sps:$4 sm:$0xff]   ;;  %v10640_v51 = vmul.f32 -1.442695, %v11219_v43  ;;  %v12604_v43 = vld [vmem:[%s16935_s2 + $0x1588] ss:$28 sps:$4 sm:$0xff]  }
 0x324   : > { %10921 = vmatpush3.bf16.msra.mxu1 %v12539_v53  ;;  %12867 = vpow2.f32 %v10640_v51  ;;  %v12437_v53 = vld [vmem:[%s16935_s2 + $0x12e4] ss:$28 sps:$4 sm:$0xff]  }
 0x325   : > { %7119 = vmatpush1.bf16.msra.mxu0 %v12347_v47  ;;  %10922 = vmatprep.subr.bf16.mxu1 %v12543_v26  ;;  %v12558_v47 = vld [vmem:[%s16935_s2 + $0x1390] ss:$28 sps:$4 sm:$0xff]   ;;  %v12450_v51 = vld [vmem:[%s16935_s2 + $0x1388] ss:$28 sps:$4 sm:$0xff]  }
 0x326   : > { %7120 = vmatprep.subr.bf16.mxu0 %v12352_v3  ;;  %v12559_v3 = vld [vmem:[%s16935_s2 + $0x11d0] ss:$28 sps:$4 sm:$0xff]  }
 0x328   : > { %10923 = vmatpush3.bf16.msra.mxu1 %v12544_v28  ;;  %v12435_v28 = vld [vmem:[%s16935_s2 + $0x12e0] ss:$28 sps:$4 sm:$0xff]  }
 0x329   : > { %7121 = vmatpush1.bf16.msra.mxu0 %v12350_v52  ;;  %10924 = vmatprep.subr.bf16.mxu1 %v12548_v30  ;;  %v12563_v52 = vld [vmem:[%s16935_s2 + $0x13c8] ss:$28 sps:$4 sm:$0xff]   ;;  %v12599_v30 = vld [vmem:[%s16935_s2 + $0x1550] ss:$28 sps:$4 sm:$0xff]  }
 0x32a   : > { %7122 = vmatprep.subr.bf16.mxu0 %v12357_v55  ;;  %v12564_v55 = vld [vmem:[%s16935_s2 + $0x1208] ss:$28 sps:$4 sm:$0xff]  }
 0x32c   : > { %10925 = vmatpush3.bf16.msra.mxu1 %v12549_v48 }
 0x32d   : > { %7123 = vmatpush1.bf16.msra.mxu0 %v12355_v59  ;;  %10932 = vmatprep.subr.bf16.mxu1 %v12553_v38  ;;  %v12568_v59 = vld [vmem:[%s16935_s2 + $0x1400] ss:$28 sps:$4 sm:$0xff]  }
 0x32e   : > { %7124 = vmatprep.subr.bf16.mxu0 %v12362_v61  ;;  %v12569_v61 = vld [vmem:[%s16935_s2 + $0x1240] ss:$28 sps:$4 sm:$0xff]  }
 0x32f   : > { %7467 = vmatmul.mubr.bf16.vlgmr.msra.gmra.mrb[20].mxu1 %v14181_v45 }
 0x330   : > { %10933 = vmatpush3.bf16.msra.mxu1 %v12554_v40  ;;  %7506 = vmatprep.mubr.bf16.mxu1 %v14192_v50  ;;  %v12447_v40 = vld [vmem:[%s16935_s2 + $0x1354] ss:$28 sps:$4 sm:$0xff]  }
 0x331   : > { %7125 = vmatpush1.bf16.msra.mxu0 %v12360_v0  ;;  %10934 = vmatprep.subr.bf16.mxu1 %v12558_v47  ;;  %v12573_v0 = vld [vmem:[%s16935_s2 + $0x1438] ss:$28 sps:$4 sm:$0xff]   ;;  %v12452_v47 = vld [vmem:[%s16935_s2 + $0x138c] ss:$28 sps:$4 sm:$0xff]  }
 0x332   : > { %7126 = vmatprep.subr.bf16.mxu0 %v12367_v41  ;;  %v12422_v41 = vld [vmem:[%s16935_s2 + $0x123c] ss:$28 sps:$4 sm:$0xff]  }
 0x334   : > { %10935 = vmatpush3.bf16.msra.mxu1 %v12559_v3  ;;  %v12608_v3 = vld [vmem:[%s16935_s2 + $0x1780] ss:$28 sps:$4 sm:$0xff]  }
 0x335   : > { %7127 = vmatpush1.bf16.msra.mxu0 %v12365_v5  ;;  %10936 = vmatprep.subr.bf16.mxu1 %v12563_v52  ;;  %v12868_v5 = vpop.eup %12867  ;;  %v12613_v52 = vld [vmem:[%s16935_s2 + $0x17b8] ss:$28 sps:$4 sm:$0xff]  }
 0x336   : > { %7128 = vmatprep.subr.bf16.mxu0 %v12372_v7  ;;  %v12420_v7 = vld [vmem:[%s16935_s2 + $0x1238] ss:$28 sps:$4 sm:$0xff]  }
 0x338   : > { %10937 = vmatpush3.bf16.msra.mxu1 %v12564_v55  ;;  %v12614_v55 = vld [vmem:[%s16935_s2 + $0x15f8] ss:$28 sps:$4 sm:$0xff]  }
 0x339   : > { %7129 = vmatpush1.bf16.msra.mxu0 %v12370_v11  ;;  %10938 = vmatprep.subr.bf16.mxu1 %v12568_v59  ;;  %v7597_v11 = vadd.f32 1.0, %v12868_v5  ;;  %v12462_v59 = vld [vmem:[%s16935_s2 + $0x13fc] ss:$28 sps:$4 sm:$0xff]  }
 0x33a   : > { %7130 = vmatprep.subr.bf16.mxu0 %v12377_v13  ;;  %v12584_v13 = vld [vmem:[%s16935_s2 + $0x12e8] ss:$28 sps:$4 sm:$0xff]   ;;  %v12629_v5 = vld [vmem:[%s16935_s2 + $0x16a0] ss:$28 sps:$4 sm:$0xff]  }
 0x33b   : > { %12869 = vrcp.f32 %v7597_v11  ;;  %v12634_v11 = vld [vmem:[%s16935_s2 + $0x1898] ss:$28 sps:$4 sm:$0xff]  }
 0x33c   : > { %10939 = vmatpush3.bf16.msra.mxu1 %v12569_v61  ;;  %v12618_v61 = vld [vmem:[%s16935_s2 + $0x17f0] ss:$28 sps:$4 sm:$0xff]  }
 0x33d   : > { %7131 = vmatpush1.bf16.msra.mxu0 %v12375_v21  ;;  %10940 = vmatprep.subr.bf16.mxu1 %v12573_v0  ;;  %v12588_v21 = vld [vmem:[%s16935_s2 + $0x14e0] ss:$28 sps:$4 sm:$0xff]   ;;  %v12467_v0 = vld [vmem:[%s16935_s2 + $0x1434] ss:$28 sps:$4 sm:$0xff]  }
 0x33e   : > { %7132 = vmatprep.subr.bf16.mxu0 %v12382_v49  ;;  %v12589_v49 = vld [vmem:[%s16935_s2 + $0x1320] ss:$28 sps:$4 sm:$0xff]  }
 0x341   : > { %7133 = vmatpush1.bf16.msra.mxu0 %v12380_v24  ;;  %v12593_v24 = vld [vmem:[%s16935_s2 + $0x16d8] ss:$28 sps:$4 sm:$0xff]  }
 0x342   : > { %7134 = vmatprep.subr.bf16.mxu0 %v12387_v27  ;;  %v12594_v27 = vld [vmem:[%s16935_s2 + $0x1518] ss:$28 sps:$4 sm:$0xff]  }
 0x345   : > { %7135 = vmatpush1.bf16.msra.mxu0 %v12385_v16  ;;  %v12442_v16 = vld [vmem:[%s16935_s2 + $0x131c] ss:$28 sps:$4 sm:$0xff]  }
 0x346   : > { %7136 = vmatprep.subr.bf16.mxu0 %v12392_v29  ;;  %v12598_v29 = vld [vmem:[%s16935_s2 + $0x1710] ss:$28 sps:$4 sm:$0xff]  }
 0x349   : > { %7137 = vmatpush1.bf16.msra.mxu0 %v12390_v31  ;;  %v12870_v31 = vpop.eup %12869 }
 0x34a   : > { %7138 = vmatprep.subr.bf16.mxu0 %v12397_v35  ;;  %v12440_v35 = vld [vmem:[%s16935_s2 + $0x1318] ss:$28 sps:$4 sm:$0xff]  }
 0x34d   : > { %7139 = vmatpush1.bf16.msra.mxu0 %v12395_v42  ;;  %v12603_v42 = vld [vmem:[%s16935_s2 + $0x1748] ss:$28 sps:$4 sm:$0xff]  }
 0x34e   : > { %7140 = vmatprep.subr.bf16.mxu0 %v12402_v46  ;;  %v12445_v46 = vld [vmem:[%s16935_s2 + $0x1350] ss:$28 sps:$4 sm:$0xff]  }
 0x351   : > { %7141 = vmatpush1.bf16.msra.mxu0 %v12400_v6  ;;  %v12609_v6 = vld [vmem:[%s16935_s2 + $0x15c0] ss:$28 sps:$4 sm:$0xff]  }
 0x352   : > { %7151 = vmatprep.subr.bf16.mxu0 %v12407_v54  ;;  %v12457_v54 = vld [vmem:[%s16935_s2 + $0x13c4] ss:$28 sps:$4 sm:$0xff]  }
 0x354   : > { %7143 = vmatmul.mubr.bf16.vlgmr.msra.gmra.mrb[4].mxu0 %v14181_v45  ;;  %v12574_v45 = vld [vmem:[%s16935_s2 + $0x1278] ss:$28 sps:$4 sm:$0xff]  }
 0x355   : > { %7152 = vmatpush1.bf16.msra.mxu0 %v12405_v56  ;;  %7183 = vmatprep.mubr.bf16.mxu0 %v14192_v50  ;;  %v12415_v50 = vld [vmem:[%s16935_s2 + $0x1200] ss:$28 sps:$4 sm:$0xff]  }
 0x356   : > { %7153 = vmatprep.subr.bf16.mxu0 %v12412_v57  ;;  %10941 = vmatpush3.bf16.msra.mxu1 %v12574_v45  ;;  %v12455_v56 = vld [vmem:[%s16935_s2 + $0x13c0] ss:$28 sps:$4 sm:$0xff]   ;;  %v12623_v45 = vld [vmem:[%s16935_s2 + $0x1828] ss:$28 sps:$4 sm:$0xff]  }
 0x357   : > { %10942 = vmatprep.subr.bf16.mxu1 %v12578_v2  ;;  %v12472_v2 = vld [vmem:[%s16935_s2 + $0x146c] ss:$28 sps:$4 sm:$0xff]  }
 0x359   : > { %7154 = vmatpush1.bf16.msra.mxu0 %v12410_v63  ;;  %v12619_v63 = vld [vmem:[%s16935_s2 + $0x1630] ss:$28 sps:$4 sm:$0xff]  }
 0x35a   : > { %7155 = vmatprep.subr.bf16.mxu0 %v12417_v37  ;;  %10943 = vmatpush3.bf16.msra.mxu1 %v12579_v17  ;;  %v12460_v37 = vld [vmem:[%s16935_s2 + $0x13f8] ss:$28 sps:$4 sm:$0xff]   ;;  %v12628_v17 = vld [vmem:[%s16935_s2 + $0x1860] ss:$28 sps:$4 sm:$0xff]  }
 0x35b   : > { %10944 = vmatprep.subr.bf16.mxu1 %v12583_v10  ;;  %v12633_v10 = vld [vmem:[%s16935_s2 + $0x1a58] ss:$28 sps:$4 sm:$0xff]  }
 0x35d   : > { %7156 = vmatpush1.bf16.msra.mxu0 %v12415_v50  ;;  %v12624_v50 = vld [vmem:[%s16935_s2 + $0x1668] ss:$28 sps:$4 sm:$0xff]  }
 0x35e   : > { %7157 = vmatprep.subr.bf16.mxu0 %v12422_v41  ;;  %10945 = vmatpush3.bf16.msra.mxu1 %v12584_v13  ;;  %v12465_v41 = vld [vmem:[%s16935_s2 + $0x1430] ss:$28 sps:$4 sm:$0xff]   ;;  %v12475_v13 = vld [vmem:[%s16935_s2 + $0x14a0] ss:$28 sps:$4 sm:$0xff]  }
 0x35f   : > { %10946 = vmatprep.subr.bf16.mxu1 %v12588_v21  ;;  %v12639_v21 = vld [vmem:[%s16935_s2 + $0x18d0] ss:$28 sps:$4 sm:$0xff]  }
 0x361   : > { %7158 = vmatpush1.bf16.msra.mxu0 %v12420_v7  ;;  %v12470_v7 = vld [vmem:[%s16935_s2 + $0x1468] ss:$28 sps:$4 sm:$0xff]  }
 0x362   : > { %7159 = vmatprep.subr.bf16.mxu0 %v12427_v9  ;;  %10947 = vmatpush3.bf16.msra.mxu1 %v12589_v49  ;;  %v12477_v9 = vld [vmem:[%s16935_s2 + $0x14a4] ss:$28 sps:$4 sm:$0xff]   ;;  %v12480_v49 = vld [vmem:[%s16935_s2 + $0x14d8] ss:$28 sps:$4 sm:$0xff]  }
 0x363   : > { %10954 = vmatprep.subr.bf16.mxu1 %v12593_v24  ;;  %v12644_v24 = vld [vmem:[%s16935_s2 + $0x1908] ss:$28 sps:$4 sm:$0xff]  }
 0x365   : > { %7160 = vmatpush1.bf16.msra.mxu0 %v12425_v14  ;;  %7507 = vmatmul.mubr.bf16.vlgmr.msra.gmra.mrb[24].mxu1 %v14391_v20  ;;  %v12482_v14 = vld [vmem:[%s16935_s2 + $0x14dc] ss:$28 sps:$4 sm:$0xff]  }
 0x366   : > { %7161 = vmatprep.subr.bf16.mxu0 %v12432_v18  ;;  %10955 = vmatpush3.bf16.msra.mxu1 %v12594_v27  ;;  %v12638_v18 = vld [vmem:[%s16935_s2 + $0x1a90] ss:$28 sps:$4 sm:$0xff]  }
 0x367   : > { %7546 = vmatprep.mubr.bf16.mxu1 %v14399_v23  ;;  %10956 = vmatprep.subr.bf16.mxu1 %v12598_v29  ;;  %v12485_v27 = vld [vmem:[%s16935_s2 + $0x1510] ss:$28 sps:$4 sm:$0xff]   ;;  %v12647_v29 = vld [vmem:[%s16935_s2 + $0x1b38] ss:$28 sps:$4 sm:$0xff]  }
 0x368   : > { %v7617_v26 = vpop.permute.xlu0 %7616 }
 0x369   : > { %7162 = vmatpush1.bf16.msra.mxu0 %v12430_v22  ;;  %v12487_v22 = vld [vmem:[%s16935_s2 + $0x1514] ss:$28 sps:$4 sm:$0xff]  }
 0x36a   : > { %7163 = vmatprep.subr.bf16.mxu0 %v12437_v53  ;;  %10957 = vmatpush3.bf16.msra.mxu1 %v12599_v30  ;;  %v12643_v53 = vld [vmem:[%s16935_s2 + $0x1ac8] ss:$28 sps:$4 sm:$0xff]  }
 0x36b   : > { %10958 = vmatprep.subr.bf16.mxu1 %v12603_v42  ;;  %v12490_v30 = vld [vmem:[%s16935_s2 + $0x1548] ss:$28 sps:$4 sm:$0xff]   ;;  %v12507_v42 = vld [vmem:[%s16935_s2 + $0x15f4] ss:$28 sps:$4 sm:$0xff]  }
 0x36c   : > { %v7619_v48 = vpop.permute.xlu0 %7618 }
 0x36d   : > { %v7621_v32 = vsel %vm7620_vm0, %v7617_v26, %v7619_v48  ;;  %7164 = vmatpush1.bf16.msra.mxu0 %v12435_v28  ;;  %v12492_v26 = vld [vmem:[%s16935_s2 + $0x154c] ss:$28 sps:$4 sm:$0xff]   ;;  %v12645_v28 = vld [vmem:[%s16935_s2 + $0x1b00] ss:$28 sps:$4 sm:$0xff]  }
 0x36e   : > { %v7623_v38 = vmul.f32 %v12870_v31, %v7621_v32  ;;  %7165 = vmatprep.subr.bf16.mxu0 %v12442_v16  ;;  %10959 = vmatpush3.bf16.msra.mxu1 %v12604_v43  ;;  %v12646_v16 = vld [vmem:[%s16935_s2 + $0x1940] ss:$28 sps:$4 sm:$0xff]   ;;  %v12649_v31 = vld [vmem:[%s16935_s2 + $0x1b70] ss:$28 sps:$4 sm:$0xff]   ;;  %v12652_v43 = vld [vmem:[%s16935_s2 + $0x19e8] ss:$28 sps:$4 sm:$0xff]  }
 0x36f   : > { %10960 = vmatprep.subr.bf16.mxu1 %v12608_v3  ;;  %v12497_v48 = vld [vmem:[%s16935_s2 + $0x1584] ss:$28 sps:$4 sm:$0xff]   ;;  %v12502_v32 = vld [vmem:[%s16935_s2 + $0x15bc] ss:$28 sps:$4 sm:$0xff]   ;;  %v12512_v3 = vld [vmem:[%s16935_s2 + $0x162c] ss:$28 sps:$4 sm:$0xff]  }
 0x370   : > { %12871 = vtanh.f32 %v7623_v38  ;;  %v12651_v38 = vld [vmem:[%s16935_s2 + $0x1ba8] ss:$28 sps:$4 sm:$0xff]  }
 0x371   : > { %7166 = vmatpush1.bf16.msra.mxu0 %v12440_v35  ;;  %v12650_v35 = vld [vmem:[%s16935_s2 + $0x19b0] ss:$28 sps:$4 sm:$0xff]  }
 0x372   : > { %7167 = vmatprep.subr.bf16.mxu0 %v12447_v40  ;;  %10961 = vmatpush3.bf16.msra.mxu1 %v12609_v6  ;;  %v12500_v40 = vld [vmem:[%s16935_s2 + $0x15b8] ss:$28 sps:$4 sm:$0xff]   ;;  %v12654_v6 = vld [vmem:[%s16935_s2 + $0x1a20] ss:$28 sps:$4 sm:$0xff]  }
 0x373   : > { %10962 = vmatprep.subr.bf16.mxu1 %v12613_v52  ;;  %v12515_v52 = vld [vmem:[%s16935_s2 + $0x1660] ss:$28 sps:$4 sm:$0xff]  }
 0x375   : > { %7168 = vmatpush1.bf16.msra.mxu0 %v12445_v46  ;;  %v12653_v46 = vld [vmem:[%s16935_s2 + $0x1be0] ss:$28 sps:$4 sm:$0xff]  }
 0x376   : > { %7169 = vmatprep.subr.bf16.mxu0 %v12452_v47  ;;  %10963 = vmatpush3.bf16.msra.mxu1 %v12614_v55  ;;  %v12505_v47 = vld [vmem:[%s16935_s2 + $0x15f0] ss:$28 sps:$4 sm:$0xff]   ;;  %v12522_v55 = vld [vmem:[%s16935_s2 + $0x169c] ss:$28 sps:$4 sm:$0xff]  }
 0x377   : > { %10964 = vmatprep.subr.bf16.mxu1 %v12618_v61  ;;  %v12532_v61 = vld [vmem:[%s16935_s2 + $0x170c] ss:$28 sps:$4 sm:$0xff]  }
 0x379   : > { %7170 = vmatpush1.bf16.msra.mxu0 %v12450_v51  ;;  %v12510_v51 = vld [vmem:[%s16935_s2 + $0x1628] ss:$28 sps:$4 sm:$0xff]  }
 0x37a   : > { %v12872_v57 = vpop.eup %12871  ;;  %7171 = vmatprep.subr.bf16.mxu0 %v12457_v54  ;;  %10965 = vmatpush3.bf16.msra.mxu1 %v12619_v63  ;;  %v12517_v54 = vld [vmem:[%s16935_s2 + $0x1664] ss:$28 sps:$4 sm:$0xff]  }
 0x37b   : > { %7626 = vrot.lane.b32.xlu0 %v12872_v57, %s16954_s30  ;;  %10966 = vmatprep.subr.bf16.mxu1 %v12623_v45  ;;  %v12527_v57 = vld [vmem:[%s16935_s2 + $0x16d4] ss:$28 sps:$4 sm:$0xff]   ;;  %v12530_v63 = vld [vmem:[%s16935_s2 + $0x1708] ss:$28 sps:$4 sm:$0xff]   ;;  %v12542_v45 = vld [vmem:[%s16935_s2 + $0x177c] ss:$28 sps:$4 sm:$0xff]  }
 0x37d   : > { %7172 = vmatpush1.bf16.msra.mxu0 %v12455_v56  ;;  %v12520_v56 = vld [vmem:[%s16935_s2 + $0x1698] ss:$28 sps:$4 sm:$0xff]  }
 0x37e   : > { %7173 = vmatprep.subr.bf16.mxu0 %v12462_v59  ;;  %10967 = vmatpush3.bf16.msra.mxu1 %v12624_v50  ;;  %v12525_v59 = vld [vmem:[%s16935_s2 + $0x16d0] ss:$28 sps:$4 sm:$0xff]   ;;  %v12540_v50 = vld [vmem:[%s16935_s2 + $0x1778] ss:$28 sps:$4 sm:$0xff]  }
 0x37f   : > { %10968 = vmatprep.subr.bf16.mxu1 %v12628_v17  ;;  %v12552_v17 = vld [vmem:[%s16935_s2 + $0x17ec] ss:$28 sps:$4 sm:$0xff]  }
 0x381   : > { %7174 = vmatpush1.bf16.msra.mxu0 %v12460_v37  ;;  %v12537_v37 = vld [vmem:[%s16935_s2 + $0x1744] ss:$28 sps:$4 sm:$0xff]  }
 0x382   : > { %7175 = vmatprep.subr.bf16.mxu0 %v12467_v0  ;;  %10969 = vmatpush3.bf16.msra.mxu1 %v12629_v5  ;;  %v12535_v0 = vld [vmem:[%s16935_s2 + $0x1740] ss:$28 sps:$4 sm:$0xff]   ;;  %v12550_v5 = vld [vmem:[%s16935_s2 + $0x17e8] ss:$28 sps:$4 sm:$0xff]  }
 0x383   : > { %10976 = vmatprep.subr.bf16.mxu1 %v12633_v10  ;;  %v12555_v10 = vld [vmem:[%s16935_s2 + $0x1820] ss:$28 sps:$4 sm:$0xff]  }
 0x385   : > { %7176 = vmatpush1.bf16.msra.mxu0 %v12465_v41  ;;  %7547 = vmatmul.mubr.bf16.vlgmr.msra.gmra.mrb[28].mxu1 %v14596_v60  ;;  %v12547_v41 = vld [vmem:[%s16935_s2 + $0x17b4] ss:$28 sps:$4 sm:$0xff]  }
 0x386   : > { %7177 = vmatprep.subr.bf16.mxu0 %v12472_v2  ;;  %10977 = vmatpush3.bf16.msra.mxu1 %v12634_v11  ;;  %v12545_v2 = vld [vmem:[%s16935_s2 + $0x17b0] ss:$28 sps:$4 sm:$0xff]  }
 0x387   : > { %7586 = vmatprep.mubr.bf16.mxu1 %v14607_v8  ;;  %10978 = vmatprep.subr.bf16.mxu1 %v12638_v18 }
 0x389   : > { %7178 = vmatpush1.bf16.msra.mxu0 %v12470_v7  ;;  %v6270_v7 = vrot.slane %v15217_v58, %v13324_v4  ;;  %v12560_v58 = vld [vmem:[%s16935_s2 + $0x1858] ss:$28 sps:$4 sm:$0xff]  }
 0x38a   : > { %7179 = vmatprep.subr.bf16.mxu0 %v12477_v9  ;;  %10979 = vmatpush3.bf16.msra.mxu1 %v12639_v21  ;;  %v12557_v9 = vld [vmem:[%s16935_s2 + $0x1824] ss:$28 sps:$4 sm:$0xff]   ;;  %v12567_v21 = vld [vmem:[%s16935_s2 + $0x1894] ss:$28 sps:$4 sm:$0xff]  }
 0x38b   : > { %10980 = vmatprep.subr.bf16.mxu1 %v12643_v53  ;;  %v11222_v11 = vadd.f32 %v15258_v12, %v6270_v7  ;;  %v12565_v12 = vld [vmem:[%s16935_s2 + $0x1890] ss:$28 sps:$4 sm:$0xff]   ;;  %v12575_v53 = vld [vmem:[%s16935_s2 + $0x1900] ss:$28 sps:$4 sm:$0xff]   ;;  %v12620_v7 = vld [vmem:[%s16935_s2 + $0x1af8] ss:$28 sps:$4 sm:$0xff]  }
 0x38d   : > { %7180 = vmatpush1.bf16.msra.mxu0 %v12475_v13  ;;  %v12562_v13 = vld [vmem:[%s16935_s2 + $0x185c] ss:$28 sps:$4 sm:$0xff]   ;;  %v10642_v18 = vmul.f32 -1.442695, %v11222_v11  ;;  %v12632_v11 = vld [vmem:[%s16935_s2 + $0x1b6c] ss:$28 sps:$4 sm:$0xff]  }
 0x38e   : > { %7181 = vmatprep.subr.bf16.mxu0 %v12482_v14  ;;  %10981 = vmatpush3.bf16.msra.mxu1 %v12644_v24  ;;  %v10641_v14 = vmul.f32 -1.442695, %v15256_v25  ;;  %v12572_v25 = vld [vmem:[%s16935_s2 + $0x18cc] ss:$28 sps:$4 sm:$0xff]  }
 0x38f   : > { %10982 = vmatprep.subr.bf16.mxu1 %v12645_v28  ;;  %v12587_v28 = vld [vmem:[%s16935_s2 + $0x1974] ss:$28 sps:$4 sm:$0xff]  }
 0x390   : > { %12873 = vpow2.f32 %v10641_v14  ;;  %v12637_v14 = vld [vmem:[%s16935_s2 + $0x1ba4] ss:$28 sps:$4 sm:$0xff]  }
 0x391   : > { %7182 = vmatpush1.bf16.msra.mxu0 %v12480_v49  ;;  %12875 = vpow2.f32 %v10642_v18  ;;  %v12570_v49 = vld [vmem:[%s16935_s2 + $0x18c8] ss:$28 sps:$4 sm:$0xff]   ;;  %v12642_v18 = vld [vmem:[%s16935_s2 + $0x1bdc] ss:$28 sps:$4 sm:$0xff]  }
 0x392   : > { %7192 = vmatprep.subr.bf16.mxu0 %v12487_v22  ;;  %10983 = vmatpush3.bf16.msra.mxu1 %v12646_v16  ;;  %v12577_v22 = vld [vmem:[%s16935_s2 + $0x1904] ss:$28 sps:$4 sm:$0xff]  }
 0x393   : > { %10984 = vmatprep.subr.bf16.mxu1 %v12647_v29  ;;  %v12585_v29 = vld [vmem:[%s16935_s2 + $0x1970] ss:$28 sps:$4 sm:$0xff]  }
 0x394   : > { %7184 = vmatmul.mubr.bf16.vlgmr.msra.gmra.mrb[4].mxu0 %v14391_v20  ;;  %v12648_v20 = vld [vmem:[%s16935_s2 + $0x1978] ss:$28 sps:$4 sm:$0xff]  }
 0x395   : > { %7193 = vmatpush1.bf16.msra.mxu0 %v12485_v27  ;;  %7224 = vmatprep.mubr.bf16.mxu0 %v14399_v23  ;;  %v12495_v23 = vld [vmem:[%s16935_s2 + $0x1580] ss:$28 sps:$4 sm:$0xff]  }
 0x396   : > { %7194 = vmatprep.subr.bf16.mxu0 %v12492_v26  ;;  %10985 = vmatpush3.bf16.msra.mxu1 %v12648_v20  ;;  %v10838_v20 = vpop.f32.mrb[4].mxu1 }
 0x397   : > { %10986 = vmatprep.subr.bf16.mxu1 %v12649_v31  ;;  %v15949_v31 = vld [vmem:[%s16936_s3] sm:$0x7f] }
 0x399   : > { %7195 = vmatpush1.bf16.msra.mxu0 %v12490_v30  ;;  %v12592_v30 = vld [vmem:[%s16935_s2 + $0x19ac] ss:$28 sps:$4 sm:$0xff]  }
 0x39a   : > { %7196 = vmatprep.subr.bf16.mxu0 %v12497_v48  ;;  %10987 = vmatpush3.bf16.msra.mxu1 %v12650_v35  ;;  %v12874_v24 = vpop.eup %12873  ;;  %v12590_v48 = vld [vmem:[%s16935_s2 + $0x19a8] ss:$28 sps:$4 sm:$0xff]   ;;  %v10839_v35 = vpop.f32.mrb[5].mxu1 }
 0x39b   : > { %10988 = vmatprep.subr.bf16.mxu1 %v12651_v38  ;;  %v12876_v27 = vpop.eup %12875  ;;  %v7608_v26 = vadd.f32 1.0, %v12874_v24  ;;  %v10840_v38 = vadd.f32 %v10839_v35, %v10838_v20 }
 0x39c   : > { %v7609_v16 = vadd.f32 1.0, %v12876_v27 }
 0x39d   : > { %7197 = vmatpush1.bf16.msra.mxu0 %v12495_v23  ;;  %12877 = vrcp.f32 %v7608_v26  ;;  %v6282_v23 = vrot.slane %v15949_v31, %v13947_v62  ;;  %v12602_v62 = vld [vmem:[%s16935_s2 + $0x1a1c] ss:$28 sps:$4 sm:$0xff]  }
 0x39e   : > { %7198 = vmatprep.subr.bf16.mxu0 %v12502_v32  ;;  %10989 = vmatpush3.bf16.msra.mxu1 %v12652_v43  ;;  %12879 = vrcp.f32 %v7609_v16  ;;  %v12597_v32 = vld [vmem:[%s16935_s2 + $0x19e4] ss:$28 sps:$4 sm:$0xff]  }
 0x39f   : > { %10990 = vmatprep.subr.bf16.mxu1 %v12653_v46  ;;  %v12595_v43 = vld [vmem:[%s16935_s2 + $0x19e0] ss:$28 sps:$4 sm:$0xff]   ;;  %v7309_v46 = vadd.f32 %v10840_v38, %v6282_v23 }
 0x3a1   : > { %7199 = vmatpush1.bf16.msra.mxu0 %v12500_v40  ;;  %v10841_v40 = vpop.f32.mrb[6].mxu1 }
 0x3a2   : > { %7200 = vmatprep.subr.bf16.mxu0 %v12507_v42  ;;  %10991 = vmatpush3.bf16.msra.mxu1 %v12654_v6  ;;  %v10842_v42 = vpop.f32.mrb[7].mxu1 }
 0x3a5   : > { %7201 = vmatpush1.bf16.msra.mxu0 %v12505_v47  ;;  %7587 = vmatmul.mubr.bf16.vlgmr.msra.gmra.mrb[32].mxu1 %v14795_v36  ;;  %v10860_v47 = vpop.f32.mrb[8].mxu1 }
 0x3a6   : > { %7202 = vmatprep.subr.bf16.mxu0 %v12512_v3  ;;  %v10861_v3 = vpop.f32.mrb[9].mxu1 }
 0x3a7   : > { %v10862_v6 = vadd.f32 %v10861_v3, %v10860_v47 }
 0x3a9   : > { %7203 = vmatpush1.bf16.msra.mxu0 %v12510_v51  ;;  %v10863_v51 = vpop.f32.mrb[10].mxu1 }
 0x3aa   : > { %7204 = vmatprep.subr.bf16.mxu0 %v12517_v54  ;;  %v12878_v54 = vpop.eup %12877 }
 0x3ad   : > { %7205 = vmatpush1.bf16.msra.mxu0 %v12515_v52  ;;  %v10864_v52 = vpop.f32.mrb[11].mxu1 }
 0x3ae   : > { %7206 = vmatprep.subr.bf16.mxu0 %v12522_v55  ;;  %v15962_v55 = vpop.eup %12879 }
 0x3b1   : > { %7207 = vmatpush1.bf16.msra.mxu0 %v12520_v56 }
 0x3b2   : > { %7208 = vmatprep.subr.bf16.mxu0 %v12527_v57  ;;  %v12600_v57 = vld [vmem:[%s16935_s2 + $0x1a18] ss:$28 sps:$4 sm:$0xff]  }
 0x3b5   : > { %7209 = vmatpush1.bf16.msra.mxu0 %v12525_v59  ;;  %v7349_v59 = vadd.f32 %v10862_v6, %v7309_v46 }
 0x3b6   : > { %7210 = vmatprep.subr.bf16.mxu0 %v12532_v61 }
 0x3b9   : > { %7211 = vmatpush1.bf16.msra.mxu0 %v12530_v63 }
 0x3ba   : > { %7212 = vmatprep.subr.bf16.mxu0 %v12537_v37  ;;  %v12607_v37 = vld [vmem:[%s16935_s2 + $0x1a54] ss:$28 sps:$4 sm:$0xff]  }
 0x3bd   : > { %7213 = vmatpush1.bf16.msra.mxu0 %v12535_v0 }
 0x3be   : > { %7214 = vmatprep.subr.bf16.mxu0 %v12542_v45  ;;  %v12605_v45 = vld [vmem:[%s16935_s2 + $0x1a50] ss:$28 sps:$4 sm:$0xff]  }
 0x3c1   : > { %7215 = vmatpush1.bf16.msra.mxu0 %v12540_v50  ;;  %v12612_v50 = vld [vmem:[%s16935_s2 + $0x1a8c] ss:$28 sps:$4 sm:$0xff]  }
 0x3c2   : > { %7216 = vmatprep.subr.bf16.mxu0 %v12547_v41  ;;  %v12610_v41 = vld [vmem:[%s16935_s2 + $0x1a88] ss:$28 sps:$4 sm:$0xff]  }
 0x3c5   : > { %7217 = vmatpush1.bf16.msra.mxu0 %v12545_v2  ;;  %v12617_v2 = vld [vmem:[%s16935_s2 + $0x1ac4] ss:$28 sps:$4 sm:$0xff]  }
 0x3c6   : > { %7218 = vmatprep.subr.bf16.mxu0 %v12552_v17  ;;  %v12615_v17 = vld [vmem:[%s16935_s2 + $0x1ac0] ss:$28 sps:$4 sm:$0xff]  }
 0x3c9   : > { %7219 = vmatpush1.bf16.msra.mxu0 %v12550_v5  ;;  %v12622_v5 = vld [vmem:[%s16935_s2 + $0x1afc] ss:$28 sps:$4 sm:$0xff]  }
 0x3ca   : > { %7220 = vmatprep.subr.bf16.mxu0 %v12557_v9  ;;  %v12627_v9 = vld [vmem:[%s16935_s2 + $0x1b34] ss:$28 sps:$4 sm:$0xff]  }
 0x3cd   : > { %7221 = vmatpush1.bf16.msra.mxu0 %v12555_v10  ;;  %v12625_v10 = vld [vmem:[%s16935_s2 + $0x1b30] ss:$28 sps:$4 sm:$0xff]  }
 0x3ce   : > { %7222 = vmatprep.subr.bf16.mxu0 %v12562_v13  ;;  %v12630_v13 = vld [vmem:[%s16935_s2 + $0x1b68] ss:$28 sps:$4 sm:$0xff]  }
 0x3d1   : > { %7223 = vmatpush1.bf16.msra.mxu0 %v12560_v58  ;;  %v12635_v58 = vld [vmem:[%s16935_s2 + $0x1ba0] ss:$28 sps:$4 sm:$0xff]  }
 0x3d2   : > { %7233 = vmatprep.subr.bf16.mxu0 %v12567_v21  ;;  %v12640_v21 = vld [vmem:[%s16935_s2 + $0x1bd8] ss:$28 sps:$4 sm:$0xff]  }
 0x3d4   : > { %7225 = vmatmul.mubr.bf16.vlgmr.msra.gmra.mrb[4].mxu0 %v14596_v60  ;;  %v12582_v60 = vld [vmem:[%s16935_s2 + $0x193c] ss:$28 sps:$4 sm:$0xff]  }
 0x3d5   : > { %7234 = vmatpush1.bf16.msra.mxu0 %v12565_v12  ;;  %7265 = vmatprep.mubr.bf16.mxu0 %v14607_v8  ;;  %v12580_v8 = vld [vmem:[%s16935_s2 + $0x1938] ss:$28 sps:$4 sm:$0xff]   ;;  %v10882_v12 = vpop.f32.mrb[12].mxu1 }
 0x3d6   : > { %7235 = vmatprep.subr.bf16.mxu0 %v12572_v25  ;;  %v10883_v25 = vpop.f32.mrb[13].mxu1 }
 0x3d9   : > { %7236 = vmatpush1.bf16.msra.mxu0 %v12570_v49  ;;  %v10885_v49 = vpop.f32.mrb[14].mxu1 }
 0x3da   : > { %7237 = vmatprep.subr.bf16.mxu0 %v12577_v22  ;;  %v10886_v22 = vpop.f32.mrb[15].mxu1 }
 0x3dd   : > { %7238 = vmatpush1.bf16.msra.mxu0 %v12575_v53 }
 0x3de   : > { %7239 = vmatprep.subr.bf16.mxu0 %v12582_v60 }
 0x3e1   : > { %7240 = vmatpush1.bf16.msra.mxu0 %v12580_v8 }
 0x3e2   : > { %7241 = vmatprep.subr.bf16.mxu0 %v12587_v28  ;;  %v10904_v53 = vpop.f32.mrb[16].mxu1 }
 0x3e3   : > { %v10905_v60 = vpop.f32.mrb[17].mxu1 }
 0x3e4   : > { %v10907_v24 = vpop.f32.mrb[18].mxu1  ;;  %v10906_v23 = vadd.f32 %v10905_v60, %v10904_v53 }
 0x3e5   : > { %7242 = vmatpush1.bf16.msra.mxu0 %v12585_v29  ;;  %v10908_v27 = vpop.f32.mrb[19].mxu1  ;;  %v10884_v29 = vadd.f32 %v10883_v25, %v10882_v12 }
 0x3e6   : > { %7243 = vmatprep.subr.bf16.mxu0 %v12592_v30  ;;  %v7681_v27 = vld [vmem:[%s16937_s4] sm:$0xff] }
 0x3e7   : > { %v7389_v20 = vadd.f32 %v10884_v29, %v7349_v59  ;;  %v7685_v29 = vld [vmem:[%s16937_s4 + $0x20] sm:$0xff] }
 0x3e9   : > { %7244 = vmatpush1.bf16.msra.mxu0 %v12590_v48 }
 0x3ea   : > { %7245 = vmatprep.subr.bf16.mxu0 %v12597_v32 }
 0x3ed   : > { %7246 = vmatpush1.bf16.msra.mxu0 %v12595_v43  ;;  %v7627_v56 = vpop.permute.xlu0 %7626 }
 0x3ee   : > { %v7629_v61 = vmul.f32 %v12878_v54, %v7627_v56  ;;  %v7630_v63 = vmul.f32 %v15962_v55, %v7627_v56  ;;  %7247 = vmatprep.subr.bf16.mxu0 %v12602_v62 }
 0x3f0   : > { %v11370_v0 = vpack.i.bf16 %v7630_v63, %v7629_v61  ;;  %v6274_v63 = vrot.slane %v15949_v31, %v13735_v33 }
 0x3f1   : > { %7248 = vmatpush1.bf16.msra.mxu0 %v12600_v57 }
 0x3f2   : > { %11371 = vrot.lane.b32.xlu0 %v11370_v0, %s12973_s22  ;;  %7249 = vmatprep.subr.bf16.mxu0 %v12607_v37  ;;  %v6278_v37 = vrot.slane %v15949_v31, %v13534_v19  ;;  %v12974_v19 = vmov 0.0|0.0   ;;  %v7831_v31 = vld [vmem:[%s516_s18] sm:$0xff]  ;;  %s519_s22 = scalar_lea.vmem %s16947_s14, %s13220_s16 }
 0x3f3   : > { %11145 = vmatprep.subr.bf16.mxu1 %v12974_v19 }
 0x3f5   : > { %7250 = vmatpush1.bf16.msra.mxu0 %v12605_v45 }
 0x3f6   : > { %7251 = vmatprep.subr.bf16.mxu0 %v12612_v50 }
 0x3f9   : > { %7252 = vmatpush1.bf16.msra.mxu0 %v12610_v41 }
 0x3fa   : > { %7253 = vmatprep.subr.bf16.mxu0 %v12617_v2 }
 0x3fd   : > { %7254 = vmatpush1.bf16.msra.mxu0 %v12615_v17 }
 0x3fe   : > { %7255 = vmatprep.subr.bf16.mxu0 %v12622_v5 }
 0x401   : > { %7256 = vmatpush1.bf16.msra.mxu0 %v12620_v7 }
 0x402   : > { %7257 = vmatprep.subr.bf16.mxu0 %v12627_v9  ;;  %v10926_v8 = vpop.f32.mrb[20].mxu1  ;;  %v7832_v9 = vld [vmem:[%s516_s18 + $0x8] sm:$0xff] }
 0x403   : > { %v10927_v26 = vpop.f32.mrb[21].mxu1 }
 0x404   : > { %v10929_v28 = vpop.f32.mrb[22].mxu1  ;;  %v10928_v38 = vadd.f32 %v10927_v26, %v10926_v8  ;;  %v7682_v8 = vld [vmem:[%s16937_s4 + $0x8] sm:$0xff]  ;;  %v7683_v26 = vld [vmem:[%s16937_s4 + $0x10] sm:$0xff] }
 0x405   : > { %7258 = vmatpush1.bf16.msra.mxu0 %v12625_v10  ;;  %v10930_v16 = vpop.f32.mrb[23].mxu1  ;;  %v12976_v10 = vmov 0.0   ;;  %v11146_v28 = vpack.c.bf16 %v7682_v8, %v7681_v27 }
 0x406   : > { %7259 = vmatprep.subr.bf16.mxu0 %v12632_v11  ;;  %v16037_v11 = vand.u32 127, %v525_v34  ;;  %v7684_v16 = vld [vmem:[%s16937_s4 + $0x18] sm:$0xff] }
 0x407   : > { %11147 = vmatpush1.bf16.msra.mxu1 %v11146_v28 }
 0x408   : > { %11148 = vmatprep.subr.bf16.mxu1 %v12974_v19 }
 0x409   : > { %7260 = vmatpush1.bf16.msra.mxu0 %v12630_v13  ;;  %v16040_v13 = vadd.s32 4294967294, %v13229_v39 }
 0x40a   : > { %7261 = vmatprep.subr.bf16.mxu0 %v12637_v14  ;;  %v16043_v14 = vadd.s32 8, %v13229_v39 }
 0x40b   : > { %vm7810_vm2 = vcmp.eq.s32.totalorder %v16040_v13, %v16037_v11 }
 0x40c   : > { %v16056_v34 = vsel %vm7810_vm2, 1.0, %v12976_v10 }
 0x40d   : > { %7262 = vmatpush1.bf16.msra.mxu0 %v12635_v58  ;;  %v11182_v58 = vpack.c.bf16 %v7832_v9, %v7831_v31 }
 0x40e   : > { %7263 = vmatprep.subr.bf16.mxu0 %v12642_v18  ;;  %v7804_v18 = vadd.s32 16, %v13229_v39 }
 0x410   : > { %v16060_v12 = vadd.s32 4294967294, %v7804_v18 }
 0x411   : > { %7264 = vmatpush1.bf16.msra.mxu0 %v12640_v21  ;;  %v16050_v21 = vadd.s32 4294967294, %v16043_v14 }
 0x412   : > { %11181 = vmatprep.subr.bf16.mxu0 %v12974_v19  ;;  %vm7812_vm5 = vcmp.eq.s32.totalorder %v16060_v12, %v16037_v11 }
 0x413   : > { %vm7811_vm4 = vcmp.eq.s32.totalorder %v16050_v21, %v16037_v11  ;;  %v16083_v49 = vsel %vm7812_vm5, 1.0, %v12976_v10 }
 0x414   : > { %7266 = vmatmul.mubr.bf16.vlgmr.msra.gmra.mrb[4].mxu0 %v14795_v36  ;;  %v7429_v36 = vadd.f32 %v10906_v23, %v7389_v20  ;;  %v16071_v25 = vsel %vm7811_vm4, 1.0, %v12976_v10  ;;  %v7687_v20 = vld [vmem:[%s16937_s4 + $0x30] sm:$0xff]  ;;  %v7688_v23 = vld [vmem:[%s16937_s4 + $0x38] sm:$0xff] }
 0x415   : > { %11103 = vmatprep.mubr.msk.f32.mxu0 %vm12975_vm1, %v12976_v10  ;;  %11183 = vmatpush3.bf16.msra.mxu0 %v11182_v58 }
 0x416   : > { %v7469_v43 = vadd.f32 %v10928_v38, %v7429_v36  ;;  %11184 = vmatprep.subr.bf16.mxu0 %v12974_v19  ;;  %v7689_v36 = vld [vmem:[%s16937_s4 + $0x40] sm:$0xff]  ;;  %v7690_v38 = vld [vmem:[%s16937_s4 + $0x48] sm:$0xff] }
 0x41c   : > { %11104 = vmatmul.mubr.msk.f32.vlgmr.msra.gmra.mrb[8].mxu0 %vm7820_vm3, %v16056_v34 }
 0x41d   : > { %11106 = vmatprep.mubr.msk.f32.mxu0 %vm12975_vm1, %v12976_v10 }
 0x420   : > { %11107 = vmatmul.mubr.msk.f32.gmra.mrb[10].mxu0 %vm7820_vm3, %v16071_v25 }
 0x421   : > { %11109 = vmatprep.mubr.msk.f32.mxu0 %vm12975_vm1, %v12976_v10 }
 0x424   : > { %11110 = vmatmul.mubr.msk.f32.gmra.mrb[12].mxu0 %vm7820_vm3, %v16083_v49 }
 0x425   : > { %11136 = vmatprep.mubr.msk.f32.mxu0 %vm12975_vm1, %v12976_v10 }
 0x438   : > { %v10948_v30 = vpop.f32.mrb[24].mxu1 }
 0x439   : > { %v10949_v48 = vpop.f32.mrb[25].mxu1 }
 0x43a   : > { %v10951_v32 = vpop.f32.mrb[26].mxu1  ;;  %v10950_v46 = vadd.f32 %v10949_v48, %v10948_v30  ;;  %v7686_v30 = vld [vmem:[%s16937_s4 + $0x28] sm:$0xff] }
 0x43b   : > { %v10952_v35 = vpop.f32.mrb[27].mxu1  ;;  %v11152_v48 = vpack.c.bf16 %v7686_v30, %v7685_v29 }
 0x43c   : > { %v7509_v6 = vadd.f32 %v10950_v46, %v7469_v43  ;;  %v11155_v35 = vpack.c.bf16 %v7688_v23, %v7687_v20  ;;  %v7692_v43 = vld [vmem:[%s16937_s4 + $0x58] sm:$0xff] }
 0x458   : > { %v10970_v40 = vpop.f32.mrb[28].mxu1 }
 0x459   : > { %v10971_v42 = vpop.f32.mrb[29].mxu1 }
 0x45a   : > { %v10973_v47 = vpop.f32.mrb[30].mxu1  ;;  %v10972_v62 = vadd.f32 %v10971_v42, %v10970_v40  ;;  %v11158_v40 = vpack.c.bf16 %v7690_v38, %v7689_v36  ;;  %v7691_v42 = vld [vmem:[%s16937_s4 + $0x50] sm:$0xff] }
 0x45b   : > { %v10974_v3 = vpop.f32.mrb[31].mxu1  ;;  %v11161_v46 = vpack.c.bf16 %v7692_v43, %v7691_v42  ;;  %v7693_v47 = vld [vmem:[%s16937_s4 + $0x60] sm:$0xff] }
 0x45c   : > { %v7549_v51 = vadd.f32 %v10972_v62, %v7509_v6  ;;  %v7694_v62 = vld [vmem:[%s16937_s4 + $0x68] sm:$0xff]  ;;  %v7695_v6 = vld [vmem:[%s16937_s4 + $0x70] sm:$0xff] }
 0x45d   : > { %v11164_v3 = vpack.c.bf16 %v7694_v62, %v7693_v47 }
 0x478   : > { %v10992_v54 = vpop.f32.mrb[32].mxu1 }
 0x479   : > { %v10993_v52 = vpop.f32.mrb[33].mxu1 }
 0x47a   : > { %v10994_v56 = vadd.f32 %v10993_v52, %v10992_v54  ;;  %v10995_v57 = vpop.f32.mrb[34].mxu1  ;;  %v7697_v52 = vld [vmem:[%s16937_s4 + $0x80] sm:$0xff] }
 0x47b   : > { %v10996_v61 = vpop.f32.mrb[35].mxu1 }
 0x47c   : > { %v16017_v59 = vadd.f32 %v10994_v56, %v7549_v51  ;;  %v7696_v51 = vld [vmem:[%s16937_s4 + $0x78] sm:$0xff]  ;;  %v7698_v56 = vld [vmem:[%s16937_s4 + $0x88] sm:$0xff]  ;;  %v7699_v61 = vld [vmem:[%s16937_s4 + $0x90] sm:$0xff] }
 0x47d   : > { %v11167_v54 = vpack.c.bf16 %v7696_v51, %v7695_v6  ;;  %v11170_v57 = vpack.c.bf16 %v7698_v56, %v7697_v52 }
 0x4e7   : > { %v7267_v0 = vpop.f32.mrb[4].mxu0 }
 0x4e8   : > { %v11223_v45 = vadd.f32 %v7267_v0, %v6274_v63  ;;  %v7269_v50 = vpop.f32.mrb[5].mxu0  ;;  %v7700_v63 = vld [vmem:[%s16937_s4 + $0x98] sm:$0xff]  ;;  %v7701_v0 = vld [vmem:[%s16937_s4 + $0xa0] sm:$0xff] }
 0x4e9   : > { %v7271_v41 = vpop.f32.mrb[6].mxu0  ;;  %v16023_v2 = vadd.f32 %v7269_v50, %v6278_v37  ;;  %v11173_v37 = vpack.c.bf16 %v7700_v63, %v7699_v61 }
 0x4ea   : > { %12881 = vtanh.f32 %v11223_v45  ;;  %v7272_v17 = vpop.f32.mrb[7].mxu0  ;;  %v7702_v45 = vld [vmem:[%s16937_s4 + $0xa8] sm:$0xff]  ;;  %v7703_v41 = vld [vmem:[%s16937_s4 + $0xb0] sm:$0xff] }
 0x4eb   : > { %12883 = vtanh.f32 %v16023_v2  ;;  %v11176_v50 = vpack.c.bf16 %v7702_v45, %v7701_v0  ;;  %v7704_v17 = vld [vmem:[%s16937_s4 + $0xb8] sm:$0xff]  ;;  %v10643_v31 = vmul.f32 -1.442695, %v16023_v2  ;;  %v11372_v45 = vpop.permute.xlu0 %11371 }
 0x4ef   : > { %v16184_v8 = vpop.f32.mrb[8].mxu0 }
 0x4f0   : > { %v7948_v38 = vrot.slane %v16184_v8, 3  ;;  %v7940_v43 = vrot.slane %v16184_v8, 2  ;;  %v7956_v56 = vrot.slane %v16184_v8, 4 }
 0x4f4   : > { %v12882_v5 = vpop.eup %12881 }
 0x4f5   : > { %7647 = vrot.lane.b32.xlu1 %v12882_v5, %s12971_s27  ;;  %v12884_v7 = vpop.eup %12883  ;;  %v11179_v5 = vpack.c.bf16 %v7704_v17, %v7703_v41  ;;  %v11373_v41 = vunpack.i.l.bf16 %v11372_v45 }
 0x4f9   : > { %7649 = vrot.lane.b32.xlu1 %v12884_v7, %s12971_s27  ;;  %v10644_v7 = vmul.f32 -1.442695, %v16017_v59  ;;  %s12978_s27 = smov 16  }
 0x567   : > { %v7648_v22 = vpop.permute.xlu1 %7647 }
 0x56b   : > { %v7650_v53 = vpop.permute.xlu1 %7649 }
 0x56c   : > { %v7651_v60 = vsel %vm7620_vm0, %v7648_v22, %v7650_v53  ;;  %v7705_v53 = vld [vmem:[%s16937_s4 + $0xc0] sm:$0xff] }
 0x56d   : > { %v7653_v24 = vmul.f32 %v15962_v55, %v7651_v60  ;;  %v11149_v55 = vpack.c.bf16 %v7684_v16, %v7683_v26  ;;  %v11105_v26 = vpop.f32.mrb[9].mxu0 }
 0x56e   : > { %v16186_v28 = vpop.f32.mrb[10].mxu0  ;;  %v12666_v26 = vld [vmem:[%s16939_s6 + $0x28] sm:$0xff]  }
 0x56f   : > { %12885 = vtanh.f32 %v7653_v24  ;;  %11150 = vmatpush1.bf16.msra.mxu1 %v11149_v55  ;;  %v11108_v16 = vpop.f32.mrb[11].mxu0  ;;  %v7932_v55 = vrot.slane %v16184_v8, 1  ;;  %v7933_v29 = vrot.slane %v16186_v28, 1  ;;  %v7963_v36 = vpack.c.bf16 %v16186_v28, %v16184_v8  ;;  %v12677_v8 = vld [vmem:[%s16939_s6 + $0xd8] sm:$0xff]  }
 0x570   : > { %11151 = vmatprep.subr.bf16.mxu1 %v12974_v19  ;;  %12887 = vpow2.f32 %v10644_v7  ;;  %v7924_v30 = vpop.f32.mrb[12].mxu0  ;;  %v12667_v16 = vld [vmem:[%s16939_s6 + $0x70] sm:$0xff]  }
 0x571   : > { %12889 = vpow2.f32 %v10643_v31  ;;  %v11111_v20 = vpop.f32.mrb[13].mxu0  ;;  %v7934_v23 = vsel %vm7931_vm6, %v7932_v55, %v7933_v29  ;;  %v7951_v42 = vrot.slane %v7924_v30, 3  ;;  %v7943_v47 = vrot.slane %v7924_v30, 2  ;;  %v12656_v31 = vld [vmem:[%s16939_s6] sm:$0xff]   ;;  %v12668_v55 = vld [vmem:[%s16939_s6 + $0x30] sm:$0xff]  }
 0x572   : > { %v7959_v61 = vrot.slane %v7924_v30, 4  ;;  %v12672_v20 = vld [vmem:[%s16939_s6 + $0x80] sm:$0xff]  }
 0x573   : > { %11153 = vmatpush1.bf16.msra.mxu1 %v11152_v48  ;;  %v7935_v48 = vrot.slane %v7924_v30, 1  ;;  %v12670_v30 = vld [vmem:[%s16939_s6 + $0x38] sm:$0xff]  }
 0x574   : > { %11154 = vmatprep.subr.bf16.mxu1 %v12974_v19 }
 0x577   : > { %11156 = vmatpush1.bf16.msra.mxu1 %v11155_v35 }
 0x578   : > { %11157 = vmatprep.subr.bf16.mxu1 %v12974_v19 }
 0x579   : > { %v12886_v32 = vpop.eup %12885 }
 0x57a   : > { %7656 = vrot.lane.b32.xlu1 %v12886_v32, %s16964_s25  ;;  %v12888_v9 = vpop.eup %12887  ;;  %v7936_v32 = vsel %vm7931_vm6, %v7933_v29, %v7935_v48  ;;  %v12669_v29 = vld [vmem:[%s16939_s6 + $0x78] sm:$0xff]   ;;  %v12671_v48 = vld [vmem:[%s16939_s6 + $0xc0] sm:$0xff]  }
 0x57b   : > { %11159 = vmatpush1.bf16.msra.mxu1 %v11158_v40  ;;  %v12890_v58 = vpop.eup %12889  ;;  %v7640_v18 = vadd.f32 1.0, %v12888_v9  ;;  %v7964_v35 = vpack.c.bf16 %v7936_v32, %v7934_v23  ;;  %v7949_v40 = vrot.slane %v16186_v28, 3  ;;  %v12673_v23 = vld [vmem:[%s16939_s6 + $0xc8] sm:$0xff]  }
 0x57c   : > { %11160 = vmatprep.subr.bf16.mxu1 %v12974_v19  ;;  %v7639_v22 = vadd.f32 1.0, %v12890_v58  ;;  %v12674_v32 = vld [vmem:[%s16939_s6 + $0x88] sm:$0xff]  }
 0x57d   : > { %12891 = vrcp.f32 %v7640_v18  ;;  %v16199_v62 = vsel %vm7947_vm7, %v7948_v38, %v7949_v40  ;;  %v12657_v18 = vld [vmem:[%s16939_s6 + $0x48] sm:$0xff]   ;;  %v12676_v38 = vld [vmem:[%s16939_s6 + $0x90] sm:$0xff]  }
 0x57e   : > { %12893 = vrcp.f32 %v7639_v22  ;;  %v12658_v22 = vld [vmem:[%s16939_s6 + $0x8] sm:$0xff]  }
 0x57f   : > { %11162 = vmatpush1.bf16.msra.mxu1 %v11161_v46  ;;  %v7941_v46 = vrot.slane %v16186_v28, 2 }
 0x580   : > { %11163 = vmatprep.subr.bf16.mxu1 %v12974_v19 }
 0x581   : > { %v16207_v51 = vsel %vm7939_vm8, %v7940_v43, %v7941_v46  ;;  %v12682_v43 = vld [vmem:[%s16939_s6 + $0xa8] sm:$0xff]  }
 0x583   : > { %11165 = vmatpush1.bf16.msra.mxu1 %v11164_v3  ;;  %v16202_v3 = vsel %vm7947_vm7, %v7949_v40, %v7951_v42  ;;  %v12680_v40 = vld [vmem:[%s16939_s6 + $0xa0] sm:$0xff]   ;;  %v12681_v42 = vld [vmem:[%s16939_s6 + $0xe8] sm:$0xff]  }
 0x584   : > { %11166 = vmatprep.subr.bf16.mxu1 %v12974_v19  ;;  %v7966_v6 = vpack.c.bf16 %v16202_v3, %v16199_v62  ;;  %v12685_v62 = vld [vmem:[%s16939_s6 + $0xf8] sm:$0xff]  }
 0x585   : > { %v12686_v3 = vld [vmem:[%s16939_s6 + $0xb8] sm:$0xff]  }
 0x587   : > { %11168 = vmatpush1.bf16.msra.mxu1 %v11167_v54  ;;  %v12892_v59 = vpop.eup %12891  ;;  %v16210_v54 = vsel %vm7939_vm8, %v7941_v46, %v7943_v47  ;;  %v12683_v46 = vld [vmem:[%s16939_s6 + $0xf0] sm:$0xff]  }
 0x588   : > { %11169 = vmatprep.subr.bf16.mxu1 %v12974_v19  ;;  %v12894_v2 = vpop.eup %12893  ;;  %v7965_v52 = vpack.c.bf16 %v16210_v54, %v16207_v51  ;;  %v12684_v47 = vld [vmem:[%s16939_s6 + $0xb0] sm:$0xff]   ;;  %v12690_v51 = vld [vmem:[%s16939_s6 + $0x118] sm:$0xff]   ;;  %v12691_v54 = vld [vmem:[%s16939_s6 + $0x120] sm:$0xff]  }
 0x58b   : > { %11171 = vmatpush1.bf16.msra.mxu1 %v11170_v57  ;;  %v7957_v57 = vrot.slane %v16186_v28, 4  ;;  %v12678_v28 = vld [vmem:[%s16939_s6 + $0x98] sm:$0xff]  }
 0x58c   : > { %11172 = vmatprep.subr.bf16.mxu1 %v12974_v19 }
 0x58d   : > { %v16217_v63 = vsel %vm7955_vm9, %v7956_v56, %v7957_v57  ;;  %v12688_v56 = vld [vmem:[%s16939_s6 + $0x108] sm:$0xff]  }
 0x58f   : > { %11174 = vmatpush1.bf16.msra.mxu1 %v11173_v37  ;;  %v16220_v37 = vsel %vm7955_vm9, %v7957_v57, %v7959_v61  ;;  %v12689_v57 = vld [vmem:[%s16939_s6 + $0x110] sm:$0xff]  }
 0x590   : > { %11175 = vmatprep.subr.bf16.mxu1 %v12974_v19  ;;  %v7967_v0 = vpack.c.bf16 %v16220_v37, %v16217_v63  ;;  %v12693_v61 = vld [vmem:[%s16939_s6 + $0x130] sm:$0xff]  }
 0x593   : > { %11177 = vmatpush1.bf16.msra.mxu1 %v11176_v50  ;;  %v11374_v50 = vunpack.i.h.bf16 %v11372_v45  ;;  %v12694_v45 = vld [vmem:[%s16939_s6 + $0x138] sm:$0xff]  }
 0x594   : > { %11178 = vmatprep.subr.bf16.mxu1 %v12974_v19  ;;  %v12655_v19 = vld [vmem:[%s16939_s6 + $0x40] sm:$0xff]  }
 0x597   : > { %11180 = vmatpush1.bf16.msra.mxu1 %v11179_v5  ;;  %v7668_v5 = vsel %vm7667_vm10, %v11373_v41, %v11374_v50 }
 0x598   : > { %7757 = vmatprep.subr.mxu1 %v12976_v10 }
 0x59b   : > { %7758 = vmatpush1.msra.mxu1 %v7705_v53  ;;  %v12659_v53 = vld [vmem:[%s16939_s6 + $0x50] sm:$0xff]  }
 0x59c   : > { %11003 = vmatprep.subr.bf16.mxu1 %v12655_v19  ;;  %v12660_v19 = vld [vmem:[%s16939_s6 + $0x10] sm:$0xff]  }
 0x5ec   : > { %v7657_v60 = vpop.permute.xlu1 %7656 }
 0x5ed   : > { %v7659_v24 = vmul.f32 %v12894_v2, %v7657_v60  ;;  %v7660_v27 = vmul.f32 %v12892_v59, %v7657_v60  ;;  %v12661_v59 = vld [vmem:[%s16939_s6 + $0x58] sm:$0xff]   ;;  %v12663_v60 = vld [vmem:[%s16939_s6 + $0x60] sm:$0xff]  }
 0x5ee   : > { %v12662_v2 = vld [vmem:[%s16939_s6 + $0x18] sm:$0xff]  }
 0x5ef   : > { %7672 = vrot.lane.b32.xlu1 %v7659_v24, %s12977_s17  ;;  %7674 = vrot.lane.b32.xlu0 %v7660_v27, %s12977_s17  ;;  %v12664_v24 = vld [vmem:[%s16939_s6 + $0x20] sm:$0xff]   ;;  %v12665_v27 = vld [vmem:[%s16939_s6 + $0x68] sm:$0xff]   ;;  %s507_s17 = scalar_lea.vmem [#allocation3], %s506_s0 }
 0x5f0   : > { %s9651_s18 = sshll.u32 %s507_s17, 4  ;;  %s16893_s18 = int_to_ptr.vmem [resolvable:$true] %s9651_s18 }
 0x5f1   : > { %s12907_s30 = scalar_lea.vmem %s16893_s18, 16 }
 0x5f2   : > { %p12908_p11 = scmp.ne.s32.totalorder %s16893_s18, %s12907_s30 }
 0x5f4   : > { %p12909_p12 = pnand %p12908_p11, %p13103_p5 }
 0x5f6   : > { %p12910_p13 = pneg %p12909_p12 }
 0x661   : > { %v7673_v17 = vpop.permute.xlu1 %7672  ;;  %v7675_v7 = vpop.permute.xlu0 %7674 }
 0x662   : > { %v7680_v9 = vsel %vm7679_vm11, %v7668_v5, %v7673_v17  ;;  %v7677_v58 = vsel %vm7676_vm12, %v7673_v17, %v7675_v7 }
 0x663   : > { %10645 = vmatprep.mubr.msk.f32.mxu1 %vm7706_vm13, %v7677_v58 }
 0x664   : > { %7774 = vmatmul.mubr.f32.vlgmr.msra.gmra.mrb[36].mxu1 %v7680_v9 }
 0x665   : > { %11004 = vmatpush3.bf16.msra.mxu1 %v12656_v31  ;;  %8327 = vmatprep.mubr.bf16.mxu1 %v7964_v35  ;;  %v12675_v35 = vld [vmem:[%s16939_s6 + $0xd0] sm:$0xff]  }
 0x666   : > { %11005 = vmatprep.subr.bf16.mxu1 %v12657_v18 }
 0x669   : > { %11006 = vmatpush3.bf16.msra.mxu1 %v12658_v22 }
 0x66a   : > { %11007 = vmatprep.subr.bf16.mxu1 %v12659_v53 }
 0x66d   : > { %11008 = vmatpush3.bf16.msra.mxu1 %v12660_v19 }
 0x66e   : > { %11009 = vmatprep.subr.bf16.mxu1 %v12661_v59 }
 0x671   : > { %11010 = vmatpush3.bf16.msra.mxu1 %v12662_v2 }
 0x672   : > { %11011 = vmatprep.subr.bf16.mxu1 %v12663_v60 }
 0x675   : > { %11012 = vmatpush3.bf16.msra.mxu1 %v12664_v24 }
 0x676   : > { %11013 = vmatprep.subr.bf16.mxu1 %v12665_v27 }
 0x679   : > { %11014 = vmatpush3.bf16.msra.mxu1 %v12666_v26 }
 0x67a   : > { %11015 = vmatprep.subr.bf16.mxu1 %v12667_v16 }
 0x67d   : > { %11016 = vmatpush3.bf16.msra.mxu1 %v12668_v55 }
 0x67e   : > { %11017 = vmatprep.subr.bf16.mxu1 %v12669_v29  ;;  %v8048_v29 = vld [vmem:[%s16940_s7] sm:$0x1f] }
 0x681   : > { %11018 = vmatpush3.bf16.msra.mxu1 %v12670_v30  ;;  %v8052_v30 = vrot.slane %v8048_v29, %v13315_v1 }
 0x682   : > { %11025 = vmatprep.subr.bf16.mxu1 %v12671_v48  ;;  %v8421_v48 = vrot.slane %v8048_v29, %v13252_v44 }
 0x684   : > { %8328 = vmatmul.mubr.bf16.vlgmr.msra.gmra.mrb[40].mxu1 %v7963_v36  ;;  %v12679_v36 = vld [vmem:[%s16939_s6 + $0xe0] sm:$0xff]  }
 0x685   : > { %11026 = vmatpush3.bf16.msra.mxu1 %v12672_v20  ;;  %8368 = vmatprep.mubr.bf16.mxu1 %v7966_v6  ;;  %v12687_v6 = vld [vmem:[%s16939_s6 + $0x100] sm:$0xff]   ;;  %v8440_v20 = vrot.slane %v8048_v29, %v13525_v15 }
 0x686   : > { %11027 = vmatprep.subr.bf16.mxu1 %v12673_v23  ;;  %v8459_v23 = vrot.slane %v8048_v29, %v13324_v4 }
 0x689   : > { %11028 = vmatpush3.bf16.msra.mxu1 %v12674_v32  ;;  %v8478_v32 = vrot.slane %v8048_v29, %v13735_v33 }
 0x68a   : > { %11029 = vmatprep.subr.bf16.mxu1 %v12675_v35 }
 0x68d   : > { %11030 = vmatpush3.bf16.msra.mxu1 %v12676_v38 }
 0x68e   : > { %11031 = vmatprep.subr.bf16.mxu1 %v12677_v8 }
 0x691   : > { %11032 = vmatpush3.bf16.msra.mxu1 %v12678_v28 }
 0x692   : > { %11033 = vmatprep.subr.bf16.mxu1 %v12679_v36 }
 0x695   : > { %11034 = vmatpush3.bf16.msra.mxu1 %v12680_v40 }
 0x696   : > { %11035 = vmatprep.subr.bf16.mxu1 %v12681_v42 }
 0x699   : > { %11036 = vmatpush3.bf16.msra.mxu1 %v12682_v43 }
 0x69a   : > { %11037 = vmatprep.subr.bf16.mxu1 %v12683_v46 }
 0x69d   : > { %11038 = vmatpush3.bf16.msra.mxu1 %v12684_v47 }
 0x69e   : > { %11039 = vmatprep.subr.bf16.mxu1 %v12685_v62 }
 0x6a1   : > { %11040 = vmatpush3.bf16.msra.mxu1 %v12686_v3 }
 0x6a2   : > { %11112 = vmatprep.subr.bf16.mxu1 %v12976_v10 }
 0x6a4   : > { %8369 = vmatmul.mubr.bf16.vlgmr.msra.gmra.mrb[44].mxu1 %v7965_v52  ;;  %v12692_v52 = vld [vmem:[%s16939_s6 + $0x128] sm:$0xff]  }
 0x6a5   : > { %11113 = vmatpush3.bf16.msra.mxu1 %v12687_v6  ;;  %11128 = vmatprep.mubr.msk.bf16.mxu1 %vm12975_vm1, %v12976_v10 }
 0x6a6   : > { %11114 = vmatprep.subr.bf16.mxu1 %v12976_v10 }
 0x6a9   : > { %11115 = vmatpush3.bf16.msra.mxu1 %v12688_v56 }
 0x6aa   : > { %11116 = vmatprep.subr.bf16.mxu1 %v12976_v10 }
 0x6ad   : > { %11117 = vmatpush3.bf16.msra.mxu1 %v12689_v57 }
 0x6ae   : > { %11118 = vmatprep.subr.bf16.mxu1 %v12976_v10 }
 0x6b1   : > { %11119 = vmatpush3.bf16.msra.mxu1 %v12690_v51 }
 0x6b2   : > { %11120 = vmatprep.subr.bf16.mxu1 %v12976_v10 }
 0x6b5   : > { %11121 = vmatpush3.bf16.msra.mxu1 %v12691_v54 }
 0x6b6   : > { %11122 = vmatprep.subr.bf16.mxu1 %v12976_v10 }
 0x6b9   : > { %11123 = vmatpush3.bf16.msra.mxu1 %v12692_v52 }
 0x6ba   : > { %11124 = vmatprep.subr.bf16.mxu1 %v12976_v10 }
 0x6bd   : > { %11125 = vmatpush3.bf16.msra.mxu1 %v12693_v61 }
 0x6be   : > { %11126 = vmatprep.subr.bf16.mxu1 %v12976_v10 }
 0x6c1   : > { %11127 = vmatpush3.bf16.msra.mxu1 %v12694_v45 }
 0x6c4   : > { %11129 = vmatmul.mubr.bf16.vlgmr.msra.gmra.mrb[48].mxu1 %v7967_v0  ;;  %v10646_v0 = vld [vmem:[#allocation2] ss:$0 sm:$0xff] }
 0x737   : > { %v16360_v50 = vpop.f32.mrb[36].mxu1 }
 0x738   : > { %v7816_v41 = vrot.slane %v16360_v50, %v13315_v1  ;;  %v7777_v17 = vpop.f32.mrb[37].mxu1 }
 0x73a   : > { %v7818_v5 = vsel %vm7811_vm4, %v7816_v41, 0.0  ;;  %v7817_v7 = vsel %vm7810_vm2, %v7816_v41, 0.0  ;;  %v7819_v63 = vsel %vm7812_vm5, %v7816_v41, 0.0 }
 0x73b   : > { %v7824_v31 = vsel %vm7820_vm3, %v7818_v5, 0.0  ;;  %v7821_v9 = vsel %vm7820_vm3, %v7817_v7, 0.0  ;;  %v7828_v37 = vsel %vm7827_vm14, %v7819_v63, 0.0 }
 0x73c   : > { %7825 = vadd.xlane.f32.xlu0 %v7824_v31  ;;  %7822 = vadd.xlane.f32.xlu1 %v7821_v9 }
 0x740   : > { %7829 = vadd.xlane.f32.xlu0 %v7828_v37 }
 0x74d   : > { %7785 = vrot.lane.b32.xlu1 %v10646_v0, %s12978_s27 }
 0x757   : > { %v11019_v21 = vpop.f32.mrb[40].mxu1 }
 0x758   : > { %v11020_v58 = vpop.f32.mrb[41].mxu1 }
 0x759   : > { %v11021_v13 = vadd.f32 %v11020_v58, %v11019_v21  ;;  %v11022_v18 = vpop.f32.mrb[42].mxu1 }
 0x75a   : > { %v11023_v22 = vpop.f32.mrb[43].mxu1 }
 0x75b   : > { %v11024_v53 = vadd.f32 %v11023_v22, %v11022_v18 }
 0x777   : > { %v11041_v19 = vpop.f32.mrb[44].mxu1 }
 0x778   : > { %v11042_v59 = vpop.f32.mrb[45].mxu1 }
 0x779   : > { %v11043_v2 = vadd.f32 %v11042_v59, %v11041_v19  ;;  %v11044_v60 = vpop.f32.mrb[46].mxu1 }
 0x77a   : > { %v11045_v24 = vpop.f32.mrb[47].mxu1 }
 0x77b   : > { %v11046_v27 = vadd.f32 %v11045_v24, %v11044_v60 }
 0x797   : > { %v8411_v12 = vpop.f32.mrb[48].mxu1 }
 0x798   : > { %v11130_v26 = vpop.f32.mrb[49].mxu1 }
 0x799   : > { %v8414_v16 = vpop.f32.mrb[50].mxu1 }
 0x79a   : > { %v11131_v55 = vpop.f32.mrb[51].mxu1 }
 0x7c9   : > { %v7826_v35 = vpop.xlane.xlu0 %7825  ;;  %v7823_v38 = vpop.xlane.xlu1 %7822 }
 0x7ca   : > { %v8054_v8 = vmul.f32 %v8052_v30, %v7826_v35  ;;  %v8423_v28 = vmul.f32 %v8421_v48, %v7826_v35  ;;  %v8442_v36 = vmul.f32 %v8440_v20, %v7826_v35  ;;  %v8461_v40 = vmul.f32 %v8459_v23, %v7826_v35 }
 0x7cb   : > { %v8053_v42 = vmul.f32 %v8052_v30, %v7823_v38  ;;  %v8422_v43 = vmul.f32 %v8421_v48, %v7823_v38  ;;  %v8441_v46 = vmul.f32 %v8440_v20, %v7823_v38  ;;  %v8480_v62 = vmul.f32 %v8478_v32, %v7826_v35 }
 0x7cc   : > { %v8333_v47 = vadd.f32 %v11024_v53, %v8054_v8  ;;  %v8429_v3 = vrot.slane %v8423_v28, 1  ;;  %v8448_v6 = vrot.slane %v8442_v36, 2  ;;  %v8460_v4 = vmul.f32 %v8459_v23, %v7823_v38 }
 0x7cd   : > { %v8330_v56 = vadd.f32 %v11021_v13, %v8053_v42  ;;  %v7830_v57 = vpop.xlane.xlu0 %7829  ;;  %v8428_v51 = vrot.slane %v8422_v43, 1  ;;  %v8467_v33 = vrot.slane %v8461_v40, 3  ;;  %v8447_v61 = vrot.slane %v8441_v46, 2  ;;  %v7786_v41 = vpop.permute.xlu1 %7785  ;;  %v12695_v43 = vld [vmem:[%s16942_s9] ss:$8 sps:$4 sm:$0xff]  }
 0x7ce   : > { %v8374_v15 = vadd.f32 %v11046_v27, %v8333_v47  ;;  %v8424_v54 = vmul.f32 %v8421_v48, %v7830_v57  ;;  %v8443_v45 = vmul.f32 %v8440_v20, %v7830_v57  ;;  %v8486_v17 = vrot.slane %v8480_v62, 4  ;;  %v10697_v20 = vld [vmem:[%s16941_s8] ss:$0 sm:$0xff]  ;;  %v12697_v46 = vld [vmem:[%s16942_s9 + $0x4] ss:$8 sps:$4 sm:$0xff]  }
 0x7cf   : > { %v8371_v52 = vadd.f32 %v11043_v2, %v8330_v56  ;;  %v8479_v5 = vmul.f32 %v8478_v32, %v7823_v38  ;;  %v8462_v37 = vmul.f32 %v8459_v23, %v7830_v57  ;;  %v8481_v0 = vmul.f32 %v8478_v32, %v7830_v57  ;;  %v12700_v47 = vld [vmem:[%s16942_s9 + $0x14] ss:$8 sps:$4 sm:$0xff]   ;;  %9113 = vmatprep.subr.bf16.mxu1 %v12697_v46  ;;  %v12698_v62 = vld [vmem:[%s16942_s9 + $0x10] ss:$8 sps:$4 sm:$0xff]   ;;  %v12709_v57 = vld [vmem:[%s16942_s9 + $0x44] ss:$8 sps:$4 sm:$0xff]  }
 0x7d0   : > { %v8415_v7 = vadd.f32 %v8414_v16, %v8374_v15  ;;  %v8431_v31 = vrot.slane %v8424_v54, 1  ;;  %v8450_v63 = vrot.slane %v8443_v45, 2  ;;  %v8430_v21 = vsel %vm7931_vm6, %v8428_v51, %v8429_v3  ;;  %9114 = vmatpush1.bf16.msra.mxu1 %v12695_v43  ;;  %v12710_v15 = vld [vmem:[%s16942_s9 + $0x50] ss:$8 sps:$4 sm:$0xff]   ;;  %v12715_v51 = vld [vmem:[%s16942_s9 + $0x64] ss:$8 sps:$4 sm:$0xff]  }
 0x7d1   : > { %v8412_v9 = vadd.f32 %v8411_v12, %v8371_v52  ;;  %v8466_v58 = vrot.slane %v8460_v4, 3  ;;  %v7788_v18 = vadd.f32 %v7786_v41, %v16360_v50  ;;  %v8449_v53 = vsel %vm7939_vm8, %v8447_v61, %v8448_v6  ;;  %9115 = vmatprep.subr.bf16.mxu1 %v12700_v47  ;;  %v12713_v4 = vld [vmem:[%s16942_s9 + $0x60] ss:$8 sps:$4 sm:$0xff]   ;;  %v12718_v54 = vld [vmem:[%s16942_s9 + $0x74] ss:$8 sps:$4 sm:$0xff]  }
 0x7d2   : > { %v8432_v13 = vsel %vm7931_vm6, %v8429_v3, %v8431_v31  ;;  %v8469_v59 = vrot.slane %v8462_v37, 3  ;;  %v8485_v2 = vrot.slane %v8479_v5, 4  ;;  %v8451_v60 = vsel %vm7939_vm8, %v8448_v6, %v8450_v63  ;;  %v12703_v3 = vld [vmem:[%s16942_s9 + $0x24] ss:$8 sps:$4 sm:$0xff]   ;;  %v12706_v6 = vld [vmem:[%s16942_s9 + $0x34] ss:$8 sps:$4 sm:$0xff]  }
 0x7d3   : > { %v8435_v22 = vadd.f32 %v8430_v21, %v8412_v9  ;;  %v8436_v19 = vadd.f32 %v8432_v13, %v8415_v7  ;;  %v8488_v24 = vrot.slane %v8481_v0, 4  ;;  %v10647_v27 = vmul.f32 -1.442695, %v7788_v18  ;;  %v12721_v52 = vld [vmem:[%s16942_s9 + $0x84] ss:$8 sps:$4 sm:$0xff]  }
 0x7d4   : > { %v8468_v16 = vsel %vm7947_vm7, %v8466_v58, %v8467_v33  ;;  %v8470_v55 = vsel %vm7947_vm7, %v8467_v33, %v8469_v59  ;;  %v8487_v48 = vsel %vm7955_vm9, %v8485_v2, %v8486_v17  ;;  %9116 = vmatpush1.bf16.msra.mxu1 %v12698_v62  ;;  %v12716_v33 = vld [vmem:[%s16942_s9 + $0x70] ss:$8 sps:$4 sm:$0xff]   ;;  %v12719_v61 = vld [vmem:[%s16942_s9 + $0x80] ss:$8 sps:$4 sm:$0xff]   ;;  %v12724_v45 = vld [vmem:[%s16942_s9 + $0x94] ss:$8 sps:$4 sm:$0xff]  }
 0x7d5   : > { %v8454_v12 = vadd.f32 %v8449_v53, %v8435_v22  ;;  %v8455_v26 = vadd.f32 %v8451_v60, %v8436_v19  ;;  %12895 = vpow2.f32 %v10647_v27  ;;  %v8489_v50 = vsel %vm7955_vm9, %v8486_v17, %v8488_v24  ;;  %9117 = vmatprep.subr.bf16.mxu1 %v12703_v3  ;;  %v12722_v41 = vld [vmem:[%s16942_s9 + $0x90] ss:$8 sps:$4 sm:$0xff]   ;;  %v12727_v17 = vld [vmem:[%s16942_s9 + $0xa4] ss:$8 sps:$4 sm:$0xff]   ;;  %v12725_v5 = vld [vmem:[%s16942_s9 + $0xa0] ss:$8 sps:$4 sm:$0xff]  }
 0x7d6   : > { %v12730_v7 = vld [vmem:[%s16942_s9 + $0xb4] ss:$8 sps:$4 sm:$0xff]   ;;  %v12728_v31 = vld [vmem:[%s16942_s9 + $0xb0] ss:$8 sps:$4 sm:$0xff]   ;;  %v12733_v9 = vld [vmem:[%s16942_s9 + $0xc4] ss:$8 sps:$4 sm:$0xff]  }
 0x7d7   : > { %v8474_v29 = vadd.f32 %v8470_v55, %v8455_v26  ;;  %v8473_v30 = vadd.f32 %v8468_v16, %v8454_v12  ;;  %v12731_v63 = vld [vmem:[%s16942_s9 + $0xc0] ss:$8 sps:$4 sm:$0xff]   ;;  %v12736_v37 = vld [vmem:[%s16942_s9 + $0xd4] ss:$8 sps:$4 sm:$0xff]   ;;  %v12734_v0 = vld [vmem:[%s16942_s9 + $0xd0] ss:$8 sps:$4 sm:$0xff]  }
 0x7d8   : > { %v12737_v21 = vld [vmem:[%s16942_s9 + $0xe0] ss:$8 sps:$4 sm:$0xff]   ;;  %v12739_v58 = vld [vmem:[%s16942_s9 + $0xe4] ss:$8 sps:$4 sm:$0xff]   ;;  %v12740_v13 = vld [vmem:[%s16942_s9 + $0xf0] ss:$8 sps:$4 sm:$0xff]  }
 0x7d9   : > { %v8493_v23 = vadd.f32 %v8489_v50, %v8474_v29  ;;  %v8492_v32 = vadd.f32 %v8487_v48, %v8473_v30  ;;  %v12742_v18 = vld [vmem:[%s16942_s9 + $0xf4] ss:$8 sps:$4 sm:$0xff]   ;;  %v12745_v22 = vld [vmem:[%s16942_s9 + $0x104] ss:$8 sps:$4 sm:$0xff]   ;;  %v12815_v19 = vld [vmem:[%s16944_s11] ss:$8 sps:$4 sm:$0xff]  }
 0x7da   : > { %v12817_v59 = vld [vmem:[%s16944_s11 + $0x4] ss:$8 sps:$4 sm:$0xff]   ;;  %v12820_v2 = vld [vmem:[%s16944_s11 + $0x14] ss:$8 sps:$4 sm:$0xff]   ;;  %v12818_v60 = vld [vmem:[%s16944_s11 + $0x10] ss:$8 sps:$4 sm:$0xff]  }
 0x7db   : > { %v8501_v35 = vadd.f32 %v10697_v20, %v8492_v32  ;;  %v8502_v38 = vadd.f32 %v10697_v20, %v8493_v23  ;;  %v12823_v24 = vld [vmem:[%s16944_s11 + $0x24] ss:$8 sps:$4 sm:$0xff]   ;;  %v12821_v27 = vld [vmem:[%s16944_s11 + $0x20] ss:$8 sps:$4 sm:$0xff]   ;;  %v12826_v12 = vld [vmem:[%s16944_s11 + $0x34] ss:$8 sps:$4 sm:$0xff]  }
 0x7dc   : > { %v12824_v26 = vld [vmem:[%s16944_s11 + $0x30] ss:$8 sps:$4 sm:$0xff]   ;;  %v12829_v16 = vld [vmem:[%s16944_s11 + $0x44] ss:$8 sps:$4 sm:$0xff]   ;;  %v12827_v55 = vld [vmem:[%s16944_s11 + $0x40] ss:$8 sps:$4 sm:$0xff]  }
 0x7dd   : > { %v8503_v8 = vmax.f32 %v8501_v35, 0.0  ;;  %v8504_v28 = vmax.f32 %v8502_v38, 0.0  ;;  %v12832_v29 = vld [vmem:[%s16944_s11 + $0x54] ss:$8 sps:$4 sm:$0xff]   ;;  %v12830_v48 = vld [vmem:[%s16944_s11 + $0x50] ss:$8 sps:$4 sm:$0xff]  }
 0x7de   : > { %v12835_v20 = vld [vmem:[%s16944_s11 + $0x64] ss:$8 sps:$4 sm:$0xff]   ;;  %v12833_v47 = vld [vmem:[%s16944_s11 + $0x60] ss:$8 sps:$4 sm:$0xff]  }
 0x7df   : > { %v11185_v36 = vpack.c.bf16 %v8504_v28, %v8503_v8  ;;  %v12896_v40 = vpop.eup %12895 }
 0x7e0   : > { %v7792_v42 = vadd.f32 1.0, %v12896_v40 }
 0x7e1   : > { %11186 = vmatpush3.bf16.msra.mxu0 %v11185_v36 }
 0x7e2   : > { %12897 = vrcp.f32 %v7792_v42  ;;  %9440 = vmatprep.subr.bf16.mxu0 %v12817_v59  ;;  %v12752_v59 = vld [vmem:[%s16942_s9 + $0x130] ss:$8 sps:$4 sm:$0xff]  }
 0x7e4   : > { %11137 = vmatmul.mubr.msk.f32.vlgmr.msra.gmra.mrb[14].mxu0 %vm7820_vm3, %v16056_v34  ;;  %v12701_v34 = vld [vmem:[%s16942_s9 + $0x20] ss:$8 sps:$4 sm:$0xff]  }
 0x7e5   : > { %11139 = vmatprep.mubr.msk.f32.mxu0 %vm12975_vm1, %v12976_v10  ;;  %9118 = vmatpush1.bf16.msra.mxu1 %v12701_v34 }
 0x7e6   : > { %9119 = vmatprep.subr.bf16.mxu1 %v12706_v6  ;;  %9441 = vmatpush1.bf16.msra.mxu0 %v12815_v19  ;;  %v12850_v19 = vld [vmem:[%s16944_s11 + $0xb4] ss:$8 sps:$4 sm:$0xff]  }
 0x7e7   : > { %9442 = vmatprep.subr.bf16.mxu0 %v12820_v2  ;;  %v12757_v2 = vld [vmem:[%s16942_s9 + $0x144] ss:$8 sps:$4 sm:$0xff]  }
 0x7e8   : > { %11140 = vmatmul.mubr.msk.f32.gmra.mrb[16].mxu0 %vm7820_vm3, %v16071_v25  ;;  %v12704_v25 = vld [vmem:[%s16942_s9 + $0x30] ss:$8 sps:$4 sm:$0xff]  }
 0x7e9   : > { %11142 = vmatprep.mubr.msk.f32.mxu0 %vm12975_vm1, %v12976_v10  ;;  %9120 = vmatpush1.bf16.msra.mxu1 %v12704_v25  ;;  %v12707_v10 = vld [vmem:[%s16942_s9 + $0x40] ss:$8 sps:$4 sm:$0xff]   ;;  %v12838_v25 = vld [vmem:[%s16944_s11 + $0x74] ss:$8 sps:$4 sm:$0xff]  }
 0x7ea   : > { %9121 = vmatprep.subr.bf16.mxu1 %v12709_v57  ;;  %9443 = vmatpush1.bf16.msra.mxu0 %v12818_v60  ;;  %v12848_v60 = vld [vmem:[%s16944_s11 + $0xb0] ss:$8 sps:$4 sm:$0xff]  }
 0x7eb   : > { %9444 = vmatprep.subr.bf16.mxu0 %v12823_v24  ;;  %v12853_v24 = vld [vmem:[%s16944_s11 + $0xc4] ss:$8 sps:$4 sm:$0xff]  }
 0x7ec   : > { %11143 = vmatmul.mubr.msk.f32.gmra.mrb[18].mxu0 %vm7820_vm3, %v16083_v49  ;;  %v12898_v56 = vpop.eup %12897  ;;  %v12712_v49 = vld [vmem:[%s16942_s9 + $0x54] ss:$8 sps:$4 sm:$0xff]  }
 0x7ed   : > { %7796 = vrot.lane.b32.xlu0 %v12898_v56, %s12979_s19  ;;  %9122 = vmatpush1.bf16.msra.mxu1 %v12707_v10 }
 0x7ee   : > { %9123 = vmatprep.subr.bf16.mxu1 %v12712_v49  ;;  %9445 = vmatpush1.bf16.msra.mxu0 %v12821_v27  ;;  %v12755_v27 = vld [vmem:[%s16942_s9 + $0x140] ss:$8 sps:$4 sm:$0xff]  }
 0x7ef   : > { %9446 = vmatprep.subr.bf16.mxu0 %v12826_v12  ;;  %v12760_v12 = vld [vmem:[%s16942_s9 + $0x154] ss:$8 sps:$4 sm:$0xff]  }
 0x7f1   : > { %9124 = vmatpush1.bf16.msra.mxu1 %v12710_v15 }
 0x7f2   : > { %9125 = vmatprep.subr.bf16.mxu1 %v12715_v51  ;;  %9447 = vmatpush1.bf16.msra.mxu0 %v12824_v26  ;;  %v12851_v26 = vld [vmem:[%s16944_s11 + $0xc0] ss:$8 sps:$4 sm:$0xff]  }
 0x7f3   : > { %9448 = vmatprep.subr.bf16.mxu0 %v12829_v16  ;;  %v12856_v16 = vld [vmem:[%s16944_s11 + $0xd4] ss:$8 sps:$4 sm:$0xff]  }
 0x7f5   : > { %9126 = vmatpush1.bf16.msra.mxu1 %v12713_v4  ;;  %v12836_v4 = vld [vmem:[%s16944_s11 + $0x70] ss:$8 sps:$4 sm:$0xff]  }
 0x7f6   : > { %9127 = vmatprep.subr.bf16.mxu1 %v12718_v54  ;;  %9449 = vmatpush1.bf16.msra.mxu0 %v12827_v55  ;;  %v12758_v55 = vld [vmem:[%s16942_s9 + $0x150] ss:$8 sps:$4 sm:$0xff]  }
 0x7f7   : > { %9450 = vmatprep.subr.bf16.mxu0 %v12832_v29  ;;  %v12763_v29 = vld [vmem:[%s16942_s9 + $0x164] ss:$8 sps:$4 sm:$0xff]  }
 0x7f9   : > { %9128 = vmatpush1.bf16.msra.mxu1 %v12716_v33 }
 0x7fa   : > { %9129 = vmatprep.subr.bf16.mxu1 %v12721_v52  ;;  %9451 = vmatpush1.bf16.msra.mxu0 %v12830_v48  ;;  %v12766_v48 = vld [vmem:[%s16942_s9 + $0x174] ss:$8 sps:$4 sm:$0xff]  }
 0x7fb   : > { %9452 = vmatprep.subr.bf16.mxu0 %v12835_v20  ;;  %v12764_v20 = vld [vmem:[%s16942_s9 + $0x170] ss:$8 sps:$4 sm:$0xff]  }
 0x7fd   : > { %9130 = vmatpush1.bf16.msra.mxu1 %v12719_v61 }
 0x7fe   : > { %9131 = vmatprep.subr.bf16.mxu1 %v12724_v45  ;;  %9453 = vmatpush1.bf16.msra.mxu0 %v12833_v47  ;;  %v12841_v45 = vld [vmem:[%s16944_s11 + $0x84] ss:$8 sps:$4 sm:$0xff]   ;;  %v12782_v47 = vld [vmem:[%s16942_s9 + $0x1d0] ss:$8 sps:$4 sm:$0xff]  }
 0x7ff   : > { %9454 = vmatprep.subr.bf16.mxu0 %v12838_v25  ;;  %v12790_v25 = vld [vmem:[%s16942_s9 + $0x1f4] ss:$8 sps:$4 sm:$0xff]  }
 0x801   : > { %9132 = vmatpush1.bf16.msra.mxu1 %v12722_v41 }
 0x802   : > { %9133 = vmatprep.subr.bf16.mxu1 %v12727_v17  ;;  %v12743_v17 = vld [vmem:[%s16942_s9 + $0x100] ss:$8 sps:$4 sm:$0xff]   ;;  %9455 = vmatpush1.bf16.msra.mxu0 %v12836_v4  ;;  %v12799_v4 = vld [vmem:[%s16942_s9 + $0x224] ss:$8 sps:$4 sm:$0xff]  }
 0x803   : > { %9456 = vmatprep.subr.bf16.mxu0 %v12841_v45  ;;  %v12803_v45 = vld [vmem:[%s16942_s9 + $0x240] ss:$8 sps:$4 sm:$0xff]  }
 0x805   : > { %9134 = vmatpush1.bf16.msra.mxu1 %v12725_v5 }
 0x806   : > { %9135 = vmatprep.subr.bf16.mxu1 %v12730_v7 }
 0x809   : > { %9136 = vmatpush1.bf16.msra.mxu1 %v12728_v31 }
 0x80a   : > { %9137 = vmatprep.subr.bf16.mxu1 %v12733_v9  ;;  %v12748_v9 = vld [vmem:[%s16942_s9 + $0x114] ss:$8 sps:$4 sm:$0xff]  }
 0x80d   : > { %9138 = vmatpush1.bf16.msra.mxu1 %v12731_v63  ;;  %v12839_v63 = vld [vmem:[%s16944_s11 + $0x80] ss:$8 sps:$4 sm:$0xff]  }
 0x80e   : > { %9139 = vmatprep.subr.bf16.mxu1 %v12736_v37  ;;  %v12844_v37 = vld [vmem:[%s16944_s11 + $0x94] ss:$8 sps:$4 sm:$0xff]   ;;  %9457 = vmatpush1.bf16.msra.mxu0 %v12839_v63  ;;  %v12812_v63 = vld [vmem:[%s16942_s9 + $0x270] ss:$8 sps:$4 sm:$0xff]  }
 0x80f   : > { %9458 = vmatprep.subr.bf16.mxu0 %v12844_v37  ;;  %v12859_v37 = vld [vmem:[%s16944_s11 + $0xe4] ss:$8 sps:$4 sm:$0xff]  }
 0x811   : > { %9140 = vmatpush1.bf16.msra.mxu1 %v12734_v0  ;;  %v12746_v0 = vld [vmem:[%s16942_s9 + $0x110] ss:$8 sps:$4 sm:$0xff]  }
 0x812   : > { %9141 = vmatprep.subr.bf16.mxu1 %v12739_v58  ;;  %v12842_v58 = vld [vmem:[%s16944_s11 + $0x90] ss:$8 sps:$4 sm:$0xff]  }
 0x813   : > { %9459 = vmatpush1.bf16.msra.mxu0 %v12842_v58  ;;  %v12862_v58 = vld [vmem:[%s16944_s11 + $0xf4] ss:$8 sps:$4 sm:$0xff]  }
 0x815   : > { %9142 = vmatpush1.bf16.msra.mxu1 %v12737_v21  ;;  %v12751_v21 = vld [vmem:[%s16942_s9 + $0x124] ss:$8 sps:$4 sm:$0xff]  }
 0x816   : > { %9143 = vmatprep.subr.bf16.mxu1 %v12742_v18  ;;  %v12749_v18 = vld [vmem:[%s16942_s9 + $0x120] ss:$8 sps:$4 sm:$0xff]  }
 0x819   : > { %9144 = vmatpush1.bf16.msra.mxu1 %v12740_v13  ;;  %v12847_v13 = vld [vmem:[%s16944_s11 + $0xa4] ss:$8 sps:$4 sm:$0xff]  }
 0x81a   : > { %9156 = vmatprep.subr.bf16.mxu1 %v12745_v22  ;;  %v12754_v22 = vld [vmem:[%s16942_s9 + $0x134] ss:$8 sps:$4 sm:$0xff]   ;;  %9460 = vmatprep.subr.bf16.mxu0 %v12847_v13 }
 0x85f   : > { %v7797_v53 = vpop.permute.xlu0 %7796 }
 0x860   : > { %7800 = vst.msk [vmem:[%s519_s22] sm:$0x1] %vm7799_vm15, %v7797_v53  ;;  %v12845_v53 = vld [vmem:[%s16944_s11 + $0xa0] ss:$8 sps:$4 sm:$0xff]   ;;  %s10818_s22 = sshll.u32 %s13086_s5, 4  ;;  %s12981_s5 = smov [#allocation3]  }
 0x861   : > { %9461 = vmatpush1.bf16.msra.mxu0 %v12845_v53  ;;  %v9525_v53 = vld [vmem:[%s16945_s12 + $0x98] sm:$0xff]  ;;  %s16891_s24 = scalar_lea.hbm %s16948_s15, %s10818_s22  ;;  %s12911_s25 = sshll.u32 %s12981_s5, 4  ;;  %s12912_s25 = int_to_ptr.vmem [resolvable:$false] %s12911_s25 }
 0x862   : > { %9462 = vmatprep.subr.bf16.mxu0 %v12850_v19  ;;  %s12913_s16 = scalar_lea.vmem %s12912_s25, 32  ;;  %p12914_p0 = scmp.lt.s32.totalorder %s16893_s18, %s12912_s25 }
 0x863   : > { %p12915_p1 = scmp.lt.s32.totalorder %s12913_s16, %s12907_s30 }
 0x865   : > { %9463 = vmatpush1.bf16.msra.mxu0 %v12848_v60  ;;  %v9509_v60 = vld [vmem:[%s16945_s12 + $0x18] sm:$0xff]  ;;  %p12916_p2 = por %p12915_p1, %p12914_p0 }
 0x866   : > { %9464 = vmatprep.subr.bf16.mxu0 %v12853_v24  ;;  %v9526_v24 = vld [vmem:[%s16945_s12 + $0xa0] sm:$0xff] }
 0x867   : > { %p12917_p3 = pnand %p12916_p2, %p12910_p13 }
 0x869   : > { %9465 = vmatpush1.bf16.msra.mxu0 %v12851_v26 }
 0x86a   : > { %9466 = vmatprep.subr.bf16.mxu0 %v12856_v16  ;;  %v9510_v16 = vld [vmem:[%s16945_s12 + $0x20] sm:$0xff] }
 0x8b7   : > { %v8571_v30 = vpop.f32.mrb[14].mxu0 }
 0x8b8   : > { %v11138_v50 = vpop.f32.mrb[15].mxu0  ;;  %v8588_v23 = vrot.slane %v8571_v30, 1  ;;  %v8595_v32 = vrot.slane %v8571_v30, 2  ;;  %v8602_v35 = vrot.slane %v8571_v30, 3  ;;  %v8609_v38 = vrot.slane %v8571_v30, 4 }
 0x8b9   : > { %v12761_v50 = vld [vmem:[%s16942_s9 + $0x160] ss:$8 sps:$4 sm:$0xff]  }
 0x8bb   : > { %v8576_v8 = vpop.f32.mrb[16].mxu0 }
 0x8bc   : > { %v8589_v28 = vrot.slane %v8576_v8, 1  ;;  %v8596_v36 = vrot.slane %v8576_v8, 2  ;;  %v8603_v40 = vrot.slane %v8576_v8, 3  ;;  %v8610_v42 = vrot.slane %v8576_v8, 4  ;;  %v11141_v43 = vpop.f32.mrb[17].mxu0 }
 0x8bd   : > { %v8616_v46 = vpack.c.bf16 %v8576_v8, %v8571_v30  ;;  %v12854_v30 = vld [vmem:[%s16944_s11 + $0xd0] ss:$8 sps:$4 sm:$0xff]   ;;  %v12775_v8 = vld [vmem:[%s16942_s9 + $0x1a4] ss:$8 sps:$4 sm:$0xff]   ;;  %v12779_v43 = vld [vmem:[%s16942_s9 + $0x1c0] ss:$8 sps:$4 sm:$0xff]  }
 0x8be   : > { %v8590_v62 = vsel %vm7931_vm6, %v8588_v23, %v8589_v28  ;;  %v8604_v3 = vsel %vm7947_vm7, %v8602_v35, %v8603_v40  ;;  %v16553_v34 = vsel %vm7939_vm8, %v8595_v32, %v8596_v36  ;;  %v16556_v6 = vsel %vm7955_vm9, %v8609_v38, %v8610_v42  ;;  %9467 = vmatpush1.bf16.msra.mxu0 %v12854_v30  ;;  %v12769_v23 = vld [vmem:[%s16942_s9 + $0x184] ss:$8 sps:$4 sm:$0xff]   ;;  %v12767_v32 = vld [vmem:[%s16942_s9 + $0x180] ss:$8 sps:$4 sm:$0xff]   ;;  %v12772_v35 = vld [vmem:[%s16942_s9 + $0x194] ss:$8 sps:$4 sm:$0xff]  }
 0x8bf   : > { %v8581_v56 = vpop.f32.mrb[18].mxu0  ;;  %v12770_v38 = vld [vmem:[%s16942_s9 + $0x190] ss:$8 sps:$4 sm:$0xff]   ;;  %9468 = vmatprep.subr.bf16.mxu0 %v12859_v37 }
 0x8c0   : > { %v8591_v57 = vrot.slane %v8581_v56, 1  ;;  %v8598_v10 = vrot.slane %v8581_v56, 2  ;;  %v8605_v49 = vrot.slane %v8581_v56, 3  ;;  %v8612_v15 = vrot.slane %v8581_v56, 4  ;;  %v11144_v51 = vpop.f32.mrb[19].mxu0  ;;  %v9529_v30 = vld [vmem:[%s16945_s12 + $0xb8] sm:$0xff] }
 0x8c1   : > { %v12788_v56 = vld [vmem:[%s16942_s9 + $0x1f0] ss:$8 sps:$4 sm:$0xff]   ;;  %v12980_v51 = vmov 0  }
 0x8c2   : > { %v8592_v54 = vsel %vm7931_vm6, %v8589_v28, %v8591_v57  ;;  %v8606_v33 = vsel %vm7947_vm7, %v8603_v40, %v8605_v49  ;;  %v16567_v52 = vsel %vm7939_vm8, %v8596_v36, %v8598_v10  ;;  %v16570_v61 = vsel %vm7955_vm9, %v8610_v42, %v8612_v15  ;;  %v12773_v28 = vld [vmem:[%s16942_s9 + $0x1a0] ss:$8 sps:$4 sm:$0xff]   ;;  %v12778_v36 = vld [vmem:[%s16942_s9 + $0x1b4] ss:$8 sps:$4 sm:$0xff]   ;;  %v12776_v40 = vld [vmem:[%s16942_s9 + $0x1b0] ss:$8 sps:$4 sm:$0xff]  }
 0x8c3   : > { %v8617_v41 = vpack.c.bf16 %v8592_v54, %v8590_v62  ;;  %v8619_v5 = vpack.c.bf16 %v8606_v33, %v8604_v3  ;;  %v8618_v7 = vpack.c.bf16 %v16567_v52, %v16553_v34  ;;  %v8620_v31 = vpack.c.bf16 %v16570_v61, %v16556_v6  ;;  %v12781_v42 = vld [vmem:[%s16942_s9 + $0x1c4] ss:$8 sps:$4 sm:$0xff]   ;;  %v12785_v3 = vld [vmem:[%s16942_s9 + $0x1e0] ss:$8 sps:$4 sm:$0xff]   ;;  %v12796_v49 = vld [vmem:[%s16942_s9 + $0x214] ss:$8 sps:$4 sm:$0xff]  }
 0x8c4   : > { %v12787_v62 = vld [vmem:[%s16942_s9 + $0x1e4] ss:$8 sps:$4 sm:$0xff]   ;;  %v12791_v10 = vld [vmem:[%s16942_s9 + $0x200] ss:$8 sps:$4 sm:$0xff]   ;;  %v12794_v15 = vld [vmem:[%s16942_s9 + $0x210] ss:$8 sps:$4 sm:$0xff]  }
 0x8c5   : > { %9145 = vmatprep.mubr.bf16.mxu1 %v8617_v41  ;;  %v12793_v57 = vld [vmem:[%s16942_s9 + $0x204] ss:$8 sps:$4 sm:$0xff]   ;;  %v12797_v54 = vld [vmem:[%s16942_s9 + $0x220] ss:$8 sps:$4 sm:$0xff]   ;;  %v12802_v34 = vld [vmem:[%s16942_s9 + $0x234] ss:$8 sps:$4 sm:$0xff]  }
 0x8c6   : > { %9146 = vmatmul.mubr.bf16.vlgmr.msra.gmra.mrb[52].mxu1 %v8616_v46  ;;  %v12784_v46 = vld [vmem:[%s16942_s9 + $0x1d4] ss:$8 sps:$4 sm:$0xff]   ;;  %v12800_v33 = vld [vmem:[%s16942_s9 + $0x230] ss:$8 sps:$4 sm:$0xff]   ;;  %v12805_v52 = vld [vmem:[%s16942_s9 + $0x244] ss:$8 sps:$4 sm:$0xff]  }
 0x8c7   : > { %9157 = vmatpush1.bf16.msra.mxu1 %v12743_v17  ;;  %9188 = vmatprep.mubr.bf16.mxu1 %v8619_v5  ;;  %v12808_v41 = vld [vmem:[%s16942_s9 + $0x254] ss:$8 sps:$4 sm:$0xff]   ;;  %v12806_v17 = vld [vmem:[%s16942_s9 + $0x250] ss:$8 sps:$4 sm:$0xff]   ;;  %v12811_v5 = vld [vmem:[%s16942_s9 + $0x264] ss:$8 sps:$4 sm:$0xff]  }
 0x8c8   : > { %9158 = vmatprep.subr.bf16.mxu1 %v12748_v9  ;;  %v12814_v9 = vld [vmem:[%s16942_s9 + $0x274] ss:$8 sps:$4 sm:$0xff]   ;;  %v9522_v6 = vld [vmem:[%s16945_s12 + $0x80] sm:$0xff]  ;;  %v9523_v61 = vld [vmem:[%s16945_s12 + $0x88] sm:$0xff] }
 0x8c9   : > { %v11187_v13 = vpack.c.bf16 %v9523_v61, %v9522_v6 }
 0x8cb   : > { %9159 = vmatpush1.bf16.msra.mxu1 %v12746_v0  ;;  %v12857_v0 = vld [vmem:[%s16944_s11 + $0xe0] ss:$8 sps:$4 sm:$0xff]  }
 0x8cc   : > { %9160 = vmatprep.subr.bf16.mxu1 %v12751_v21  ;;  %9469 = vmatpush1.bf16.msra.mxu0 %v12857_v0  ;;  %v12860_v21 = vld [vmem:[%s16944_s11 + $0xf0] ss:$8 sps:$4 sm:$0xff]  }
 0x8cd   : > { %9470 = vmatprep.subr.bf16.mxu0 %v12862_v58 }
 0x8cf   : > { %9161 = vmatpush1.bf16.msra.mxu1 %v12749_v18  ;;  %v9507_v18 = vld [vmem:[%s16945_s12 + $0x8] sm:$0xff] }
 0x8d0   : > { %9162 = vmatprep.subr.bf16.mxu1 %v12754_v22  ;;  %9471 = vmatpush1.bf16.msra.mxu0 %v12860_v21  ;;  %v9524_v22 = vld [vmem:[%s16945_s12 + $0x90] sm:$0xff] }
 0x8d3   : > { %9163 = vmatpush1.bf16.msra.mxu1 %v12752_v59  ;;  %v11191_v59 = vpack.c.bf16 %v9525_v53, %v9524_v22  ;;  %v9491_v22 = vadd.s32 1, %v16043_v14  ;;  %v9483_v53 = vadd.s32 128, %v16037_v11 }
 0x8d4   : > { %9164 = vmatprep.subr.bf16.mxu1 %v12757_v2  ;;  %v9508_v2 = vld [vmem:[%s16945_s12 + $0x10] sm:$0xff] }
 0x8d7   : > { %9165 = vmatpush1.bf16.msra.mxu1 %v12755_v27  ;;  %v9527_v27 = vld [vmem:[%s16945_s12 + $0xa8] sm:$0xff] }
 0x8d8   : > { %9166 = vmatprep.subr.bf16.mxu1 %v12760_v12  ;;  %v11193_v12 = vpack.c.bf16 %v9509_v60, %v9508_v2  ;;  %v11195_v26 = vpack.c.bf16 %v9527_v27, %v9526_v24  ;;  %v9485_v2 = vmul.u32 16, %v16043_v14  ;;  %v9493_v60 = vmul.u32 16, %v9491_v22 }
 0x8da   : > { %vm9489_vm5 = vcmp.ge.s32.totalorder %v9483_v53, %v9485_v2  ;;  %vm9497_vm6 = vcmp.lt.s32.totalorder %v9483_v53, %v9493_v60  ;;  %vm9488_vm10 = vcmp.ge.s32.totalorder %v16037_v11, %v9485_v2  ;;  %vm9496_vm11 = vcmp.lt.s32.totalorder %v16037_v11, %v9493_v60 }
 0x8db   : > { %9167 = vmatpush1.bf16.msra.mxu1 %v12758_v55  ;;  %v9511_v55 = vld [vmem:[%s16945_s12 + $0x28] sm:$0xff]  ;;  %vm9501_vm9 = vmand %vm9489_vm5, %vm9497_vm6 }
 0x8dc   : > { %9168 = vmatprep.subr.bf16.mxu1 %v12763_v29  ;;  %v9528_v29 = vld [vmem:[%s16945_s12 + $0xb0] sm:$0xff]  ;;  %vm9500_vm12 = vmand %vm9488_vm10, %vm9496_vm11 }
 0x8df   : > { %9169 = vmatpush1.bf16.msra.mxu1 %v12761_v50  ;;  %v11197_v50 = vpack.c.bf16 %v9511_v55, %v9510_v16 }
 0x8e0   : > { %9170 = vmatprep.subr.bf16.mxu1 %v12766_v48  ;;  %v11199_v48 = vpack.c.bf16 %v9529_v30, %v9528_v29 }
 0x8e3   : > { %9171 = vmatpush1.bf16.msra.mxu1 %v12764_v20  ;;  %v9512_v20 = vld [vmem:[%s16945_s12 + $0x30] sm:$0xff] }
 0x8e4   : > { %9172 = vmatprep.subr.bf16.mxu1 %v12769_v23  ;;  %v9513_v23 = vld [vmem:[%s16945_s12 + $0x38] sm:$0xff] }
 0x8e7   : > { %9173 = vmatpush1.bf16.msra.mxu1 %v12767_v32  ;;  %v9530_v32 = vld [vmem:[%s16945_s12 + $0xc0] sm:$0xff] }
 0x8e8   : > { %9174 = vmatprep.subr.bf16.mxu1 %v12772_v35  ;;  %v9531_v35 = vld [vmem:[%s16945_s12 + $0xc8] sm:$0xff] }
 0x8eb   : > { %9175 = vmatpush1.bf16.msra.mxu1 %v12770_v38  ;;  %v11201_v38 = vpack.c.bf16 %v9513_v23, %v9512_v20 }
 0x8ec   : > { %9176 = vmatprep.subr.bf16.mxu1 %v12775_v8  ;;  %v11203_v8 = vpack.c.bf16 %v9531_v35, %v9530_v32 }
 0x8ef   : > { %9177 = vmatpush1.bf16.msra.mxu1 %v12773_v28  ;;  %v9514_v28 = vld [vmem:[%s16945_s12 + $0x40] sm:$0xff] }
 0x8f0   : > { %9178 = vmatprep.subr.bf16.mxu1 %v12778_v36  ;;  %v9515_v36 = vld [vmem:[%s16945_s12 + $0x48] sm:$0xff] }
 0x8f3   : > { %9179 = vmatpush1.bf16.msra.mxu1 %v12776_v40  ;;  %v9532_v40 = vld [vmem:[%s16945_s12 + $0xd0] sm:$0xff] }
 0x8f4   : > { %9180 = vmatprep.subr.bf16.mxu1 %v12781_v42  ;;  %v9533_v42 = vld [vmem:[%s16945_s12 + $0xd8] sm:$0xff] }
 0x8f7   : > { %9181 = vmatpush1.bf16.msra.mxu1 %v12779_v43  ;;  %v11205_v43 = vpack.c.bf16 %v9515_v36, %v9514_v28 }
 0x8f8   : > { %9182 = vmatprep.subr.bf16.mxu1 %v12784_v46  ;;  %v11207_v46 = vpack.c.bf16 %v9533_v42, %v9532_v40 }
 0x8fb   : > { %9183 = vmatpush1.bf16.msra.mxu1 %v12782_v47  ;;  %v9516_v47 = vld [vmem:[%s16945_s12 + $0x50] sm:$0xff] }
 0x8fc   : > { %9184 = vmatprep.subr.bf16.mxu1 %v12787_v62  ;;  %v9517_v62 = vld [vmem:[%s16945_s12 + $0x58] sm:$0xff] }
 0x8ff   : > { %9185 = vmatpush1.bf16.msra.mxu1 %v12785_v3  ;;  %v9534_v3 = vld [vmem:[%s16945_s12 + $0xe0] sm:$0xff] }
 0x900   : > { %9186 = vmatprep.subr.bf16.mxu1 %v12790_v25  ;;  %v9535_v25 = vld [vmem:[%s16945_s12 + $0xe8] sm:$0xff] }
 0x903   : > { %9187 = vmatpush1.bf16.msra.mxu1 %v12788_v56  ;;  %v11209_v56 = vpack.c.bf16 %v9517_v62, %v9516_v47 }
 0x904   : > { %9199 = vmatprep.subr.bf16.mxu1 %v12793_v57  ;;  %v11211_v57 = vpack.c.bf16 %v9535_v25, %v9534_v3 }
 0x906   : > { %9189 = vmatmul.mubr.bf16.vlgmr.msra.gmra.mrb[52].mxu1 %v8618_v7  ;;  %v12809_v7 = vld [vmem:[%s16942_s9 + $0x260] ss:$8 sps:$4 sm:$0xff]  }
 0x907   : > { %9200 = vmatpush1.bf16.msra.mxu1 %v12791_v10  ;;  %9231 = vmatprep.mubr.bf16.mxu1 %v12980_v51  ;;  %v9518_v10 = vld [vmem:[%s16945_s12 + $0x60] sm:$0xff]  ;;  %v9537_v51 = vld [vmem:[%s16945_s12 + $0xf8] sm:$0xff] }
 0x908   : > { %9201 = vmatprep.subr.bf16.mxu1 %v12796_v49  ;;  %v9519_v49 = vld [vmem:[%s16945_s12 + $0x68] sm:$0xff] }
 0x90b   : > { %9202 = vmatpush1.bf16.msra.mxu1 %v12794_v15  ;;  %v9536_v15 = vld [vmem:[%s16945_s12 + $0xf0] sm:$0xff] }
 0x90c   : > { %9203 = vmatprep.subr.bf16.mxu1 %v12799_v4  ;;  %v11213_v4 = vpack.c.bf16 %v9519_v49, %v9518_v10 }
 0x90f   : > { %9204 = vmatpush1.bf16.msra.mxu1 %v12797_v54  ;;  %v11215_v54 = vpack.c.bf16 %v9537_v51, %v9536_v15 }
 0x910   : > { %9205 = vmatprep.subr.bf16.mxu1 %v12802_v34  ;;  %v8701_v34 = vld [vmem:[%s16943_s10] sm:$0x3] }
 0x913   : > { %9206 = vmatpush1.bf16.msra.mxu1 %v12800_v33  ;;  %v8706_v33 = vrot.slane %v8701_v34, %v13315_v1  ;;  %v9521_v1 = vld [vmem:[%s16945_s12 + $0x78] sm:$0xff] }
 0x914   : > { %9207 = vmatprep.subr.bf16.mxu1 %v12805_v52  ;;  %v8710_v52 = vrot.slane %v8701_v34, %v13252_v44  ;;  %v9520_v44 = vld [vmem:[%s16945_s12 + $0x70] sm:$0xff] }
 0x917   : > { %9208 = vmatpush1.bf16.msra.mxu1 %v12803_v45 }
 0x918   : > { %9209 = vmatprep.subr.bf16.mxu1 %v12808_v41 }
 0x91b   : > { %9210 = vmatpush1.bf16.msra.mxu1 %v12806_v17 }
 0x91c   : > { %9211 = vmatprep.subr.bf16.mxu1 %v12811_v5 }
 0x91f   : > { %9212 = vmatpush1.bf16.msra.mxu1 %v12809_v7 }
 0x920   : > { %9213 = vmatprep.subr.bf16.mxu1 %v12814_v9 }
 0x923   : > { %9214 = vmatpush1.bf16.msra.mxu1 %v12812_v63 }
 0x924   : > { %11188 = vmatprep.subr.bf16.mxu1 %v11187_v13  ;;  %v11217_v13 = vpack.c.bf16 %v9521_v1, %v9520_v44 }
 0x926   : > { %9232 = vmatmul.mubr.bf16.vlgmr.msra.gmra.mrb[52].mxu1 %v8620_v31  ;;  %v9506_v31 = vld [vmem:[%s16945_s12] sm:$0xff] }
 0x927   : > { %v11189_v19 = vpack.c.bf16 %v9507_v18, %v9506_v31  ;;  %v9490_v18 = vadd.s32 1, %v13229_v39 }
 0x929   : > { %11190 = vmatpush3.bf16.msra.mxu1 %v11189_v19  ;;  %v9484_v19 = vmul.u32 16, %v13229_v39 }
 0x92a   : > { %11192 = vmatprep.subr.bf16.mxu1 %v11191_v59  ;;  %v9492_v59 = vmul.u32 16, %v9490_v18 }
 0x92b   : > { %vm9487_vm0 = vcmp.ge.s32.totalorder %v9483_v53, %v9484_v19  ;;  %vm9486_vm2 = vcmp.ge.s32.totalorder %v16037_v11, %v9484_v19 }
 0x92c   : > { %vm9495_vm1 = vcmp.lt.s32.totalorder %v9483_v53, %v9492_v59  ;;  %vm9494_vm4 = vcmp.lt.s32.totalorder %v16037_v11, %v9492_v59 }
 0x92d   : > { %11194 = vmatpush3.bf16.msra.mxu1 %v11193_v12  ;;  %vm9499_vm7 = vmand %vm9487_vm0, %vm9495_vm1 }
 0x92e   : > { %11196 = vmatprep.subr.bf16.mxu1 %v11195_v26  ;;  %vm9498_vm8 = vmand %vm9486_vm2, %vm9494_vm4 }
 0x931   : > { %11198 = vmatpush3.bf16.msra.mxu1 %v11197_v50 }
 0x932   : > { %11200 = vmatprep.subr.bf16.mxu1 %v11199_v48 }
 0x935   : > { %11202 = vmatpush3.bf16.msra.mxu1 %v11201_v38 }
 0x936   : > { %11204 = vmatprep.subr.bf16.mxu1 %v11203_v8  ;;  %v9622_v8 = vld [vmem:[%s16946_s13] sm:$0x1] }
 0x939   : > { %11206 = vmatpush3.bf16.msra.mxu1 %v11205_v43 }
 0x93a   : > { %11208 = vmatprep.subr.bf16.mxu1 %v11207_v46 }
 0x93d   : > { %11210 = vmatpush3.bf16.msra.mxu1 %v11209_v56 }
 0x93e   : > { %11212 = vmatprep.subr.bf16.mxu1 %v11211_v57 }
 0x941   : > { %11214 = vmatpush3.bf16.msra.mxu1 %v11213_v4 }
 0x942   : > { %11216 = vmatprep.subr.bf16.mxu1 %v11215_v54 }
 0x945   : > { %11218 = vmatpush3.bf16.msra.mxu1 %v11217_v13 }
 0x9f9   : > { %v9233_v45 = vpop.f32.mrb[52].mxu1 }
 0x9fa   : > { %v11225_v41 = vadd.f32 %v9233_v45, %v8706_v33  ;;  %v9235_v17 = vpop.f32.mrb[53].mxu1 }
 0x9fb   : > { %v11226_v5 = vadd.f32 %v9235_v17, %v8710_v52  ;;  %v9237_v7 = vpop.f32.mrb[54].mxu1 }
 0x9fc   : > { %v11227_v9 = vadd.f32 %v9237_v7, %v8706_v33  ;;  %v9239_v63 = vpop.f32.mrb[55].mxu1  ;;  %v9242_v0 = vmax.f32 %v11225_v41, 0.0 }
 0x9fd   : > { %v11228_v37 = vadd.f32 %v9239_v63, %v8710_v52  ;;  %v9243_v58 = vmax.f32 %v11226_v5, 0.0 }
 0x9fe   : > { %v9244_v21 = vmax.f32 %v11227_v9, 0.0 }
 0x9ff   : > { %v9245_v6 = vmax.f32 %v11228_v37, 0.0 }
 0xa00   : > { %v9246_v61 = vpack.c.bf16 %v9244_v21, %v9242_v0 }
 0xa01   : > { %v9247_v31 = vpack.c.bf16 %v9245_v6, %v9243_v58 }
 0xa03   : > { %9472 = vmatprep.mubr.bf16.mxu0 %v9247_v31 }
 0xa04   : > { %9473 = vmatmul.mubr.bf16.vlgmr.msra.gmra.mrb[20].mxu0 %v9246_v61 }
 0xad7   : > { %v9474_v24 = vpop.f32.mrb[20].mxu0 }
 0xad8   : > { %v9476_v27 = vpop.f32.mrb[21].mxu0 }
 0xad9   : > { %v9478_v39 = vpop.f32.mrb[22].mxu0  ;;  %10813 = vmatprep.mubr.msk.f32.mxu1 %vm9499_vm7, %v9476_v27 }
 0xada   : > { %v9480_v14 = vpop.f32.mrb[23].mxu0  ;;  %10814 = vmatmul.mubr.msk.f32.vlgmr.msra.gmra.mrb[38].mxu1 %vm9498_vm8, %v9474_v24 }
 0xadb   : > { %10815 = vmatprep.mubr.msk.f32.mxu1 %vm9501_vm9, %v9480_v14 }
 0xade   : > { %10816 = vmatmul.mubr.msk.f32.gmra.mrb[56].mxu1 %vm9500_vm12, %v9478_v39 }
 0xbad   : > { %v11093_v12 = vpop.f32.mrb[38].mxu1 }
 0xbae   : > { %v11094_v26 = vpop.f32.mrb[39].mxu1 }
 0xbaf   : > { %v11095_v16 = vadd.f32 %v11094_v26, %v11093_v12 }
 0xbb1   : > { %v11096_v55 = vpop.f32.mrb[56].mxu1  ;;  %v9613_v50 = vsel %vm7820_vm3, %v11095_v16, 0.0 }
 0xbb2   : > { %v11097_v29 = vpop.f32.mrb[57].mxu1 }
 0xbb3   : > { %v11098_v30 = vadd.f32 %v11097_v29, %v11096_v55 }
 0xbb5   : > { %v9614_v48 = vsel %vm7820_vm3, %v11098_v30, 0.0  ;;  %vm9630_vm3 = vcmask 122880  }
 0xbb6   : > { %v9615_v11 = vadd.f32 %v9614_v48, %v9613_v50 }
 0xbb8   : > { %v9616_v20 = vrot.slane %v9615_v11, 4 }
 0xbba   : > { %v9617_v23 = vadd.f32 %v9616_v20, %v9615_v11 }
 0xbbc   : > { %v9618_v32 = vrot.slane %v9617_v23, 2 }
 0xbbe   : > { %v9619_v35 = vadd.f32 %v9618_v32, %v9617_v23 }
 0xbc0   : > { %v9620_v38 = vrot.slane %v9619_v35, 1 }
 0xbc2   : > { %v9621_v28 = vadd.f32 %v9620_v38, %v9619_v35 }
 0xbc4   : > { %v9623_v36 = vadd.f32 %v9622_v8, %v9621_v28 }
 0xbc6   : > { %v10817_v40 = vmul.f32 -1.442695, %v9623_v36 }
 0xbc8   : > { %12899 = vpow2.f32 %v10817_v40 }
 0xbd2   : > { %v12900_v42 = vpop.eup %12899 }
 0xbd3   : > { %v9627_v43 = vadd.f32 1.0, %v12900_v42 }
 0xbd5   : > { %12901 = vrcp.f32 %v9627_v43 }
 0xbdf   : > { %v12902_v46 = vpop.eup %12901 }
 0xbe0   : > { %9631 = vst.msk [vmem:[%s507_s17] sm:$0x1] %vm9630_vm3, %v12902_v46 }
 0xbe1   : > { %12920 = shalt.err (!%p12917_p3)
}
 0xbe2   : > { %s12921_s26 = scalar_lea.hbm %s16891_s24, 16  ;;  %s12925_s17 = scalar_lea.hbm %s16948_s15, 32 }
 0xbe3   : > { %p12922_p4 = scmp.ne.s32.totalorder %s16891_s24, %s12921_s26  ;;  %p12926_p9 = scmp.lt.u32.totalorder %s16891_s24, %s16948_s15 }
 0xbe4   : > { %p12927_p10 = scmp.lt.u32.totalorder %s12925_s17, %s12921_s26  ;;  %p12929_p12 = scmp.lt.u32.totalorder %s12921_s26, %s16891_s24 }
 0xbe5   : > { %p12923_p7 = pnand %p12922_p4, %p13103_p5 }
 0xbe6   : > { %p12928_p11 = por %p12927_p10, %p12926_p9 }
 0xbe7   : > { %p12924_p8 = pneg %p12923_p7 }
 0xbe8   : > { %p12930_p13 = por %p12929_p12, %p12928_p11 }
 0xbea   : > { %p12931_p0 = pnand %p12930_p13, %p12924_p8 }
 0xbec   : > { %12934 = shalt.err (!%p12931_p0)
}
 0xbed   : > { %11321 = dma.vmem_to_hbm [thread:$0]  (%p13103_p5), %s16893_s18, 16, %s16891_s24, %s9636_s28  }
 0xbee PF: > { %p11327_p1 = scmp.ge.s32.totalorder %s12969_s23, 2  ;;  %s9669_s5 = sand.u32 1, %s12957_s20  }
 0xbef   : > { %s9670_s25 = scalar_lea.sflag [#allocation4], %s9669_s5 }
 0xbf0   : > { %p11324_p2 = pnand %p11327_p1, %p13107_p6 }
 0xbf2   : > { %12952 = dma.done.wait (!%p11324_p2), %s9670_s25, 16  }
 0xbf3   : > { %12954 = vsyncadd (!%p11324_p2), %s9670_s25, 4294967280  ;;  %s16966_s23 = sld [smem:[#allocation7_spill]]  ;;  %s16967_s16 = sld [smem:[#allocation6_spill]] }
 0xbf4   : > { %s16968_s22 = sld [smem:[#allocation8_spill]]  ;;  %s16969_s20 = smov %s12961_s21 }
 0xbf9   : > { %p28_p3 = scmp.ge.s32.totalorder %s16966_s23, 4   ;;  %s16970_s21 = smov %s16967_s16 }
 0xbfb   :  { %30 = sbr.rel (!%p28_p3) target bundleno = 6 (0x6), region = 126 }
 0xc02   :  { %9674 = vsyncpa [#allocation4], 1 }
 0xc03   :  { %9676 = vsyncpa [#allocation4 + $0x1], 1 }

</bundles_post_ra>
